<compile_context>
chip_gen: v6e
topology: v6e:2x2x1
jax: 0.10.0
libtpu: 0.0.40
codegen_flags: <defaults>
</compile_context>

<pallas_src>
import functools

import jax
import jax.numpy as jnp
import numpy as np
from jax import lax
from jax.experimental import pallas as pl
from jax.experimental.pallas import tpu as pltpu


# ----------------------------------------------------------------------------
# In-kernel building blocks (activations live as flat (H*W, C) f32 in VMEM)
# ----------------------------------------------------------------------------
def _matmul(a, w, b, relu):
    """a @ w + b with f32 accumulation; operands cast to the weight dtype."""
    y = jnp.dot(a.astype(w.dtype), w, preferred_element_type=jnp.float32) + b
    return jnp.maximum(y, 0.0) if relu else y


def _conv3x3(a, H, W, w_flat, b, relu, stride):
    """3x3 conv (pad 1, stride 1 or 2) on one batch element.

    a      : (H*W, Cin) f32
    w_flat : (9*Cin, Cout)  HWIO weights flattened tap-major / channel-minor
    b      : (1, Cout) f32
    Returns (Ho*Wo, Cout) f32.
    """
    C = a.shape[-1]
    x3 = a.reshape(H, W, C)
    # True 2-D zero halo (no validity mask, no wrap-around).
    zr = jnp.zeros((1, W, C), a.dtype)
    xp = jnp.concatenate([zr, x3, zr], axis=0)            # (H+2, W, C)
    zc = jnp.zeros((H + 2, 1, C), a.dtype)
    xp = jnp.concatenate([zc, xp, zc], axis=1)            # (H+2, W+2, C)
    taps = [xp[dh:dh + H, dw:dw + W, :] for dh in range(3) for dw in range(3)]
    p = jnp.concatenate(taps, axis=-1)                    # (H, W, 9*Cin)
    if stride == 2:
        Ho, Wo = H // 2, W // 2
        # Lane-preserving even-row / even-col selection (no selector matmul,
        # no strided slice): split a leading / the sublane dim and slice.
        p = p.reshape(Ho, 2, W, 9 * C)[:, 0]              # even rows
        p = p.reshape(Ho, Wo, 2, 9 * C)[:, :, 0, :]       # even cols
    else:
        Ho, Wo = H, W
    p2 = p.reshape(Ho * Wo, 9 * C)
    return _matmul(p2, w_flat, b, relu)


def _nonlocal(a, w_tpg, b_tpg, w_m, b_m, Ci):
    """Embedded-Gaussian non-local block on one batch element (a: (HW, C))."""
    # theta / phi / g fused into one (C, 3*Ci) projection matmul.
    tpg = _matmul(a, w_tpg, b_tpg, relu=False)            # (HW, 3*Ci) f32
    th = tpg[:, 0 * Ci:1 * Ci]
    ph = tpg[:, 1 * Ci:2 * Ci]
    g = tpg[:, 2 * Ci:3 * Ci]
    # scores = theta @ phi^T  (contract the channel dims of both operands)
    s = lax.dot_general(th.astype(w_tpg.dtype), ph.astype(w_tpg.dtype),
                        (((1,), (1,)), ((), ())),
                        preferred_element_type=jnp.float32)       # (HW, HW)
    # Softmax kept entirely in f32 (numerics; EUP exp + approx reciprocal).
    s = s - jnp.max(s, axis=-1, keepdims=True)
    e = jnp.exp(s)
    d = jnp.sum(e, axis=-1, keepdims=True)
    r = pl.reciprocal(d, approx=True)                     # EUP slot
    r = r * (2.0 - d * r)                                 # one Newton step
    # Denominator applied AFTER the PV matmul: (HW, Ci) scale, not (HW, HW).
    y = jnp.dot(e.astype(w_tpg.dtype), g.astype(w_tpg.dtype),
                preferred_element_type=jnp.float32) * r           # (HW, Ci)
    m = _matmul(y, w_m, b_m, relu=False)                  # (HW, C)
    return a + m
    # TODO(synk): flash-style blocked attention (query tiles, online softmax
    #             over key tiles) once HW exceeds ~2K so scores fit VMEM.


def _encoder_kernel(*refs, plan, flat_out):
    """Fused encoder forward for one batch element (grid=(N,))."""
    x_ref, t, o_ref = refs[0], refs[1:-1], refs[-1]
    a = x_ref[0].astype(jnp.float32)                      # (H*W, 9*Cin) patches
    for op, cfg in plan:
        if op == "mm":                                    # 1x1 conv / input conv
            a = _matmul(a, t[cfg["w"]][...], t[cfg["b"]][...], cfg["relu"])
        elif op == "conv3":
            a = _conv3x3(a, cfg["H"], cfg["W"], t[cfg["w"]][...],
                         t[cfg["b"]][...], cfg["relu"], cfg["stride"])
        elif op == "res":
            h1 = _conv3x3(a, cfg["H"], cfg["W"], t[cfg["w1"]][...],
                          t[cfg["b1"]][...], True, 1)
            h2 = _conv3x3(h1, cfg["H"], cfg["W"], t[cfg["w2"]][...],
                          t[cfg["b2"]][...], False, 1)
            a = a + h2
        else:  # "nl"
            a = _nonlocal(a, t[cfg["wtpg"]][...], t[cfg["btpg"]][...],
                          t[cfg["wm"]][...], t[cfg["bm"]][...], cfg["Ci"])
    if flat_out:
        o_ref[0] = a.reshape(1, -1).astype(o_ref.dtype)   # lane-dense slab
    else:
        o_ref[0] = a.astype(o_ref.dtype)


# ----------------------------------------------------------------------------
# Wrapper: flatten params into (tensor list, static plan) and call Pallas once
# ----------------------------------------------------------------------------
def encoder_forward_pallas(x_nchw, params, args, *, matmul_dtype=jnp.float32,
                           flatten_out=True, single_buffer_weights=True):
    N, Cin, H, W = x_nchw.shape

    # Lane-dense input: im2col the FIRST conv on the host (cheap XLA ops), so
    # the kernel's first op is a plain matmul on a (H*W, 9*Cin) operand.
    x_nhwc = jnp.transpose(x_nchw, (0, 2, 3, 1))
    xpad = jnp.pad(x_nhwc, ((0, 0), (1, 1), (1, 1), (0, 0)))
    taps = [xpad[:, dh:dh + H, dw:dw + W, :]
            for dh in range(3) for dw in range(3)]
    patches0 = jnp.concatenate(taps, axis=-1).reshape(N, H * W, 9 * Cin)

    tensors, plan = [], []
    h_, w_, c_ = H, W, Cin
    peak_ws = 0                                           # per-layer VMEM estimate

    def push(arr, dtype):
        tensors.append(jnp.asarray(arr, dtype))
        return len(tensors) - 1

    def note_ws(nbytes):
        nonlocal peak_ws
        peak_ws = max(peak_ws, nbytes)

    def add_mm(wt, bt, relu):
        nonlocal c_
        cin, cout = wt.shape
        plan.append(("mm", dict(
            w=push(wt, matmul_dtype),
            b=push(jnp.reshape(bt, (1, cout)), jnp.float32),
            relu=relu)))
        note_ws(4 * h_ * w_ * (cin + cout))
        c_ = cout

    def add_conv3(wt, bt, relu, stride):
        nonlocal h_, w_, c_
        cin, cout = wt.shape[2], wt.shape[3]
        if stride == 2:
            assert h_ % 2 == 0 and w_ % 2 == 0, "stride-2 assumes even dims"
        plan.append(("conv3", dict(
            H=h_, W=w_, relu=relu, stride=stride,
            w=push(jnp.reshape(wt, (9 * cin, cout)), matmul_dtype),
            b=push(jnp.reshape(bt, (1, cout)), jnp.float32))))
        note_ws(4 * ((h_ + 2) * (w_ + 2) * cin + 2 * h_ * w_ * 9 * cin
                     + h_ * w_ * (cin + cout)))
        if stride == 2:
            h_, w_ = h_ // 2, w_ // 2
        c_ = cout

    def add_res(w1, b1, w2, b2):
        c = w1.shape[2]
        plan.append(("res", dict(
            H=h_, W=w_,
            w1=push(jnp.reshape(w1, (9 * c, c)), matmul_dtype),
            b1=push(jnp.reshape(b1, (1, c)), jnp.float32),
            w2=push(jnp.reshape(w2, (9 * c, c)), matmul_dtype),
            b2=push(jnp.reshape(b2, (1, c)), jnp.float32))))
        note_ws(4 * ((h_ + 2) * (w_ + 2) * c + 2 * h_ * w_ * 9 * c
                     + 3 * h_ * w_ * c))

    def add_nl(p):
        c, ci = c_, c_ // 2
        w_tpg = jnp.concatenate([p["theta"][0], p["phi"][0], p["g"][0]], axis=1)
        b_tpg = jnp.concatenate([p["theta"][1], p["phi"][1], p["g"][1]])
        plan.append(("nl", dict(
            Ci=ci,
            wtpg=push(w_tpg, matmul_dtype),
            btpg=push(jnp.reshape(b_tpg, (1, 3 * ci)), jnp.float32),
            wm=push(p["mask"][0], matmul_dtype),
            bm=push(jnp.reshape(p["mask"][1], (1, c)), jnp.float32))))
        hw = h_ * w_
        note_ws(4 * (2 * hw * hw + hw * (2 * c + 4 * ci)))

    # ---- build the layer plan from the params structure --------------------
    add_mm(jnp.reshape(params["input"][0], (9 * Cin, -1)),
           params["input"][1], relu=True)                 # input conv (im2col'd)
    for kind, p in params["feat"]:
        if kind == "res":
            add_res(*p)
        elif kind == "down":
            add_conv3(p[0], p[1], relu=True, stride=2)
        else:
            add_nl(p)
    for kind, p in params["output"]:
        if kind == "res":
            add_res(*p)
        else:
            add_mm(p[0], p[1], relu=False)

    out_hw, out_c = h_ * w_, c_

    # ---- BlockSpecs ---------------------------------------------------------
    def inv_spec(t):
        # Grid-invariant parameter tensors -> single-buffered (never re-fetched).
        if single_buffer_weights:
            return pl.BlockSpec(t.shape, lambda n: (0, 0),
                                pipeline_mode=pl.Buffered(1))
        return pl.BlockSpec(t.shape, lambda n: (0, 0))

    in_specs = [pl.BlockSpec((1, H * W, 9 * Cin), lambda n: (n, 0, 0))]
    in_specs += [inv_spec(t) for t in tensors]

    if flatten_out:
        out_shape = jax.ShapeDtypeStruct((N, 1, out_hw * out_c), jnp.float32)
        out_spec = pl.BlockSpec((1, 1, out_hw * out_c), lambda n: (n, 0, 0))
    else:
        out_shape = jax.ShapeDtypeStruct((N, out_hw, out_c), jnp.float32)
        out_spec = pl.BlockSpec((1, out_hw, out_c), lambda n: (n, 0, 0))

    # ---- explicit VMEM budget (weights + peak per-layer workspace + 2x I/O) -
    weight_bytes = sum(t.size * t.dtype.itemsize for t in tensors)
    io_bytes = 4 * (H * W * 9 * Cin + out_hw * out_c)
    vmem_limit = int(weight_bytes + 2 * io_bytes + 3 * peak_ws)
    vmem_limit = int(min(64 << 20, max(32 << 20, vmem_limit)))

    y = pl.pallas_call(
        functools.partial(_encoder_kernel, plan=tuple(plan),
                          flat_out=flatten_out),
        out_shape=out_shape,
        grid=(N,),
        in_specs=in_specs,
        out_specs=out_spec,
        compiler_params=pltpu.CompilerParams(
            dimension_semantics=("parallel",),            # batch across TCs
            vmem_limit_bytes=vmem_limit),
    )(patches0, *tensors)

    return jnp.transpose(y.reshape(N, h_, w_, out_c), (0, 3, 1, 2))  # -> NCHW


# ----------------------------------------------------------------------------
# Pure-JAX reference (for validation)
# ----------------------------------------------------------------------------
def _ref_conv3x3(x, w, b, relu=False, stride=1):
    y = lax.conv_general_dilated(x, w, (stride, stride), ((1, 1), (1, 1)),
                                 dimension_numbers=("NHWC", "HWIO", "NHWC")) + b
    return jnp.maximum(y, 0.0) if relu else y


def _ref_conv1x1(x, w, b, relu=False):
    y = jnp.einsum("nhwc,cd->nhwd", x, w) + b
    return jnp.maximum(y, 0.0) if relu else y


def _ref_res(x, w1, b1, w2, b2):
    return x + _ref_conv3x3(_ref_conv3x3(x, w1, b1, relu=True), w2, b2)


def _ref_nonlocal(x, p):
    N, H, W_, C = x.shape
    Ci = C // 2
    th = _ref_conv1x1(x, *p["theta"]).reshape(N, H * W_, Ci)
    ph = _ref_conv1x1(x, *p["phi"]).reshape(N, H * W_, Ci)
    g = _ref_conv1x1(x, *p["g"]).reshape(N, H * W_, Ci)
    attn = jax.nn.softmax(jnp.einsum("nqc,nkc->nqk", th, ph), axis=-1)
    y = jnp.einsum("nqk,nkc->nqc", attn, g).reshape(N, H, W_, Ci)
    return x + _ref_conv1x1(y, *p["mask"])


def encoder_forward_ref(x_nchw, params, args):
    x = jnp.transpose(x_nchw, (0, 2, 3, 1))
    h = _ref_conv3x3(x, *params["input"], relu=True)
    for kind, p in params["feat"]:
        if kind == "res":
            h = _ref_res(h, *p)
        elif kind == "down":
            h = _ref_conv3x3(h, *p, relu=True, stride=2)
        else:
            h = _ref_nonlocal(h, p)
    for kind, p in params["output"]:
        if kind == "res":
            h = _ref_res(h, *p)
        else:
            h = _ref_conv1x1(h, *p)
    return jnp.transpose(h, (0, 3, 1, 2))


# ----------------------------------------------------------------------------
# Deterministic parameter initialization (PyTorch-default-like uniform)
# ----------------------------------------------------------------------------
def _conv_init(key, kh, kw, cin, cout):
    kwk, kbk = jax.random.split(key)
    bound = 1.0 / np.sqrt(kh * kw * cin)
    w = jax.random.uniform(kwk, (kh, kw, cin, cout), jnp.float32, -bound, bound)
    b = jax.random.uniform(kbk, (cout,), jnp.float32, -bound, bound)
    return w, b


def init_params(key, args):
    cl = args["channel_list"]
    keys = iter(jax.random.split(key, 64))
    params = {"input": _conv_init(next(keys), 3, 3, args["im_channel"], cl[0])}

    feat = []
    for i in range(len(cl) - 1):
        cin, cout = cl[i], cl[i + 1]
        for _ in range(args["num_resblock_per_scale"]):
            w1, b1 = _conv_init(next(keys), 3, 3, cin, cin)
            w2, b2 = _conv_init(next(keys), 3, 3, cin, cin)
            feat.append(("res", (w1, b1, w2, b2)))
        feat.append(("down", _conv_init(next(keys), 3, 3, cin, cout)))
    if args["use_non_local"]:
        c = cl[-1]
        ci = c // 2
        tw, tb = _conv_init(next(keys), 1, 1, c, ci)
        pw, pb = _conv_init(next(keys), 1, 1, c, ci)
        gw, gb = _conv_init(next(keys), 1, 1, c, ci)
        mw, mb = _conv_init(next(keys), 1, 1, ci, c)
        feat.append(("nonlocal", {"theta": (tw[0, 0], tb), "phi": (pw[0, 0], pb),
                                  "g": (gw[0, 0], gb), "mask": (mw[0, 0], mb)}))
    params["feat"] = feat

    out = []
    c = cl[-1]
    for _ in range(args["num_output_resblck"]):
        w1, b1 = _conv_init(next(keys), 3, 3, c, c)
        w2, b2 = _conv_init(next(keys), 3, 3, c, c)
        out.append(("res", (w1, b1, w2, b2)))
    lw, lb = _conv_init(next(keys), 1, 1, c, args["latent_dim"])
    out.append(("conv1x1", (lw[0, 0], lb)))
    params["output"] = out
    return params


# ----------------------------------------------------------------------------
if __name__ == "__main__":
    ARGS = dict(
        im_channel=1,
        channel_list=[8, 16, 32],
        num_resblock_per_scale=1,
        num_output_resblck=1,
        latent_dim=8,
        use_non_local=True,
    )

    key = jax.random.PRNGKey(0)
    kp, kx = jax.random.split(key)
    params = init_params(kp, ARGS)
    x = jax.random.normal(kx, (2, ARGS["im_channel"], 16, 16), jnp.float32)

    ref = jax.block_until_ready(encoder_forward_ref(x, params, ARGS))

    def run(**kw):
        fwd = jax.jit(lambda inp: encoder_forward_pallas(inp, params, ARGS, **kw))
        return jax.block_until_ready(fwd(x))

    # f32 MXU operands: tight check against the pure-JAX reference.
    perf_kw = dict(flatten_out=True, single_buffer_weights=True)
    try:
        out = run(matmul_dtype=jnp.float32, **perf_kw)
    except Exception:
        # Fallback if this JAX build rejects Buffered(1) single-buffering or
        # the lane-dense flattened-output store; core kernel is unchanged.
        perf_kw = dict(flatten_out=False, single_buffer_weights=False)
        out = run(matmul_dtype=jnp.float32, **perf_kw)
    np.testing.assert_allclose(np.asarray(out), np.asarray(ref),
                               rtol=2e-3, atol=2e-3)

    # bf16 MXU operands (f32 accumulate): ~2x MXU on v6e/v7x and half the
    # weight/patch VMEM; validated at a loosened tolerance.
    out_bf16 = run(matmul_dtype=jnp.bfloat16, **perf_kw)
    np.testing.assert_allclose(np.asarray(out_bf16), np.asarray(ref),
                               rtol=1e-1, atol=1e-1)

    print("KERNEL_OK")
</pallas_src>

<mosaic_0001>
module attributes {stable_mosaic.version = 11 : i64} {
  func.func @_encoder_kernel(%arg0: i32, %arg1: memref<1x256x9xf32, #tpu.memory_space<vmem>>, %arg2: memref<9x8xf32, #tpu.memory_space<vmem>>, %arg3: memref<1x8xf32, #tpu.memory_space<vmem>>, %arg4: memref<72x8xf32, #tpu.memory_space<vmem>>, %arg5: memref<1x8xf32, #tpu.memory_space<vmem>>, %arg6: memref<72x8xf32, #tpu.memory_space<vmem>>, %arg7: memref<1x8xf32, #tpu.memory_space<vmem>>, %arg8: memref<72x16xf32, #tpu.memory_space<vmem>>, %arg9: memref<1x16xf32, #tpu.memory_space<vmem>>, %arg10: memref<144x16xf32, #tpu.memory_space<vmem>>, %arg11: memref<1x16xf32, #tpu.memory_space<vmem>>, %arg12: memref<144x16xf32, #tpu.memory_space<vmem>>, %arg13: memref<1x16xf32, #tpu.memory_space<vmem>>, %arg14: memref<144x32xf32, #tpu.memory_space<vmem>>, %arg15: memref<1x32xf32, #tpu.memory_space<vmem>>, %arg16: memref<32x48xf32, #tpu.memory_space<vmem>>, %arg17: memref<1x48xf32, #tpu.memory_space<vmem>>, %arg18: memref<16x32xf32, #tpu.memory_space<vmem>>, %arg19: memref<1x32xf32, #tpu.memory_space<vmem>>, %arg20: memref<288x32xf32, #tpu.memory_space<vmem>>, %arg21: memref<1x32xf32, #tpu.memory_space<vmem>>, %arg22: memref<288x32xf32, #tpu.memory_space<vmem>>, %arg23: memref<1x32xf32, #tpu.memory_space<vmem>>, %arg24: memref<32x8xf32, #tpu.memory_space<vmem>>, %arg25: memref<1x8xf32, #tpu.memory_space<vmem>>, %arg26: memref<1x1x128xf32, #tpu.memory_space<vmem>>) attributes {dimension_semantics = [#tpu.dimension_semantics<parallel>], iteration_bounds = array<i64: 2>, scalar_prefetch = 0 : i64, scratch_operands = 0 : i64, tpu.core_type = #tpu.core_type<tc>, window_params = [{transform_indices = @transform_0, window_bounds = array<i64: 1, 256, 9>}, {pipeline_mode = #tpu.pipeline_mode<synchronous>, transform_indices = @transform_1, window_bounds = array<i64: 9, 8>}, {pipeline_mode = #tpu.pipeline_mode<synchronous>, transform_indices = @transform_2, window_bounds = array<i64: 1, 8>}, {pipeline_mode = #tpu.pipeline_mode<synchronous>, transform_indices = @transform_3, window_bounds = array<i64: 72, 8>}, {pipeline_mode = #tpu.pipeline_mode<synchronous>, transform_indices = @transform_4, window_bounds = array<i64: 1, 8>}, {pipeline_mode = #tpu.pipeline_mode<synchronous>, transform_indices = @transform_5, window_bounds = array<i64: 72, 8>}, {pipeline_mode = #tpu.pipeline_mode<synchronous>, transform_indices = @transform_6, window_bounds = array<i64: 1, 8>}, {pipeline_mode = #tpu.pipeline_mode<synchronous>, transform_indices = @transform_7, window_bounds = array<i64: 72, 16>}, {pipeline_mode = #tpu.pipeline_mode<synchronous>, transform_indices = @transform_8, window_bounds = array<i64: 1, 16>}, {pipeline_mode = #tpu.pipeline_mode<synchronous>, transform_indices = @transform_9, window_bounds = array<i64: 144, 16>}, {pipeline_mode = #tpu.pipeline_mode<synchronous>, transform_indices = @transform_10, window_bounds = array<i64: 1, 16>}, {pipeline_mode = #tpu.pipeline_mode<synchronous>, transform_indices = @transform_11, window_bounds = array<i64: 144, 16>}, {pipeline_mode = #tpu.pipeline_mode<synchronous>, transform_indices = @transform_12, window_bounds = array<i64: 1, 16>}, {pipeline_mode = #tpu.pipeline_mode<synchronous>, transform_indices = @transform_13, window_bounds = array<i64: 144, 32>}, {pipeline_mode = #tpu.pipeline_mode<synchronous>, transform_indices = @transform_14, window_bounds = array<i64: 1, 32>}, {pipeline_mode = #tpu.pipeline_mode<synchronous>, transform_indices = @transform_15, window_bounds = array<i64: 32, 48>}, {pipeline_mode = #tpu.pipeline_mode<synchronous>, transform_indices = @transform_16, window_bounds = array<i64: 1, 48>}, {pipeline_mode = #tpu.pipeline_mode<synchronous>, transform_indices = @transform_17, window_bounds = array<i64: 16, 32>}, {pipeline_mode = #tpu.pipeline_mode<synchronous>, transform_indices = @transform_18, window_bounds = array<i64: 1, 32>}, {pipeline_mode = #tpu.pipeline_mode<synchronous>, transform_indices = @transform_19, window_bounds = array<i64: 288, 32>}, {pipeline_mode = #tpu.pipeline_mode<synchronous>, transform_indices = @transform_20, window_bounds = array<i64: 1, 32>}, {pipeline_mode = #tpu.pipeline_mode<synchronous>, transform_indices = @transform_21, window_bounds = array<i64: 288, 32>}, {pipeline_mode = #tpu.pipeline_mode<synchronous>, transform_indices = @transform_22, window_bounds = array<i64: 1, 32>}, {pipeline_mode = #tpu.pipeline_mode<synchronous>, transform_indices = @transform_23, window_bounds = array<i64: 32, 8>}, {pipeline_mode = #tpu.pipeline_mode<synchronous>, transform_indices = @transform_24, window_bounds = array<i64: 1, 8>}, {transform_indices = @transform_25, window_bounds = array<i64: 1, 1, 128>}]} {
    %c0 = arith.constant 0 : index
    %c0_0 = arith.constant 0 : index
    %c0_1 = arith.constant 0 : index
    %0 = vector.load %arg1[%c0, %c0_0, %c0_1] : memref<1x256x9xf32, #tpu.memory_space<vmem>>, vector<1x256x9xf32>
    %1 = vector.shape_cast %0 : vector<1x256x9xf32> to vector<256x9xf32>
    %c0_2 = arith.constant 0 : index
    %c0_3 = arith.constant 0 : index
    %2 = vector.load %arg2[%c0_2, %c0_3] : memref<9x8xf32, #tpu.memory_space<vmem>>, vector<9x8xf32>
    %c0_4 = arith.constant 0 : index
    %c0_5 = arith.constant 0 : index
    %3 = vector.load %arg3[%c0_4, %c0_5] : memref<1x8xf32, #tpu.memory_space<vmem>>, vector<1x8xf32>
    %cst = arith.constant dense<0.000000e+00> : vector<256x8xf32>
    %4 = tpu.matmul %1, %2, %cst {dimension_numbers = #tpu.dot_dimension_numbers<[1], [0], [0], [1], [0, 0, 1, 1], [], []>} : vector<256x9xf32>, vector<9x8xf32>, vector<256x8xf32> -> vector<256x8xf32>
    %5 = vector.broadcast %3 : vector<1x8xf32> to vector<256x8xf32>
    %6 = arith.addf %4, %5 : vector<256x8xf32>
    %cst_6 = arith.constant 0.000000e+00 : f32
    %7 = vector.broadcast %cst_6 : f32 to vector<256x8xf32>
    %8 = arith.maximumf %6, %7 : vector<256x8xf32>
    %c0_7 = arith.constant 0 : index
    %c0_8 = arith.constant 0 : index
    %9 = vector.load %arg4[%c0_7, %c0_8] : memref<72x8xf32, #tpu.memory_space<vmem>>, vector<72x8xf32>
    %c0_9 = arith.constant 0 : index
    %c0_10 = arith.constant 0 : index
    %10 = vector.load %arg5[%c0_9, %c0_10] : memref<1x8xf32, #tpu.memory_space<vmem>>, vector<1x8xf32>
    %11 = vector.shape_cast %8 : vector<256x8xf32> to vector<16x16x8xf32>
    %cst_11 = arith.constant 0.000000e+00 : f32
    %12 = vector.broadcast %cst_11 : f32 to vector<1x16x8xf32>
    %13 = tpu.concatenate %12, %11, %12 in 0 : vector<1x16x8xf32>, vector<16x16x8xf32>, vector<1x16x8xf32> -> vector<18x16x8xf32>
    %cst_12 = arith.constant 0.000000e+00 : f32
    %14 = vector.broadcast %cst_12 : f32 to vector<18x1x8xf32>
    %15 = tpu.concatenate %14, %13, %14 in 1 : vector<18x1x8xf32>, vector<18x16x8xf32>, vector<18x1x8xf32> -> vector<18x18x8xf32>
    %16 = vector.extract_strided_slice %15 {offsets = [0, 0, 0], sizes = [16, 16, 8], strides = [1, 1, 1]} : vector<18x18x8xf32> to vector<16x16x8xf32>
    %17 = vector.extract_strided_slice %15 {offsets = [0, 1, 0], sizes = [16, 16, 8], strides = [1, 1, 1]} : vector<18x18x8xf32> to vector<16x16x8xf32>
    %18 = vector.extract_strided_slice %15 {offsets = [0, 2, 0], sizes = [16, 16, 8], strides = [1, 1, 1]} : vector<18x18x8xf32> to vector<16x16x8xf32>
    %19 = vector.extract_strided_slice %15 {offsets = [1, 0, 0], sizes = [16, 16, 8], strides = [1, 1, 1]} : vector<18x18x8xf32> to vector<16x16x8xf32>
    %20 = vector.extract_strided_slice %15 {offsets = [1, 1, 0], sizes = [16, 16, 8], strides = [1, 1, 1]} : vector<18x18x8xf32> to vector<16x16x8xf32>
    %21 = vector.extract_strided_slice %15 {offsets = [1, 2, 0], sizes = [16, 16, 8], strides = [1, 1, 1]} : vector<18x18x8xf32> to vector<16x16x8xf32>
    %22 = vector.extract_strided_slice %15 {offsets = [2, 0, 0], sizes = [16, 16, 8], strides = [1, 1, 1]} : vector<18x18x8xf32> to vector<16x16x8xf32>
    %23 = vector.extract_strided_slice %15 {offsets = [2, 1, 0], sizes = [16, 16, 8], strides = [1, 1, 1]} : vector<18x18x8xf32> to vector<16x16x8xf32>
    %24 = vector.extract_strided_slice %15 {offsets = [2, 2, 0], sizes = [16, 16, 8], strides = [1, 1, 1]} : vector<18x18x8xf32> to vector<16x16x8xf32>
    %25 = tpu.concatenate %16, %17, %18, %19, %20, %21, %22, %23, %24 in 2 : vector<16x16x8xf32>, vector<16x16x8xf32>, vector<16x16x8xf32>, vector<16x16x8xf32>, vector<16x16x8xf32>, vector<16x16x8xf32>, vector<16x16x8xf32>, vector<16x16x8xf32>, vector<16x16x8xf32> -> vector<16x16x72xf32>
    %26 = vector.shape_cast %25 : vector<16x16x72xf32> to vector<256x72xf32>
    %cst_13 = arith.constant dense<0.000000e+00> : vector<256x8xf32>
    %27 = tpu.matmul %26, %9, %cst_13 {dimension_numbers = #tpu.dot_dimension_numbers<[1], [0], [0], [1], [0, 0, 1, 1], [], []>} : vector<256x72xf32>, vector<72x8xf32>, vector<256x8xf32> -> vector<256x8xf32>
    %28 = vector.broadcast %10 : vector<1x8xf32> to vector<256x8xf32>
    %29 = arith.addf %27, %28 : vector<256x8xf32>
    %cst_14 = arith.constant 0.000000e+00 : f32
    %30 = vector.broadcast %cst_14 : f32 to vector<256x8xf32>
    %31 = arith.maximumf %29, %30 : vector<256x8xf32>
    %c0_15 = arith.constant 0 : index
    %c0_16 = arith.constant 0 : index
    %32 = vector.load %arg6[%c0_15, %c0_16] : memref<72x8xf32, #tpu.memory_space<vmem>>, vector<72x8xf32>
    %c0_17 = arith.constant 0 : index
    %c0_18 = arith.constant 0 : index
    %33 = vector.load %arg7[%c0_17, %c0_18] : memref<1x8xf32, #tpu.memory_space<vmem>>, vector<1x8xf32>
    %34 = vector.shape_cast %31 : vector<256x8xf32> to vector<16x16x8xf32>
    %cst_19 = arith.constant 0.000000e+00 : f32
    %35 = vector.broadcast %cst_19 : f32 to vector<1x16x8xf32>
    %36 = tpu.concatenate %35, %34, %35 in 0 : vector<1x16x8xf32>, vector<16x16x8xf32>, vector<1x16x8xf32> -> vector<18x16x8xf32>
    %cst_20 = arith.constant 0.000000e+00 : f32
    %37 = vector.broadcast %cst_20 : f32 to vector<18x1x8xf32>
    %38 = tpu.concatenate %37, %36, %37 in 1 : vector<18x1x8xf32>, vector<18x16x8xf32>, vector<18x1x8xf32> -> vector<18x18x8xf32>
    %39 = vector.extract_strided_slice %38 {offsets = [0, 0, 0], sizes = [16, 16, 8], strides = [1, 1, 1]} : vector<18x18x8xf32> to vector<16x16x8xf32>
    %40 = vector.extract_strided_slice %38 {offsets = [0, 1, 0], sizes = [16, 16, 8], strides = [1, 1, 1]} : vector<18x18x8xf32> to vector<16x16x8xf32>
    %41 = vector.extract_strided_slice %38 {offsets = [0, 2, 0], sizes = [16, 16, 8], strides = [1, 1, 1]} : vector<18x18x8xf32> to vector<16x16x8xf32>
    %42 = vector.extract_strided_slice %38 {offsets = [1, 0, 0], sizes = [16, 16, 8], strides = [1, 1, 1]} : vector<18x18x8xf32> to vector<16x16x8xf32>
    %43 = vector.extract_strided_slice %38 {offsets = [1, 1, 0], sizes = [16, 16, 8], strides = [1, 1, 1]} : vector<18x18x8xf32> to vector<16x16x8xf32>
    %44 = vector.extract_strided_slice %38 {offsets = [1, 2, 0], sizes = [16, 16, 8], strides = [1, 1, 1]} : vector<18x18x8xf32> to vector<16x16x8xf32>
    %45 = vector.extract_strided_slice %38 {offsets = [2, 0, 0], sizes = [16, 16, 8], strides = [1, 1, 1]} : vector<18x18x8xf32> to vector<16x16x8xf32>
    %46 = vector.extract_strided_slice %38 {offsets = [2, 1, 0], sizes = [16, 16, 8], strides = [1, 1, 1]} : vector<18x18x8xf32> to vector<16x16x8xf32>
    %47 = vector.extract_strided_slice %38 {offsets = [2, 2, 0], sizes = [16, 16, 8], strides = [1, 1, 1]} : vector<18x18x8xf32> to vector<16x16x8xf32>
    %48 = tpu.concatenate %39, %40, %41, %42, %43, %44, %45, %46, %47 in 2 : vector<16x16x8xf32>, vector<16x16x8xf32>, vector<16x16x8xf32>, vector<16x16x8xf32>, vector<16x16x8xf32>, vector<16x16x8xf32>, vector<16x16x8xf32>, vector<16x16x8xf32>, vector<16x16x8xf32> -> vector<16x16x72xf32>
    %49 = vector.shape_cast %48 : vector<16x16x72xf32> to vector<256x72xf32>
    %cst_21 = arith.constant dense<0.000000e+00> : vector<256x8xf32>
    %50 = tpu.matmul %49, %32, %cst_21 {dimension_numbers = #tpu.dot_dimension_numbers<[1], [0], [0], [1], [0, 0, 1, 1], [], []>} : vector<256x72xf32>, vector<72x8xf32>, vector<256x8xf32> -> vector<256x8xf32>
    %51 = vector.broadcast %33 : vector<1x8xf32> to vector<256x8xf32>
    %52 = arith.addf %50, %51 : vector<256x8xf32>
    %53 = arith.addf %8, %52 : vector<256x8xf32>
    %c0_22 = arith.constant 0 : index
    %c0_23 = arith.constant 0 : index
    %54 = vector.load %arg8[%c0_22, %c0_23] : memref<72x16xf32, #tpu.memory_space<vmem>>, vector<72x16xf32>
    %c0_24 = arith.constant 0 : index
    %c0_25 = arith.constant 0 : index
    %55 = vector.load %arg9[%c0_24, %c0_25] : memref<1x16xf32, #tpu.memory_space<vmem>>, vector<1x16xf32>
    %56 = vector.shape_cast %53 : vector<256x8xf32> to vector<16x16x8xf32>
    %cst_26 = arith.constant 0.000000e+00 : f32
    %57 = vector.broadcast %cst_26 : f32 to vector<1x16x8xf32>
    %58 = tpu.concatenate %57, %56, %57 in 0 : vector<1x16x8xf32>, vector<16x16x8xf32>, vector<1x16x8xf32> -> vector<18x16x8xf32>
    %cst_27 = arith.constant 0.000000e+00 : f32
    %59 = vector.broadcast %cst_27 : f32 to vector<18x1x8xf32>
    %60 = tpu.concatenate %59, %58, %59 in 1 : vector<18x1x8xf32>, vector<18x16x8xf32>, vector<18x1x8xf32> -> vector<18x18x8xf32>
    %61 = vector.extract_strided_slice %60 {offsets = [0, 0, 0], sizes = [16, 16, 8], strides = [1, 1, 1]} : vector<18x18x8xf32> to vector<16x16x8xf32>
    %62 = vector.extract_strided_slice %60 {offsets = [0, 1, 0], sizes = [16, 16, 8], strides = [1, 1, 1]} : vector<18x18x8xf32> to vector<16x16x8xf32>
    %63 = vector.extract_strided_slice %60 {offsets = [0, 2, 0], sizes = [16, 16, 8], strides = [1, 1, 1]} : vector<18x18x8xf32> to vector<16x16x8xf32>
    %64 = vector.extract_strided_slice %60 {offsets = [1, 0, 0], sizes = [16, 16, 8], strides = [1, 1, 1]} : vector<18x18x8xf32> to vector<16x16x8xf32>
    %65 = vector.extract_strided_slice %60 {offsets = [1, 1, 0], sizes = [16, 16, 8], strides = [1, 1, 1]} : vector<18x18x8xf32> to vector<16x16x8xf32>
    %66 = vector.extract_strided_slice %60 {offsets = [1, 2, 0], sizes = [16, 16, 8], strides = [1, 1, 1]} : vector<18x18x8xf32> to vector<16x16x8xf32>
    %67 = vector.extract_strided_slice %60 {offsets = [2, 0, 0], sizes = [16, 16, 8], strides = [1, 1, 1]} : vector<18x18x8xf32> to vector<16x16x8xf32>
    %68 = vector.extract_strided_slice %60 {offsets = [2, 1, 0], sizes = [16, 16, 8], strides = [1, 1, 1]} : vector<18x18x8xf32> to vector<16x16x8xf32>
    %69 = vector.extract_strided_slice %60 {offsets = [2, 2, 0], sizes = [16, 16, 8], strides = [1, 1, 1]} : vector<18x18x8xf32> to vector<16x16x8xf32>
    %70 = tpu.concatenate %61, %62, %63, %64, %65, %66, %67, %68, %69 in 2 : vector<16x16x8xf32>, vector<16x16x8xf32>, vector<16x16x8xf32>, vector<16x16x8xf32>, vector<16x16x8xf32>, vector<16x16x8xf32>, vector<16x16x8xf32>, vector<16x16x8xf32>, vector<16x16x8xf32> -> vector<16x16x72xf32>
    %71 = vector.shape_cast %70 : vector<16x16x72xf32> to vector<8x2x16x72xf32>
    %72 = vector.extract_strided_slice %71 {offsets = [0, 0, 0, 0], sizes = [8, 1, 16, 72], strides = [1, 1, 1, 1]} : vector<8x2x16x72xf32> to vector<8x1x16x72xf32>
    %73 = vector.shape_cast %72 : vector<8x1x16x72xf32> to vector<8x16x72xf32>
    %74 = vector.shape_cast %73 : vector<8x16x72xf32> to vector<8x8x2x72xf32>
    %75 = vector.extract_strided_slice %74 {offsets = [0, 0, 0, 0], sizes = [8, 8, 1, 72], strides = [1, 1, 1, 1]} : vector<8x8x2x72xf32> to vector<8x8x1x72xf32>
    %76 = vector.shape_cast %75 : vector<8x8x1x72xf32> to vector<8x8x72xf32>
    %77 = vector.shape_cast %76 : vector<8x8x72xf32> to vector<64x72xf32>
    %cst_28 = arith.constant dense<0.000000e+00> : vector<64x16xf32>
    %78 = tpu.matmul %77, %54, %cst_28 {dimension_numbers = #tpu.dot_dimension_numbers<[1], [0], [0], [1], [0, 0, 1, 1], [], []>} : vector<64x72xf32>, vector<72x16xf32>, vector<64x16xf32> -> vector<64x16xf32>
    %79 = vector.broadcast %55 : vector<1x16xf32> to vector<64x16xf32>
    %80 = arith.addf %78, %79 : vector<64x16xf32>
    %cst_29 = arith.constant 0.000000e+00 : f32
    %81 = vector.broadcast %cst_29 : f32 to vector<64x16xf32>
    %82 = arith.maximumf %80, %81 : vector<64x16xf32>
    %c0_30 = arith.constant 0 : index
    %c0_31 = arith.constant 0 : index
    %83 = vector.load %arg10[%c0_30, %c0_31] : memref<144x16xf32, #tpu.memory_space<vmem>>, vector<144x16xf32>
    %c0_32 = arith.constant 0 : index
    %c0_33 = arith.constant 0 : index
    %84 = vector.load %arg11[%c0_32, %c0_33] : memref<1x16xf32, #tpu.memory_space<vmem>>, vector<1x16xf32>
    %85 = vector.shape_cast %82 : vector<64x16xf32> to vector<8x8x16xf32>
    %cst_34 = arith.constant 0.000000e+00 : f32
    %86 = vector.broadcast %cst_34 : f32 to vector<1x8x16xf32>
    %87 = tpu.concatenate %86, %85, %86 in 0 : vector<1x8x16xf32>, vector<8x8x16xf32>, vector<1x8x16xf32> -> vector<10x8x16xf32>
    %cst_35 = arith.constant 0.000000e+00 : f32
    %88 = vector.broadcast %cst_35 : f32 to vector<10x1x16xf32>
    %89 = tpu.concatenate %88, %87, %88 in 1 : vector<10x1x16xf32>, vector<10x8x16xf32>, vector<10x1x16xf32> -> vector<10x10x16xf32>
    %90 = vector.extract_strided_slice %89 {offsets = [0, 0, 0], sizes = [8, 8, 16], strides = [1, 1, 1]} : vector<10x10x16xf32> to vector<8x8x16xf32>
    %91 = vector.extract_strided_slice %89 {offsets = [0, 1, 0], sizes = [8, 8, 16], strides = [1, 1, 1]} : vector<10x10x16xf32> to vector<8x8x16xf32>
    %92 = vector.extract_strided_slice %89 {offsets = [0, 2, 0], sizes = [8, 8, 16], strides = [1, 1, 1]} : vector<10x10x16xf32> to vector<8x8x16xf32>
    %93 = vector.extract_strided_slice %89 {offsets = [1, 0, 0], sizes = [8, 8, 16], strides = [1, 1, 1]} : vector<10x10x16xf32> to vector<8x8x16xf32>
    %94 = vector.extract_strided_slice %89 {offsets = [1, 1, 0], sizes = [8, 8, 16], strides = [1, 1, 1]} : vector<10x10x16xf32> to vector<8x8x16xf32>
    %95 = vector.extract_strided_slice %89 {offsets = [1, 2, 0], sizes = [8, 8, 16], strides = [1, 1, 1]} : vector<10x10x16xf32> to vector<8x8x16xf32>
    %96 = vector.extract_strided_slice %89 {offsets = [2, 0, 0], sizes = [8, 8, 16], strides = [1, 1, 1]} : vector<10x10x16xf32> to vector<8x8x16xf32>
    %97 = vector.extract_strided_slice %89 {offsets = [2, 1, 0], sizes = [8, 8, 16], strides = [1, 1, 1]} : vector<10x10x16xf32> to vector<8x8x16xf32>
    %98 = vector.extract_strided_slice %89 {offsets = [2, 2, 0], sizes = [8, 8, 16], strides = [1, 1, 1]} : vector<10x10x16xf32> to vector<8x8x16xf32>
    %99 = tpu.concatenate %90, %91, %92, %93, %94, %95, %96, %97, %98 in 2 : vector<8x8x16xf32>, vector<8x8x16xf32>, vector<8x8x16xf32>, vector<8x8x16xf32>, vector<8x8x16xf32>, vector<8x8x16xf32>, vector<8x8x16xf32>, vector<8x8x16xf32>, vector<8x8x16xf32> -> vector<8x8x144xf32>
    %100 = vector.shape_cast %99 : vector<8x8x144xf32> to vector<64x144xf32>
    %cst_36 = arith.constant dense<0.000000e+00> : vector<64x16xf32>
    %101 = tpu.matmul %100, %83, %cst_36 {dimension_numbers = #tpu.dot_dimension_numbers<[1], [0], [0], [1], [0, 0, 1, 1], [], []>} : vector<64x144xf32>, vector<144x16xf32>, vector<64x16xf32> -> vector<64x16xf32>
    %102 = vector.broadcast %84 : vector<1x16xf32> to vector<64x16xf32>
    %103 = arith.addf %101, %102 : vector<64x16xf32>
    %cst_37 = arith.constant 0.000000e+00 : f32
    %104 = vector.broadcast %cst_37 : f32 to vector<64x16xf32>
    %105 = arith.maximumf %103, %104 : vector<64x16xf32>
    %c0_38 = arith.constant 0 : index
    %c0_39 = arith.constant 0 : index
    %106 = vector.load %arg12[%c0_38, %c0_39] : memref<144x16xf32, #tpu.memory_space<vmem>>, vector<144x16xf32>
    %c0_40 = arith.constant 0 : index
    %c0_41 = arith.constant 0 : index
    %107 = vector.load %arg13[%c0_40, %c0_41] : memref<1x16xf32, #tpu.memory_space<vmem>>, vector<1x16xf32>
    %108 = vector.shape_cast %105 : vector<64x16xf32> to vector<8x8x16xf32>
    %cst_42 = arith.constant 0.000000e+00 : f32
    %109 = vector.broadcast %cst_42 : f32 to vector<1x8x16xf32>
    %110 = tpu.concatenate %109, %108, %109 in 0 : vector<1x8x16xf32>, vector<8x8x16xf32>, vector<1x8x16xf32> -> vector<10x8x16xf32>
    %cst_43 = arith.constant 0.000000e+00 : f32
    %111 = vector.broadcast %cst_43 : f32 to vector<10x1x16xf32>
    %112 = tpu.concatenate %111, %110, %111 in 1 : vector<10x1x16xf32>, vector<10x8x16xf32>, vector<10x1x16xf32> -> vector<10x10x16xf32>
    %113 = vector.extract_strided_slice %112 {offsets = [0, 0, 0], sizes = [8, 8, 16], strides = [1, 1, 1]} : vector<10x10x16xf32> to vector<8x8x16xf32>
    %114 = vector.extract_strided_slice %112 {offsets = [0, 1, 0], sizes = [8, 8, 16], strides = [1, 1, 1]} : vector<10x10x16xf32> to vector<8x8x16xf32>
    %115 = vector.extract_strided_slice %112 {offsets = [0, 2, 0], sizes = [8, 8, 16], strides = [1, 1, 1]} : vector<10x10x16xf32> to vector<8x8x16xf32>
    %116 = vector.extract_strided_slice %112 {offsets = [1, 0, 0], sizes = [8, 8, 16], strides = [1, 1, 1]} : vector<10x10x16xf32> to vector<8x8x16xf32>
    %117 = vector.extract_strided_slice %112 {offsets = [1, 1, 0], sizes = [8, 8, 16], strides = [1, 1, 1]} : vector<10x10x16xf32> to vector<8x8x16xf32>
    %118 = vector.extract_strided_slice %112 {offsets = [1, 2, 0], sizes = [8, 8, 16], strides = [1, 1, 1]} : vector<10x10x16xf32> to vector<8x8x16xf32>
    %119 = vector.extract_strided_slice %112 {offsets = [2, 0, 0], sizes = [8, 8, 16], strides = [1, 1, 1]} : vector<10x10x16xf32> to vector<8x8x16xf32>
    %120 = vector.extract_strided_slice %112 {offsets = [2, 1, 0], sizes = [8, 8, 16], strides = [1, 1, 1]} : vector<10x10x16xf32> to vector<8x8x16xf32>
    %121 = vector.extract_strided_slice %112 {offsets = [2, 2, 0], sizes = [8, 8, 16], strides = [1, 1, 1]} : vector<10x10x16xf32> to vector<8x8x16xf32>
    %122 = tpu.concatenate %113, %114, %115, %116, %117, %118, %119, %120, %121 in 2 : vector<8x8x16xf32>, vector<8x8x16xf32>, vector<8x8x16xf32>, vector<8x8x16xf32>, vector<8x8x16xf32>, vector<8x8x16xf32>, vector<8x8x16xf32>, vector<8x8x16xf32>, vector<8x8x16xf32> -> vector<8x8x144xf32>
    %123 = vector.shape_cast %122 : vector<8x8x144xf32> to vector<64x144xf32>
    %cst_44 = arith.constant dense<0.000000e+00> : vector<64x16xf32>
    %124 = tpu.matmul %123, %106, %cst_44 {dimension_numbers = #tpu.dot_dimension_numbers<[1], [0], [0], [1], [0, 0, 1, 1], [], []>} : vector<64x144xf32>, vector<144x16xf32>, vector<64x16xf32> -> vector<64x16xf32>
    %125 = vector.broadcast %107 : vector<1x16xf32> to vector<64x16xf32>
    %126 = arith.addf %124, %125 : vector<64x16xf32>
    %127 = arith.addf %82, %126 : vector<64x16xf32>
    %c0_45 = arith.constant 0 : index
    %c0_46 = arith.constant 0 : index
    %128 = vector.load %arg14[%c0_45, %c0_46] : memref<144x32xf32, #tpu.memory_space<vmem>>, vector<144x32xf32>
    %c0_47 = arith.constant 0 : index
    %c0_48 = arith.constant 0 : index
    %129 = vector.load %arg15[%c0_47, %c0_48] : memref<1x32xf32, #tpu.memory_space<vmem>>, vector<1x32xf32>
    %130 = vector.shape_cast %127 : vector<64x16xf32> to vector<8x8x16xf32>
    %cst_49 = arith.constant 0.000000e+00 : f32
    %131 = vector.broadcast %cst_49 : f32 to vector<1x8x16xf32>
    %132 = tpu.concatenate %131, %130, %131 in 0 : vector<1x8x16xf32>, vector<8x8x16xf32>, vector<1x8x16xf32> -> vector<10x8x16xf32>
    %cst_50 = arith.constant 0.000000e+00 : f32
    %133 = vector.broadcast %cst_50 : f32 to vector<10x1x16xf32>
    %134 = tpu.concatenate %133, %132, %133 in 1 : vector<10x1x16xf32>, vector<10x8x16xf32>, vector<10x1x16xf32> -> vector<10x10x16xf32>
    %135 = vector.extract_strided_slice %134 {offsets = [0, 0, 0], sizes = [8, 8, 16], strides = [1, 1, 1]} : vector<10x10x16xf32> to vector<8x8x16xf32>
    %136 = vector.extract_strided_slice %134 {offsets = [0, 1, 0], sizes = [8, 8, 16], strides = [1, 1, 1]} : vector<10x10x16xf32> to vector<8x8x16xf32>
    %137 = vector.extract_strided_slice %134 {offsets = [0, 2, 0], sizes = [8, 8, 16], strides = [1, 1, 1]} : vector<10x10x16xf32> to vector<8x8x16xf32>
    %138 = vector.extract_strided_slice %134 {offsets = [1, 0, 0], sizes = [8, 8, 16], strides = [1, 1, 1]} : vector<10x10x16xf32> to vector<8x8x16xf32>
    %139 = vector.extract_strided_slice %134 {offsets = [1, 1, 0], sizes = [8, 8, 16], strides = [1, 1, 1]} : vector<10x10x16xf32> to vector<8x8x16xf32>
    %140 = vector.extract_strided_slice %134 {offsets = [1, 2, 0], sizes = [8, 8, 16], strides = [1, 1, 1]} : vector<10x10x16xf32> to vector<8x8x16xf32>
    %141 = vector.extract_strided_slice %134 {offsets = [2, 0, 0], sizes = [8, 8, 16], strides = [1, 1, 1]} : vector<10x10x16xf32> to vector<8x8x16xf32>
    %142 = vector.extract_strided_slice %134 {offsets = [2, 1, 0], sizes = [8, 8, 16], strides = [1, 1, 1]} : vector<10x10x16xf32> to vector<8x8x16xf32>
    %143 = vector.extract_strided_slice %134 {offsets = [2, 2, 0], sizes = [8, 8, 16], strides = [1, 1, 1]} : vector<10x10x16xf32> to vector<8x8x16xf32>
    %144 = tpu.concatenate %135, %136, %137, %138, %139, %140, %141, %142, %143 in 2 : vector<8x8x16xf32>, vector<8x8x16xf32>, vector<8x8x16xf32>, vector<8x8x16xf32>, vector<8x8x16xf32>, vector<8x8x16xf32>, vector<8x8x16xf32>, vector<8x8x16xf32>, vector<8x8x16xf32> -> vector<8x8x144xf32>
    %145 = vector.shape_cast %144 : vector<8x8x144xf32> to vector<4x2x8x144xf32>
    %146 = vector.extract_strided_slice %145 {offsets = [0, 0, 0, 0], sizes = [4, 1, 8, 144], strides = [1, 1, 1, 1]} : vector<4x2x8x144xf32> to vector<4x1x8x144xf32>
    %147 = vector.shape_cast %146 : vector<4x1x8x144xf32> to vector<4x8x144xf32>
    %148 = vector.shape_cast %147 : vector<4x8x144xf32> to vector<4x4x2x144xf32>
    %149 = vector.extract_strided_slice %148 {offsets = [0, 0, 0, 0], sizes = [4, 4, 1, 144], strides = [1, 1, 1, 1]} : vector<4x4x2x144xf32> to vector<4x4x1x144xf32>
    %150 = vector.shape_cast %149 : vector<4x4x1x144xf32> to vector<4x4x144xf32>
    %151 = vector.shape_cast %150 : vector<4x4x144xf32> to vector<16x144xf32>
    %cst_51 = arith.constant dense<0.000000e+00> : vector<16x32xf32>
    %152 = tpu.matmul %151, %128, %cst_51 {dimension_numbers = #tpu.dot_dimension_numbers<[1], [0], [0], [1], [0, 0, 1, 1], [], []>} : vector<16x144xf32>, vector<144x32xf32>, vector<16x32xf32> -> vector<16x32xf32>
    %153 = vector.broadcast %129 : vector<1x32xf32> to vector<16x32xf32>
    %154 = arith.addf %152, %153 : vector<16x32xf32>
    %cst_52 = arith.constant 0.000000e+00 : f32
    %155 = vector.broadcast %cst_52 : f32 to vector<16x32xf32>
    %156 = arith.maximumf %154, %155 : vector<16x32xf32>
    %c0_53 = arith.constant 0 : index
    %c0_54 = arith.constant 0 : index
    %157 = vector.load %arg16[%c0_53, %c0_54] : memref<32x48xf32, #tpu.memory_space<vmem>>, vector<32x48xf32>
    %c0_55 = arith.constant 0 : index
    %c0_56 = arith.constant 0 : index
    %158 = vector.load %arg17[%c0_55, %c0_56] : memref<1x48xf32, #tpu.memory_space<vmem>>, vector<1x48xf32>
    %c0_57 = arith.constant 0 : index
    %c0_58 = arith.constant 0 : index
    %159 = vector.load %arg18[%c0_57, %c0_58] : memref<16x32xf32, #tpu.memory_space<vmem>>, vector<16x32xf32>
    %c0_59 = arith.constant 0 : index
    %c0_60 = arith.constant 0 : index
    %160 = vector.load %arg19[%c0_59, %c0_60] : memref<1x32xf32, #tpu.memory_space<vmem>>, vector<1x32xf32>
    %cst_61 = arith.constant dense<0.000000e+00> : vector<16x48xf32>
    %161 = tpu.matmul %156, %157, %cst_61 {dimension_numbers = #tpu.dot_dimension_numbers<[1], [0], [0], [1], [0, 0, 1, 1], [], []>} : vector<16x32xf32>, vector<32x48xf32>, vector<16x48xf32> -> vector<16x48xf32>
    %162 = vector.broadcast %158 : vector<1x48xf32> to vector<16x48xf32>
    %163 = arith.addf %161, %162 : vector<16x48xf32>
    %164 = vector.extract_strided_slice %163 {offsets = [0, 0], sizes = [16, 16], strides = [1, 1]} : vector<16x48xf32> to vector<16x16xf32>
    %165 = vector.extract_strided_slice %163 {offsets = [0, 16], sizes = [16, 16], strides = [1, 1]} : vector<16x48xf32> to vector<16x16xf32>
    %166 = vector.extract_strided_slice %163 {offsets = [0, 32], sizes = [16, 16], strides = [1, 1]} : vector<16x48xf32> to vector<16x16xf32>
    %cst_62 = arith.constant dense<0.000000e+00> : vector<16x16xf32>
    %167 = tpu.matmul %164, %165, %cst_62 {dimension_numbers = #tpu.dot_dimension_numbers<[1], [1], [0], [0], [0, 0, 1, 0], [], []>} : vector<16x16xf32>, vector<16x16xf32>, vector<16x16xf32> -> vector<16x16xf32>
    %cst_63 = arith.constant dense<0xFF800000> : vector<16xf32>
    %168 = vector.multi_reduction <maximumf>, %167, %cst_63 [1] : vector<16x16xf32> to vector<16xf32>
    %169 = vector.shape_cast %168 : vector<16xf32> to vector<16x1xf32>
    %170 = vector.broadcast %169 : vector<16x1xf32> to vector<16x16xf32>
    %171 = arith.subf %167, %170 : vector<16x16xf32>
    %172 = math.exp %171 : vector<16x16xf32>
    %cst_64 = arith.constant dense<0.000000e+00> : vector<16xf32>
    %173 = vector.multi_reduction <add>, %172, %cst_64 [1] : vector<16x16xf32> to vector<16xf32>
    %174 = vector.shape_cast %173 : vector<16xf32> to vector<16x1xf32>
    %175 = tpu.reciprocal %174 {approx = true} : vector<16x1xf32> -> vector<16x1xf32>
    %176 = arith.mulf %174, %175 : vector<16x1xf32>
    %cst_65 = arith.constant 2.000000e+00 : f32
    %177 = vector.broadcast %cst_65 : f32 to vector<16x1xf32>
    %178 = arith.subf %177, %176 : vector<16x1xf32>
    %179 = arith.mulf %175, %178 : vector<16x1xf32>
    %cst_66 = arith.constant dense<0.000000e+00> : vector<16x16xf32>
    %180 = tpu.matmul %172, %166, %cst_66 {dimension_numbers = #tpu.dot_dimension_numbers<[1], [0], [0], [1], [0, 0, 1, 1], [], []>} : vector<16x16xf32>, vector<16x16xf32>, vector<16x16xf32> -> vector<16x16xf32>
    %181 = vector.broadcast %179 : vector<16x1xf32> to vector<16x16xf32>
    %182 = arith.mulf %180, %181 : vector<16x16xf32>
    %cst_67 = arith.constant dense<0.000000e+00> : vector<16x32xf32>
    %183 = tpu.matmul %182, %159, %cst_67 {dimension_numbers = #tpu.dot_dimension_numbers<[1], [0], [0], [1], [0, 0, 1, 1], [], []>} : vector<16x16xf32>, vector<16x32xf32>, vector<16x32xf32> -> vector<16x32xf32>
    %184 = vector.broadcast %160 : vector<1x32xf32> to vector<16x32xf32>
    %185 = arith.addf %183, %184 : vector<16x32xf32>
    %186 = arith.addf %156, %185 : vector<16x32xf32>
    %c0_68 = arith.constant 0 : index
    %c0_69 = arith.constant 0 : index
    %187 = vector.load %arg20[%c0_68, %c0_69] : memref<288x32xf32, #tpu.memory_space<vmem>>, vector<288x32xf32>
    %c0_70 = arith.constant 0 : index
    %c0_71 = arith.constant 0 : index
    %188 = vector.load %arg21[%c0_70, %c0_71] : memref<1x32xf32, #tpu.memory_space<vmem>>, vector<1x32xf32>
    %189 = vector.shape_cast %186 : vector<16x32xf32> to vector<4x4x32xf32>
    %cst_72 = arith.constant 0.000000e+00 : f32
    %190 = vector.broadcast %cst_72 : f32 to vector<1x4x32xf32>
    %191 = tpu.concatenate %190, %189, %190 in 0 : vector<1x4x32xf32>, vector<4x4x32xf32>, vector<1x4x32xf32> -> vector<6x4x32xf32>
    %cst_73 = arith.constant 0.000000e+00 : f32
    %192 = vector.broadcast %cst_73 : f32 to vector<6x1x32xf32>
    %193 = tpu.concatenate %192, %191, %192 in 1 : vector<6x1x32xf32>, vector<6x4x32xf32>, vector<6x1x32xf32> -> vector<6x6x32xf32>
    %194 = vector.extract_strided_slice %193 {offsets = [0, 0, 0], sizes = [4, 4, 32], strides = [1, 1, 1]} : vector<6x6x32xf32> to vector<4x4x32xf32>
    %195 = vector.extract_strided_slice %193 {offsets = [0, 1, 0], sizes = [4, 4, 32], strides = [1, 1, 1]} : vector<6x6x32xf32> to vector<4x4x32xf32>
    %196 = vector.extract_strided_slice %193 {offsets = [0, 2, 0], sizes = [4, 4, 32], strides = [1, 1, 1]} : vector<6x6x32xf32> to vector<4x4x32xf32>
    %197 = vector.extract_strided_slice %193 {offsets = [1, 0, 0], sizes = [4, 4, 32], strides = [1, 1, 1]} : vector<6x6x32xf32> to vector<4x4x32xf32>
    %198 = vector.extract_strided_slice %193 {offsets = [1, 1, 0], sizes = [4, 4, 32], strides = [1, 1, 1]} : vector<6x6x32xf32> to vector<4x4x32xf32>
    %199 = vector.extract_strided_slice %193 {offsets = [1, 2, 0], sizes = [4, 4, 32], strides = [1, 1, 1]} : vector<6x6x32xf32> to vector<4x4x32xf32>
    %200 = vector.extract_strided_slice %193 {offsets = [2, 0, 0], sizes = [4, 4, 32], strides = [1, 1, 1]} : vector<6x6x32xf32> to vector<4x4x32xf32>
    %201 = vector.extract_strided_slice %193 {offsets = [2, 1, 0], sizes = [4, 4, 32], strides = [1, 1, 1]} : vector<6x6x32xf32> to vector<4x4x32xf32>
    %202 = vector.extract_strided_slice %193 {offsets = [2, 2, 0], sizes = [4, 4, 32], strides = [1, 1, 1]} : vector<6x6x32xf32> to vector<4x4x32xf32>
    %203 = tpu.concatenate %194, %195, %196, %197, %198, %199, %200, %201, %202 in 2 : vector<4x4x32xf32>, vector<4x4x32xf32>, vector<4x4x32xf32>, vector<4x4x32xf32>, vector<4x4x32xf32>, vector<4x4x32xf32>, vector<4x4x32xf32>, vector<4x4x32xf32>, vector<4x4x32xf32> -> vector<4x4x288xf32>
    %204 = vector.shape_cast %203 : vector<4x4x288xf32> to vector<16x288xf32>
    %cst_74 = arith.constant dense<0.000000e+00> : vector<16x32xf32>
    %205 = tpu.matmul %204, %187, %cst_74 {dimension_numbers = #tpu.dot_dimension_numbers<[1], [0], [0], [1], [0, 0, 1, 1], [], []>} : vector<16x288xf32>, vector<288x32xf32>, vector<16x32xf32> -> vector<16x32xf32>
    %206 = vector.broadcast %188 : vector<1x32xf32> to vector<16x32xf32>
    %207 = arith.addf %205, %206 : vector<16x32xf32>
    %cst_75 = arith.constant 0.000000e+00 : f32
    %208 = vector.broadcast %cst_75 : f32 to vector<16x32xf32>
    %209 = arith.maximumf %207, %208 : vector<16x32xf32>
    %c0_76 = arith.constant 0 : index
    %c0_77 = arith.constant 0 : index
    %210 = vector.load %arg22[%c0_76, %c0_77] : memref<288x32xf32, #tpu.memory_space<vmem>>, vector<288x32xf32>
    %c0_78 = arith.constant 0 : index
    %c0_79 = arith.constant 0 : index
    %211 = vector.load %arg23[%c0_78, %c0_79] : memref<1x32xf32, #tpu.memory_space<vmem>>, vector<1x32xf32>
    %212 = vector.shape_cast %209 : vector<16x32xf32> to vector<4x4x32xf32>
    %cst_80 = arith.constant 0.000000e+00 : f32
    %213 = vector.broadcast %cst_80 : f32 to vector<1x4x32xf32>
    %214 = tpu.concatenate %213, %212, %213 in 0 : vector<1x4x32xf32>, vector<4x4x32xf32>, vector<1x4x32xf32> -> vector<6x4x32xf32>
    %cst_81 = arith.constant 0.000000e+00 : f32
    %215 = vector.broadcast %cst_81 : f32 to vector<6x1x32xf32>
    %216 = tpu.concatenate %215, %214, %215 in 1 : vector<6x1x32xf32>, vector<6x4x32xf32>, vector<6x1x32xf32> -> vector<6x6x32xf32>
    %217 = vector.extract_strided_slice %216 {offsets = [0, 0, 0], sizes = [4, 4, 32], strides = [1, 1, 1]} : vector<6x6x32xf32> to vector<4x4x32xf32>
    %218 = vector.extract_strided_slice %216 {offsets = [0, 1, 0], sizes = [4, 4, 32], strides = [1, 1, 1]} : vector<6x6x32xf32> to vector<4x4x32xf32>
    %219 = vector.extract_strided_slice %216 {offsets = [0, 2, 0], sizes = [4, 4, 32], strides = [1, 1, 1]} : vector<6x6x32xf32> to vector<4x4x32xf32>
    %220 = vector.extract_strided_slice %216 {offsets = [1, 0, 0], sizes = [4, 4, 32], strides = [1, 1, 1]} : vector<6x6x32xf32> to vector<4x4x32xf32>
    %221 = vector.extract_strided_slice %216 {offsets = [1, 1, 0], sizes = [4, 4, 32], strides = [1, 1, 1]} : vector<6x6x32xf32> to vector<4x4x32xf32>
    %222 = vector.extract_strided_slice %216 {offsets = [1, 2, 0], sizes = [4, 4, 32], strides = [1, 1, 1]} : vector<6x6x32xf32> to vector<4x4x32xf32>
    %223 = vector.extract_strided_slice %216 {offsets = [2, 0, 0], sizes = [4, 4, 32], strides = [1, 1, 1]} : vector<6x6x32xf32> to vector<4x4x32xf32>
    %224 = vector.extract_strided_slice %216 {offsets = [2, 1, 0], sizes = [4, 4, 32], strides = [1, 1, 1]} : vector<6x6x32xf32> to vector<4x4x32xf32>
    %225 = vector.extract_strided_slice %216 {offsets = [2, 2, 0], sizes = [4, 4, 32], strides = [1, 1, 1]} : vector<6x6x32xf32> to vector<4x4x32xf32>
    %226 = tpu.concatenate %217, %218, %219, %220, %221, %222, %223, %224, %225 in 2 : vector<4x4x32xf32>, vector<4x4x32xf32>, vector<4x4x32xf32>, vector<4x4x32xf32>, vector<4x4x32xf32>, vector<4x4x32xf32>, vector<4x4x32xf32>, vector<4x4x32xf32>, vector<4x4x32xf32> -> vector<4x4x288xf32>
    %227 = vector.shape_cast %226 : vector<4x4x288xf32> to vector<16x288xf32>
    %cst_82 = arith.constant dense<0.000000e+00> : vector<16x32xf32>
    %228 = tpu.matmul %227, %210, %cst_82 {dimension_numbers = #tpu.dot_dimension_numbers<[1], [0], [0], [1], [0, 0, 1, 1], [], []>} : vector<16x288xf32>, vector<288x32xf32>, vector<16x32xf32> -> vector<16x32xf32>
    %229 = vector.broadcast %211 : vector<1x32xf32> to vector<16x32xf32>
    %230 = arith.addf %228, %229 : vector<16x32xf32>
    %231 = arith.addf %186, %230 : vector<16x32xf32>
    %c0_83 = arith.constant 0 : index
    %c0_84 = arith.constant 0 : index
    %232 = vector.load %arg24[%c0_83, %c0_84] : memref<32x8xf32, #tpu.memory_space<vmem>>, vector<32x8xf32>
    %c0_85 = arith.constant 0 : index
    %c0_86 = arith.constant 0 : index
    %233 = vector.load %arg25[%c0_85, %c0_86] : memref<1x8xf32, #tpu.memory_space<vmem>>, vector<1x8xf32>
    %cst_87 = arith.constant dense<0.000000e+00> : vector<16x8xf32>
    %234 = tpu.matmul %231, %232, %cst_87 {dimension_numbers = #tpu.dot_dimension_numbers<[1], [0], [0], [1], [0, 0, 1, 1], [], []>} : vector<16x32xf32>, vector<32x8xf32>, vector<16x8xf32> -> vector<16x8xf32>
    %235 = vector.broadcast %233 : vector<1x8xf32> to vector<16x8xf32>
    %236 = arith.addf %234, %235 : vector<16x8xf32>
    %237 = vector.shape_cast %236 : vector<16x8xf32> to vector<1x128xf32>
    %c0_88 = arith.constant 0 : index
    %c0_89 = arith.constant 0 : index
    %c0_90 = arith.constant 0 : index
    %238 = vector.load %arg26[%c0_88, %c0_89, %c0_90] : memref<1x1x128xf32, #tpu.memory_space<vmem>>, vector<1x1x128xf32>
    %239 = vector.shape_cast %238 : vector<1x1x128xf32> to vector<1x128xf32>
    %240 = vector.shape_cast %237 : vector<1x128xf32> to vector<1x1x128xf32>
    tpu.vector_store %arg26[%c0_88, %c0_89, %c0_90], %240 {strides = array<i32>} : memref<1x1x128xf32, #tpu.memory_space<vmem>>, vector<1x1x128xf32>,
    return
  }
  func.func @transform_0(%arg0: i32) -> (i32, i32, i32) {
    %c0_i32 = arith.constant 0 : i32
    %c0_i32_0 = arith.constant 0 : i32
    %c0_i32_1 = arith.constant 0 : i32
    return %arg0, %c0_i32, %c0_i32_0 : i32, i32, i32
  }
  func.func @transform_1(%arg0: i32) -> (i32, i32) {
    %c0_i32 = arith.constant 0 : i32
    %c0_i32_0 = arith.constant 0 : i32
    %c0_i32_1 = arith.constant 0 : i32
    return %c0_i32, %c0_i32_0 : i32, i32
  }
  func.func @transform_2(%arg0: i32) -> (i32, i32) {
    %c0_i32 = arith.constant 0 : i32
    %c0_i32_0 = arith.constant 0 : i32
    %c0_i32_1 = arith.constant 0 : i32
    return %c0_i32, %c0_i32_0 : i32, i32
  }
  func.func @transform_3(%arg0: i32) -> (i32, i32) {
    %c0_i32 = arith.constant 0 : i32
    %c0_i32_0 = arith.constant 0 : i32
    %c0_i32_1 = arith.constant 0 : i32
    return %c0_i32, %c0_i32_0 : i32, i32
  }
  func.func @transform_4(%arg0: i32) -> (i32, i32) {
    %c0_i32 = arith.constant 0 : i32
    %c0_i32_0 = arith.constant 0 : i32
    %c0_i32_1 = arith.constant 0 : i32
    return %c0_i32, %c0_i32_0 : i32, i32
  }
  func.func @transform_5(%arg0: i32) -> (i32, i32) {
    %c0_i32 = arith.constant 0 : i32
    %c0_i32_0 = arith.constant 0 : i32
    %c0_i32_1 = arith.constant 0 : i32
    return %c0_i32, %c0_i32_0 : i32, i32
  }
  func.func @transform_6(%arg0: i32) -> (i32, i32) {
    %c0_i32 = arith.constant 0 : i32
    %c0_i32_0 = arith.constant 0 : i32
    %c0_i32_1 = arith.constant 0 : i32
    return %c0_i32, %c0_i32_0 : i32, i32
  }
  func.func @transform_7(%arg0: i32) -> (i32, i32) {
    %c0_i32 = arith.constant 0 : i32
    %c0_i32_0 = arith.constant 0 : i32
    %c0_i32_1 = arith.constant 0 : i32
    return %c0_i32, %c0_i32_0 : i32, i32
  }
  func.func @transform_8(%arg0: i32) -> (i32, i32) {
    %c0_i32 = arith.constant 0 : i32
    %c0_i32_0 = arith.constant 0 : i32
    %c0_i32_1 = arith.constant 0 : i32
    return %c0_i32, %c0_i32_0 : i32, i32
  }
  func.func @transform_9(%arg0: i32) -> (i32, i32) {
    %c0_i32 = arith.constant 0 : i32
    %c0_i32_0 = arith.constant 0 : i32
    %c0_i32_1 = arith.constant 0 : i32
    return %c0_i32, %c0_i32_0 : i32, i32
  }
  func.func @transform_10(%arg0: i32) -> (i32, i32) {
    %c0_i32 = arith.constant 0 : i32
    %c0_i32_0 = arith.constant 0 : i32
    %c0_i32_1 = arith.constant 0 : i32
    return %c0_i32, %c0_i32_0 : i32, i32
  }
  func.func @transform_11(%arg0: i32) -> (i32, i32) {
    %c0_i32 = arith.constant 0 : i32
    %c0_i32_0 = arith.constant 0 : i32
    %c0_i32_1 = arith.constant 0 : i32
    return %c0_i32, %c0_i32_0 : i32, i32
  }
  func.func @transform_12(%arg0: i32) -> (i32, i32) {
    %c0_i32 = arith.constant 0 : i32
    %c0_i32_0 = arith.constant 0 : i32
    %c0_i32_1 = arith.constant 0 : i32
    return %c0_i32, %c0_i32_0 : i32, i32
  }
  func.func @transform_13(%arg0: i32) -> (i32, i32) {
    %c0_i32 = arith.constant 0 : i32
    %c0_i32_0 = arith.constant 0 : i32
    %c0_i32_1 = arith.constant 0 : i32
    return %c0_i32, %c0_i32_0 : i32, i32
  }
  func.func @transform_14(%arg0: i32) -> (i32, i32) {
    %c0_i32 = arith.constant 0 : i32
    %c0_i32_0 = arith.constant 0 : i32
    %c0_i32_1 = arith.constant 0 : i32
    return %c0_i32, %c0_i32_0 : i32, i32
  }
  func.func @transform_15(%arg0: i32) -> (i32, i32) {
    %c0_i32 = arith.constant 0 : i32
    %c0_i32_0 = arith.constant 0 : i32
    %c0_i32_1 = arith.constant 0 : i32
    return %c0_i32, %c0_i32_0 : i32, i32
  }
  func.func @transform_16(%arg0: i32) -> (i32, i32) {
    %c0_i32 = arith.constant 0 : i32
    %c0_i32_0 = arith.constant 0 : i32
    %c0_i32_1 = arith.constant 0 : i32
    return %c0_i32, %c0_i32_0 : i32, i32
  }
  func.func @transform_17(%arg0: i32) -> (i32, i32) {
    %c0_i32 = arith.constant 0 : i32
    %c0_i32_0 = arith.constant 0 : i32
    %c0_i32_1 = arith.constant 0 : i32
    return %c0_i32, %c0_i32_0 : i32, i32
  }
  func.func @transform_18(%arg0: i32) -> (i32, i32) {
    %c0_i32 = arith.constant 0 : i32
    %c0_i32_0 = arith.constant 0 : i32
    %c0_i32_1 = arith.constant 0 : i32
    return %c0_i32, %c0_i32_0 : i32, i32
  }
  func.func @transform_19(%arg0: i32) -> (i32, i32) {
    %c0_i32 = arith.constant 0 : i32
    %c0_i32_0 = arith.constant 0 : i32
    %c0_i32_1 = arith.constant 0 : i32
    return %c0_i32, %c0_i32_0 : i32, i32
  }
  func.func @transform_20(%arg0: i32) -> (i32, i32) {
    %c0_i32 = arith.constant 0 : i32
    %c0_i32_0 = arith.constant 0 : i32
    %c0_i32_1 = arith.constant 0 : i32
    return %c0_i32, %c0_i32_0 : i32, i32
  }
  func.func @transform_21(%arg0: i32) -> (i32, i32) {
    %c0_i32 = arith.constant 0 : i32
    %c0_i32_0 = arith.constant 0 : i32
    %c0_i32_1 = arith.constant 0 : i32
    return %c0_i32, %c0_i32_0 : i32, i32
  }
  func.func @transform_22(%arg0: i32) -> (i32, i32) {
    %c0_i32 = arith.constant 0 : i32
    %c0_i32_0 = arith.constant 0 : i32
    %c0_i32_1 = arith.constant 0 : i32
    return %c0_i32, %c0_i32_0 : i32, i32
  }
  func.func @transform_23(%arg0: i32) -> (i32, i32) {
    %c0_i32 = arith.constant 0 : i32
    %c0_i32_0 = arith.constant 0 : i32
    %c0_i32_1 = arith.constant 0 : i32
    return %c0_i32, %c0_i32_0 : i32, i32
  }
  func.func @transform_24(%arg0: i32) -> (i32, i32) {
    %c0_i32 = arith.constant 0 : i32
    %c0_i32_0 = arith.constant 0 : i32
    %c0_i32_1 = arith.constant 0 : i32
    return %c0_i32, %c0_i32_0 : i32, i32
  }
  func.func @transform_25(%arg0: i32) -> (i32, i32, i32) {
    %c0_i32 = arith.constant 0 : i32
    %c0_i32_0 = arith.constant 0 : i32
    %c0_i32_1 = arith.constant 0 : i32
    return %arg0, %c0_i32, %c0_i32_0 : i32, i32, i32
  }
}

module attributes {stable_mosaic.version = 11 : i64} {
  func.func @_encoder_kernel(%arg0: i32, %arg1: memref<1x256x9xf32, #tpu.memory_space<vmem>>, %arg2: memref<9x8xf32, #tpu.memory_space<vmem>>, %arg3: memref<1x8xf32, #tpu.memory_space<vmem>>, %arg4: memref<72x8xf32, #tpu.memory_space<vmem>>, %arg5: memref<1x8xf32, #tpu.memory_space<vmem>>, %arg6: memref<72x8xf32, #tpu.memory_space<vmem>>, %arg7: memref<1x8xf32, #tpu.memory_space<vmem>>, %arg8: memref<72x16xf32, #tpu.memory_space<vmem>>, %arg9: memref<1x16xf32, #tpu.memory_space<vmem>>, %arg10: memref<144x16xf32, #tpu.memory_space<vmem>>, %arg11: memref<1x16xf32, #tpu.memory_space<vmem>>, %arg12: memref<144x16xf32, #tpu.memory_space<vmem>>, %arg13: memref<1x16xf32, #tpu.memory_space<vmem>>, %arg14: memref<144x32xf32, #tpu.memory_space<vmem>>, %arg15: memref<1x32xf32, #tpu.memory_space<vmem>>, %arg16: memref<32x48xf32, #tpu.memory_space<vmem>>, %arg17: memref<1x48xf32, #tpu.memory_space<vmem>>, %arg18: memref<16x32xf32, #tpu.memory_space<vmem>>, %arg19: memref<1x32xf32, #tpu.memory_space<vmem>>, %arg20: memref<288x32xf32, #tpu.memory_space<vmem>>, %arg21: memref<1x32xf32, #tpu.memory_space<vmem>>, %arg22: memref<288x32xf32, #tpu.memory_space<vmem>>, %arg23: memref<1x32xf32, #tpu.memory_space<vmem>>, %arg24: memref<32x8xf32, #tpu.memory_space<vmem>>, %arg25: memref<1x8xf32, #tpu.memory_space<vmem>>, %arg26: memref<1x16x8xf32, #tpu.memory_space<vmem>>) attributes {dimension_semantics = [#tpu.dimension_semantics<parallel>], iteration_bounds = array<i64: 2>, scalar_prefetch = 0 : i64, scratch_operands = 0 : i64, tpu.core_type = #tpu.core_type<tc>, window_params = [{transform_indices = @transform_0, window_bounds = array<i64: 1, 256, 9>}, {pipeline_mode = #tpu.pipeline_mode<synchronous>, transform_indices = @transform_1, window_bounds = array<i64: 9, 8>}, {pipeline_mode = #tpu.pipeline_mode<synchronous>, transform_indices = @transform_2, window_bounds = array<i64: 1, 8>}, {pipeline_mode = #tpu.pipeline_mode<synchronous>, transform_indices = @transform_3, window_bounds = array<i64: 72, 8>}, {pipeline_mode = #tpu.pipeline_mode<synchronous>, transform_indices = @transform_4, window_bounds = array<i64: 1, 8>}, {pipeline_mode = #tpu.pipeline_mode<synchronous>, transform_indices = @transform_5, window_bounds = array<i64: 72, 8>}, {pipeline_mode = #tpu.pipeline_mode<synchronous>, transform_indices = @transform_6, window_bounds = array<i64: 1, 8>}, {pipeline_mode = #tpu.pipeline_mode<synchronous>, transform_indices = @transform_7, window_bounds = array<i64: 72, 16>}, {pipeline_mode = #tpu.pipeline_mode<synchronous>, transform_indices = @transform_8, window_bounds = array<i64: 1, 16>}, {pipeline_mode = #tpu.pipeline_mode<synchronous>, transform_indices = @transform_9, window_bounds = array<i64: 144, 16>}, {pipeline_mode = #tpu.pipeline_mode<synchronous>, transform_indices = @transform_10, window_bounds = array<i64: 1, 16>}, {pipeline_mode = #tpu.pipeline_mode<synchronous>, transform_indices = @transform_11, window_bounds = array<i64: 144, 16>}, {pipeline_mode = #tpu.pipeline_mode<synchronous>, transform_indices = @transform_12, window_bounds = array<i64: 1, 16>}, {pipeline_mode = #tpu.pipeline_mode<synchronous>, transform_indices = @transform_13, window_bounds = array<i64: 144, 32>}, {pipeline_mode = #tpu.pipeline_mode<synchronous>, transform_indices = @transform_14, window_bounds = array<i64: 1, 32>}, {pipeline_mode = #tpu.pipeline_mode<synchronous>, transform_indices = @transform_15, window_bounds = array<i64: 32, 48>}, {pipeline_mode = #tpu.pipeline_mode<synchronous>, transform_indices = @transform_16, window_bounds = array<i64: 1, 48>}, {pipeline_mode = #tpu.pipeline_mode<synchronous>, transform_indices = @transform_17, window_bounds = array<i64: 16, 32>}, {pipeline_mode = #tpu.pipeline_mode<synchronous>, transform_indices = @transform_18, window_bounds = array<i64: 1, 32>}, {pipeline_mode = #tpu.pipeline_mode<synchronous>, transform_indices = @transform_19, window_bounds = array<i64: 288, 32>}, {pipeline_mode = #tpu.pipeline_mode<synchronous>, transform_indices = @transform_20, window_bounds = array<i64: 1, 32>}, {pipeline_mode = #tpu.pipeline_mode<synchronous>, transform_indices = @transform_21, window_bounds = array<i64: 288, 32>}, {pipeline_mode = #tpu.pipeline_mode<synchronous>, transform_indices = @transform_22, window_bounds = array<i64: 1, 32>}, {pipeline_mode = #tpu.pipeline_mode<synchronous>, transform_indices = @transform_23, window_bounds = array<i64: 32, 8>}, {pipeline_mode = #tpu.pipeline_mode<synchronous>, transform_indices = @transform_24, window_bounds = array<i64: 1, 8>}, {transform_indices = @transform_25, window_bounds = array<i64: 1, 16, 8>}]} {
    %c0 = arith.constant 0 : index
    %c0_0 = arith.constant 0 : index
    %c0_1 = arith.constant 0 : index
    %0 = vector.load %arg1[%c0, %c0_0, %c0_1] : memref<1x256x9xf32, #tpu.memory_space<vmem>>, vector<1x256x9xf32>
    %1 = vector.shape_cast %0 : vector<1x256x9xf32> to vector<256x9xf32>
    %c0_2 = arith.constant 0 : index
    %c0_3 = arith.constant 0 : index
    %2 = vector.load %arg2[%c0_2, %c0_3] : memref<9x8xf32, #tpu.memory_space<vmem>>, vector<9x8xf32>
    %c0_4 = arith.constant 0 : index
    %c0_5 = arith.constant 0 : index
    %3 = vector.load %arg3[%c0_4, %c0_5] : memref<1x8xf32, #tpu.memory_space<vmem>>, vector<1x8xf32>
    %cst = arith.constant dense<0.000000e+00> : vector<256x8xf32>
    %4 = tpu.matmul %1, %2, %cst {dimension_numbers = #tpu.dot_dimension_numbers<[1], [0], [0], [1], [0, 0, 1, 1], [], []>} : vector<256x9xf32>, vector<9x8xf32>, vector<256x8xf32> -> vector<256x8xf32>
    %5 = vector.broadcast %3 : vector<1x8xf32> to vector<256x8xf32>
    %6 = arith.addf %4, %5 : vector<256x8xf32>
    %cst_6 = arith.constant 0.000000e+00 : f32
    %7 = vector.broadcast %cst_6 : f32 to vector<256x8xf32>
    %8 = arith.maximumf %6, %7 : vector<256x8xf32>
    %c0_7 = arith.constant 0 : index
    %c0_8 = arith.constant 0 : index
    %9 = vector.load %arg4[%c0_7, %c0_8] : memref<72x8xf32, #tpu.memory_space<vmem>>, vector<72x8xf32>
    %c0_9 = arith.constant 0 : index
    %c0_10 = arith.constant 0 : index
    %10 = vector.load %arg5[%c0_9, %c0_10] : memref<1x8xf32, #tpu.memory_space<vmem>>, vector<1x8xf32>
    %11 = vector.shape_cast %8 : vector<256x8xf32> to vector<16x16x8xf32>
    %cst_11 = arith.constant 0.000000e+00 : f32
    %12 = vector.broadcast %cst_11 : f32 to vector<1x16x8xf32>
    %13 = tpu.concatenate %12, %11, %12 in 0 : vector<1x16x8xf32>, vector<16x16x8xf32>, vector<1x16x8xf32> -> vector<18x16x8xf32>
    %cst_12 = arith.constant 0.000000e+00 : f32
    %14 = vector.broadcast %cst_12 : f32 to vector<18x1x8xf32>
    %15 = tpu.concatenate %14, %13, %14 in 1 : vector<18x1x8xf32>, vector<18x16x8xf32>, vector<18x1x8xf32> -> vector<18x18x8xf32>
    %16 = vector.extract_strided_slice %15 {offsets = [0, 0, 0], sizes = [16, 16, 8], strides = [1, 1, 1]} : vector<18x18x8xf32> to vector<16x16x8xf32>
    %17 = vector.extract_strided_slice %15 {offsets = [0, 1, 0], sizes = [16, 16, 8], strides = [1, 1, 1]} : vector<18x18x8xf32> to vector<16x16x8xf32>
    %18 = vector.extract_strided_slice %15 {offsets = [0, 2, 0], sizes = [16, 16, 8], strides = [1, 1, 1]} : vector<18x18x8xf32> to vector<16x16x8xf32>
    %19 = vector.extract_strided_slice %15 {offsets = [1, 0, 0], sizes = [16, 16, 8], strides = [1, 1, 1]} : vector<18x18x8xf32> to vector<16x16x8xf32>
    %20 = vector.extract_strided_slice %15 {offsets = [1, 1, 0], sizes = [16, 16, 8], strides = [1, 1, 1]} : vector<18x18x8xf32> to vector<16x16x8xf32>
    %21 = vector.extract_strided_slice %15 {offsets = [1, 2, 0], sizes = [16, 16, 8], strides = [1, 1, 1]} : vector<18x18x8xf32> to vector<16x16x8xf32>
    %22 = vector.extract_strided_slice %15 {offsets = [2, 0, 0], sizes = [16, 16, 8], strides = [1, 1, 1]} : vector<18x18x8xf32> to vector<16x16x8xf32>
    %23 = vector.extract_strided_slice %15 {offsets = [2, 1, 0], sizes = [16, 16, 8], strides = [1, 1, 1]} : vector<18x18x8xf32> to vector<16x16x8xf32>
    %24 = vector.extract_strided_slice %15 {offsets = [2, 2, 0], sizes = [16, 16, 8], strides = [1, 1, 1]} : vector<18x18x8xf32> to vector<16x16x8xf32>
    %25 = tpu.concatenate %16, %17, %18, %19, %20, %21, %22, %23, %24 in 2 : vector<16x16x8xf32>, vector<16x16x8xf32>, vector<16x16x8xf32>, vector<16x16x8xf32>, vector<16x16x8xf32>, vector<16x16x8xf32>, vector<16x16x8xf32>, vector<16x16x8xf32>, vector<16x16x8xf32> -> vector<16x16x72xf32>
    %26 = vector.shape_cast %25 : vector<16x16x72xf32> to vector<256x72xf32>
    %cst_13 = arith.constant dense<0.000000e+00> : vector<256x8xf32>
    %27 = tpu.matmul %26, %9, %cst_13 {dimension_numbers = #tpu.dot_dimension_numbers<[1], [0], [0], [1], [0, 0, 1, 1], [], []>} : vector<256x72xf32>, vector<72x8xf32>, vector<256x8xf32> -> vector<256x8xf32>
    %28 = vector.broadcast %10 : vector<1x8xf32> to vector<256x8xf32>
    %29 = arith.addf %27, %28 : vector<256x8xf32>
    %cst_14 = arith.constant 0.000000e+00 : f32
    %30 = vector.broadcast %cst_14 : f32 to vector<256x8xf32>
    %31 = arith.maximumf %29, %30 : vector<256x8xf32>
    %c0_15 = arith.constant 0 : index
    %c0_16 = arith.constant 0 : index
    %32 = vector.load %arg6[%c0_15, %c0_16] : memref<72x8xf32, #tpu.memory_space<vmem>>, vector<72x8xf32>
    %c0_17 = arith.constant 0 : index
    %c0_18 = arith.constant 0 : index
    %33 = vector.load %arg7[%c0_17, %c0_18] : memref<1x8xf32, #tpu.memory_space<vmem>>, vector<1x8xf32>
    %34 = vector.shape_cast %31 : vector<256x8xf32> to vector<16x16x8xf32>
    %cst_19 = arith.constant 0.000000e+00 : f32
    %35 = vector.broadcast %cst_19 : f32 to vector<1x16x8xf32>
    %36 = tpu.concatenate %35, %34, %35 in 0 : vector<1x16x8xf32>, vector<16x16x8xf32>, vector<1x16x8xf32> -> vector<18x16x8xf32>
    %cst_20 = arith.constant 0.000000e+00 : f32
    %37 = vector.broadcast %cst_20 : f32 to vector<18x1x8xf32>
    %38 = tpu.concatenate %37, %36, %37 in 1 : vector<18x1x8xf32>, vector<18x16x8xf32>, vector<18x1x8xf32> -> vector<18x18x8xf32>
    %39 = vector.extract_strided_slice %38 {offsets = [0, 0, 0], sizes = [16, 16, 8], strides = [1, 1, 1]} : vector<18x18x8xf32> to vector<16x16x8xf32>
    %40 = vector.extract_strided_slice %38 {offsets = [0, 1, 0], sizes = [16, 16, 8], strides = [1, 1, 1]} : vector<18x18x8xf32> to vector<16x16x8xf32>
    %41 = vector.extract_strided_slice %38 {offsets = [0, 2, 0], sizes = [16, 16, 8], strides = [1, 1, 1]} : vector<18x18x8xf32> to vector<16x16x8xf32>
    %42 = vector.extract_strided_slice %38 {offsets = [1, 0, 0], sizes = [16, 16, 8], strides = [1, 1, 1]} : vector<18x18x8xf32> to vector<16x16x8xf32>
    %43 = vector.extract_strided_slice %38 {offsets = [1, 1, 0], sizes = [16, 16, 8], strides = [1, 1, 1]} : vector<18x18x8xf32> to vector<16x16x8xf32>
    %44 = vector.extract_strided_slice %38 {offsets = [1, 2, 0], sizes = [16, 16, 8], strides = [1, 1, 1]} : vector<18x18x8xf32> to vector<16x16x8xf32>
    %45 = vector.extract_strided_slice %38 {offsets = [2, 0, 0], sizes = [16, 16, 8], strides = [1, 1, 1]} : vector<18x18x8xf32> to vector<16x16x8xf32>
    %46 = vector.extract_strided_slice %38 {offsets = [2, 1, 0], sizes = [16, 16, 8], strides = [1, 1, 1]} : vector<18x18x8xf32> to vector<16x16x8xf32>
    %47 = vector.extract_strided_slice %38 {offsets = [2, 2, 0], sizes = [16, 16, 8], strides = [1, 1, 1]} : vector<18x18x8xf32> to vector<16x16x8xf32>
    %48 = tpu.concatenate %39, %40, %41, %42, %43, %44, %45, %46, %47 in 2 : vector<16x16x8xf32>, vector<16x16x8xf32>, vector<16x16x8xf32>, vector<16x16x8xf32>, vector<16x16x8xf32>, vector<16x16x8xf32>, vector<16x16x8xf32>, vector<16x16x8xf32>, vector<16x16x8xf32> -> vector<16x16x72xf32>
    %49 = vector.shape_cast %48 : vector<16x16x72xf32> to vector<256x72xf32>
    %cst_21 = arith.constant dense<0.000000e+00> : vector<256x8xf32>
    %50 = tpu.matmul %49, %32, %cst_21 {dimension_numbers = #tpu.dot_dimension_numbers<[1], [0], [0], [1], [0, 0, 1, 1], [], []>} : vector<256x72xf32>, vector<72x8xf32>, vector<256x8xf32> -> vector<256x8xf32>
    %51 = vector.broadcast %33 : vector<1x8xf32> to vector<256x8xf32>
    %52 = arith.addf %50, %51 : vector<256x8xf32>
    %53 = arith.addf %8, %52 : vector<256x8xf32>
    %c0_22 = arith.constant 0 : index
    %c0_23 = arith.constant 0 : index
    %54 = vector.load %arg8[%c0_22, %c0_23] : memref<72x16xf32, #tpu.memory_space<vmem>>, vector<72x16xf32>
    %c0_24 = arith.constant 0 : index
    %c0_25 = arith.constant 0 : index
    %55 = vector.load %arg9[%c0_24, %c0_25] : memref<1x16xf32, #tpu.memory_space<vmem>>, vector<1x16xf32>
    %56 = vector.shape_cast %53 : vector<256x8xf32> to vector<16x16x8xf32>
    %cst_26 = arith.constant 0.000000e+00 : f32
    %57 = vector.broadcast %cst_26 : f32 to vector<1x16x8xf32>
    %58 = tpu.concatenate %57, %56, %57 in 0 : vector<1x16x8xf32>, vector<16x16x8xf32>, vector<1x16x8xf32> -> vector<18x16x8xf32>
    %cst_27 = arith.constant 0.000000e+00 : f32
    %59 = vector.broadcast %cst_27 : f32 to vector<18x1x8xf32>
    %60 = tpu.concatenate %59, %58, %59 in 1 : vector<18x1x8xf32>, vector<18x16x8xf32>, vector<18x1x8xf32> -> vector<18x18x8xf32>
    %61 = vector.extract_strided_slice %60 {offsets = [0, 0, 0], sizes = [16, 16, 8], strides = [1, 1, 1]} : vector<18x18x8xf32> to vector<16x16x8xf32>
    %62 = vector.extract_strided_slice %60 {offsets = [0, 1, 0], sizes = [16, 16, 8], strides = [1, 1, 1]} : vector<18x18x8xf32> to vector<16x16x8xf32>
    %63 = vector.extract_strided_slice %60 {offsets = [0, 2, 0], sizes = [16, 16, 8], strides = [1, 1, 1]} : vector<18x18x8xf32> to vector<16x16x8xf32>
    %64 = vector.extract_strided_slice %60 {offsets = [1, 0, 0], sizes = [16, 16, 8], strides = [1, 1, 1]} : vector<18x18x8xf32> to vector<16x16x8xf32>
    %65 = vector.extract_strided_slice %60 {offsets = [1, 1, 0], sizes = [16, 16, 8], strides = [1, 1, 1]} : vector<18x18x8xf32> to vector<16x16x8xf32>
    %66 = vector.extract_strided_slice %60 {offsets = [1, 2, 0], sizes = [16, 16, 8], strides = [1, 1, 1]} : vector<18x18x8xf32> to vector<16x16x8xf32>
    %67 = vector.extract_strided_slice %60 {offsets = [2, 0, 0], sizes = [16, 16, 8], strides = [1, 1, 1]} : vector<18x18x8xf32> to vector<16x16x8xf32>
    %68 = vector.extract_strided_slice %60 {offsets = [2, 1, 0], sizes = [16, 16, 8], strides = [1, 1, 1]} : vector<18x18x8xf32> to vector<16x16x8xf32>
    %69 = vector.extract_strided_slice %60 {offsets = [2, 2, 0], sizes = [16, 16, 8], strides = [1, 1, 1]} : vector<18x18x8xf32> to vector<16x16x8xf32>
    %70 = tpu.concatenate %61, %62, %63, %64, %65, %66, %67, %68, %69 in 2 : vector<16x16x8xf32>, vector<16x16x8xf32>, vector<16x16x8xf32>, vector<16x16x8xf32>, vector<16x16x8xf32>, vector<16x16x8xf32>, vector<16x16x8xf32>, vector<16x16x8xf32>, vector<16x16x8xf32> -> vector<16x16x72xf32>
    %71 = vector.shape_cast %70 : vector<16x16x72xf32> to vector<8x2x16x72xf32>
    %72 = vector.extract_strided_slice %71 {offsets = [0, 0, 0, 0], sizes = [8, 1, 16, 72], strides = [1, 1, 1, 1]} : vector<8x2x16x72xf32> to vector<8x1x16x72xf32>
    %73 = vector.shape_cast %72 : vector<8x1x16x72xf32> to vector<8x16x72xf32>
    %74 = vector.shape_cast %73 : vector<8x16x72xf32> to vector<8x8x2x72xf32>
    %75 = vector.extract_strided_slice %74 {offsets = [0, 0, 0, 0], sizes = [8, 8, 1, 72], strides = [1, 1, 1, 1]} : vector<8x8x2x72xf32> to vector<8x8x1x72xf32>
    %76 = vector.shape_cast %75 : vector<8x8x1x72xf32> to vector<8x8x72xf32>
    %77 = vector.shape_cast %76 : vector<8x8x72xf32> to vector<64x72xf32>
    %cst_28 = arith.constant dense<0.000000e+00> : vector<64x16xf32>
    %78 = tpu.matmul %77, %54, %cst_28 {dimension_numbers = #tpu.dot_dimension_numbers<[1], [0], [0], [1], [0, 0, 1, 1], [], []>} : vector<64x72xf32>, vector<72x16xf32>, vector<64x16xf32> -> vector<64x16xf32>
    %79 = vector.broadcast %55 : vector<1x16xf32> to vector<64x16xf32>
    %80 = arith.addf %78, %79 : vector<64x16xf32>
    %cst_29 = arith.constant 0.000000e+00 : f32
    %81 = vector.broadcast %cst_29 : f32 to vector<64x16xf32>
    %82 = arith.maximumf %80, %81 : vector<64x16xf32>
    %c0_30 = arith.constant 0 : index
    %c0_31 = arith.constant 0 : index
    %83 = vector.load %arg10[%c0_30, %c0_31] : memref<144x16xf32, #tpu.memory_space<vmem>>, vector<144x16xf32>
    %c0_32 = arith.constant 0 : index
    %c0_33 = arith.constant 0 : index
    %84 = vector.load %arg11[%c0_32, %c0_33] : memref<1x16xf32, #tpu.memory_space<vmem>>, vector<1x16xf32>
    %85 = vector.shape_cast %82 : vector<64x16xf32> to vector<8x8x16xf32>
    %cst_34 = arith.constant 0.000000e+00 : f32
    %86 = vector.broadcast %cst_34 : f32 to vector<1x8x16xf32>
    %87 = tpu.concatenate %86, %85, %86 in 0 : vector<1x8x16xf32>, vector<8x8x16xf32>, vector<1x8x16xf32> -> vector<10x8x16xf32>
    %cst_35 = arith.constant 0.000000e+00 : f32
    %88 = vector.broadcast %cst_35 : f32 to vector<10x1x16xf32>
    %89 = tpu.concatenate %88, %87, %88 in 1 : vector<10x1x16xf32>, vector<10x8x16xf32>, vector<10x1x16xf32> -> vector<10x10x16xf32>
    %90 = vector.extract_strided_slice %89 {offsets = [0, 0, 0], sizes = [8, 8, 16], strides = [1, 1, 1]} : vector<10x10x16xf32> to vector<8x8x16xf32>
    %91 = vector.extract_strided_slice %89 {offsets = [0, 1, 0], sizes = [8, 8, 16], strides = [1, 1, 1]} : vector<10x10x16xf32> to vector<8x8x16xf32>
    %92 = vector.extract_strided_slice %89 {offsets = [0, 2, 0], sizes = [8, 8, 16], strides = [1, 1, 1]} : vector<10x10x16xf32> to vector<8x8x16xf32>
    %93 = vector.extract_strided_slice %89 {offsets = [1, 0, 0], sizes = [8, 8, 16], strides = [1, 1, 1]} : vector<10x10x16xf32> to vector<8x8x16xf32>
    %94 = vector.extract_strided_slice %89 {offsets = [1, 1, 0], sizes = [8, 8, 16], strides = [1, 1, 1]} : vector<10x10x16xf32> to vector<8x8x16xf32>
    %95 = vector.extract_strided_slice %89 {offsets = [1, 2, 0], sizes = [8, 8, 16], strides = [1, 1, 1]} : vector<10x10x16xf32> to vector<8x8x16xf32>
    %96 = vector.extract_strided_slice %89 {offsets = [2, 0, 0], sizes = [8, 8, 16], strides = [1, 1, 1]} : vector<10x10x16xf32> to vector<8x8x16xf32>
    %97 = vector.extract_strided_slice %89 {offsets = [2, 1, 0], sizes = [8, 8, 16], strides = [1, 1, 1]} : vector<10x10x16xf32> to vector<8x8x16xf32>
    %98 = vector.extract_strided_slice %89 {offsets = [2, 2, 0], sizes = [8, 8, 16], strides = [1, 1, 1]} : vector<10x10x16xf32> to vector<8x8x16xf32>
    %99 = tpu.concatenate %90, %91, %92, %93, %94, %95, %96, %97, %98 in 2 : vector<8x8x16xf32>, vector<8x8x16xf32>, vector<8x8x16xf32>, vector<8x8x16xf32>, vector<8x8x16xf32>, vector<8x8x16xf32>, vector<8x8x16xf32>, vector<8x8x16xf32>, vector<8x8x16xf32> -> vector<8x8x144xf32>
    %100 = vector.shape_cast %99 : vector<8x8x144xf32> to vector<64x144xf32>
    %cst_36 = arith.constant dense<0.000000e+00> : vector<64x16xf32>
    %101 = tpu.matmul %100, %83, %cst_36 {dimension_numbers = #tpu.dot_dimension_numbers<[1], [0], [0], [1], [0, 0, 1, 1], [], []>} : vector<64x144xf32>, vector<144x16xf32>, vector<64x16xf32> -> vector<64x16xf32>
    %102 = vector.broadcast %84 : vector<1x16xf32> to vector<64x16xf32>
    %103 = arith.addf %101, %102 : vector<64x16xf32>
    %cst_37 = arith.constant 0.000000e+00 : f32
    %104 = vector.broadcast %cst_37 : f32 to vector<64x16xf32>
    %105 = arith.maximumf %103, %104 : vector<64x16xf32>
    %c0_38 = arith.constant 0 : index
    %c0_39 = arith.constant 0 : index
    %106 = vector.load %arg12[%c0_38, %c0_39] : memref<144x16xf32, #tpu.memory_space<vmem>>, vector<144x16xf32>
    %c0_40 = arith.constant 0 : index
    %c0_41 = arith.constant 0 : index
    %107 = vector.load %arg13[%c0_40, %c0_41] : memref<1x16xf32, #tpu.memory_space<vmem>>, vector<1x16xf32>
    %108 = vector.shape_cast %105 : vector<64x16xf32> to vector<8x8x16xf32>
    %cst_42 = arith.constant 0.000000e+00 : f32
    %109 = vector.broadcast %cst_42 : f32 to vector<1x8x16xf32>
    %110 = tpu.concatenate %109, %108, %109 in 0 : vector<1x8x16xf32>, vector<8x8x16xf32>, vector<1x8x16xf32> -> vector<10x8x16xf32>
    %cst_43 = arith.constant 0.000000e+00 : f32
    %111 = vector.broadcast %cst_43 : f32 to vector<10x1x16xf32>
    %112 = tpu.concatenate %111, %110, %111 in 1 : vector<10x1x16xf32>, vector<10x8x16xf32>, vector<10x1x16xf32> -> vector<10x10x16xf32>
    %113 = vector.extract_strided_slice %112 {offsets = [0, 0, 0], sizes = [8, 8, 16], strides = [1, 1, 1]} : vector<10x10x16xf32> to vector<8x8x16xf32>
    %114 = vector.extract_strided_slice %112 {offsets = [0, 1, 0], sizes = [8, 8, 16], strides = [1, 1, 1]} : vector<10x10x16xf32> to vector<8x8x16xf32>
    %115 = vector.extract_strided_slice %112 {offsets = [0, 2, 0], sizes = [8, 8, 16], strides = [1, 1, 1]} : vector<10x10x16xf32> to vector<8x8x16xf32>
    %116 = vector.extract_strided_slice %112 {offsets = [1, 0, 0], sizes = [8, 8, 16], strides = [1, 1, 1]} : vector<10x10x16xf32> to vector<8x8x16xf32>
    %117 = vector.extract_strided_slice %112 {offsets = [1, 1, 0], sizes = [8, 8, 16], strides = [1, 1, 1]} : vector<10x10x16xf32> to vector<8x8x16xf32>
    %118 = vector.extract_strided_slice %112 {offsets = [1, 2, 0], sizes = [8, 8, 16], strides = [1, 1, 1]} : vector<10x10x16xf32> to vector<8x8x16xf32>
    %119 = vector.extract_strided_slice %112 {offsets = [2, 0, 0], sizes = [8, 8, 16], strides = [1, 1, 1]} : vector<10x10x16xf32> to vector<8x8x16xf32>
    %120 = vector.extract_strided_slice %112 {offsets = [2, 1, 0], sizes = [8, 8, 16], strides = [1, 1, 1]} : vector<10x10x16xf32> to vector<8x8x16xf32>
    %121 = vector.extract_strided_slice %112 {offsets = [2, 2, 0], sizes = [8, 8, 16], strides = [1, 1, 1]} : vector<10x10x16xf32> to vector<8x8x16xf32>
    %122 = tpu.concatenate %113, %114, %115, %116, %117, %118, %119, %120, %121 in 2 : vector<8x8x16xf32>, vector<8x8x16xf32>, vector<8x8x16xf32>, vector<8x8x16xf32>, vector<8x8x16xf32>, vector<8x8x16xf32>, vector<8x8x16xf32>, vector<8x8x16xf32>, vector<8x8x16xf32> -> vector<8x8x144xf32>
    %123 = vector.shape_cast %122 : vector<8x8x144xf32> to vector<64x144xf32>
    %cst_44 = arith.constant dense<0.000000e+00> : vector<64x16xf32>
    %124 = tpu.matmul %123, %106, %cst_44 {dimension_numbers = #tpu.dot_dimension_numbers<[1], [0], [0], [1], [0, 0, 1, 1], [], []>} : vector<64x144xf32>, vector<144x16xf32>, vector<64x16xf32> -> vector<64x16xf32>
    %125 = vector.broadcast %107 : vector<1x16xf32> to vector<64x16xf32>
    %126 = arith.addf %124, %125 : vector<64x16xf32>
    %127 = arith.addf %82, %126 : vector<64x16xf32>
    %c0_45 = arith.constant 0 : index
    %c0_46 = arith.constant 0 : index
    %128 = vector.load %arg14[%c0_45, %c0_46] : memref<144x32xf32, #tpu.memory_space<vmem>>, vector<144x32xf32>
    %c0_47 = arith.constant 0 : index
    %c0_48 = arith.constant 0 : index
    %129 = vector.load %arg15[%c0_47, %c0_48] : memref<1x32xf32, #tpu.memory_space<vmem>>, vector<1x32xf32>
    %130 = vector.shape_cast %127 : vector<64x16xf32> to vector<8x8x16xf32>
    %cst_49 = arith.constant 0.000000e+00 : f32
    %131 = vector.broadcast %cst_49 : f32 to vector<1x8x16xf32>
    %132 = tpu.concatenate %131, %130, %131 in 0 : vector<1x8x16xf32>, vector<8x8x16xf32>, vector<1x8x16xf32> -> vector<10x8x16xf32>
    %cst_50 = arith.constant 0.000000e+00 : f32
    %133 = vector.broadcast %cst_50 : f32 to vector<10x1x16xf32>
    %134 = tpu.concatenate %133, %132, %133 in 1 : vector<10x1x16xf32>, vector<10x8x16xf32>, vector<10x1x16xf32> -> vector<10x10x16xf32>
    %135 = vector.extract_strided_slice %134 {offsets = [0, 0, 0], sizes = [8, 8, 16], strides = [1, 1, 1]} : vector<10x10x16xf32> to vector<8x8x16xf32>
    %136 = vector.extract_strided_slice %134 {offsets = [0, 1, 0], sizes = [8, 8, 16], strides = [1, 1, 1]} : vector<10x10x16xf32> to vector<8x8x16xf32>
    %137 = vector.extract_strided_slice %134 {offsets = [0, 2, 0], sizes = [8, 8, 16], strides = [1, 1, 1]} : vector<10x10x16xf32> to vector<8x8x16xf32>
    %138 = vector.extract_strided_slice %134 {offsets = [1, 0, 0], sizes = [8, 8, 16], strides = [1, 1, 1]} : vector<10x10x16xf32> to vector<8x8x16xf32>
    %139 = vector.extract_strided_slice %134 {offsets = [1, 1, 0], sizes = [8, 8, 16], strides = [1, 1, 1]} : vector<10x10x16xf32> to vector<8x8x16xf32>
    %140 = vector.extract_strided_slice %134 {offsets = [1, 2, 0], sizes = [8, 8, 16], strides = [1, 1, 1]} : vector<10x10x16xf32> to vector<8x8x16xf32>
    %141 = vector.extract_strided_slice %134 {offsets = [2, 0, 0], sizes = [8, 8, 16], strides = [1, 1, 1]} : vector<10x10x16xf32> to vector<8x8x16xf32>
    %142 = vector.extract_strided_slice %134 {offsets = [2, 1, 0], sizes = [8, 8, 16], strides = [1, 1, 1]} : vector<10x10x16xf32> to vector<8x8x16xf32>
    %143 = vector.extract_strided_slice %134 {offsets = [2, 2, 0], sizes = [8, 8, 16], strides = [1, 1, 1]} : vector<10x10x16xf32> to vector<8x8x16xf32>
    %144 = tpu.concatenate %135, %136, %137, %138, %139, %140, %141, %142, %143 in 2 : vector<8x8x16xf32>, vector<8x8x16xf32>, vector<8x8x16xf32>, vector<8x8x16xf32>, vector<8x8x16xf32>, vector<8x8x16xf32>, vector<8x8x16xf32>, vector<8x8x16xf32>, vector<8x8x16xf32> -> vector<8x8x144xf32>
    %145 = vector.shape_cast %144 : vector<8x8x144xf32> to vector<4x2x8x144xf32>
    %146 = vector.extract_strided_slice %145 {offsets = [0, 0, 0, 0], sizes = [4, 1, 8, 144], strides = [1, 1, 1, 1]} : vector<4x2x8x144xf32> to vector<4x1x8x144xf32>
    %147 = vector.shape_cast %146 : vector<4x1x8x144xf32> to vector<4x8x144xf32>
    %148 = vector.shape_cast %147 : vector<4x8x144xf32> to vector<4x4x2x144xf32>
    %149 = vector.extract_strided_slice %148 {offsets = [0, 0, 0, 0], sizes = [4, 4, 1, 144], strides = [1, 1, 1, 1]} : vector<4x4x2x144xf32> to vector<4x4x1x144xf32>
    %150 = vector.shape_cast %149 : vector<4x4x1x144xf32> to vector<4x4x144xf32>
    %151 = vector.shape_cast %150 : vector<4x4x144xf32> to vector<16x144xf32>
    %cst_51 = arith.constant dense<0.000000e+00> : vector<16x32xf32>
    %152 = tpu.matmul %151, %128, %cst_51 {dimension_numbers = #tpu.dot_dimension_numbers<[1], [0], [0], [1], [0, 0, 1, 1], [], []>} : vector<16x144xf32>, vector<144x32xf32>, vector<16x32xf32> -> vector<16x32xf32>
    %153 = vector.broadcast %129 : vector<1x32xf32> to vector<16x32xf32>
    %154 = arith.addf %152, %153 : vector<16x32xf32>
    %cst_52 = arith.constant 0.000000e+00 : f32
    %155 = vector.broadcast %cst_52 : f32 to vector<16x32xf32>
    %156 = arith.maximumf %154, %155 : vector<16x32xf32>
    %c0_53 = arith.constant 0 : index
    %c0_54 = arith.constant 0 : index
    %157 = vector.load %arg16[%c0_53, %c0_54] : memref<32x48xf32, #tpu.memory_space<vmem>>, vector<32x48xf32>
    %c0_55 = arith.constant 0 : index
    %c0_56 = arith.constant 0 : index
    %158 = vector.load %arg17[%c0_55, %c0_56] : memref<1x48xf32, #tpu.memory_space<vmem>>, vector<1x48xf32>
    %c0_57 = arith.constant 0 : index
    %c0_58 = arith.constant 0 : index
    %159 = vector.load %arg18[%c0_57, %c0_58] : memref<16x32xf32, #tpu.memory_space<vmem>>, vector<16x32xf32>
    %c0_59 = arith.constant 0 : index
    %c0_60 = arith.constant 0 : index
    %160 = vector.load %arg19[%c0_59, %c0_60] : memref<1x32xf32, #tpu.memory_space<vmem>>, vector<1x32xf32>
    %cst_61 = arith.constant dense<0.000000e+00> : vector<16x48xf32>
    %161 = tpu.matmul %156, %157, %cst_61 {dimension_numbers = #tpu.dot_dimension_numbers<[1], [0], [0], [1], [0, 0, 1, 1], [], []>} : vector<16x32xf32>, vector<32x48xf32>, vector<16x48xf32> -> vector<16x48xf32>
    %162 = vector.broadcast %158 : vector<1x48xf32> to vector<16x48xf32>
    %163 = arith.addf %161, %162 : vector<16x48xf32>
    %164 = vector.extract_strided_slice %163 {offsets = [0, 0], sizes = [16, 16], strides = [1, 1]} : vector<16x48xf32> to vector<16x16xf32>
    %165 = vector.extract_strided_slice %163 {offsets = [0, 16], sizes = [16, 16], strides = [1, 1]} : vector<16x48xf32> to vector<16x16xf32>
    %166 = vector.extract_strided_slice %163 {offsets = [0, 32], sizes = [16, 16], strides = [1, 1]} : vector<16x48xf32> to vector<16x16xf32>
    %cst_62 = arith.constant dense<0.000000e+00> : vector<16x16xf32>
    %167 = tpu.matmul %164, %165, %cst_62 {dimension_numbers = #tpu.dot_dimension_numbers<[1], [1], [0], [0], [0, 0, 1, 0], [], []>} : vector<16x16xf32>, vector<16x16xf32>, vector<16x16xf32> -> vector<16x16xf32>
    %cst_63 = arith.constant dense<0xFF800000> : vector<16xf32>
    %168 = vector.multi_reduction <maximumf>, %167, %cst_63 [1] : vector<16x16xf32> to vector<16xf32>
    %169 = vector.shape_cast %168 : vector<16xf32> to vector<16x1xf32>
    %170 = vector.broadcast %169 : vector<16x1xf32> to vector<16x16xf32>
    %171 = arith.subf %167, %170 : vector<16x16xf32>
    %172 = math.exp %171 : vector<16x16xf32>
    %cst_64 = arith.constant dense<0.000000e+00> : vector<16xf32>
    %173 = vector.multi_reduction <add>, %172, %cst_64 [1] : vector<16x16xf32> to vector<16xf32>
    %174 = vector.shape_cast %173 : vector<16xf32> to vector<16x1xf32>
    %175 = tpu.reciprocal %174 {approx = true} : vector<16x1xf32> -> vector<16x1xf32>
    %176 = arith.mulf %174, %175 : vector<16x1xf32>
    %cst_65 = arith.constant 2.000000e+00 : f32
    %177 = vector.broadcast %cst_65 : f32 to vector<16x1xf32>
    %178 = arith.subf %177, %176 : vector<16x1xf32>
    %179 = arith.mulf %175, %178 : vector<16x1xf32>
    %cst_66 = arith.constant dense<0.000000e+00> : vector<16x16xf32>
    %180 = tpu.matmul %172, %166, %cst_66 {dimension_numbers = #tpu.dot_dimension_numbers<[1], [0], [0], [1], [0, 0, 1, 1], [], []>} : vector<16x16xf32>, vector<16x16xf32>, vector<16x16xf32> -> vector<16x16xf32>
    %181 = vector.broadcast %179 : vector<16x1xf32> to vector<16x16xf32>
    %182 = arith.mulf %180, %181 : vector<16x16xf32>
    %cst_67 = arith.constant dense<0.000000e+00> : vector<16x32xf32>
    %183 = tpu.matmul %182, %159, %cst_67 {dimension_numbers = #tpu.dot_dimension_numbers<[1], [0], [0], [1], [0, 0, 1, 1], [], []>} : vector<16x16xf32>, vector<16x32xf32>, vector<16x32xf32> -> vector<16x32xf32>
    %184 = vector.broadcast %160 : vector<1x32xf32> to vector<16x32xf32>
    %185 = arith.addf %183, %184 : vector<16x32xf32>
    %186 = arith.addf %156, %185 : vector<16x32xf32>
    %c0_68 = arith.constant 0 : index
    %c0_69 = arith.constant 0 : index
    %187 = vector.load %arg20[%c0_68, %c0_69] : memref<288x32xf32, #tpu.memory_space<vmem>>, vector<288x32xf32>
    %c0_70 = arith.constant 0 : index
    %c0_71 = arith.constant 0 : index
    %188 = vector.load %arg21[%c0_70, %c0_71] : memref<1x32xf32, #tpu.memory_space<vmem>>, vector<1x32xf32>
    %189 = vector.shape_cast %186 : vector<16x32xf32> to vector<4x4x32xf32>
    %cst_72 = arith.constant 0.000000e+00 : f32
    %190 = vector.broadcast %cst_72 : f32 to vector<1x4x32xf32>
    %191 = tpu.concatenate %190, %189, %190 in 0 : vector<1x4x32xf32>, vector<4x4x32xf32>, vector<1x4x32xf32> -> vector<6x4x32xf32>
    %cst_73 = arith.constant 0.000000e+00 : f32
    %192 = vector.broadcast %cst_73 : f32 to vector<6x1x32xf32>
    %193 = tpu.concatenate %192, %191, %192 in 1 : vector<6x1x32xf32>, vector<6x4x32xf32>, vector<6x1x32xf32> -> vector<6x6x32xf32>
    %194 = vector.extract_strided_slice %193 {offsets = [0, 0, 0], sizes = [4, 4, 32], strides = [1, 1, 1]} : vector<6x6x32xf32> to vector<4x4x32xf32>
    %195 = vector.extract_strided_slice %193 {offsets = [0, 1, 0], sizes = [4, 4, 32], strides = [1, 1, 1]} : vector<6x6x32xf32> to vector<4x4x32xf32>
    %196 = vector.extract_strided_slice %193 {offsets = [0, 2, 0], sizes = [4, 4, 32], strides = [1, 1, 1]} : vector<6x6x32xf32> to vector<4x4x32xf32>
    %197 = vector.extract_strided_slice %193 {offsets = [1, 0, 0], sizes = [4, 4, 32], strides = [1, 1, 1]} : vector<6x6x32xf32> to vector<4x4x32xf32>
    %198 = vector.extract_strided_slice %193 {offsets = [1, 1, 0], sizes = [4, 4, 32], strides = [1, 1, 1]} : vector<6x6x32xf32> to vector<4x4x32xf32>
    %199 = vector.extract_strided_slice %193 {offsets = [1, 2, 0], sizes = [4, 4, 32], strides = [1, 1, 1]} : vector<6x6x32xf32> to vector<4x4x32xf32>
    %200 = vector.extract_strided_slice %193 {offsets = [2, 0, 0], sizes = [4, 4, 32], strides = [1, 1, 1]} : vector<6x6x32xf32> to vector<4x4x32xf32>
    %201 = vector.extract_strided_slice %193 {offsets = [2, 1, 0], sizes = [4, 4, 32], strides = [1, 1, 1]} : vector<6x6x32xf32> to vector<4x4x32xf32>
    %202 = vector.extract_strided_slice %193 {offsets = [2, 2, 0], sizes = [4, 4, 32], strides = [1, 1, 1]} : vector<6x6x32xf32> to vector<4x4x32xf32>
    %203 = tpu.concatenate %194, %195, %196, %197, %198, %199, %200, %201, %202 in 2 : vector<4x4x32xf32>, vector<4x4x32xf32>, vector<4x4x32xf32>, vector<4x4x32xf32>, vector<4x4x32xf32>, vector<4x4x32xf32>, vector<4x4x32xf32>, vector<4x4x32xf32>, vector<4x4x32xf32> -> vector<4x4x288xf32>
    %204 = vector.shape_cast %203 : vector<4x4x288xf32> to vector<16x288xf32>
    %cst_74 = arith.constant dense<0.000000e+00> : vector<16x32xf32>
    %205 = tpu.matmul %204, %187, %cst_74 {dimension_numbers = #tpu.dot_dimension_numbers<[1], [0], [0], [1], [0, 0, 1, 1], [], []>} : vector<16x288xf32>, vector<288x32xf32>, vector<16x32xf32> -> vector<16x32xf32>
    %206 = vector.broadcast %188 : vector<1x32xf32> to vector<16x32xf32>
    %207 = arith.addf %205, %206 : vector<16x32xf32>
    %cst_75 = arith.constant 0.000000e+00 : f32
    %208 = vector.broadcast %cst_75 : f32 to vector<16x32xf32>
    %209 = arith.maximumf %207, %208 : vector<16x32xf32>
    %c0_76 = arith.constant 0 : index
    %c0_77 = arith.constant 0 : index
    %210 = vector.load %arg22[%c0_76, %c0_77] : memref<288x32xf32, #tpu.memory_space<vmem>>, vector<288x32xf32>
    %c0_78 = arith.constant 0 : index
    %c0_79 = arith.constant 0 : index
    %211 = vector.load %arg23[%c0_78, %c0_79] : memref<1x32xf32, #tpu.memory_space<vmem>>, vector<1x32xf32>
    %212 = vector.shape_cast %209 : vector<16x32xf32> to vector<4x4x32xf32>
    %cst_80 = arith.constant 0.000000e+00 : f32
    %213 = vector.broadcast %cst_80 : f32 to vector<1x4x32xf32>
    %214 = tpu.concatenate %213, %212, %213 in 0 : vector<1x4x32xf32>, vector<4x4x32xf32>, vector<1x4x32xf32> -> vector<6x4x32xf32>
    %cst_81 = arith.constant 0.000000e+00 : f32
    %215 = vector.broadcast %cst_81 : f32 to vector<6x1x32xf32>
    %216 = tpu.concatenate %215, %214, %215 in 1 : vector<6x1x32xf32>, vector<6x4x32xf32>, vector<6x1x32xf32> -> vector<6x6x32xf32>
    %217 = vector.extract_strided_slice %216 {offsets = [0, 0, 0], sizes = [4, 4, 32], strides = [1, 1, 1]} : vector<6x6x32xf32> to vector<4x4x32xf32>
    %218 = vector.extract_strided_slice %216 {offsets = [0, 1, 0], sizes = [4, 4, 32], strides = [1, 1, 1]} : vector<6x6x32xf32> to vector<4x4x32xf32>
    %219 = vector.extract_strided_slice %216 {offsets = [0, 2, 0], sizes = [4, 4, 32], strides = [1, 1, 1]} : vector<6x6x32xf32> to vector<4x4x32xf32>
    %220 = vector.extract_strided_slice %216 {offsets = [1, 0, 0], sizes = [4, 4, 32], strides = [1, 1, 1]} : vector<6x6x32xf32> to vector<4x4x32xf32>
    %221 = vector.extract_strided_slice %216 {offsets = [1, 1, 0], sizes = [4, 4, 32], strides = [1, 1, 1]} : vector<6x6x32xf32> to vector<4x4x32xf32>
    %222 = vector.extract_strided_slice %216 {offsets = [1, 2, 0], sizes = [4, 4, 32], strides = [1, 1, 1]} : vector<6x6x32xf32> to vector<4x4x32xf32>
    %223 = vector.extract_strided_slice %216 {offsets = [2, 0, 0], sizes = [4, 4, 32], strides = [1, 1, 1]} : vector<6x6x32xf32> to vector<4x4x32xf32>
    %224 = vector.extract_strided_slice %216 {offsets = [2, 1, 0], sizes = [4, 4, 32], strides = [1, 1, 1]} : vector<6x6x32xf32> to vector<4x4x32xf32>
    %225 = vector.extract_strided_slice %216 {offsets = [2, 2, 0], sizes = [4, 4, 32], strides = [1, 1, 1]} : vector<6x6x32xf32> to vector<4x4x32xf32>
    %226 = tpu.concatenate %217, %218, %219, %220, %221, %222, %223, %224, %225 in 2 : vector<4x4x32xf32>, vector<4x4x32xf32>, vector<4x4x32xf32>, vector<4x4x32xf32>, vector<4x4x32xf32>, vector<4x4x32xf32>, vector<4x4x32xf32>, vector<4x4x32xf32>, vector<4x4x32xf32> -> vector<4x4x288xf32>
    %227 = vector.shape_cast %226 : vector<4x4x288xf32> to vector<16x288xf32>
    %cst_82 = arith.constant dense<0.000000e+00> : vector<16x32xf32>
    %228 = tpu.matmul %227, %210, %cst_82 {dimension_numbers = #tpu.dot_dimension_numbers<[1], [0], [0], [1], [0, 0, 1, 1], [], []>} : vector<16x288xf32>, vector<288x32xf32>, vector<16x32xf32> -> vector<16x32xf32>
    %229 = vector.broadcast %211 : vector<1x32xf32> to vector<16x32xf32>
    %230 = arith.addf %228, %229 : vector<16x32xf32>
    %231 = arith.addf %186, %230 : vector<16x32xf32>
    %c0_83 = arith.constant 0 : index
    %c0_84 = arith.constant 0 : index
    %232 = vector.load %arg24[%c0_83, %c0_84] : memref<32x8xf32, #tpu.memory_space<vmem>>, vector<32x8xf32>
    %c0_85 = arith.constant 0 : index
    %c0_86 = arith.constant 0 : index
    %233 = vector.load %arg25[%c0_85, %c0_86] : memref<1x8xf32, #tpu.memory_space<vmem>>, vector<1x8xf32>
    %cst_87 = arith.constant dense<0.000000e+00> : vector<16x8xf32>
    %234 = tpu.matmul %231, %232, %cst_87 {dimension_numbers = #tpu.dot_dimension_numbers<[1], [0], [0], [1], [0, 0, 1, 1], [], []>} : vector<16x32xf32>, vector<32x8xf32>, vector<16x8xf32> -> vector<16x8xf32>
    %235 = vector.broadcast %233 : vector<1x8xf32> to vector<16x8xf32>
    %236 = arith.addf %234, %235 : vector<16x8xf32>
    %c0_88 = arith.constant 0 : index
    %c0_89 = arith.constant 0 : index
    %c0_90 = arith.constant 0 : index
    %237 = vector.load %arg26[%c0_88, %c0_89, %c0_90] : memref<1x16x8xf32, #tpu.memory_space<vmem>>, vector<1x16x8xf32>
    %238 = vector.shape_cast %237 : vector<1x16x8xf32> to vector<16x8xf32>
    %239 = vector.shape_cast %236 : vector<16x8xf32> to vector<1x16x8xf32>
    tpu.vector_store %arg26[%c0_88, %c0_89, %c0_90], %239 {strides = array<i32>} : memref<1x16x8xf32, #tpu.memory_space<vmem>>, vector<1x16x8xf32>,
    return
  }
  func.func @transform_0(%arg0: i32) -> (i32, i32, i32) {
    %c0_i32 = arith.constant 0 : i32
    %c0_i32_0 = arith.constant 0 : i32
    %c0_i32_1 = arith.constant 0 : i32
    return %arg0, %c0_i32, %c0_i32_0 : i32, i32, i32
  }
  func.func @transform_1(%arg0: i32) -> (i32, i32) {
    %c0_i32 = arith.constant 0 : i32
    %c0_i32_0 = arith.constant 0 : i32
    %c0_i32_1 = arith.constant 0 : i32
    return %c0_i32, %c0_i32_0 : i32, i32
  }
  func.func @transform_2(%arg0: i32) -> (i32, i32) {
    %c0_i32 = arith.constant 0 : i32
    %c0_i32_0 = arith.constant 0 : i32
    %c0_i32_1 = arith.constant 0 : i32
    return %c0_i32, %c0_i32_0 : i32, i32
  }
  func.func @transform_3(%arg0: i32) -> (i32, i32) {
    %c0_i32 = arith.constant 0 : i32
    %c0_i32_0 = arith.constant 0 : i32
    %c0_i32_1 = arith.constant 0 : i32
    return %c0_i32, %c0_i32_0 : i32, i32
  }
  func.func @transform_4(%arg0: i32) -> (i32, i32) {
    %c0_i32 = arith.constant 0 : i32
    %c0_i32_0 = arith.constant 0 : i32
    %c0_i32_1 = arith.constant 0 : i32
    return %c0_i32, %c0_i32_0 : i32, i32
  }
  func.func @transform_5(%arg0: i32) -> (i32, i32) {
    %c0_i32 = arith.constant 0 : i32
    %c0_i32_0 = arith.constant 0 : i32
    %c0_i32_1 = arith.constant 0 : i32
    return %c0_i32, %c0_i32_0 : i32, i32
  }
  func.func @transform_6(%arg0: i32) -> (i32, i32) {
    %c0_i32 = arith.constant 0 : i32
    %c0_i32_0 = arith.constant 0 : i32
    %c0_i32_1 = arith.constant 0 : i32
    return %c0_i32, %c0_i32_0 : i32, i32
  }
  func.func @transform_7(%arg0: i32) -> (i32, i32) {
    %c0_i32 = arith.constant 0 : i32
    %c0_i32_0 = arith.constant 0 : i32
    %c0_i32_1 = arith.constant 0 : i32
    return %c0_i32, %c0_i32_0 : i32, i32
  }
  func.func @transform_8(%arg0: i32) -> (i32, i32) {
    %c0_i32 = arith.constant 0 : i32
    %c0_i32_0 = arith.constant 0 : i32
    %c0_i32_1 = arith.constant 0 : i32
    return %c0_i32, %c0_i32_0 : i32, i32
  }
  func.func @transform_9(%arg0: i32) -> (i32, i32) {
    %c0_i32 = arith.constant 0 : i32
    %c0_i32_0 = arith.constant 0 : i32
    %c0_i32_1 = arith.constant 0 : i32
    return %c0_i32, %c0_i32_0 : i32, i32
  }
  func.func @transform_10(%arg0: i32) -> (i32, i32) {
    %c0_i32 = arith.constant 0 : i32
    %c0_i32_0 = arith.constant 0 : i32
    %c0_i32_1 = arith.constant 0 : i32
    return %c0_i32, %c0_i32_0 : i32, i32
  }
  func.func @transform_11(%arg0: i32) -> (i32, i32) {
    %c0_i32 = arith.constant 0 : i32
    %c0_i32_0 = arith.constant 0 : i32
    %c0_i32_1 = arith.constant 0 : i32
    return %c0_i32, %c0_i32_0 : i32, i32
  }
  func.func @transform_12(%arg0: i32) -> (i32, i32) {
    %c0_i32 = arith.constant 0 : i32
    %c0_i32_0 = arith.constant 0 : i32
    %c0_i32_1 = arith.constant 0 : i32
    return %c0_i32, %c0_i32_0 : i32, i32
  }
  func.func @transform_13(%arg0: i32) -> (i32, i32) {
    %c0_i32 = arith.constant 0 : i32
    %c0_i32_0 = arith.constant 0 : i32
    %c0_i32_1 = arith.constant 0 : i32
    return %c0_i32, %c0_i32_0 : i32, i32
  }
  func.func @transform_14(%arg0: i32) -> (i32, i32) {
    %c0_i32 = arith.constant 0 : i32
    %c0_i32_0 = arith.constant 0 : i32
    %c0_i32_1 = arith.constant 0 : i32
    return %c0_i32, %c0_i32_0 : i32, i32
  }
  func.func @transform_15(%arg0: i32) -> (i32, i32) {
    %c0_i32 = arith.constant 0 : i32
    %c0_i32_0 = arith.constant 0 : i32
    %c0_i32_1 = arith.constant 0 : i32
    return %c0_i32, %c0_i32_0 : i32, i32
  }
  func.func @transform_16(%arg0: i32) -> (i32, i32) {
    %c0_i32 = arith.constant 0 : i32
    %c0_i32_0 = arith.constant 0 : i32
    %c0_i32_1 = arith.constant 0 : i32
    return %c0_i32, %c0_i32_0 : i32, i32
  }
  func.func @transform_17(%arg0: i32) -> (i32, i32) {
    %c0_i32 = arith.constant 0 : i32
    %c0_i32_0 = arith.constant 0 : i32
    %c0_i32_1 = arith.constant 0 : i32
    return %c0_i32, %c0_i32_0 : i32, i32
  }
  func.func @transform_18(%arg0: i32) -> (i32, i32) {
    %c0_i32 = arith.constant 0 : i32
    %c0_i32_0 = arith.constant 0 : i32
    %c0_i32_1 = arith.constant 0 : i32
    return %c0_i32, %c0_i32_0 : i32, i32
  }
  func.func @transform_19(%arg0: i32) -> (i32, i32) {
    %c0_i32 = arith.constant 0 : i32
    %c0_i32_0 = arith.constant 0 : i32
    %c0_i32_1 = arith.constant 0 : i32
    return %c0_i32, %c0_i32_0 : i32, i32
  }
  func.func @transform_20(%arg0: i32) -> (i32, i32) {
    %c0_i32 = arith.constant 0 : i32
    %c0_i32_0 = arith.constant 0 : i32
    %c0_i32_1 = arith.constant 0 : i32
    return %c0_i32, %c0_i32_0 : i32, i32
  }
  func.func @transform_21(%arg0: i32) -> (i32, i32) {
    %c0_i32 = arith.constant 0 : i32
    %c0_i32_0 = arith.constant 0 : i32
    %c0_i32_1 = arith.constant 0 : i32
    return %c0_i32, %c0_i32_0 : i32, i32
  }
  func.func @transform_22(%arg0: i32) -> (i32, i32) {
    %c0_i32 = arith.constant 0 : i32
    %c0_i32_0 = arith.constant 0 : i32
    %c0_i32_1 = arith.constant 0 : i32
    return %c0_i32, %c0_i32_0 : i32, i32
  }
  func.func @transform_23(%arg0: i32) -> (i32, i32) {
    %c0_i32 = arith.constant 0 : i32
    %c0_i32_0 = arith.constant 0 : i32
    %c0_i32_1 = arith.constant 0 : i32
    return %c0_i32, %c0_i32_0 : i32, i32
  }
  func.func @transform_24(%arg0: i32) -> (i32, i32) {
    %c0_i32 = arith.constant 0 : i32
    %c0_i32_0 = arith.constant 0 : i32
    %c0_i32_1 = arith.constant 0 : i32
    return %c0_i32, %c0_i32_0 : i32, i32
  }
  func.func @transform_25(%arg0: i32) -> (i32, i32, i32) {
    %c0_i32 = arith.constant 0 : i32
    %c0_i32_0 = arith.constant 0 : i32
    %c0_i32_1 = arith.constant 0 : i32
    return %arg0, %c0_i32, %c0_i32_0 : i32, i32, i32
  }
}

</mosaic_0001>

<bundles_post_ra>
// kernel: _lambda_.1
= control target key start
LH: loop header
LB: loop body
LE: loop exit
PB: predicated region body
PF: predicated region fallthrough
CT: control target
= control target key end

     0   :  { %s16360_s0 = inlined_call_operand.vmem [shape: f32[2,256,9], index: 0, kind: input, shape index: {}]   ;;  %s16361_s1 = inlined_call_operand.hbm [shape: f32[9,8], index: 1, kind: input, shape index: {}]   ;;  %s16362_s2 = inlined_call_operand.vmem [shape: f32[1,8], index: 2, kind: input, shape index: {}]   ;;  %s16363_s3 = inlined_call_operand.vmem [shape: f32[72,8], index: 3, kind: input, shape index: {}]   ;;  %s16364_s4 = inlined_call_operand.vmem [shape: f32[1,8], index: 4, kind: input, shape index: {}]   ;;  %s16365_s5 = inlined_call_operand.vmem [shape: f32[72,8], index: 5, kind: input, shape index: {}]   ;;  %s16366_s6 = inlined_call_operand.vmem [shape: f32[1,8], index: 6, kind: input, shape index: {}]   ;;  %s16367_s7 = inlined_call_operand.hbm [shape: f32[72,16], index: 7, kind: input, shape index: {}]   ;;  %s16368_s8 = inlined_call_operand.vmem [shape: f32[1,16], index: 8, kind: input, shape index: {}]   ;;  %s16369_s9 = inlined_call_operand.vmem [shape: f32[144,16], index: 9, kind: input, shape index: {}]   ;;  %s16370_s10 = inlined_call_operand.vmem [shape: f32[1,16], index: 10, kind: input, shape index: {}]   ;;  %s16371_s11 = inlined_call_operand.vmem [shape: f32[144,16], index: 11, kind: input, shape index: {}]   ;;  %s16372_s12 = inlined_call_operand.vmem [shape: f32[1,16], index: 12, kind: input, shape index: {}]   ;;  %s16373_s13 = inlined_call_operand.vmem [shape: f32[144,32], index: 13, kind: input, shape index: {}]   ;;  %s16374_s14 = inlined_call_operand.vmem [shape: f32[1,32], index: 14, kind: input, shape index: {}]   ;;  %s16375_s15 = inlined_call_operand.vmem [shape: f32[32,48], index: 15, kind: input, shape index: {}]   ;;  %s16376_s16 = inlined_call_operand.vmem [shape: f32[1,48], index: 16, kind: input, shape index: {}]   ;;  %s16377_s17 = inlined_call_operand.vmem [shape: f32[16,32], index: 17, kind: input, shape index: {}]   ;;  %s16378_s18 = inlined_call_operand.vmem [shape: f32[1,32], index: 18, kind: input, shape index: {}]   ;;  %s16379_s19 = inlined_call_operand.vmem [shape: f32[288,32], index: 19, kind: input, shape index: {}]   ;;  %s16380_s20 = inlined_call_operand.hbm [shape: f32[1,32], index: 20, kind: input, shape index: {}]   ;;  %s16381_s21 = inlined_call_operand.vmem [shape: f32[288,32], index: 21, kind: input, shape index: {}]   ;;  %s16382_s22 = inlined_call_operand.hbm [shape: f32[1,32], index: 22, kind: input, shape index: {}]   ;;  %s16383_s23 = inlined_call_operand.vmem [shape: f32[32,8], index: 23, kind: input, shape index: {}]   ;;  %s16384_s24 = inlined_call_operand.hbm [shape: f32[1,8], index: 24, kind: input, shape index: {}]   ;;  %s16385_s25 = inlined_call_operand.hbm [shape: f32[2,16,8], index: 25, kind: output, shape index: {}]  }
   0x1   :  { %16514 = sst [smem:[#allocation45_spill]] %s16360_s0 }
   0x2   :  { %16515 = sst [smem:[#allocation46_spill]] %s16361_s1 }
   0x3   :  { %16516 = sst [smem:[#allocation47_spill]] %s16362_s2 }
   0x4   :  { %16517 = sst [smem:[#allocation48_spill]] %s16363_s3 }
   0x5   :  { %16518 = sst [smem:[#allocation49_spill]] %s16364_s4 }
   0x6   :  { %16519 = sst [smem:[#allocation50_spill]] %s16365_s5 }
   0x7   :  { %16520 = sst [smem:[#allocation51_spill]] %s16366_s6 }
   0x8   :  { %16521 = sst [smem:[#allocation52_spill]] %s16367_s7 }
   0x9   :  { %16522 = sst [smem:[#allocation53_spill]] %s16368_s8 }
   0xa   :  { %16523 = sst [smem:[#allocation54_spill]] %s16369_s9 }
   0xb   :  { %16524 = sst [smem:[#allocation55_spill]] %s16370_s10 }
   0xc   :  { %16525 = sst [smem:[#allocation56_spill]] %s16371_s11 }
   0xd   :  { %16526 = sst [smem:[#allocation57_spill]] %s16372_s12 }
   0xe   :  { %16527 = sst [smem:[#allocation58_spill]] %s16385_s25 }
   0xf   :  { %30 = vsyncpa [#allocation3], 0 }
  0x10   :  { %31 = vsyncpa [#allocation6], 0 }
  0x11   :  { %32 = vsyncpa [#allocation9], 0 }
  0x12   :  { %33 = vsyncpa [#allocation4], 0 }
  0x13   :  { %35 = vsyncpa [#allocation4 + $0x1], 0  ;;  %s10556_s29 = smov 0   ;;  %s10558_s2 = smov 0  }
  0x14   :  { %s10560_s6 = smov 0   ;;  %s10562_s30 = smov 0  }
  0x15 LB: > { %16528 = sst [smem:[#allocation16_spill]] %s10390_s29  ;;  %s10577_s7 = sadd.s32 4294967295, %s10402_s30   ;;  %s10402_s30 = sphi %s10562_s30, %s16753_s30   ;;  %s10398_s6 = sphi %s10560_s6, %s16756_s6   ;;  %s10394_s2 = sphi %s10558_s2, %s16755_s2   ;;  %s10390_s29 = sphi %s10556_s29, %s16754_s29  }
  0x16   : > { %16529 = sst [smem:[#allocation17_spill]] %s10394_s2  ;;  %s9110_s3 = sadd.s32 4294967294, %s10402_s30  }
  0x17   : > { %16530 = sst [smem:[#allocation18_spill]] %s10398_s6  ;;  %s10581_s26 = sadd.s32 1, %s10402_s30  }
  0x18   : > { %16531 = sst [smem:[#allocation19_spill]] %s10402_s30  ;;  %s578_s1 = sadd.s32 1, %s10398_s6 }
  0x19   : > { %16532 = sst [smem:[#allocation20_spill]] %s10581_s26  ;;  %s575_s8 = ssub.s32 %s10402_s30, %s10581_s26 }
  0x1a   : > { %p588_p0 = scmp.ne.s32.totalorder %s10398_s6, %s10394_s2  ;;  %p576_p1 = scmp.eq.s32.totalorder %s575_s8, 0 }
  0x1b   : > { %p589_p2 = scmp.eq.s32.totalorder %s10577_s7, 1  ;;  %p594_p3 = scmp.ne.s32.totalorder %s10394_s2, %s10390_s29 }
  0x1c   : > { %p595_p4 = scmp.eq.s32.totalorder %s9110_s3, 1  ;;  %p9111_p7 = scmp.ge.s32.totalorder %s10402_s30, 1 }
  0x1d   : > { %s10592_s27 = scalar_select %p576_p1, %s10398_s6, %s578_s1  }
  0x1e   : > { %p10594_p5 = por %p589_p2, %p588_p0  ;;  %p10598_p6 = por %p595_p4, %p594_p3 }
  0x1f   : > { %16533 = sst [smem:[#allocation21_spill]] %s10592_s27  ;;  %p602_p8 = scmp.lt.s32.totalorder %s10402_s30, 3 }
  0x20   : > { %s16534_s4 = scalar_select %p10594_p5, 1, 0 }
  0x21   : > { %s16536_s28 = scalar_select %p10598_p6, 1, 0 }
  0x22   : > { %16535 = sst [smem:[#allocation22_spill]] %s16534_s4  ;;  %p16399_p9 = scmp.eq.s32.totalorder %s10577_s7, 0 }
  0x23   : > { %16537 = sst [smem:[#allocation23_spill]] %s16536_s28  ;;  %p10605_p10 = pnand %p9111_p7, %p602_p8 }
  0x24   : > { %s10404_s5 = smov [#allocation5]   ;;  %s10405_s1 = smov [#allocation8]  }
  0x25   : > { %s16538_s9 = scalar_select %p10605_p10, 1, 0 }
  0x26   : > { %p9839_p11 = pneg %p10605_p10  ;;  %s642_s0 = sshll.u32 %s10404_s5, 4  ;;  %s643_s0 = int_to_ptr.vmem [resolvable:$true] %s642_s0 }
  0x27   : > { %s706_s8 = sshll.u32 %s10405_s1, 4  ;;  %s10406_s27 = smov [#allocation2]   ;;  %s707_s8 = int_to_ptr.vmem [resolvable:$true] %s706_s8 }
  0x28   : > { %p10613_p12 = pnand %p16399_p9, %p9839_p11  ;;  %s614_s6 = sshll.u32 %s10406_s27, 4  ;;  %s615_s6 = int_to_ptr.vmem [resolvable:$true] %s614_s6 }
  0x29   : > { %s10211_s28 = scalar_lea.vmem %s643_s0, 1152  ;;  %p10219_p3 = scmp.lt.s32.totalorder %s643_s0, %s643_s0 }
  0x2a   : > { %p10619_p13 = pneg %p10613_p12  ;;  %p10212_p0 = scmp.ne.s32.totalorder %s643_s0, %s10211_s28 }
  0x2b   : > { %p10220_p4 = scmp.lt.s32.totalorder %s10211_s28, %s10211_s28 }
  0x2c   : > { %p10214_p1 = pnand %p10212_p0, %p10619_p13 }
  0x2d   : > { %p10221_p7 = por %p10220_p4, %p10219_p3 }
  0x2e   : > { %p10215_p2 = pneg %p10214_p1 }
  0x30   : > { %p10222_p8 = pnand %p10221_p7, %p10215_p2 }
  0x32   : > { %10225 = shalt.err (!%p10222_p8)
}
  0x33   : > { %s10407_s5 = smov 128   ;;  %s10408_s27 = smov 8  }
  0x34   : > { %s16541_s30 = sld [smem:[#allocation52_spill]]  ;;  %s10237_s25 = scalar_lea.vmem %s707_s8, 16 }
  0x35   : > { %p10238_p11 = scmp.ne.s32.totalorder %s707_s8, %s10237_s25  ;;  %s10244_s4 = scalar_lea.vmem %s707_s8, 32 }
  0x36   : > { %p10245_p1 = scmp.lt.s32.totalorder %s707_s8, %s707_s8  ;;  %p10246_p6 = scmp.lt.s32.totalorder %s10244_s4, %s10237_s25 }
  0x37   : > { %p10240_p9 = pnand %p10238_p11, %p10619_p13 }
  0x38   : > { %p10247_p3 = por %p10246_p6, %p10245_p1 }
  0x39   : > { %p10241_p0 = pneg %p10240_p9 }
  0x3a   : > { %9845 = dma.hbm_to_vmem [thread:$0]  (!%p10613_p12), %s16541_s30, 1152, %s643_s0, [#allocation6], %s10407_s5, %s10407_s5, %s10408_s27  }
  0x3b   : > { %p10248_p2 = pnand %p10247_p3, %p10241_p0 }
  0x3d   : > { %10251 = shalt.err (!%p10248_p2)
}
  0x3e   : > { %9851 = dma.hbm_to_vmem [thread:$0]  (!%p10613_p12), %s16382_s22, 16, %s707_s8, [#allocation9]  }
  0x3f   : > { %s10263_s29 = scalar_lea.vmem %s615_s6, 256  ;;  %p10271_p9 = scmp.lt.s32.totalorder %s615_s6, %s615_s6 }
  0x40   : > { %p10264_p4 = scmp.ne.s32.totalorder %s615_s6, %s10263_s29  ;;  %p10272_p11 = scmp.lt.s32.totalorder %s10263_s29, %s10263_s29 }
  0x42   : > { %p10266_p7 = pnand %p10264_p4, %p10619_p13  ;;  %p10273_p5 = por %p10272_p11, %p10271_p9 }
  0x44   : > { %p10267_p8 = pneg %p10266_p7 }
  0x46   : > { %p10274_p10 = pnand %p10273_p5, %p10267_p8 }
  0x48   : > { %10277 = shalt.err (!%p10274_p10)
}
  0x49   : > { %s16542_s4 = sld [smem:[#allocation46_spill]]  ;;  %s10409_s2 = smov [#allocation7]  }
  0x4a   : > { %s692_s0 = sshll.u32 %s10409_s2, 4  ;;  %s10410_s8 = smov [#allocation10]   ;;  %s693_s0 = int_to_ptr.vmem [resolvable:$true] %s692_s0 }
  0x4b   : > { %s720_s1 = sshll.u32 %s10410_s8, 4  ;;  %s10289_s28 = scalar_lea.vmem %s693_s0, 16  ;;  %s721_s1 = int_to_ptr.vmem [resolvable:$true] %s720_s1 }
  0x4c   : > { %p10290_p6 = scmp.ne.s32.totalorder %s693_s0, %s10289_s28  ;;  %s10296_s29 = scalar_lea.vmem %s693_s0, 32 }
  0x4d   : > { %p10297_p5 = scmp.lt.s32.totalorder %s693_s0, %s693_s0  ;;  %p10298_p10 = scmp.lt.s32.totalorder %s10296_s29, %s10289_s28 }
  0x4e   : > { %p10292_p0 = pnand %p10290_p6, %p10619_p13 }
  0x4f   : > { %9842 = dma.hbm_to_vmem [thread:$0]  (!%p10613_p12), %s16542_s4, 256, %s615_s6, [#allocation3], %s10407_s5, %s10407_s5, %s10408_s27  }
  0x50   : > { %p10293_p1 = pneg %p10292_p0  ;;  %p10299_p3 = por %p10298_p10, %p10297_p5 }
  0x52   : > { %p10300_p2 = pnand %p10299_p3, %p10293_p1 }
  0x54   : > { %10303 = shalt.err (!%p10300_p2)
}
  0x55   : > { %9848 = dma.hbm_to_vmem [thread:$0]  (!%p10613_p12), %s16380_s20, 16, %s693_s0, [#allocation6]  }
  0x56   : > { %s10315_s5 = scalar_lea.vmem %s721_s1, 16  ;;  %s10322_s27 = scalar_lea.vmem %s721_s1, 32 }
  0x57   : > { %p10316_p4 = scmp.ne.s32.totalorder %s721_s1, %s10315_s5  ;;  %p10323_p9 = scmp.lt.s32.totalorder %s721_s1, %s721_s1 }
  0x58   : > { %p10324_p11 = scmp.lt.s32.totalorder %s10322_s27, %s10315_s5 }
  0x59   : > { %p10318_p7 = pnand %p10316_p4, %p10619_p13 }
  0x5a   : > { %p10325_p6 = por %p10324_p11, %p10323_p9 }
  0x5b   : > { %p10319_p8 = pneg %p10318_p7 }
  0x5d   : > { %p10326_p0 = pnand %p10325_p6, %p10319_p8 }
  0x5f   : > { %10329 = shalt.err (!%p10326_p0)
}
  0x60   : > { %9854 = dma.hbm_to_vmem [thread:$0]  (!%p10613_p12), %s16384_s24, 16, %s721_s1, [#allocation9]  }
  0x61   : > { %p16543_p1 = scmp.ne.s32.totalorder %s16538_s9, 0 }
  0x63   : > { %741 = sbr.rel (%p16543_p1) target bundleno = 5025 (0x13a1), region = 120 }
  0x68   : > { %p16544_p5 = scmp.eq.s32.totalorder %s10577_s7, 0 }
  0x6a   : > { %10373 = dma.done.wait (%p16544_p5), [#allocation3], 256   ;;  %p16545_p13 = pmov %p16544_p5 }
  0x6b   : > { %p16546_p10 = pmov %p16544_p5 }
  0x6c   : > { %10375 = vsyncadd (%p16545_p13), [#allocation3], 4294967040 }
  0x6d   : > { %10377 = dma.done.wait (%p16546_p10), [#allocation6], 1168   ;;  %p16547_p3 = pmov %p16544_p5 }
  0x6f   : > { %10379 = vsyncadd (%p16547_p3), [#allocation6], 4294966128  ;;  %p16548_p2 = pmov %p16547_p3 }
  0x71   : > { %10381 = dma.done.wait (%p16548_p2), [#allocation9], 32   ;;  %p16549_p12 = pmov %p16548_p2 }
  0x72   : > { %p825_p4 = scmp.lt.s32.totalorder %s10577_s7, 1  ;;  %vm968_vm0 = vcmask 1040384   ;;  %s16550_s0 = sld [smem:[#allocation45_spill]]  ;;  %vm871_vm1 = vcmask 72704   ;;  %v863_v0 = vld [vmem:[#allocation2 + $0x8] sm:$0x1] }
  0x73   : > { %10383 = vsyncadd (%p16549_p12), [#allocation9], 4294967264  ;;  %v862_v1 = vld [vmem:[#allocation2] sm:$0xff]  ;;  %9538 = vmatprep.subr.msk.mxu0 %vm968_vm0, %v863_v0  ;;  %v16421_v16 = vmov 0.0   ;;  %vm1437_vm2 = vcmask 1046528   ;;  %s16477_s1 = smov 8  }
  0x74   : > { %s826_s26 = scalar_select %p825_p4, %s10577_s7, 1  ;;  %9539 = vmatpush3.msk.msra.mxu0 %vm968_vm0, %v863_v0  ;;  %v10710_v17 = vrot.slane %v16421_v16, 7  ;;  %vm1614_vm3 = vcmask 1045504   ;;  %vm16492_vm4 = vcmask 64512   ;;  %vm2412_vm5 = vcmask 130048  }
  0x75   : > { %9540 = vmatprep.subr.mxu0 %v862_v1  ;;  %s16465_s28 = smov 16   ;;  %s16553_s6 = sld [smem:[#allocation47_spill]]  ;;  %vm2445_vm6 = vcmask 195584   ;;  %vm2478_vm7 = vcmask 261120   ;;  %vm2511_vm8 = vcmask 326656   ;;  %vm2544_vm9 = vcmask 392192  }
  0x76   : > { %s9291_s9 = sshll.u32 %s826_s26, 8  ;;  %9541 = vmatpush3.msra.mxu0 %v862_v1  ;;  %v10714_v18 = vsel %vm968_vm0, 0.0, %v10710_v17  ;;  %v10718_v19 = vsel %vm968_vm0, %v10710_v17, 0.0  ;;  %v1439_v21 = vrot.slane %v10710_v17, 1  ;;  %v1616_v28 = vrot.slane %v10710_v17, 2  ;;  %s10414_s27 = smov 24  }
  0x77   : > { %16551 = vst [vmem:[#allocation24_spill] sm:$0xff] %v10714_v18  ;;  %16552 = vst [vmem:[#allocation25_spill] sm:$0xff] %v10718_v19  ;;  %v16405_v20 = vrot.slane %v10714_v18, 1  ;;  %v16406_v22 = vrot.slane %v10718_v19, 1  ;;  %v16408_v26 = vrot.slane %v10718_v19, 2  ;;  %v16407_v27 = vrot.slane %v10714_v18, 2 }
  0x78   : > { %s10677_s8 = scalar_lea.vmem %s16550_s0, %s9291_s9  ;;  %s16504_s30 = smov 32   ;;  %vm2577_vm10 = vcmask 457728   ;;  %vm2610_vm11 = vcmask 523264   ;;  %vm16493_vm12 = vcmask 588800   ;;  %vm16496_vm13 = vcmask 1041409  }
  0x79   : > { %v830_v2 = vld [vmem:[%s10677_s8] sm:$0xff]  ;;  %v831_v3 = vld [vmem:[%s10677_s8 + $0x8] sm:$0xff]  ;;  %v832_v4 = vld [vmem:[%s10677_s8 + $0x10] sm:$0xff]  ;;  %v1440_v23 = vsel %vm1437_vm2, %v16405_v20, %v1439_v21  ;;  %v1442_v24 = vsel %vm1437_vm2, %v1439_v21, %v16406_v22  ;;  %v1617_v29 = vsel %vm1614_vm3, %v16407_v27, %v1616_v28  ;;  %v1619_v30 = vsel %vm1614_vm3, %v1616_v28, %v16408_v26  ;;  %s16463_s4 = smov 40   ;;  %s16555_s3 = sld [smem:[#allocation48_spill]] }
  0x7a   : > { %9542 = vmatprep.mubr.msk.f32.mxu0 %vm871_vm1, %v830_v2  ;;  %v833_v5 = vld [vmem:[%s10677_s8 + $0x18] sm:$0xff]  ;;  %v834_v6 = vld [vmem:[%s10677_s8 + $0x20] sm:$0xff]  ;;  %v835_v7 = vld [vmem:[%s10677_s8 + $0x28] sm:$0xff]  ;;  %v10729_v25 = vpack.i.bf16 %v1442_v24, %v1440_v23  ;;  %v10742_v31 = vpack.i.bf16 %v1619_v30, %v1617_v29  ;;  %s16500_s9 = smov 48   ;;  %s10418_s2 = smov 56   ;;  %vm16499_vm14 = vcmask 1042434  }
  0x7b   : > { %9543 = vmatmul.mubr.msk.f32.vlgmr.msra.gmra.mxu0 %vm871_vm1, %v831_v3  ;;  %v836_v8 = vld [vmem:[%s10677_s8 + $0x30] sm:$0xff]  ;;  %v837_v9 = vld [vmem:[%s10677_s8 + $0x38] sm:$0xff]  ;;  %v838_v10 = vld [vmem:[%s10677_s8 + $0x40] sm:$0xff]  ;;  %s16554_s5 = smov %s16553_s6  ;;  %s16461_s26 = smov 64   ;;  %vm16498_vm15 = vcmask 1043459  }
  0x7c   : > { %9545 = vmatprep.mubr.msk.f32.mxu0 %vm871_vm1, %v832_v4  ;;  %v839_v11 = vld [vmem:[%s10677_s8 + $0x48] sm:$0xff]  ;;  %v840_v12 = vld [vmem:[%s10677_s8 + $0x50] sm:$0xff]  ;;  %v841_v13 = vld [vmem:[%s10677_s8 + $0x58] sm:$0xff]  ;;  %9924 = vrot.lane.b32.xlu0 %v10729_v25, %s16477_s1  ;;  %s16577_s25 = sld [smem:[#allocation50_spill]]  ;;  %s16581_s0 = smov 16  }
  0x7d   : > { %v842_v14 = vld [vmem:[%s10677_s8 + $0x60] sm:$0xff]  ;;  %v843_v15 = vld [vmem:[%s10677_s8 + $0x68] sm:$0xff]  ;;  %v844_v32 = vld [vmem:[%s10677_s8 + $0x70] sm:$0xff]  ;;  %s16582_s29 = sld [smem:[#allocation51_spill]] }
  0x7e   : > { %v845_v33 = vld [vmem:[%s10677_s8 + $0x78] sm:$0xff]  ;;  %v846_v34 = vld [vmem:[%s10677_s8 + $0x80] sm:$0xff]  ;;  %v847_v35 = vld [vmem:[%s10677_s8 + $0x88] sm:$0xff]  ;;  %s16721_s10 = sld [smem:[#allocation55_spill]] }
  0x7f   : > { %9546 = vmatmul.mubr.msk.f32.gmra.mxu0 %vm871_vm1, %v833_v5  ;;  %v848_v36 = vld [vmem:[%s10677_s8 + $0x90] sm:$0xff]  ;;  %v849_v37 = vld [vmem:[%s10677_s8 + $0x98] sm:$0xff]  ;;  %v850_v38 = vld [vmem:[%s10677_s8 + $0xa0] sm:$0xff]  ;;  %s16722_s11 = sld [smem:[#allocation56_spill]] }
  0x80   : > { %9548 = vmatprep.mubr.msk.f32.mxu0 %vm871_vm1, %v834_v6  ;;  %9929 = vrot.lane.b32.xlu0 %v10742_v31, %s16465_s28  ;;  %v851_v39 = vld [vmem:[%s10677_s8 + $0xa8] sm:$0xff]  ;;  %v10765_v40 = vld [vmem:[%s16553_s6] ss:$0 sm:$0xff]  ;;  %v852_v62 = vld [vmem:[%s10677_s8 + $0xb0] sm:$0xff]  ;;  %s16575_s6 = sld [smem:[#allocation49_spill]] }
  0x81   : > { %v853_v63 = vld [vmem:[%s10677_s8 + $0xb8] sm:$0xff]  ;;  %v1237_v6 = vld [vmem:[%s16555_s3 + $0x40] sm:$0xff]  ;;  %v1231_v29 = vld [vmem:[%s16555_s3 + $0x10] sm:$0xff]  ;;  %s16725_s12 = sld [smem:[#allocation57_spill]] }
  0x82   : > { %9590 = vmatprep.subr.mxu1 %v1237_v6  ;;  %v1232_v24 = vld [vmem:[%s16555_s3 + $0x18] sm:$0xff]  ;;  %v860_v20 = vld [vmem:[%s10677_s8 + $0xf0] sm:$0xff] }
  0x83   : > { %9549 = vmatmul.mubr.msk.f32.gmra.mxu0 %vm871_vm1, %v835_v7  ;;  %9591 = vmatpush3.msra.mxu1 %v1237_v6  ;;  %v861_v22 = vld [vmem:[%s10677_s8 + $0xf8] sm:$0xff] }
  0x84   : > { %9551 = vmatprep.mubr.msk.f32.mxu0 %vm871_vm1, %v836_v8  ;;  %v1236_v8 = vld [vmem:[%s16555_s3 + $0x38] sm:$0xff] }
  0x85   : > { %9592 = vmatprep.subr.mxu1 %v1236_v8 }
  0x86   : > { %9593 = vmatpush3.msra.mxu1 %v1236_v8 }
  0x87   : > { %9552 = vmatmul.mubr.msk.f32.gmra.mxu0 %vm871_vm1, %v837_v9 }
  0x88   : > { %9554 = vmatprep.mubr.msk.f32.mxu0 %vm871_vm1, %v838_v10  ;;  %v1235_v10 = vld [vmem:[%s16555_s3 + $0x30] sm:$0xff] }
  0x89   : > { %9594 = vmatprep.subr.mxu1 %v1235_v10 }
  0x8a   : > { %9595 = vmatpush3.msra.mxu1 %v1235_v10 }
  0x8b   : > { %9555 = vmatmul.mubr.msk.f32.gmra.mxu0 %vm871_vm1, %v839_v11 }
  0x8c   : > { %9557 = vmatprep.mubr.msk.f32.mxu0 %vm871_vm1, %v840_v12  ;;  %v1234_v12 = vld [vmem:[%s16555_s3 + $0x28] sm:$0xff] }
  0x8d   : > { %9596 = vmatprep.subr.mxu1 %v1234_v12 }
  0x8e   : > { %9597 = vmatpush3.msra.mxu1 %v1234_v12 }
  0x8f   : > { %9558 = vmatmul.mubr.msk.f32.gmra.mxu0 %vm871_vm1, %v841_v13 }
  0x90   : > { %9560 = vmatprep.mubr.msk.f32.mxu0 %vm871_vm1, %v842_v14  ;;  %v1233_v14 = vld [vmem:[%s16555_s3 + $0x20] sm:$0xff] }
  0x91   : > { %9598 = vmatprep.subr.mxu1 %v1233_v14 }
  0x92   : > { %9599 = vmatpush3.msra.mxu1 %v1233_v14  ;;  %v856_v14 = vld [vmem:[%s10677_s8 + $0xd0] sm:$0xff] }
  0x93   : > { %9561 = vmatmul.mubr.msk.f32.gmra.mxu0 %vm871_vm1, %v843_v15  ;;  %9600 = vmatprep.subr.mxu1 %v1232_v24 }
  0x94   : > { %9563 = vmatprep.mubr.msk.f32.mxu0 %vm871_vm1, %v844_v32  ;;  %9601 = vmatpush3.msra.mxu1 %v1232_v24  ;;  %v1230_v32 = vld [vmem:[%s16555_s3 + $0x8] sm:$0xff] }
  0x95   : > { %9602 = vmatprep.subr.mxu1 %v1231_v29 }
  0x96   : > { %9603 = vmatpush3.msra.mxu1 %v1231_v29 }
  0x97   : > { %9564 = vmatmul.mubr.msk.f32.gmra.mxu0 %vm871_vm1, %v845_v33  ;;  %9604 = vmatprep.subr.mxu1 %v1230_v32 }
  0x98   : > { %9566 = vmatprep.mubr.msk.f32.mxu0 %vm871_vm1, %v846_v34  ;;  %v1229_v34 = vld [vmem:[%s16555_s3] sm:$0xff]  ;;  %9605 = vmatpush3.msra.mxu1 %v1230_v32  ;;  %s16723_s3 = smov 96  }
  0x99   : > { %9606 = vmatprep.subr.mxu1 %v1229_v34 }
  0x9a   : > { %9607 = vmatpush3.msra.mxu1 %v1229_v34 }
  0x9b   : > { %9567 = vmatmul.mubr.msk.f32.gmra.mxu0 %vm871_vm1, %v847_v35 }
  0x9c   : > { %9569 = vmatprep.mubr.msk.f32.mxu0 %vm871_vm1, %v848_v36 }
  0x9f   : > { %9570 = vmatmul.mubr.msk.f32.gmra.mxu0 %vm871_vm1, %v849_v37 }
  0xa0   : > { %9572 = vmatprep.mubr.msk.f32.mxu0 %vm871_vm1, %v850_v38 }
  0xa3   : > { %9573 = vmatmul.mubr.msk.f32.gmra.mxu0 %vm871_vm1, %v851_v39 }
  0xa4   : > { %9575 = vmatprep.mubr.msk.f32.mxu0 %vm871_vm1, %v852_v62 }
  0xa7   : > { %9576 = vmatmul.mubr.msk.f32.gmra.mxu0 %vm871_vm1, %v853_v63 }
 0x13b   : > { %v9544_v41 = vpop.f32.mrf.mxu0 }
 0x13c   : > { %v10768_v42 = vadd.f32 %v9544_v41, %v10765_v40 }
 0x13d   : > { %v1038_v43 = vpop.f32.mrf.mxu0 }
 0x13e   : > { %v16415_v44 = vmax.f32 %v10768_v42, 0.0  ;;  %v10772_v45 = vadd.f32 %v10765_v40, %v1038_v43 }
 0x13f   : > { %v9547_v53 = vpop.f32.mrf.mxu0 }
 0x140   : > { %v16417_v46 = vmax.f32 %v10772_v45, 0.0  ;;  %v1275_v47 = vrot.slane %v16415_v44, 7  ;;  %v10804_v0 = vadd.f32 %v9547_v53, %v10765_v40 }
 0x141   : > { %v1048_v57 = vpop.f32.mrf.mxu0 }
 0x142   : > { %v1274_v48 = vrot.slane %v16417_v46, 7  ;;  %v1389_v54 = vsel %vm968_vm0, %v1275_v47, 0.0  ;;  %v10797_v59 = vadd.f32 %v10765_v40, %v1048_v57  ;;  %v16419_v4 = vmax.f32 %v10804_v0, 0.0 }
 0x143   : > { %v1446_v56 = vrot.slane %v1389_v54, 1  ;;  %v1623_v3 = vrot.slane %v1389_v54, 2  ;;  %v9550_v37 = vpop.f32.mrf.mxu0 }
 0x144   : > { %v10780_v49 = vsel %vm968_vm0, %v1274_v48, %v1275_v47  ;;  %v10783_v50 = vsel %vm968_vm0, 0.0, %v1274_v48  ;;  %v16420_v1 = vmax.f32 %v10797_v59, 0.0  ;;  %v1278_v9 = vrot.slane %v16419_v4, 7  ;;  %v854_v47 = vld [vmem:[%s10677_s8 + $0xc0] sm:$0xff]  ;;  %v855_v48 = vld [vmem:[%s10677_s8 + $0xc8] sm:$0xff] }
 0x145   : > { %1792 = vrot.lane.b32.xlu1 %v10783_v50, %s10414_s27  ;;  %v1443_v51 = vrot.slane %v10783_v50, 1  ;;  %v1444_v52 = vrot.slane %v10780_v49, 1  ;;  %v1620_v60 = vrot.slane %v10783_v50, 2  ;;  %v1621_v61 = vrot.slane %v10780_v49, 2  ;;  %v1058_v39 = vpop.f32.mrf.mxu0  ;;  %9578 = vmatprep.mubr.msk.f32.mxu0 %vm871_vm1, %v854_v47 }
 0x146   : > { %v1277_v7 = vrot.slane %v16420_v1, 7  ;;  %v1390_v15 = vsel %vm968_vm0, %v1278_v9, 0.0  ;;  %v10878_v43 = vadd.f32 %v10765_v40, %v1058_v39  ;;  %9579 = vmatmul.mubr.msk.f32.gmra.mxu0 %vm871_vm1, %v855_v48 }
 0x147   : > { %v1445_v55 = vsel %vm1437_vm2, %v1443_v51, %v1444_v52  ;;  %v1447_v58 = vsel %vm1437_vm2, %v1444_v52, %v1446_v56  ;;  %v1622_v2 = vsel %vm1614_vm3, %v1620_v60, %v1621_v61  ;;  %v1624_v5 = vsel %vm1614_vm3, %v1621_v61, %v1623_v3  ;;  %9581 = vmatprep.mubr.msk.f32.mxu0 %vm871_vm1, %v856_v14 }
 0x148   : > { %1894 = vrot.lane.b32.xlu0 %v1445_v55, %s16504_s30  ;;  %v10831_v11 = vsel %vm968_vm0, 0.0, %v1277_v7  ;;  %v10840_v13 = vsel %vm968_vm0, %v1277_v7, %v1278_v9  ;;  %v1451_v28 = vrot.slane %v1390_v15, 1  ;;  %v1628_v41 = vrot.slane %v1390_v15, 2  ;;  %v9553_v7 = vpop.f32.mrf.mxu0  ;;  %v857_v15 = vld [vmem:[%s10677_s8 + $0xd8] sm:$0xff] }
 0x149   : > { %1794 = vrot.lane.b32.xlu1 %v10780_v49, %s10414_s27  ;;  %v1448_v21 = vrot.slane %v10831_v11, 1  ;;  %v1449_v23 = vrot.slane %v10840_v13, 1  ;;  %v1625_v35 = vrot.slane %v10831_v11, 2  ;;  %v1626_v36 = vrot.slane %v10840_v13, 2 }
 0x14a   : > { %v10883_v51 = vadd.f32 %v9550_v37, %v10765_v40  ;;  %v16418_v52 = vmax.f32 %v10878_v43, 0.0  ;;  %v1068_v9 = vpop.f32.mrf.mxu0  ;;  %9582 = vmatmul.mubr.msk.f32.gmra.mxu0 %vm871_vm1, %v857_v15 }
 0x14b   : > { %v1450_v30 = vsel %vm1437_vm2, %v1448_v21, %v1449_v23  ;;  %v1452_v33 = vsel %vm1437_vm2, %v1449_v23, %v1451_v28  ;;  %v1627_v38 = vsel %vm1614_vm3, %v1625_v35, %v1626_v36  ;;  %v1629_v53 = vsel %vm1614_vm3, %v1626_v36, %v1628_v41 }
 0x14c   : > { %1896 = vrot.lane.b32.xlu0 %v1447_v58, %s16504_s30  ;;  %v16416_v54 = vmax.f32 %v10883_v51, 0.0  ;;  %v10929_v12 = vadd.f32 %v10765_v40, %v1068_v9  ;;  %v10934_v21 = vadd.f32 %v9553_v7, %v10765_v40  ;;  %v9556_v48 = vpop.f32.mrf.mxu0 }
 0x14d   : > { %1522 = vrot.lane.b32.xlu1 %v1445_v55, %s16477_s1  ;;  %v1280_v55 = vrot.slane %v16418_v52, 7 }
 0x14e   : > { %v1281_v56 = vrot.slane %v16416_v54, 7  ;;  %v16412_v23 = vmax.f32 %v10929_v12, 0.0  ;;  %v16411_v28 = vmax.f32 %v10934_v21, 0.0 }
 0x14f   : > { %v10900_v57 = vsel %vm968_vm0, 0.0, %v1280_v55 }
 0x150   : > { %1524 = vrot.lane.b32.xlu0 %v1447_v58, %s16477_s1  ;;  %v10906_v58 = vsel %vm968_vm0, %v1280_v55, %v1281_v56  ;;  %v1391_v60 = vsel %vm968_vm0, %v1281_v56, 0.0  ;;  %v1453_v61 = vrot.slane %v10900_v57, 1  ;;  %v1283_v29 = vrot.slane %v16412_v23, 7  ;;  %v1078_v55 = vpop.f32.mrf.mxu0 }
 0x151   : > { %1995 = vrot.lane.b32.xlu1 %v1622_v2, %s16463_s4  ;;  %v1454_v62 = vrot.slane %v10906_v58, 1  ;;  %v1456_v63 = vrot.slane %v1391_v60, 1  ;;  %v1631_v6 = vrot.slane %v10906_v58, 2  ;;  %v1633_v10 = vrot.slane %v1391_v60, 2 }
 0x152   : > { %v10951_v32 = vsel %vm968_vm0, 0.0, %v1283_v29  ;;  %v10980_v60 = vadd.f32 %v10765_v40, %v1078_v55 }
 0x153   : > { %v1457_v3 = vsel %vm1437_vm2, %v1454_v62, %v1456_v63  ;;  %v1634_v24 = vsel %vm1614_vm3, %v1631_v6, %v1633_v10  ;;  %v1458_v35 = vrot.slane %v10951_v32, 1  ;;  %v1635_v41 = vrot.slane %v10951_v32, 2 }
 0x154   : > { %1997 = vrot.lane.b32.xlu0 %v1624_v5, %s16463_s4  ;;  %v10985_v63 = vadd.f32 %v9556_v48, %v10765_v40 }
 0x155   : > { %1699 = vrot.lane.b32.xlu1 %v1622_v2, %s16465_s28  ;;  %v1455_v2 = vsel %vm1437_vm2, %v1453_v61, %v1454_v62  ;;  %v858_v61 = vld [vmem:[%s10677_s8 + $0xe0] sm:$0xff]  ;;  %v859_v62 = vld [vmem:[%s10677_s8 + $0xe8] sm:$0xff]  ;;  %s16576_s8 = smov %s16575_s6 }
 0x156   : > { %9584 = vmatprep.mubr.msk.f32.mxu0 %vm871_vm1, %v858_v61 }
 0x157   : > { %9585 = vmatmul.mubr.msk.f32.gmra.mxu0 %vm871_vm1, %v859_v62 }
 0x158   : > { %1701 = vrot.lane.b32.xlu0 %v1624_v5, %s16465_s28  ;;  %v1630_v5 = vrot.slane %v10900_v57, 2  ;;  %9587 = vmatprep.mubr.msk.f32.mxu0 %vm871_vm1, %v860_v20 }
 0x159   : > { %2091 = vrot.lane.b32.xlu1 %v10831_v11, %s16500_s9 }
 0x15a   : > { %v1632_v8 = vsel %vm1614_vm3, %v1630_v5, %v1631_v6  ;;  %v16409_v6 = vmax.f32 %v10985_v63, 0.0 }
 0x15b   : > { %9588 = vmatmul.mubr.msk.f32.gmra.mxu0 %vm871_vm1, %v861_v22  ;;  %vm16497_vm1 = vcmask 1044484  }
 0x15c   : > { %2093 = vrot.lane.b32.xlu0 %v10840_v13, %s16500_s9 }
 0x15d   : > { %1796 = vrot.lane.b32.xlu1 %v10831_v11, %s10414_s27 }
 0x160   : > { %1798 = vrot.lane.b32.xlu0 %v10840_v13, %s10414_s27 }
 0x161   : > { %2187 = vrot.lane.b32.xlu1 %v1450_v30, %s10418_s2 }
 0x164   : > { %2189 = vrot.lane.b32.xlu0 %v1452_v33, %s10418_s2 }
 0x165   : > { %1898 = vrot.lane.b32.xlu1 %v1450_v30, %s16504_s30 }
 0x168   : > { %1526 = vrot.lane.b32.xlu0 %v1450_v30, %s16477_s1  ;;  %v1284_v30 = vrot.slane %v16411_v28, 7 }
 0x169   : > { %2283 = vrot.lane.b32.xlu1 %v1627_v38, %s16461_s26 }
 0x16a   : > { %v1392_v34 = vsel %vm968_vm0, %v1284_v30, 0.0 }
 0x16b   : > { %v1461_v37 = vrot.slane %v1392_v34, 1  ;;  %v1638_v56 = vrot.slane %v1392_v34, 2 }
 0x16c   : > { %1999 = vrot.lane.b32.xlu0 %v1627_v38, %s16463_s4 }
 0x16d   : > { %1900 = vrot.lane.b32.xlu1 %v1452_v33, %s16504_s30 }
 0x170   : > { %1528 = vrot.lane.b32.xlu0 %v1452_v33, %s16477_s1  ;;  %v10957_v33 = vsel %vm968_vm0, %v1283_v29, %v1284_v30 }
 0x171   : > { %2285 = vrot.lane.b32.xlu1 %v1629_v53, %s16461_s26  ;;  %v1459_v36 = vrot.slane %v10957_v33, 1  ;;  %v1636_v47 = vrot.slane %v10957_v33, 2 }
 0x173   : > { %v1462_v39 = vsel %vm1437_vm2, %v1459_v36, %v1461_v37  ;;  %v1639_v5 = vsel %vm1614_vm3, %v1636_v47, %v1638_v56  ;;  %v9559_v56 = vpop.f32.mrf.mxu0 }
 0x174   : > { %2001 = vrot.lane.b32.xlu0 %v1629_v53, %s16463_s4 }
 0x175   : > { %1703 = vrot.lane.b32.xlu1 %v1627_v38, %s16465_s28  ;;  %v1460_v38 = vsel %vm1437_vm2, %v1458_v35, %v1459_v36 }
 0x178   : > { %1705 = vrot.lane.b32.xlu0 %v1629_v53, %s16465_s28  ;;  %v1637_v53 = vsel %vm1614_vm3, %v1635_v41, %v1636_v47 }
 0x179   : > { %2095 = vrot.lane.b32.xlu1 %v10900_v57, %s16500_s9 }
 0x17c   : > { %2097 = vrot.lane.b32.xlu0 %v10906_v58, %s16500_s9 }
 0x17d   : > { %1800 = vrot.lane.b32.xlu1 %v10900_v57, %s10414_s27 }
 0x180   : > { %1802 = vrot.lane.b32.xlu0 %v10906_v58, %s10414_s27 }
 0x181   : > { %2191 = vrot.lane.b32.xlu1 %v1455_v2, %s10418_s2 }
 0x184   : > { %2193 = vrot.lane.b32.xlu0 %v1457_v3, %s10418_s2 }
 0x185   : > { %1902 = vrot.lane.b32.xlu1 %v1455_v2, %s16504_s30 }
 0x188   : > { %1530 = vrot.lane.b32.xlu0 %v1455_v2, %s16477_s1  ;;  %v16410_v2 = vmax.f32 %v10980_v60, 0.0 }
 0x189   : > { %2287 = vrot.lane.b32.xlu1 %v1632_v8, %s16461_s26 }
 0x18a   : > { %v1286_v7 = vrot.slane %v16410_v2, 7 }
 0x18c   : > { %2003 = vrot.lane.b32.xlu0 %v1632_v8, %s16463_s4  ;;  %v11008_v14 = vsel %vm968_vm0, 0.0, %v1286_v7 }
 0x18d   : > { %1904 = vrot.lane.b32.xlu1 %v1457_v3, %s16504_s30  ;;  %v1463_v34 = vrot.slane %v11008_v14, 1 }
 0x190   : > { %1532 = vrot.lane.b32.xlu0 %v1457_v3, %s16477_s1  ;;  %v10991_v3 = vpop.permute.xlu0 %9924 }
 0x191   : > { %2289 = vrot.lane.b32.xlu1 %v1634_v24, %s16461_s26  ;;  %v9926_v27 = vunpack.i.l.bf16 %v10991_v3  ;;  %v9927_v28 = vunpack.i.h.bf16 %v10991_v3 }
 0x194   : > { %2005 = vrot.lane.b32.xlu0 %v1634_v24, %s16463_s4  ;;  %v11003_v9 = vpop.permute.xlu0 %9929 }
 0x195   : > { %1707 = vrot.lane.b32.xlu1 %v1632_v8, %s16465_s28  ;;  %v1287_v8 = vrot.slane %v16409_v6, 7 }
 0x197   : > { %v11014_v15 = vsel %vm968_vm0, %v1286_v7, %v1287_v8  ;;  %v1393_v30 = vsel %vm968_vm0, %v1287_v8, 0.0  ;;  %v1088_v7 = vpop.f32.mrf.mxu0 }
 0x198   : > { %1709 = vrot.lane.b32.xlu0 %v1634_v24, %s16465_s28  ;;  %v1464_v35 = vrot.slane %v11014_v15, 1  ;;  %v1466_v37 = vrot.slane %v1393_v30, 1  ;;  %v1641_v55 = vrot.slane %v11014_v15, 2 }
 0x199   : > { %2099 = vrot.lane.b32.xlu1 %v10951_v32, %s16500_s9 }
 0x19a   : > { %v1467_v48 = vsel %vm1437_vm2, %v1464_v35, %v1466_v37  ;;  %v11053_v37 = vadd.f32 %v10765_v40, %v1088_v7  ;;  %v9931_v7 = vunpack.i.l.bf16 %v11003_v9 }
 0x19c   : > { %2101 = vrot.lane.b32.xlu0 %v10957_v33, %s16500_s9  ;;  %v16413_v26 = vmax.f32 %v11053_v37, 0.0 }
 0x19d   : > { %1804 = vrot.lane.b32.xlu1 %v10951_v32, %s10414_s27 }
 0x1a0   : > { %1806 = vrot.lane.b32.xlu0 %v10957_v33, %s10414_s27 }
 0x1a1   : > { %2195 = vrot.lane.b32.xlu1 %v1460_v38, %s10418_s2 }
 0x1a4   : > { %2197 = vrot.lane.b32.xlu0 %v1462_v39, %s10418_s2 }
 0x1a5   : > { %1906 = vrot.lane.b32.xlu1 %v1460_v38, %s16504_s30 }
 0x1a8   : > { %1534 = vrot.lane.b32.xlu0 %v1460_v38, %s16477_s1 }
 0x1a9   : > { %2291 = vrot.lane.b32.xlu1 %v1637_v53, %s16461_s26 }
 0x1ac   : > { %2007 = vrot.lane.b32.xlu0 %v1637_v53, %s16463_s4 }
 0x1ad   : > { %1908 = vrot.lane.b32.xlu1 %v1462_v39, %s16504_s30 }
 0x1b0   : > { %1536 = vrot.lane.b32.xlu0 %v1462_v39, %s16477_s1  ;;  %v1465_v39 = vsel %vm1437_vm2, %v1463_v34, %v1464_v35  ;;  %v1643_v35 = vrot.slane %v1393_v30, 2 }
 0x1b1   : > { %2293 = vrot.lane.b32.xlu1 %v1639_v5, %s16461_s26 }
 0x1b2   : > { %v1644_v6 = vsel %vm1614_vm3, %v1641_v55, %v1643_v35  ;;  %v9932_v35 = vunpack.i.h.bf16 %v11003_v9 }
 0x1b4   : > { %2009 = vrot.lane.b32.xlu0 %v1639_v5, %s16463_s4 }
 0x1b5   : > { %1711 = vrot.lane.b32.xlu1 %v1637_v53, %s16465_s28  ;;  %v1640_v53 = vrot.slane %v11008_v14, 2 }
 0x1b7   : > { %v11005_v10 = vpop.permute.xlu1 %1792 }
 0x1b8   : > { %1713 = vrot.lane.b32.xlu0 %v1639_v5, %s16465_s28  ;;  %v1642_v5 = vsel %vm1614_vm3, %v1640_v53, %v1641_v55 }
 0x1b9   : > { %2103 = vrot.lane.b32.xlu1 %v11008_v14, %s16500_s9 }
 0x1ba   : > { %v11016_v24 = vpop.permute.xlu0 %1894 }
 0x1bb   : > { %v11018_v29 = vpop.permute.xlu1 %1794 }
 0x1bc   : > { %2105 = vrot.lane.b32.xlu0 %v11014_v15, %s16500_s9 }
 0x1bd   : > { %1808 = vrot.lane.b32.xlu1 %v11008_v14, %s10414_s27 }
 0x1be   : > { %v11027_v36 = vpop.permute.xlu0 %1896 }
 0x1bf   : > { %v11029_v38 = vpop.permute.xlu1 %1522 }
 0x1c0   : > { %1810 = vrot.lane.b32.xlu0 %v11014_v15, %s10414_s27  ;;  %v2382_v4 = vsel %vm16492_vm4, %v10783_v50, %v11029_v38 }
 0x1c1   : > { %2199 = vrot.lane.b32.xlu1 %v1465_v39, %s10418_s2 }
 0x1c2   : > { %v11035_v41 = vpop.permute.xlu0 %1524 }
 0x1c3   : > { %v1996_v47 = vpop.permute.xlu1 %1995 }
 0x1c4   : > { %2201 = vrot.lane.b32.xlu0 %v1467_v48, %s10418_s2 }
 0x1c5   : > { %1910 = vrot.lane.b32.xlu1 %v1465_v39, %s16504_s30 }
 0x1c6   : > { %v11042_v61 = vpop.permute.xlu0 %1997 }
 0x1c7   : > { %v11044_v62 = vpop.permute.xlu1 %1699 }
 0x1c8   : > { %1538 = vrot.lane.b32.xlu0 %v1465_v39, %s16477_s1  ;;  %v11059_v39 = vadd.f32 %v9559_v56, %v10765_v40  ;;  %v2380_v56 = vsel %vm16492_vm4, %v10714_v18, %v9926_v27 }
 0x1c9   : > { %2295 = vrot.lane.b32.xlu1 %v1642_v5, %s16461_s26  ;;  %v11078_v23 = vsel %vm2412_vm5, %v2380_v56, %v9931_v7 }
 0x1ca   : > { %v11049_v8 = vpop.permute.xlu0 %1701  ;;  %v16414_v20 = vmax.f32 %v11059_v39, 0.0  ;;  %v2446_v3 = vsel %vm2445_vm6, %v11078_v23, %v11005_v10 }
 0x1cb   : > { %v2092_v34 = vpop.permute.xlu1 %2091  ;;  %v2479_v56 = vsel %vm2478_vm7, %v2446_v3, %v11016_v24 }
 0x1cc   : > { %2011 = vrot.lane.b32.xlu0 %v1642_v5, %s16463_s4  ;;  %v1290_v27 = vrot.slane %v16414_v20, 7  ;;  %v2512_v9 = vsel %vm2511_vm8, %v2479_v56, %v1996_v47 }
 0x1cd   : > { %1912 = vrot.lane.b32.xlu1 %v1467_v48, %s16504_s30  ;;  %v2545_v24 = vsel %vm2544_vm9, %v2512_v9, %v2092_v34 }
 0x1ce   : > { %v2094_v53 = vpop.permute.xlu0 %2093  ;;  %v1394_v47 = vsel %vm968_vm0, %v1290_v27, 0.0 }
 0x1cf   : > { %v11064_v30 = vpop.permute.xlu1 %1796 }
 0x1d0   : > { %1540 = vrot.lane.b32.xlu0 %v1467_v48, %s16477_s1  ;;  %v1289_v48 = vrot.slane %v16413_v26, 7  ;;  %v2381_v26 = vsel %vm16492_vm4, %v10710_v17, %v9927_v28 }
 0x1d1   : > { %2297 = vrot.lane.b32.xlu1 %v1644_v6, %s16461_s26  ;;  %v11110_v28 = vsel %vm2412_vm5, %v2381_v26, %v9932_v35 }
 0x1d2   : > { %v11074_v2 = vpop.permute.xlu0 %1798  ;;  %v11097_v20 = vsel %vm968_vm0, 0.0, %v1289_v48  ;;  %v11104_v10 = vsel %vm968_vm0, %v1289_v48, %v1290_v27  ;;  %v1471_v27 = vrot.slane %v1394_v47, 1 }
 0x1d3   : > { %v2188_v22 = vpop.permute.xlu1 %2187  ;;  %v1468_v56 = vrot.slane %v11097_v20, 1  ;;  %v1469_v34 = vrot.slane %v11104_v10, 1 }
 0x1d4   : > { %2013 = vrot.lane.b32.xlu0 %v1644_v6, %s16463_s4  ;;  %v2578_v3 = vsel %vm2577_vm10, %v2545_v24, %v2188_v22  ;;  %v2447_v22 = vsel %vm2445_vm6, %v11110_v28, %v11018_v29 }
 0x1d5   : > { %1715 = vrot.lane.b32.xlu1 %v1642_v5, %s16465_s28  ;;  %v2480_v9 = vsel %vm2478_vm7, %v2447_v22, %v11027_v36  ;;  %v1470_v24 = vsel %vm1437_vm2, %v1468_v56, %v1469_v34  ;;  %v1472_v54 = vsel %vm1437_vm2, %v1469_v34, %v1471_v27  ;;  %v1645_v56 = vrot.slane %v11097_v20, 2 }
 0x1d6   : > { %v2190_v55 = vpop.permute.xlu0 %2189  ;;  %v1646_v22 = vrot.slane %v11104_v10, 2 }
 0x1d7   : > { %v11090_v7 = vpop.permute.xlu1 %1898 }
 0x1d8   : > { %1717 = vrot.lane.b32.xlu0 %v1644_v6, %s16465_s28 }
 0x1d9   : > { %2107 = vrot.lane.b32.xlu1 %v11097_v20, %s16500_s9 }
 0x1da   : > { %v11107_v5 = vpop.permute.xlu0 %1526 }
 0x1db   : > { %v2284_v6 = vpop.permute.xlu1 %2283 }
 0x1dc   : > { %2109 = vrot.lane.b32.xlu0 %v11104_v10, %s16500_s9  ;;  %v2611_v48 = vsel %vm2610_vm11, %v2578_v3, %v2284_v6  ;;  %v2513_v3 = vsel %vm2511_vm8, %v2480_v9, %v11042_v61  ;;  %v9562_v61 = vpop.f32.mrf.mxu0 }
 0x1dd   : > { %1812 = vrot.lane.b32.xlu1 %v11097_v20, %s10414_s27  ;;  %9608 = vmatprep.mubr.msk.f32.mxu1 %vm16493_vm12, %v2611_v48  ;;  %v2546_v6 = vsel %vm2544_vm9, %v2513_v3, %v2094_v53  ;;  %v1648_v3 = vrot.slane %v1394_v47, 2 }
 0x1de   : > { %v2000_v26 = vpop.permute.xlu0 %1999  ;;  %v2579_v29 = vsel %vm2577_vm10, %v2546_v6, %v2190_v55  ;;  %v1647_v55 = vsel %vm1614_vm3, %v1645_v56, %v1646_v22 }
 0x1df   : > { %v11125_v35 = vpop.permute.xlu1 %1900  ;;  %v1649_v46 = vsel %vm1614_vm3, %v1646_v22, %v1648_v3  ;;  %v2415_v22 = vsel %vm2412_vm5, %v2382_v4, %v11044_v62 }
 0x1e0   : > { %1814 = vrot.lane.b32.xlu0 %v11104_v10, %s10414_s27  ;;  %v2448_v1 = vsel %vm2445_vm6, %v2415_v22, %v11064_v30 }
 0x1e1   : > { %2203 = vrot.lane.b32.xlu1 %v1470_v24, %s10418_s2 }
 0x1e2   : > { %v11136_v48 = vpop.permute.xlu0 %1528 }
 0x1e3   : > { %v2286_v44 = vpop.permute.xlu1 %2285 }
 0x1e4   : > { %v2612_v36 = vsel %vm2610_vm11, %v2579_v29, %v2286_v44  ;;  %2205 = vrot.lane.b32.xlu0 %v1472_v54, %s10418_s2  ;;  %v1098_v44 = vpop.f32.mrf.mxu0  ;;  %v11158_v29 = vadd.f32 %v9562_v61, %v10765_v40 }
 0x1e5   : > { %1914 = vrot.lane.b32.xlu1 %v1470_v24, %s16504_s30  ;;  %9609 = vmatmul.mubr.msk.f32.vlgmr.msra.gmra.mxu1 %vm16493_vm12, %v2612_v36  ;;  %v11155_v6 = vadd.f32 %v10765_v40, %v1098_v44 }
 0x1e6   : > { %v2002_v53 = vpop.permute.xlu0 %2001  ;;  %v16426_v47 = vmax.f32 %v11158_v29, 0.0 }
 0x1e7   : > { %v11146_v9 = vpop.permute.xlu1 %1703  ;;  %16556 = vst [vmem:[#allocation26_spill] sm:$0xff] %v11155_v6  ;;  %v16423_v56 = vmax.f32 %v11155_v6, 0.0 }
 0x1e8   : > { %1542 = vrot.lane.b32.xlu0 %v1470_v24, %s16477_s1 }
 0x1e9   : > { %2299 = vrot.lane.b32.xlu1 %v1647_v55, %s16461_s26  ;;  %v1292_v61 = vrot.slane %v16423_v56, 7  ;;  %v2481_v56 = vsel %vm2478_vm7, %v2448_v1, %v11090_v7 }
 0x1ea   : > { %v11151_v34 = vpop.permute.xlu0 %1705  ;;  %v2514_v50 = vsel %vm2511_vm8, %v2481_v56, %v2000_v26 }
 0x1eb   : > { %v2096_v27 = vpop.permute.xlu1 %2095  ;;  %v11188_v19 = vsel %vm968_vm0, 0.0, %v1292_v61 }
 0x1ec   : > { %2015 = vrot.lane.b32.xlu0 %v1647_v55, %s16463_s4  ;;  %v2547_v38 = vsel %vm2544_vm9, %v2514_v50, %v2096_v27  ;;  %v2383_v27 = vsel %vm16492_vm4, %v10780_v49, %v11035_v41 }
 0x1ed   : > { %1916 = vrot.lane.b32.xlu1 %v1472_v54, %s16504_s30 }
 0x1ee   : > { %v2098_v24 = vpop.permute.xlu0 %2097 }
 0x1ef   : > { %v11161_v36 = vpop.permute.xlu1 %1800 }
 0x1f0   : > { %1544 = vrot.lane.b32.xlu0 %v1472_v54, %s16477_s1  ;;  %v1293_v54 = vrot.slane %v16426_v47, 7 }
 0x1f1   : > { %2301 = vrot.lane.b32.xlu1 %v1649_v46, %s16461_s26 }
 0x1f2   : > { %v11168_v44 = vpop.permute.xlu0 %1802  ;;  %v11195_v4 = vsel %vm968_vm0, %v1292_v61, %v1293_v54  ;;  %v1395_v7 = vsel %vm968_vm0, %v1293_v54, 0.0 }
 0x1f3   : > { %v2192_v52 = vpop.permute.xlu1 %2191  ;;  %v1474_v26 = vrot.slane %v11195_v4, 1  ;;  %v1476_v54 = vrot.slane %v1395_v7, 1 }
 0x1f4   : > { %2017 = vrot.lane.b32.xlu0 %v1649_v46, %s16463_s4  ;;  %v2580_v30 = vsel %vm2577_vm10, %v2547_v38, %v2192_v52  ;;  %v2416_v52 = vsel %vm2412_vm5, %v2383_v27, %v11049_v8 }
 0x1f5   : > { %1719 = vrot.lane.b32.xlu1 %v1647_v55, %s16465_s28  ;;  %v2449_v61 = vsel %vm2445_vm6, %v2416_v52, %v11074_v2 }
 0x1f6   : > { %v2194_v3 = vpop.permute.xlu0 %2193  ;;  %v2482_v50 = vsel %vm2478_vm7, %v2449_v61, %v11125_v35 }
 0x1f7   : > { %v11183_v16 = vpop.permute.xlu1 %1902  ;;  %v2515_v41 = vsel %vm2511_vm8, %v2482_v50, %v2002_v53  ;;  %v9565_v53 = vpop.f32.mrf.mxu0 }
 0x1f8   : > { %1721 = vrot.lane.b32.xlu0 %v1649_v46, %s16465_s28  ;;  %v1473_v46 = vrot.slane %v11188_v19, 1  ;;  %v2548_v8 = vsel %vm2544_vm9, %v2515_v41, %v2098_v24  ;;  %v11249_v41 = vadd.f32 %v9565_v53, %v10765_v40 }
 0x1f9   : > { %2111 = vrot.lane.b32.xlu1 %v11188_v19, %s16500_s9  ;;  %v2581_v2 = vsel %vm2577_vm10, %v2548_v8, %v2194_v3 }
 0x1fa   : > { %v11198_v62 = vpop.permute.xlu0 %1530  ;;  %v1475_v49 = vsel %vm1437_vm2, %v1473_v46, %v1474_v26  ;;  %v1651_v46 = vrot.slane %v11195_v4, 2  ;;  %16558 = vst [vmem:[#allocation28_spill] sm:$0xff] %v11249_v41 }
 0x1fb   : > { %v2288_v1 = vpop.permute.xlu1 %2287 }
 0x1fc   : > { %v2613_v55 = vsel %vm2610_vm11, %v2580_v30, %v2288_v1  ;;  %2113 = vrot.lane.b32.xlu0 %v11195_v4, %s16500_s9  ;;  %v1477_v1 = vsel %vm1437_vm2, %v1474_v26, %v1476_v54  ;;  %v1108_v26 = vpop.f32.mrf.mxu0  ;;  %v1653_v54 = vrot.slane %v1395_v7, 2  ;;  %v16430_v7 = vmax.f32 %v11249_v41, 0.0 }
 0x1fd   : > { %1816 = vrot.lane.b32.xlu1 %v11188_v19, %s10414_s27  ;;  %9611 = vmatprep.mubr.msk.f32.mxu1 %vm16493_vm12, %v2613_v55  ;;  %v1650_v55 = vrot.slane %v11188_v19, 2  ;;  %v11246_v50 = vadd.f32 %v10765_v40, %v1108_v26  ;;  %v2384_v26 = vsel %vm16492_vm4, %v10831_v11, %v11107_v5 }
 0x1fe   : > { %v2004_v56 = vpop.permute.xlu0 %2003 }
 0x1ff   : > { %v11217_v22 = vpop.permute.xlu1 %1904  ;;  %v1652_v3 = vsel %vm1614_vm3, %v1650_v55, %v1651_v46  ;;  %16557 = vst [vmem:[#allocation27_spill] sm:$0xff] %v11246_v50 }
 0x200   : > { %1818 = vrot.lane.b32.xlu0 %v11195_v4, %s10414_s27 }
 0x201   : > { %2207 = vrot.lane.b32.xlu1 %v1475_v49, %s10418_s2 }
 0x202   : > { %v11227_v38 = vpop.permute.xlu0 %1532 }
 0x203   : > { %v2290_v30 = vpop.permute.xlu1 %2289 }
 0x204   : > { %v2614_v35 = vsel %vm2610_vm11, %v2581_v2, %v2290_v30  ;;  %2209 = vrot.lane.b32.xlu0 %v1477_v1, %s10418_s2  ;;  %v16428_v2 = vmax.f32 %v11246_v50, 0.0  ;;  %v1654_v30 = vsel %vm1614_vm3, %v1651_v46, %v1653_v54  ;;  %v2417_v46 = vsel %vm2412_vm5, %v2384_v26, %v11146_v9 }
 0x205   : > { %1918 = vrot.lane.b32.xlu1 %v1475_v49, %s16504_s30  ;;  %9612 = vmatmul.mubr.msk.f32.gmra.mxu1 %vm16493_vm12, %v2614_v35  ;;  %v2450_v47 = vsel %vm2445_vm6, %v2417_v46, %v11161_v36 }
 0x206   : > { %v2006_v24 = vpop.permute.xlu0 %2005  ;;  %v1295_v53 = vrot.slane %v16428_v2, 7  ;;  %v2483_v2 = vsel %vm2478_vm7, %v2450_v47, %v11183_v16 }
 0x207   : > { %v11237_v27 = vpop.permute.xlu1 %1707  ;;  %v2516_v11 = vsel %vm2511_vm8, %v2483_v2, %v2004_v56 }
 0x208   : > { %1546 = vrot.lane.b32.xlu0 %v1475_v49, %s16477_s1  ;;  %v11279_v6 = vsel %vm968_vm0, 0.0, %v1295_v53 }
 0x209   : > { %2303 = vrot.lane.b32.xlu1 %v1652_v3, %s16461_s26  ;;  %v1478_v56 = vrot.slane %v11279_v6, 1 }
 0x20a   : > { %v11242_v52 = vpop.permute.xlu0 %1709 }
 0x20b   : > { %v2100_v61 = vpop.permute.xlu1 %2099 }
 0x20c   : > { %2019 = vrot.lane.b32.xlu0 %v1652_v3, %s16463_s4  ;;  %v2549_v9 = vsel %vm2544_vm9, %v2516_v11, %v2100_v61  ;;  %v2385_v61 = vsel %vm16492_vm4, %v10840_v13, %v11136_v48 }
 0x20d   : > { %1920 = vrot.lane.b32.xlu1 %v1477_v1, %s16504_s30 }
 0x20e   : > { %v2102_v49 = vpop.permute.xlu0 %2101 }
 0x20f   : > { %v11252_v8 = vpop.permute.xlu1 %1804 }
 0x210   : > { %1548 = vrot.lane.b32.xlu0 %v1477_v1, %s16477_s1  ;;  %v1296_v1 = vrot.slane %v16430_v7, 7 }
 0x211   : > { %2305 = vrot.lane.b32.xlu1 %v1654_v30, %s16461_s26 }
 0x212   : > { %v11259_v35 = vpop.permute.xlu0 %1806  ;;  %v11286_v5 = vsel %vm968_vm0, %v1295_v53, %v1296_v1  ;;  %v1396_v47 = vsel %vm968_vm0, %v1296_v1, 0.0 }
 0x213   : > { %v2196_v55 = vpop.permute.xlu1 %2195  ;;  %v1479_v2 = vrot.slane %v11286_v5, 1  ;;  %v1481_v1 = vrot.slane %v1396_v47, 1 }
 0x214   : > { %2021 = vrot.lane.b32.xlu0 %v1654_v30, %s16463_s4 }
 0x215   : > { %1723 = vrot.lane.b32.xlu1 %v1652_v3, %s16465_s28  ;;  %v2582_v3 = vsel %vm2577_vm10, %v2549_v9, %v2196_v55  ;;  %v1480_v13 = vsel %vm1437_vm2, %v1478_v56, %v1479_v2  ;;  %v1656_v56 = vrot.slane %v11286_v5, 2 }
 0x216   : > { %v2198_v54 = vpop.permute.xlu0 %2197 }
 0x217   : > { %v11274_v50 = vpop.permute.xlu1 %1906 }
 0x218   : > { %1725 = vrot.lane.b32.xlu0 %v1654_v30, %s16465_s28  ;;  %v2418_v30 = vsel %vm2412_vm5, %v2385_v61, %v11151_v34 }
 0x219   : > { %2115 = vrot.lane.b32.xlu1 %v11279_v6, %s16500_s9  ;;  %v2451_v53 = vsel %vm2445_vm6, %v2418_v30, %v11168_v44 }
 0x21a   : > { %v11289_v36 = vpop.permute.xlu0 %1534  ;;  %v2484_v11 = vsel %vm2478_vm7, %v2451_v53, %v11217_v22 }
 0x21b   : > { %v2292_v16 = vpop.permute.xlu1 %2291  ;;  %v2517_v48 = vsel %vm2511_vm8, %v2484_v11, %v2006_v24  ;;  %v9568_v24 = vpop.f32.mrf.mxu0 }
 0x21c   : > { %v2615_v26 = vsel %vm2610_vm11, %v2582_v3, %v2292_v16  ;;  %2117 = vrot.lane.b32.xlu0 %v11286_v5, %s16500_s9  ;;  %v2550_v34 = vsel %vm2544_vm9, %v2517_v48, %v2102_v49  ;;  %v1482_v16 = vsel %vm1437_vm2, %v1479_v2, %v1481_v1  ;;  %v1658_v1 = vrot.slane %v1396_v47, 2 }
 0x21d   : > { %1820 = vrot.lane.b32.xlu1 %v11279_v6, %s10414_s27  ;;  %9614 = vmatprep.mubr.msk.f32.mxu1 %vm16493_vm12, %v2615_v26  ;;  %v2583_v44 = vsel %vm2577_vm10, %v2550_v34, %v2198_v54  ;;  %v1655_v26 = vrot.slane %v11279_v6, 2  ;;  %v1118_v2 = vpop.f32.mrf.mxu0  ;;  %v11340_v48 = vadd.f32 %v9568_v24, %v10765_v40  ;;  %v2386_v24 = vsel %vm16492_vm4, %v10900_v57, %v11198_v62 }
 0x21e   : > { %v2008_v55 = vpop.permute.xlu0 %2007  ;;  %v11337_v11 = vadd.f32 %v10765_v40, %v1118_v2 }
 0x21f   : > { %v11308_v46 = vpop.permute.xlu1 %1908  ;;  %v1657_v54 = vsel %vm1614_vm3, %v1655_v26, %v1656_v56  ;;  %16560 = vst [vmem:[#allocation30_spill] sm:$0xff] %v11340_v48  ;;  %v16433_v47 = vmax.f32 %v11340_v48, 0.0 }
 0x220   : > { %1822 = vrot.lane.b32.xlu0 %v11286_v5, %s10414_s27  ;;  %16559 = vst [vmem:[#allocation29_spill] sm:$0xff] %v11337_v11 }
 0x221   : > { %2211 = vrot.lane.b32.xlu1 %v1480_v13, %s10418_s2 }
 0x222   : > { %v11318_v9 = vpop.permute.xlu0 %1536 }
 0x223   : > { %v2294_v3 = vpop.permute.xlu1 %2293 }
 0x224   : > { %v2616_v22 = vsel %vm2610_vm11, %v2583_v44, %v2294_v3  ;;  %2213 = vrot.lane.b32.xlu0 %v1482_v16, %s10418_s2  ;;  %v16431_v44 = vmax.f32 %v11337_v11, 0.0  ;;  %v1659_v3 = vsel %vm1614_vm3, %v1656_v56, %v1658_v1  ;;  %v2419_v56 = vsel %vm2412_vm5, %v2386_v24, %v11237_v27 }
 0x225   : > { %1922 = vrot.lane.b32.xlu1 %v1480_v13, %s16504_s30  ;;  %9615 = vmatmul.mubr.msk.f32.gmra.mxu1 %vm16493_vm12, %v2616_v22  ;;  %v2452_v1 = vsel %vm2445_vm6, %v2419_v56, %v11252_v8 }
 0x226   : > { %v2010_v49 = vpop.permute.xlu0 %2009  ;;  %v1298_v40 = vrot.slane %v16431_v44, 7  ;;  %v2485_v44 = vsel %vm2478_vm7, %v2452_v1, %v11274_v50 }
 0x227   : > { %v11328_v61 = vpop.permute.xlu1 %1711  ;;  %v2518_v57 = vsel %vm2511_vm8, %v2485_v44, %v2008_v55 }
 0x228   : > { %1550 = vrot.lane.b32.xlu0 %v1480_v13, %s16477_s1  ;;  %v11370_v11 = vsel %vm968_vm0, 0.0, %v1298_v40 }
 0x229   : > { %2307 = vrot.lane.b32.xlu1 %v1657_v54, %s16461_s26  ;;  %v1483_v55 = vrot.slane %v11370_v11, 1 }
 0x22a   : > { %v11333_v30 = vpop.permute.xlu0 %1713 }
 0x22b   : > { %v2104_v53 = vpop.permute.xlu1 %2103 }
 0x22c   : > { %2023 = vrot.lane.b32.xlu0 %v1657_v54, %s16463_s4  ;;  %v2551_v27 = vsel %vm2544_vm9, %v2518_v57, %v2104_v53  ;;  %v2387_v53 = vsel %vm16492_vm4, %v10906_v58, %v11227_v38 }
 0x22d   : > { %1924 = vrot.lane.b32.xlu1 %v1482_v16, %s16504_s30 }
 0x22e   : > { %v2106_v13 = vpop.permute.xlu0 %2105 }
 0x22f   : > { %v11343_v34 = vpop.permute.xlu1 %1808 }
 0x230   : > { %1552 = vrot.lane.b32.xlu0 %v1482_v16, %s16477_s1  ;;  %v1299_v16 = vrot.slane %v16433_v47, 7  ;;  %v2388_v47 = vsel %vm16492_vm4, %v10951_v32, %v11289_v36 }
 0x231   : > { %2309 = vrot.lane.b32.xlu1 %v1659_v3, %s16461_s26 }
 0x232   : > { %v11350_v22 = vpop.permute.xlu0 %1810  ;;  %v11377_v62 = vsel %vm968_vm0, %v1298_v40, %v1299_v16  ;;  %v1397_v24 = vsel %vm968_vm0, %v1299_v16, 0.0 }
 0x233   : > { %v2200_v26 = vpop.permute.xlu1 %2199  ;;  %v1484_v44 = vrot.slane %v11377_v62, 1  ;;  %v1486_v16 = vrot.slane %v1397_v24, 1 }
 0x234   : > { %2025 = vrot.lane.b32.xlu0 %v1659_v3, %s16463_s4 }
 0x235   : > { %1727 = vrot.lane.b32.xlu1 %v1657_v54, %s16465_s28  ;;  %v2584_v54 = vsel %vm2577_vm10, %v2551_v27, %v2200_v26  ;;  %v1485_v58 = vsel %vm1437_vm2, %v1483_v55, %v1484_v44  ;;  %v1661_v55 = vrot.slane %v11377_v62, 2 }
 0x236   : > { %v2202_v2 = vpop.permute.xlu0 %2201 }
 0x237   : > { %v11365_v7 = vpop.permute.xlu1 %1910 }
 0x238   : > { %1729 = vrot.lane.b32.xlu0 %v1659_v3, %s16465_s28  ;;  %v2420_v3 = vsel %vm2412_vm5, %v2387_v53, %v11242_v52 }
 0x239   : > { %2119 = vrot.lane.b32.xlu1 %v11370_v11, %s16500_s9  ;;  %v2453_v40 = vsel %vm2445_vm6, %v2420_v3, %v11259_v35 }
 0x23a   : > { %v11380_v8 = vpop.permute.xlu0 %1538  ;;  %v2486_v57 = vsel %vm2478_vm7, %v2453_v40, %v11308_v46 }
 0x23b   : > { %v2296_v50 = vpop.permute.xlu1 %2295  ;;  %v2519_v38 = vsel %vm2511_vm8, %v2486_v57, %v2010_v49  ;;  %v9571_v49 = vpop.f32.mrf.mxu0  ;;  %v11430_v57 = vld [vmem:[%s16554_s5] ss:$0 sm:$0xff]  ;;  %s10424_s5 = smov [#allocation11]  }
 0x23c   : > { %v2617_v56 = vsel %vm2610_vm11, %v2584_v54, %v2296_v50  ;;  %2121 = vrot.lane.b32.xlu0 %v11377_v62, %s16500_s9  ;;  %v2552_v52 = vsel %vm2544_vm9, %v2519_v38, %v2106_v13  ;;  %v1487_v50 = vsel %vm1437_vm2, %v1484_v44, %v1486_v16  ;;  %v1663_v16 = vrot.slane %v1397_v24, 2 }
 0x23d   : > { %1824 = vrot.lane.b32.xlu1 %v11370_v11, %s10414_s27  ;;  %9617 = vmatprep.mubr.msk.f32.mxu1 %vm16493_vm12, %v2617_v56  ;;  %v2585_v35 = vsel %vm2577_vm10, %v2552_v52, %v2202_v2  ;;  %v1660_v56 = vrot.slane %v11370_v11, 2  ;;  %v1128_v44 = vpop.f32.mrf.mxu0 }
 0x23e   : > { %v2012_v26 = vpop.permute.xlu0 %2011  ;;  %v11433_v38 = vadd.f32 %v11430_v57, %v1128_v44 }
 0x23f   : > { %v11399_v1 = vpop.permute.xlu1 %1912  ;;  %v1662_v2 = vsel %vm1614_vm3, %v1660_v56, %v1661_v55 }
 0x240   : > { %1826 = vrot.lane.b32.xlu0 %v11377_v62, %s10414_s27  ;;  %16561 = vst [vmem:[#allocation31_spill] sm:$0xff] %v11433_v38  ;;  %v16436_v24 = vmax.f32 %v11433_v38, 0.0 }
 0x241   : > { %2215 = vrot.lane.b32.xlu1 %v1485_v58, %s10418_s2 }
 0x242   : > { %v11409_v27 = vpop.permute.xlu0 %1540 }
 0x243   : > { %v2298_v54 = vpop.permute.xlu1 %2297 }
 0x244   : > { %v2618_v46 = vsel %vm2610_vm11, %v2585_v35, %v2298_v54  ;;  %2217 = vrot.lane.b32.xlu0 %v1487_v50, %s10418_s2  ;;  %v1664_v54 = vsel %vm1614_vm3, %v1661_v55, %v1663_v16  ;;  %v2421_v55 = vsel %vm2412_vm5, %v2388_v47, %v11328_v61 }
 0x245   : > { %1926 = vrot.lane.b32.xlu1 %v1485_v58, %s16504_s30  ;;  %9618 = vmatmul.mubr.msk.f32.gmra.mxu1 %vm16493_vm12, %v2618_v46  ;;  %v2454_v48 = vsel %vm2445_vm6, %v2421_v55, %v11343_v34 }
 0x246   : > { %v2014_v13 = vpop.permute.xlu0 %2013 }
 0x247   : > { %v11419_v53 = vpop.permute.xlu1 %1715 }
 0x248   : > { %1554 = vrot.lane.b32.xlu0 %v1485_v58, %s16477_s1  ;;  %v11436_v58 = vadd.f32 %v11430_v57, %v9571_v49  ;;  %v1301_v49 = vrot.slane %v16436_v24, 7  ;;  %v2487_v24 = vsel %vm2478_vm7, %v2454_v48, %v11365_v7 }
 0x249   : > { %2311 = vrot.lane.b32.xlu1 %v1662_v2, %s16461_s26  ;;  %v2520_v32 = vsel %vm2511_vm8, %v2487_v24, %v2012_v26 }
 0x24a   : > { %v11424_v3 = vpop.permute.xlu0 %1717  ;;  %16562 = vst [vmem:[#allocation32_spill] sm:$0xff] %v11436_v58  ;;  %v16438_v46 = vmax.f32 %v11436_v58, 0.0  ;;  %v11466_v41 = vsel %vm968_vm0, 0.0, %v1301_v49 }
 0x24b   : > { %v2108_v40 = vpop.permute.xlu1 %2107  ;;  %v1488_v26 = vrot.slane %v11466_v41, 1 }
 0x24c   : > { %2027 = vrot.lane.b32.xlu0 %v1662_v2, %s16463_s4  ;;  %v2553_v61 = vsel %vm2544_vm9, %v2520_v32, %v2108_v40  ;;  %v2389_v40 = vsel %vm16492_vm4, %v10957_v33, %v11318_v9 }
 0x24d   : > { %1928 = vrot.lane.b32.xlu1 %v1487_v50, %s16504_s30 }
 0x24e   : > { %v2110_v52 = vpop.permute.xlu0 %2109 }
 0x24f   : > { %v11439_v35 = vpop.permute.xlu1 %1812 }
 0x250   : > { %1556 = vrot.lane.b32.xlu0 %v1487_v50, %s16477_s1  ;;  %v1302_v50 = vrot.slane %v16438_v46, 7 }
 0x251   : > { %2313 = vrot.lane.b32.xlu1 %v1664_v54, %s16461_s26 }
 0x252   : > { %v11446_v56 = vpop.permute.xlu0 %1814  ;;  %v11473_v36 = vsel %vm968_vm0, %v1301_v49, %v1302_v50  ;;  %v1398_v48 = vsel %vm968_vm0, %v1302_v50, 0.0 }
 0x253   : > { %v2204_v44 = vpop.permute.xlu1 %2203  ;;  %v1489_v24 = vrot.slane %v11473_v36, 1  ;;  %v1491_v50 = vrot.slane %v1398_v48, 1 }
 0x254   : > { %2029 = vrot.lane.b32.xlu0 %v1664_v54, %s16463_s4  ;;  %v2586_v47 = vsel %vm2577_vm10, %v2553_v61, %v2204_v44 }
 0x255   : > { %1731 = vrot.lane.b32.xlu1 %v1662_v2, %s16465_s28  ;;  %v1490_v33 = vsel %vm1437_vm2, %v1488_v26, %v1489_v24  ;;  %v1666_v26 = vrot.slane %v11473_v36, 2 }
 0x256   : > { %v2206_v16 = vpop.permute.xlu0 %2205 }
 0x257   : > { %v11461_v38 = vpop.permute.xlu1 %1914 }
 0x258   : > { %1733 = vrot.lane.b32.xlu0 %v1664_v54, %s16465_s28  ;;  %v2422_v54 = vsel %vm2412_vm5, %v2389_v40, %v11333_v30 }
 0x259   : > { %2123 = vrot.lane.b32.xlu1 %v11466_v41, %s16500_s9  ;;  %v2455_v49 = vsel %vm2445_vm6, %v2422_v54, %v11350_v22 }
 0x25a   : > { %v11476_v34 = vpop.permute.xlu0 %1542  ;;  %v2488_v32 = vsel %vm2478_vm7, %v2455_v49, %v11399_v1 }
 0x25b   : > { %v2300_v7 = vpop.permute.xlu1 %2299  ;;  %v2521_v9 = vsel %vm2511_vm8, %v2488_v32, %v2014_v13  ;;  %v9574_v13 = vpop.f32.mrf.mxu0 }
 0x25c   : > { %v2619_v2 = vsel %vm2610_vm11, %v2586_v47, %v2300_v7  ;;  %2125 = vrot.lane.b32.xlu0 %v11473_v36, %s16500_s9  ;;  %v2554_v30 = vsel %vm2544_vm9, %v2521_v9, %v2110_v52  ;;  %v1492_v7 = vsel %vm1437_vm2, %v1489_v24, %v1491_v50  ;;  %v1668_v50 = vrot.slane %v1398_v48, 2 }
 0x25d   : > { %1828 = vrot.lane.b32.xlu1 %v11466_v41, %s10414_s27  ;;  %9620 = vmatprep.mubr.msk.f32.mxu1 %vm16493_vm12, %v2619_v2  ;;  %v2587_v22 = vsel %vm2577_vm10, %v2554_v30, %v2206_v16  ;;  %v1665_v2 = vrot.slane %v11466_v41, 2  ;;  %v1138_v24 = vpop.f32.mrf.mxu0  ;;  %v11527_v9 = vadd.f32 %v11430_v57, %v9574_v13 }
 0x25e   : > { %v2016_v44 = vpop.permute.xlu0 %2015  ;;  %v11524_v32 = vadd.f32 %v11430_v57, %v1138_v24  ;;  %v2390_v24 = vsel %vm16492_vm4, %v11008_v14, %v11380_v8 }
 0x25f   : > { %v11495_v55 = vpop.permute.xlu1 %1916  ;;  %v1667_v16 = vsel %vm1614_vm3, %v1665_v2, %v1666_v26  ;;  %16564 = vst [vmem:[#allocation34_spill] sm:$0xff] %v11527_v9  ;;  %v16442_v48 = vmax.f32 %v11527_v9, 0.0 }
 0x260   : > { %1830 = vrot.lane.b32.xlu0 %v11473_v36, %s10414_s27  ;;  %16563 = vst [vmem:[#allocation33_spill] sm:$0xff] %v11524_v32 }
 0x261   : > { %2219 = vrot.lane.b32.xlu1 %v1490_v33, %s10418_s2 }
 0x262   : > { %v11505_v61 = vpop.permute.xlu0 %1544 }
 0x263   : > { %v2302_v47 = vpop.permute.xlu1 %2301 }
 0x264   : > { %v2620_v1 = vsel %vm2610_vm11, %v2587_v22, %v2302_v47  ;;  %2221 = vrot.lane.b32.xlu0 %v1492_v7, %s10418_s2  ;;  %v16440_v22 = vmax.f32 %v11524_v32, 0.0  ;;  %v1669_v47 = vsel %vm1614_vm3, %v1666_v26, %v1668_v50  ;;  %v2423_v26 = vsel %vm2412_vm5, %v2390_v24, %v11419_v53 }
 0x265   : > { %1930 = vrot.lane.b32.xlu1 %v1490_v33, %s16504_s30  ;;  %9621 = vmatmul.mubr.msk.f32.gmra.mxu1 %vm16493_vm12, %v2620_v1  ;;  %v2456_v46 = vsel %vm2445_vm6, %v2423_v26, %v11439_v35 }
 0x266   : > { %v2018_v52 = vpop.permute.xlu0 %2017  ;;  %v1304_v13 = vrot.slane %v16440_v22, 7  ;;  %v2489_v22 = vsel %vm2478_vm7, %v2456_v46, %v11461_v38 }
 0x267   : > { %v11515_v40 = vpop.permute.xlu1 %1719  ;;  %v2522_v14 = vsel %vm2511_vm8, %v2489_v22, %v2016_v44 }
 0x268   : > { %1558 = vrot.lane.b32.xlu0 %v1490_v33, %s16477_s1  ;;  %v11557_v58 = vsel %vm968_vm0, 0.0, %v1304_v13 }
 0x269   : > { %2315 = vrot.lane.b32.xlu1 %v1667_v16, %s16461_s26  ;;  %v1493_v44 = vrot.slane %v11557_v58, 1 }
 0x26a   : > { %v11520_v54 = vpop.permute.xlu0 %1721 }
 0x26b   : > { %v2112_v49 = vpop.permute.xlu1 %2111 }
 0x26c   : > { %2031 = vrot.lane.b32.xlu0 %v1667_v16, %s16463_s4  ;;  %v2555_v53 = vsel %vm2544_vm9, %v2522_v14, %v2112_v49  ;;  %v2391_v49 = vsel %vm16492_vm4, %v11014_v15, %v11409_v27 }
 0x26d   : > { %1932 = vrot.lane.b32.xlu1 %v1492_v7, %s16504_s30 }
 0x26e   : > { %v2114_v33 = vpop.permute.xlu0 %2113 }
 0x26f   : > { %v11530_v30 = vpop.permute.xlu1 %1816 }
 0x270   : > { %1560 = vrot.lane.b32.xlu0 %v1492_v7, %s16477_s1  ;;  %v1305_v7 = vrot.slane %v16442_v48, 7 }
 0x271   : > { %2317 = vrot.lane.b32.xlu1 %v1669_v47, %s16461_s26 }
 0x272   : > { %v11537_v1 = vpop.permute.xlu0 %1818  ;;  %v11564_v8 = vsel %vm968_vm0, %v1304_v13, %v1305_v7  ;;  %v1399_v46 = vsel %vm968_vm0, %v1305_v7, 0.0 }
 0x273   : > { %v2208_v2 = vpop.permute.xlu1 %2207  ;;  %v1494_v22 = vrot.slane %v11564_v8, 1  ;;  %v1496_v7 = vrot.slane %v1399_v46, 1 }
 0x274   : > { %2033 = vrot.lane.b32.xlu0 %v1669_v47, %s16463_s4 }
 0x275   : > { %1735 = vrot.lane.b32.xlu1 %v1667_v16, %s16465_s28  ;;  %v2588_v16 = vsel %vm2577_vm10, %v2555_v53, %v2208_v2  ;;  %v1495_v15 = vsel %vm1437_vm2, %v1493_v44, %v1494_v22  ;;  %v1671_v44 = vrot.slane %v11564_v8, 2 }
 0x276   : > { %v2210_v50 = vpop.permute.xlu0 %2209 }
 0x277   : > { %v11552_v32 = vpop.permute.xlu1 %1918 }
 0x278   : > { %1737 = vrot.lane.b32.xlu0 %v1669_v47, %s16465_s28  ;;  %v2424_v47 = vsel %vm2412_vm5, %v2391_v49, %v11424_v3 }
 0x279   : > { %2127 = vrot.lane.b32.xlu1 %v11557_v58, %s16500_s9  ;;  %v2457_v13 = vsel %vm2445_vm6, %v2424_v47, %v11446_v56 }
 0x27a   : > { %v11567_v35 = vpop.permute.xlu0 %1546  ;;  %v2490_v14 = vsel %vm2478_vm7, %v2457_v13, %v11495_v55 }
 0x27b   : > { %v2304_v38 = vpop.permute.xlu1 %2303  ;;  %v2523_v27 = vsel %vm2511_vm8, %v2490_v14, %v2018_v52  ;;  %v9577_v52 = vpop.f32.mrf.mxu0 }
 0x27c   : > { %v2621_v24 = vsel %vm2610_vm11, %v2588_v16, %v2304_v38  ;;  %2129 = vrot.lane.b32.xlu0 %v11564_v8, %s16500_s9  ;;  %v2556_v3 = vsel %vm2544_vm9, %v2523_v27, %v2114_v33  ;;  %v1497_v38 = vsel %vm1437_vm2, %v1494_v22, %v1496_v7  ;;  %v1673_v7 = vrot.slane %v1399_v46, 2 }
 0x27d   : > { %1832 = vrot.lane.b32.xlu1 %v11557_v58, %s10414_s27  ;;  %9623 = vmatprep.mubr.msk.f32.mxu1 %vm16493_vm12, %v2621_v24  ;;  %v2589_v56 = vsel %vm2577_vm10, %v2556_v3, %v2210_v50  ;;  %v1670_v24 = vrot.slane %v11557_v58, 2  ;;  %v1148_v22 = vpop.f32.mrf.mxu0  ;;  %v11618_v27 = vadd.f32 %v11430_v57, %v9577_v52 }
 0x27e   : > { %v2020_v2 = vpop.permute.xlu0 %2019  ;;  %v11615_v14 = vadd.f32 %v11430_v57, %v1148_v22  ;;  %v2392_v22 = vsel %vm16492_vm4, %v11097_v20, %v11476_v34 }
 0x27f   : > { %v11586_v26 = vpop.permute.xlu1 %1920  ;;  %v1672_v50 = vsel %vm1614_vm3, %v1670_v24, %v1671_v44  ;;  %16566 = vst [vmem:[#allocation36_spill] sm:$0xff] %v11618_v27  ;;  %v16446_v46 = vmax.f32 %v11618_v27, 0.0 }
 0x280   : > { %1834 = vrot.lane.b32.xlu0 %v11564_v8, %s10414_s27  ;;  %16565 = vst [vmem:[#allocation35_spill] sm:$0xff] %v11615_v14 }
 0x281   : > { %2223 = vrot.lane.b32.xlu1 %v1495_v15, %s10418_s2 }
 0x282   : > { %v11596_v53 = vpop.permute.xlu0 %1548 }
 0x283   : > { %v2306_v16 = vpop.permute.xlu1 %2305 }
 0x284   : > { %v2622_v55 = vsel %vm2610_vm11, %v2589_v56, %v2306_v16  ;;  %2225 = vrot.lane.b32.xlu0 %v1497_v38, %s10418_s2  ;;  %v16444_v56 = vmax.f32 %v11615_v14, 0.0  ;;  %v1674_v16 = vsel %vm1614_vm3, %v1671_v44, %v1673_v7  ;;  %v2425_v44 = vsel %vm2412_vm5, %v2392_v22, %v11515_v40 }
 0x285   : > { %1934 = vrot.lane.b32.xlu1 %v1495_v15, %s16504_s30  ;;  %9624 = vmatmul.mubr.msk.f32.gmra.mxu1 %vm16493_vm12, %v2622_v55  ;;  %v2458_v48 = vsel %vm2445_vm6, %v2425_v44, %v11530_v30 }
 0x286   : > { %v2022_v33 = vpop.permute.xlu0 %2021  ;;  %v1307_v52 = vrot.slane %v16444_v56, 7  ;;  %v2491_v56 = vsel %vm2478_vm7, %v2458_v48, %v11552_v32 }
 0x287   : > { %v11606_v49 = vpop.permute.xlu1 %1723  ;;  %v2524_v20 = vsel %vm2511_vm8, %v2491_v56, %v2020_v2 }
 0x288   : > { %1562 = vrot.lane.b32.xlu0 %v1495_v15, %s16477_s1  ;;  %v11648_v9 = vsel %vm968_vm0, 0.0, %v1307_v52 }
 0x289   : > { %2319 = vrot.lane.b32.xlu1 %v1672_v50, %s16461_s26  ;;  %v1498_v2 = vrot.slane %v11648_v9, 1 }
 0x28a   : > { %v11611_v47 = vpop.permute.xlu0 %1725 }
 0x28b   : > { %v2116_v13 = vpop.permute.xlu1 %2115 }
 0x28c   : > { %2035 = vrot.lane.b32.xlu0 %v1672_v50, %s16463_s4  ;;  %v2557_v40 = vsel %vm2544_vm9, %v2524_v20, %v2116_v13  ;;  %v2393_v13 = vsel %vm16492_vm4, %v11104_v10, %v11505_v61 }
 0x28d   : > { %1936 = vrot.lane.b32.xlu1 %v1497_v38, %s16504_s30 }
 0x28e   : > { %v2118_v15 = vpop.permute.xlu0 %2117 }
 0x28f   : > { %v11621_v3 = vpop.permute.xlu1 %1820 }
 0x290   : > { %1564 = vrot.lane.b32.xlu0 %v1497_v38, %s16477_s1  ;;  %v1308_v38 = vrot.slane %v16446_v46, 7 }
 0x291   : > { %2321 = vrot.lane.b32.xlu1 %v1674_v16, %s16461_s26 }
 0x292   : > { %v11628_v55 = vpop.permute.xlu0 %1822  ;;  %v11655_v34 = vsel %vm968_vm0, %v1307_v52, %v1308_v38  ;;  %v1400_v48 = vsel %vm968_vm0, %v1308_v38, 0.0 }
 0x293   : > { %v2212_v24 = vpop.permute.xlu1 %2211  ;;  %v1499_v56 = vrot.slane %v11655_v34, 1  ;;  %v1501_v38 = vrot.slane %v1400_v48, 1 }
 0x294   : > { %2037 = vrot.lane.b32.xlu0 %v1674_v16, %s16463_s4 }
 0x295   : > { %1739 = vrot.lane.b32.xlu1 %v1672_v50, %s16465_s28  ;;  %v2590_v50 = vsel %vm2577_vm10, %v2557_v40, %v2212_v24  ;;  %v1500_v10 = vsel %vm1437_vm2, %v1498_v2, %v1499_v56  ;;  %v1676_v2 = vrot.slane %v11655_v34, 2 }
 0x296   : > { %v2214_v7 = vpop.permute.xlu0 %2213 }
 0x297   : > { %v11643_v14 = vpop.permute.xlu1 %1922 }
 0x298   : > { %1741 = vrot.lane.b32.xlu0 %v1674_v16, %s16465_s28  ;;  %v2426_v16 = vsel %vm2412_vm5, %v2393_v13, %v11520_v54 }
 0x299   : > { %2131 = vrot.lane.b32.xlu1 %v11648_v9, %s16500_s9  ;;  %v2459_v52 = vsel %vm2445_vm6, %v2426_v16, %v11537_v1 }
 0x29a   : > { %v11658_v30 = vpop.permute.xlu0 %1550  ;;  %v2492_v20 = vsel %vm2478_vm7, %v2459_v52, %v11586_v26 }
 0x29b   : > { %v2308_v32 = vpop.permute.xlu1 %2307  ;;  %v2525_v61 = vsel %vm2511_vm8, %v2492_v20, %v2022_v33  ;;  %v9580_v33 = vpop.f32.mrf.mxu0 }
 0x29c   : > { %v2623_v22 = vsel %vm2610_vm11, %v2590_v50, %v2308_v32  ;;  %2133 = vrot.lane.b32.xlu0 %v11655_v34, %s16500_s9  ;;  %v2558_v54 = vsel %vm2544_vm9, %v2525_v61, %v2118_v15  ;;  %v1502_v32 = vsel %vm1437_vm2, %v1499_v56, %v1501_v38  ;;  %v1678_v38 = vrot.slane %v1400_v48, 2 }
 0x29d   : > { %1836 = vrot.lane.b32.xlu1 %v11648_v9, %s10414_s27  ;;  %9626 = vmatprep.mubr.msk.f32.mxu1 %vm16493_vm12, %v2623_v22  ;;  %v2591_v1 = vsel %vm2577_vm10, %v2558_v54, %v2214_v7  ;;  %v1675_v22 = vrot.slane %v11648_v9, 2  ;;  %v1158_v56 = vpop.f32.mrf.mxu0  ;;  %v11709_v61 = vadd.f32 %v11430_v57, %v9580_v33 }
 0x29e   : > { %v2024_v24 = vpop.permute.xlu0 %2023  ;;  %v11706_v20 = vadd.f32 %v11430_v57, %v1158_v56  ;;  %v2394_v56 = vsel %vm16492_vm4, %v11188_v19, %v11567_v35 }
 0x29f   : > { %v11677_v44 = vpop.permute.xlu1 %1924  ;;  %v1677_v7 = vsel %vm1614_vm3, %v1675_v22, %v1676_v2  ;;  %16568 = vst [vmem:[#allocation38_spill] sm:$0xff] %v11709_v61  ;;  %v16450_v48 = vmax.f32 %v11709_v61, 0.0 }
 0x2a0   : > { %1838 = vrot.lane.b32.xlu0 %v11655_v34, %s10414_s27  ;;  %16567 = vst [vmem:[#allocation37_spill] sm:$0xff] %v11706_v20 }
 0x2a1   : > { %2227 = vrot.lane.b32.xlu1 %v1500_v10, %s10418_s2 }
 0x2a2   : > { %v11687_v40 = vpop.permute.xlu0 %1552 }
 0x2a3   : > { %v2310_v50 = vpop.permute.xlu1 %2309 }
 0x2a4   : > { %v2624_v26 = vsel %vm2610_vm11, %v2591_v1, %v2310_v50  ;;  %2229 = vrot.lane.b32.xlu0 %v1502_v32, %s10418_s2  ;;  %v16448_v1 = vmax.f32 %v11706_v20, 0.0  ;;  %v1679_v50 = vsel %vm1614_vm3, %v1676_v2, %v1678_v38  ;;  %v2427_v2 = vsel %vm2412_vm5, %v2394_v56, %v11606_v49 }
 0x2a5   : > { %1938 = vrot.lane.b32.xlu1 %v1500_v10, %s16504_s30  ;;  %9627 = vmatmul.mubr.msk.f32.gmra.mxu1 %vm16493_vm12, %v2624_v26  ;;  %v2460_v46 = vsel %vm2445_vm6, %v2427_v2, %v11621_v3 }
 0x2a6   : > { %v2026_v15 = vpop.permute.xlu0 %2025  ;;  %v1310_v33 = vrot.slane %v16448_v1, 7  ;;  %v2493_v1 = vsel %vm2478_vm7, %v2460_v46, %v11643_v14 }
 0x2a7   : > { %v11697_v13 = vpop.permute.xlu1 %1727  ;;  %v2526_v19 = vsel %vm2511_vm8, %v2493_v1, %v2024_v24 }
 0x2a8   : > { %1566 = vrot.lane.b32.xlu0 %v1500_v10, %s16477_s1  ;;  %v11739_v27 = vsel %vm968_vm0, 0.0, %v1310_v33 }
 0x2a9   : > { %2323 = vrot.lane.b32.xlu1 %v1677_v7, %s16461_s26  ;;  %v1503_v24 = vrot.slane %v11739_v27, 1 }
 0x2aa   : > { %v11702_v16 = vpop.permute.xlu0 %1729 }
 0x2ab   : > { %v2120_v52 = vpop.permute.xlu1 %2119 }
 0x2ac   : > { %2039 = vrot.lane.b32.xlu0 %v1677_v7, %s16463_s4  ;;  %v2559_v49 = vsel %vm2544_vm9, %v2526_v19, %v2120_v52  ;;  %v2395_v52 = vsel %vm16492_vm4, %v11195_v4, %v11596_v53 }
 0x2ad   : > { %1940 = vrot.lane.b32.xlu1 %v1502_v32, %s16504_s30 }
 0x2ae   : > { %v2122_v10 = vpop.permute.xlu0 %2121 }
 0x2af   : > { %v11712_v54 = vpop.permute.xlu1 %1824 }
 0x2b0   : > { %1568 = vrot.lane.b32.xlu0 %v1502_v32, %s16477_s1  ;;  %v1311_v32 = vrot.slane %v16450_v48, 7 }
 0x2b1   : > { %2325 = vrot.lane.b32.xlu1 %v1679_v50, %s16461_s26 }
 0x2b2   : > { %v11719_v26 = vpop.permute.xlu0 %1826  ;;  %v11746_v35 = vsel %vm968_vm0, %v1310_v33, %v1311_v32  ;;  %v1401_v46 = vsel %vm968_vm0, %v1311_v32, 0.0 }
 0x2b3   : > { %v2216_v22 = vpop.permute.xlu1 %2215  ;;  %v1504_v1 = vrot.slane %v11746_v35, 1  ;;  %v1506_v32 = vrot.slane %v1401_v46, 1 }
 0x2b4   : > { %2041 = vrot.lane.b32.xlu0 %v1679_v50, %s16463_s4 }
 0x2b5   : > { %1743 = vrot.lane.b32.xlu1 %v1677_v7, %s16465_s28  ;;  %v2592_v7 = vsel %vm2577_vm10, %v2559_v49, %v2216_v22  ;;  %v1505_v4 = vsel %vm1437_vm2, %v1503_v24, %v1504_v1  ;;  %v1681_v24 = vrot.slane %v11746_v35, 2 }
 0x2b6   : > { %v2218_v38 = vpop.permute.xlu0 %2217 }
 0x2b7   : > { %v11734_v20 = vpop.permute.xlu1 %1926 }
 0x2b8   : > { %1745 = vrot.lane.b32.xlu0 %v1679_v50, %s16465_s28  ;;  %v2428_v50 = vsel %vm2412_vm5, %v2395_v52, %v11611_v47 }
 0x2b9   : > { %2135 = vrot.lane.b32.xlu1 %v11739_v27, %s16500_s9  ;;  %v2461_v33 = vsel %vm2445_vm6, %v2428_v50, %v11628_v55 }
 0x2ba   : > { %v11749_v3 = vpop.permute.xlu0 %1554  ;;  %v2494_v19 = vsel %vm2478_vm7, %v2461_v33, %v11677_v44 }
 0x2bb   : > { %v2312_v14 = vpop.permute.xlu1 %2311  ;;  %v2527_v53 = vsel %vm2511_vm8, %v2494_v19, %v2026_v15  ;;  %v9583_v15 = vpop.f32.mrf.mxu0 }
 0x2bc   : > { %v2625_v56 = vsel %vm2610_vm11, %v2592_v7, %v2312_v14  ;;  %2137 = vrot.lane.b32.xlu0 %v11746_v35, %s16500_s9  ;;  %v2560_v47 = vsel %vm2544_vm9, %v2527_v53, %v2122_v10  ;;  %v1507_v14 = vsel %vm1437_vm2, %v1504_v1, %v1506_v32  ;;  %v1683_v32 = vrot.slane %v1401_v46, 2 }
 0x2bd   : > { %1840 = vrot.lane.b32.xlu1 %v11739_v27, %s10414_s27  ;;  %9629 = vmatprep.mubr.msk.f32.mxu1 %vm16493_vm12, %v2625_v56  ;;  %v2593_v55 = vsel %vm2577_vm10, %v2560_v47, %v2218_v38  ;;  %v1680_v56 = vrot.slane %v11739_v27, 2  ;;  %v1168_v1 = vpop.f32.mrf.mxu0  ;;  %v11800_v53 = vadd.f32 %v11430_v57, %v9583_v15 }
 0x2be   : > { %v2028_v22 = vpop.permute.xlu0 %2027  ;;  %v11797_v19 = vadd.f32 %v11430_v57, %v1168_v1  ;;  %v2396_v1 = vsel %vm16492_vm4, %v11279_v6, %v11658_v30 }
 0x2bf   : > { %v11768_v2 = vpop.permute.xlu1 %1928  ;;  %v1682_v38 = vsel %vm1614_vm3, %v1680_v56, %v1681_v24  ;;  %16570 = vst [vmem:[#allocation40_spill] sm:$0xff] %v11800_v53  ;;  %v16454_v46 = vmax.f32 %v11800_v53, 0.0 }
 0x2c0   : > { %1842 = vrot.lane.b32.xlu0 %v11746_v35, %s10414_s27  ;;  %16569 = vst [vmem:[#allocation39_spill] sm:$0xff] %v11797_v19 }
 0x2c1   : > { %2231 = vrot.lane.b32.xlu1 %v1505_v4, %s10418_s2 }
 0x2c2   : > { %v11778_v49 = vpop.permute.xlu0 %1556 }
 0x2c3   : > { %v2314_v7 = vpop.permute.xlu1 %2313 }
 0x2c4   : > { %v2626_v44 = vsel %vm2610_vm11, %v2593_v55, %v2314_v7  ;;  %2233 = vrot.lane.b32.xlu0 %v1507_v14, %s10418_s2  ;;  %v16452_v55 = vmax.f32 %v11797_v19, 0.0  ;;  %v1684_v7 = vsel %vm1614_vm3, %v1681_v24, %v1683_v32  ;;  %v2429_v24 = vsel %vm2412_vm5, %v2396_v1, %v11697_v13 }
 0x2c5   : > { %1942 = vrot.lane.b32.xlu1 %v1505_v4, %s16504_s30  ;;  %9630 = vmatmul.mubr.msk.f32.gmra.mxu1 %vm16493_vm12, %v2626_v44  ;;  %v2462_v48 = vsel %vm2445_vm6, %v2429_v24, %v11712_v54 }
 0x2c6   : > { %v2030_v10 = vpop.permute.xlu0 %2029  ;;  %v1313_v15 = vrot.slane %v16452_v55, 7  ;;  %v2495_v55 = vsel %vm2478_vm7, %v2462_v48, %v11734_v20 }
 0x2c7   : > { %v11788_v52 = vpop.permute.xlu1 %1731  ;;  %v2528_v6 = vsel %vm2511_vm8, %v2495_v55, %v2028_v22 }
 0x2c8   : > { %1570 = vrot.lane.b32.xlu0 %v1505_v4, %s16477_s1  ;;  %v11830_v61 = vsel %vm968_vm0, 0.0, %v1313_v15 }
 0x2c9   : > { %2327 = vrot.lane.b32.xlu1 %v1682_v38, %s16461_s26  ;;  %v1508_v22 = vrot.slane %v11830_v61, 1 }
 0x2ca   : > { %v11793_v50 = vpop.permute.xlu0 %1733 }
 0x2cb   : > { %v2124_v33 = vpop.permute.xlu1 %2123 }
 0x2cc   : > { %2043 = vrot.lane.b32.xlu0 %v1682_v38, %s16463_s4  ;;  %v2561_v13 = vsel %vm2544_vm9, %v2528_v6, %v2124_v33  ;;  %v2397_v33 = vsel %vm16492_vm4, %v11286_v5, %v11687_v40 }
 0x2cd   : > { %1944 = vrot.lane.b32.xlu1 %v1507_v14, %s16504_s30 }
 0x2ce   : > { %v2126_v4 = vpop.permute.xlu0 %2125 }
 0x2cf   : > { %v11803_v47 = vpop.permute.xlu1 %1828 }
 0x2d0   : > { %1572 = vrot.lane.b32.xlu0 %v1507_v14, %s16477_s1  ;;  %v1314_v14 = vrot.slane %v16454_v46, 7 }
 0x2d1   : > { %2329 = vrot.lane.b32.xlu1 %v1684_v7, %s16461_s26 }
 0x2d2   : > { %v11810_v44 = vpop.permute.xlu0 %1830  ;;  %v11837_v30 = vsel %vm968_vm0, %v1313_v15, %v1314_v14  ;;  %v1402_v48 = vsel %vm968_vm0, %v1314_v14, 0.0 }
 0x2d3   : > { %v2220_v56 = vpop.permute.xlu1 %2219  ;;  %v1509_v55 = vrot.slane %v11837_v30, 1  ;;  %v1511_v14 = vrot.slane %v1402_v48, 1 }
 0x2d4   : > { %2045 = vrot.lane.b32.xlu0 %v1684_v7, %s16463_s4 }
 0x2d5   : > { %1747 = vrot.lane.b32.xlu1 %v1682_v38, %s16465_s28  ;;  %v2594_v38 = vsel %vm2577_vm10, %v2561_v13, %v2220_v56  ;;  %v1510_v5 = vsel %vm1437_vm2, %v1508_v22, %v1509_v55  ;;  %v1686_v22 = vrot.slane %v11837_v30, 2 }
 0x2d6   : > { %v2222_v32 = vpop.permute.xlu0 %2221 }
 0x2d7   : > { %v11825_v19 = vpop.permute.xlu1 %1930 }
 0x2d8   : > { %1749 = vrot.lane.b32.xlu0 %v1684_v7, %s16465_s28  ;;  %v2430_v7 = vsel %vm2412_vm5, %v2397_v33, %v11702_v16 }
 0x2d9   : > { %2139 = vrot.lane.b32.xlu1 %v11830_v61, %s16500_s9  ;;  %v2463_v15 = vsel %vm2445_vm6, %v2430_v7, %v11719_v26 }
 0x2da   : > { %v11840_v54 = vpop.permute.xlu0 %1558  ;;  %v2496_v6 = vsel %vm2478_vm7, %v2463_v15, %v11768_v2 }
 0x2db   : > { %v2316_v20 = vpop.permute.xlu1 %2315  ;;  %v2529_v40 = vsel %vm2511_vm8, %v2496_v6, %v2030_v10  ;;  %v9586_v10 = vpop.f32.mrf.mxu0 }
 0x2dc   : > { %v2627_v1 = vsel %vm2610_vm11, %v2594_v38, %v2316_v20  ;;  %2141 = vrot.lane.b32.xlu0 %v11837_v30, %s16500_s9  ;;  %v2562_v16 = vsel %vm2544_vm9, %v2529_v40, %v2126_v4  ;;  %v1512_v20 = vsel %vm1437_vm2, %v1509_v55, %v1511_v14  ;;  %v1688_v14 = vrot.slane %v1402_v48, 2 }
 0x2dd   : > { %1844 = vrot.lane.b32.xlu1 %v11830_v61, %s10414_s27  ;;  %9632 = vmatprep.mubr.msk.f32.mxu1 %vm16493_vm12, %v2627_v1  ;;  %v2595_v26 = vsel %vm2577_vm10, %v2562_v16, %v2222_v32  ;;  %v1685_v1 = vrot.slane %v11830_v61, 2  ;;  %v1178_v55 = vpop.f32.mrf.mxu0  ;;  %v11891_v40 = vadd.f32 %v11430_v57, %v9586_v10 }
 0x2de   : > { %v2032_v56 = vpop.permute.xlu0 %2031  ;;  %v11888_v6 = vadd.f32 %v11430_v57, %v1178_v55  ;;  %v2398_v55 = vsel %vm16492_vm4, %v11370_v11, %v11749_v3 }
 0x2df   : > { %v11859_v24 = vpop.permute.xlu1 %1932  ;;  %v1687_v32 = vsel %vm1614_vm3, %v1685_v1, %v1686_v22  ;;  %16572 = vst [vmem:[#allocation42_spill] sm:$0xff] %v11891_v40  ;;  %v16458_v48 = vmax.f32 %v11891_v40, 0.0 }
 0x2e0   : > { %1846 = vrot.lane.b32.xlu0 %v11837_v30, %s10414_s27  ;;  %16571 = vst [vmem:[#allocation41_spill] sm:$0xff] %v11888_v6 }
 0x2e1   : > { %2235 = vrot.lane.b32.xlu1 %v1510_v5, %s10418_s2 }
 0x2e2   : > { %v11869_v13 = vpop.permute.xlu0 %1560 }
 0x2e3   : > { %v2318_v38 = vpop.permute.xlu1 %2317 }
 0x2e4   : > { %v2628_v2 = vsel %vm2610_vm11, %v2595_v26, %v2318_v38  ;;  %2237 = vrot.lane.b32.xlu0 %v1512_v20, %s10418_s2  ;;  %v16456_v26 = vmax.f32 %v11888_v6, 0.0  ;;  %v1689_v38 = vsel %vm1614_vm3, %v1686_v22, %v1688_v14  ;;  %v2431_v22 = vsel %vm2412_vm5, %v2398_v55, %v11788_v52 }
 0x2e5   : > { %1946 = vrot.lane.b32.xlu1 %v1510_v5, %s16504_s30  ;;  %9633 = vmatmul.mubr.msk.f32.gmra.mxu1 %vm16493_vm12, %v2628_v2  ;;  %v2464_v46 = vsel %vm2445_vm6, %v2431_v22, %v11803_v47 }
 0x2e6   : > { %v2034_v4 = vpop.permute.xlu0 %2033  ;;  %v1316_v10 = vrot.slane %v16456_v26, 7  ;;  %v2497_v26 = vsel %vm2478_vm7, %v2464_v46, %v11825_v19 }
 0x2e7   : > { %v11879_v33 = vpop.permute.xlu1 %1735  ;;  %v2530_v11 = vsel %vm2511_vm8, %v2497_v26, %v2032_v56 }
 0x2e8   : > { %1574 = vrot.lane.b32.xlu0 %v1510_v5, %s16477_s1  ;;  %v11921_v53 = vsel %vm968_vm0, 0.0, %v1316_v10 }
 0x2e9   : > { %2331 = vrot.lane.b32.xlu1 %v1687_v32, %s16461_s26  ;;  %v1513_v56 = vrot.slane %v11921_v53, 1 }
 0x2ea   : > { %v11884_v7 = vpop.permute.xlu0 %1737 }
 0x2eb   : > { %v2128_v15 = vpop.permute.xlu1 %2127 }
 0x2ec   : > { %2047 = vrot.lane.b32.xlu0 %v1687_v32, %s16463_s4  ;;  %v2563_v52 = vsel %vm2544_vm9, %v2530_v11, %v2128_v15  ;;  %v2399_v15 = vsel %vm16492_vm4, %v11377_v62, %v11778_v49 }
 0x2ed   : > { %1948 = vrot.lane.b32.xlu1 %v1512_v20, %s16504_s30 }
 0x2ee   : > { %v2130_v5 = vpop.permute.xlu0 %2129 }
 0x2ef   : > { %v11894_v16 = vpop.permute.xlu1 %1832 }
 0x2f0   : > { %1576 = vrot.lane.b32.xlu0 %v1512_v20, %s16477_s1  ;;  %v1317_v20 = vrot.slane %v16458_v48, 7 }
 0x2f1   : > { %2333 = vrot.lane.b32.xlu1 %v1689_v38, %s16461_s26 }
 0x2f2   : > { %v11901_v2 = vpop.permute.xlu0 %1834  ;;  %v11928_v3 = vsel %vm968_vm0, %v1316_v10, %v1317_v20  ;;  %v1403_v46 = vsel %vm968_vm0, %v1317_v20, 0.0 }
 0x2f3   : > { %v2224_v1 = vpop.permute.xlu1 %2223  ;;  %v1514_v26 = vrot.slane %v11928_v3, 1  ;;  %v1516_v20 = vrot.slane %v1403_v46, 1 }
 0x2f4   : > { %2049 = vrot.lane.b32.xlu0 %v1689_v38, %s16463_s4 }
 0x2f5   : > { %1751 = vrot.lane.b32.xlu1 %v1687_v32, %s16465_s28  ;;  %v2596_v32 = vsel %vm2577_vm10, %v2563_v52, %v2224_v1  ;;  %v1515_v62 = vsel %vm1437_vm2, %v1513_v56, %v1514_v26  ;;  %v1691_v56 = vrot.slane %v11928_v3, 2 }
 0x2f6   : > { %v2226_v14 = vpop.permute.xlu0 %2225 }
 0x2f7   : > { %v11916_v6 = vpop.permute.xlu1 %1934 }
 0x2f8   : > { %1753 = vrot.lane.b32.xlu0 %v1689_v38, %s16465_s28  ;;  %v2432_v38 = vsel %vm2412_vm5, %v2399_v15, %v11793_v50 }
 0x2f9   : > { %2143 = vrot.lane.b32.xlu1 %v11921_v53, %s16500_s9  ;;  %v2465_v10 = vsel %vm2445_vm6, %v2432_v38, %v11810_v44 }
 0x2fa   : > { %v11931_v47 = vpop.permute.xlu0 %1562  ;;  %v2498_v11 = vsel %vm2478_vm7, %v2465_v10, %v11859_v24 }
 0x2fb   : > { %v2320_v19 = vpop.permute.xlu1 %2319  ;;  %v2531_v49 = vsel %vm2511_vm8, %v2498_v11, %v2034_v4  ;;  %v9589_v4 = vpop.f32.mrf.mxu0 }
 0x2fc   : > { %v2629_v55 = vsel %vm2610_vm11, %v2596_v32, %v2320_v19  ;;  %2145 = vrot.lane.b32.xlu0 %v11928_v3, %s16500_s9  ;;  %v2564_v50 = vsel %vm2544_vm9, %v2531_v49, %v2130_v5  ;;  %v1517_v19 = vsel %vm1437_vm2, %v1514_v26, %v1516_v20  ;;  %v1693_v20 = vrot.slane %v1403_v46, 2 }
 0x2fd   : > { %1848 = vrot.lane.b32.xlu1 %v11921_v53, %s10414_s27  ;;  %9635 = vmatprep.mubr.msk.f32.mxu1 %vm16493_vm12, %v2629_v55  ;;  %v2597_v44 = vsel %vm2577_vm10, %v2564_v50, %v2226_v14  ;;  %v1690_v55 = vrot.slane %v11921_v53, 2  ;;  %v1188_v26 = vpop.f32.mrf.mxu0  ;;  %v11982_v49 = vadd.f32 %v11430_v57, %v9589_v4  ;;  %v2400_v4 = vsel %vm16492_vm4, %v11466_v41, %v11840_v54 }
 0x2fe   : > { %v2036_v1 = vpop.permute.xlu0 %2035  ;;  %v11979_v11 = vadd.f32 %v11430_v57, %v1188_v26 }
 0x2ff   : > { %v11950_v22 = vpop.permute.xlu1 %1936  ;;  %v1692_v14 = vsel %vm1614_vm3, %v1690_v55, %v1691_v56  ;;  %16574 = vst [vmem:[#allocation44_spill] sm:$0xff] %v11982_v49  ;;  %v16460_v46 = vmax.f32 %v11982_v49, 0.0 }
 0x300   : > { %1850 = vrot.lane.b32.xlu0 %v11928_v3, %s10414_s27  ;;  %16573 = vst [vmem:[#allocation43_spill] sm:$0xff] %v11979_v11 }
 0x301   : > { %2239 = vrot.lane.b32.xlu1 %v1515_v62, %s10418_s2 }
 0x302   : > { %v11960_v52 = vpop.permute.xlu0 %1564 }
 0x303   : > { %v2322_v32 = vpop.permute.xlu1 %2321 }
 0x304   : > { %v2630_v24 = vsel %vm2610_vm11, %v2597_v44, %v2322_v32  ;;  %2241 = vrot.lane.b32.xlu0 %v1517_v19, %s10418_s2  ;;  %v16459_v44 = vmax.f32 %v11979_v11, 0.0  ;;  %v1694_v32 = vsel %vm1614_vm3, %v1691_v56, %v1693_v20  ;;  %v2433_v56 = vsel %vm2412_vm5, %v2400_v4, %v11879_v33 }
 0x305   : > { %1950 = vrot.lane.b32.xlu1 %v1515_v62, %s16504_s30  ;;  %9636 = vmatmul.mubr.msk.f32.gmra.mxu1 %vm16493_vm12, %v2630_v24  ;;  %v2466_v20 = vsel %vm2445_vm6, %v2433_v56, %v11894_v16 }
 0x306   : > { %v2038_v5 = vpop.permute.xlu0 %2037  ;;  %v1319_v57 = vrot.slane %v16459_v44, 7  ;;  %v2499_v44 = vsel %vm2478_vm7, %v2466_v20, %v11916_v6 }
 0x307   : > { %v11970_v15 = vpop.permute.xlu1 %1739  ;;  %v2532_v54 = vsel %vm2511_vm8, %v2499_v44, %v2036_v1  ;;  %v2401_v1 = vsel %vm16492_vm4, %v11473_v36, %v11869_v13  ;;  %v9610_v13 = vpop.f32.mrf.mxu1 }
 0x308   : > { %1578 = vrot.lane.b32.xlu0 %v1515_v62, %s16477_s1  ;;  %v1387_v41 = vsel %vm968_vm0, 0.0, %v1319_v57 }
 0x309   : > { %2335 = vrot.lane.b32.xlu1 %v1692_v14, %s16461_s26  ;;  %v1889_v6 = vrot.slane %v1387_v41, 1 }
 0x30a   : > { %v11975_v38 = vpop.permute.xlu0 %1741 }
 0x30b   : > { %v2132_v10 = vpop.permute.xlu1 %2131 }
 0x30c   : > { %2051 = vrot.lane.b32.xlu0 %v1692_v14, %s16463_s4  ;;  %v2565_v33 = vsel %vm2544_vm9, %v2532_v54, %v2132_v10  ;;  %v2434_v10 = vsel %vm2412_vm5, %v2401_v1, %v11884_v7  ;;  %v1990_v1 = vrot.slane %v1387_v41, 2 }
 0x30d   : > { %1952 = vrot.lane.b32.xlu1 %v1517_v19, %s16504_s30 }
 0x30e   : > { %v2134_v62 = vpop.permute.xlu0 %2133 }
 0x30f   : > { %v11985_v50 = vpop.permute.xlu1 %1836 }
 0x310   : > { %1580 = vrot.lane.b32.xlu0 %v1517_v19, %s16477_s1  ;;  %v1320_v19 = vrot.slane %v16460_v46, 7 }
 0x311   : > { %2337 = vrot.lane.b32.xlu1 %v1694_v32, %s16461_s26 }
 0x312   : > { %v11992_v24 = vpop.permute.xlu0 %1838  ;;  %v1404_v46 = vsel %vm968_vm0, %v1320_v19, 0.0 }
 0x313   : > { %v2228_v55 = vpop.permute.xlu1 %2227 }
 0x314   : > { %2053 = vrot.lane.b32.xlu0 %v1694_v32, %s16463_s4  ;;  %v2598_v16 = vsel %vm2577_vm10, %v2565_v33, %v2228_v55  ;;  %v2467_v55 = vsel %vm2445_vm6, %v2434_v10, %v11901_v2 }
 0x315   : > { %1755 = vrot.lane.b32.xlu1 %v1692_v14, %s16465_s28  ;;  %v1321_v14 = vsel %vm968_vm0, %v1319_v57, %v1320_v19  ;;  %v1892_v57 = vrot.slane %v1404_v46, 1  ;;  %v2500_v54 = vsel %vm2478_vm7, %v2467_v55, %v11950_v22 }
 0x316   : > { %v2230_v26 = vpop.permute.xlu0 %2229  ;;  %v1890_v20 = vrot.slane %v1321_v14, 1  ;;  %v2533_v33 = vsel %vm2511_vm8, %v2500_v54, %v2038_v5  ;;  %v1991_v22 = vrot.slane %v1321_v14, 2 }
 0x317   : > { %v12007_v48 = vpop.permute.xlu1 %1938  ;;  %v2566_v7 = vsel %vm2544_vm9, %v2533_v33, %v2134_v62  ;;  %v12056_v62 = vld [vmem:[%s16575_s6] ss:$0 sm:$0xff]  ;;  %s16508_s6 = smov 96  }
 0x318   : > { %1757 = vrot.lane.b32.xlu0 %v1694_v32, %s16465_s28  ;;  %v1891_v36 = vsel %vm1437_vm2, %v1889_v6, %v1890_v20  ;;  %v2599_v2 = vsel %vm2577_vm10, %v2566_v7, %v2230_v26  ;;  %v2812_v6 = vpop.f32.mrf.mxu1  ;;  %v1993_v26 = vrot.slane %v1404_v46, 2  ;;  %v2818_v55 = vadd.f32 %v9610_v13, %v12056_v62 }
 0x319   : > { %2147 = vrot.lane.b32.xlu1 %v1387_v41, %s16500_s9  ;;  %v9933_v46 = vpack.i.bf16 %v10710_v17, %v10714_v18 }
 0x31a   : > { %v12017_v4 = vpop.permute.xlu0 %1566  ;;  %v2972_v7 = vmax.f32 %v2818_v55, 0.0 }
 0x31b   : > { %v2324_v56 = vpop.permute.xlu1 %2323 }
 0x31c   : > { %v2631_v32 = vsel %vm2610_vm11, %v2598_v16, %v2324_v56  ;;  %2149 = vrot.lane.b32.xlu0 %v1321_v14, %s16500_s9  ;;  %v3046_v13 = vrot.slane %v2972_v7, 7 }
 0x31d   : > { %1852 = vrot.lane.b32.xlu1 %v1387_v41, %s10414_s27  ;;  %9638 = vmatprep.mubr.msk.f32.mxu1 %vm16493_vm12, %v2631_v32  ;;  %v1893_v32 = vsel %vm1437_vm2, %v1890_v20, %v1892_v57  ;;  %v2813_v41 = vadd.f32 %v12056_v62, %v2812_v6 }
 0x31e   : > { %v12030_v44 = vpop.permute.xlu0 %2039 }
 0x31f   : > { %v12034_v19 = vpop.permute.xlu1 %1940  ;;  %v2971_v33 = vmax.f32 %v2813_v41, 0.0 }
 0x320   : > { %1854 = vrot.lane.b32.xlu0 %v1321_v14, %s10414_s27  ;;  %v1992_v14 = vsel %vm1614_vm3, %v1990_v1, %v1991_v22 }
 0x321   : > { %2243 = vrot.lane.b32.xlu1 %v1891_v36, %s10418_s2 }
 0x322   : > { %v12043_v16 = vpop.permute.xlu0 %1568 }
 0x323   : > { %v2326_v56 = vpop.permute.xlu1 %2325 }
 0x324   : > { %v2632_v10 = vsel %vm2610_vm11, %v2599_v2, %v2326_v56  ;;  %2245 = vrot.lane.b32.xlu0 %v1893_v32, %s10418_s2 }
 0x325   : > { %1954 = vrot.lane.b32.xlu1 %v1891_v36, %s16504_s30  ;;  %9639 = vmatmul.mubr.msk.f32.gmra.mxu1 %vm16493_vm12, %v2632_v10  ;;  %v1994_v36 = vsel %vm1614_vm3, %v1991_v22, %v1993_v26  ;;  %v9613_v10 = vpop.f32.mrf.mxu1  ;;  %v2402_v26 = vsel %vm16492_vm4, %v11557_v58, %v11931_v47  ;;  %v3156_v47 = vsel %vm968_vm0, %v3046_v13, 0.0 }
 0x326   : > { %v12051_v5 = vpop.permute.xlu0 %2041  ;;  %v2435_v41 = vsel %vm2412_vm5, %v2402_v26, %v11970_v15 }
 0x327   : > { %v12058_v20 = vpop.permute.xlu1 %1743 }
 0x328   : > { %1956 = vrot.lane.b32.xlu0 %v1893_v32, %s16504_s30  ;;  %v3045_v32 = vrot.slane %v2971_v33, 7 }
 0x329   : > { %2339 = vrot.lane.b32.xlu1 %v1992_v14, %s16461_s26 }
 0x32a   : > { %v12065_v57 = vpop.permute.xlu0 %1745  ;;  %v12081_v17 = vsel %vm968_vm0, %v3045_v32, %v3046_v13  ;;  %v12084_v6 = vsel %vm968_vm0, 0.0, %v3045_v32  ;;  %v3205_v13 = vrot.slane %v3156_v47, 1 }
 0x32b   : > { %v2136_v54 = vpop.permute.xlu1 %2135  ;;  %v3202_v33 = vrot.slane %v12084_v6, 1  ;;  %v3367_v26 = vrot.slane %v12084_v6, 2 }
 0x32c   : > { %2341 = vrot.lane.b32.xlu0 %v1994_v36, %s16461_s26 }
 0x32d   : > { %2055 = vrot.lane.b32.xlu1 %v1992_v14, %s16463_s4 }
 0x32e   : > { %v2138_v2 = vpop.permute.xlu0 %2137 }
 0x32f   : > { %v12072_v56 = vpop.permute.xlu1 %1840 }
 0x330   : > { %9934 = vrot.lane.b32.xlu0 %v9933_v46, %s16500_s9  ;;  %v2822_v46 = vpop.f32.mrf.mxu1 }
 0x331   : > { %2057 = vrot.lane.b32.xlu1 %v1994_v36, %s16463_s4  ;;  %v3203_v36 = vrot.slane %v12081_v17, 1  ;;  %v2823_v32 = vadd.f32 %v12056_v62, %v2822_v46 }
 0x332   : > { %v12076_v1 = vpop.permute.xlu0 %1842 }
 0x333   : > { %v2232_v22 = vpop.permute.xlu1 %2231 }
 0x334   : > { %9944 = vrot.lane.b32.xlu0 %v10742_v31, %s16461_s26  ;;  %v2468_v31 = vsel %vm2445_vm6, %v2435_v41, %v11985_v50  ;;  %v3368_v50 = vrot.slane %v12081_v17, 2  ;;  %s16590_s26 = smov 8  }
 0x335   : > { %9939 = vrot.lane.b32.xlu1 %v10729_v25, %s10418_s2  ;;  %v2501_v58 = vsel %vm2478_vm7, %v2468_v31, %v12007_v48 }
 0x336   : > { %v2234_v14 = vpop.permute.xlu0 %2233  ;;  %v2534_v25 = vsel %vm2511_vm8, %v2501_v58, %v12030_v44  ;;  %v3204_v44 = vsel %vm1437_vm2, %v3202_v33, %v3203_v36  ;;  %v2973_v33 = vmax.f32 %v2823_v32, 0.0 }
 0x337   : > { %v12095_v55 = vpop.permute.xlu1 %1942  ;;  %v2567_v15 = vsel %vm2544_vm9, %v2534_v25, %v2136_v54  ;;  %v2403_v54 = vsel %vm16492_vm4, %v11564_v8, %v11960_v52  ;;  %v3369_v8 = vsel %vm1614_vm3, %v3367_v26, %v3368_v50 }
 0x338   : > { %3535 = vrot.lane.b32.xlu0 %v12081_v17, %s10414_s27  ;;  %v2600_v48 = vsel %vm2577_vm10, %v2567_v15, %v2232_v22  ;;  %v2828_v22 = vadd.f32 %v9613_v10, %v12056_v62  ;;  %v2436_v46 = vsel %vm2412_vm5, %v2403_v54, %v11975_v38  ;;  %v3206_v10 = vsel %vm1437_vm2, %v3203_v36, %v3205_v13 }
 0x339   : > { %3533 = vrot.lane.b32.xlu1 %v12084_v6, %s10414_s27  ;;  %v2469_v25 = vsel %vm2445_vm6, %v2436_v46, %v11992_v24  ;;  %v3011_v24 = vld [vmem:[%s16577_s25 + $0x40] sm:$0xff] }
 0x33a   : > { %v12110_v7 = vpop.permute.xlu0 %1570  ;;  %v2502_v52 = vsel %vm2478_vm7, %v2469_v25, %v12034_v19  ;;  %v2974_v32 = vmax.f32 %v2828_v22, 0.0  ;;  %9656 = vmatprep.subr.mxu0 %v3011_v24  ;;  %v3048_v19 = vrot.slane %v2973_v33, 7  ;;  %v3008_v33 = vld [vmem:[%s16577_s25 + $0x28] sm:$0xff] }
 0x33b   : > { %v2328_v41 = vpop.permute.xlu1 %2327  ;;  %v2535_v38 = vsel %vm2511_vm8, %v2502_v52, %v12051_v5  ;;  %9657 = vmatpush3.msra.mxu0 %v3011_v24  ;;  %v3010_v5 = vld [vmem:[%s16577_s25 + $0x38] sm:$0xff] }
 0x33c   : > { %v2633_v31 = vsel %vm2610_vm11, %v2600_v48, %v2328_v41  ;;  %3277 = vrot.lane.b32.xlu0 %v3204_v44, %s16477_s1  ;;  %v2568_v48 = vsel %vm2544_vm9, %v2535_v38, %v2138_v2  ;;  %v3370_v2 = vrot.slane %v3156_v47, 2  ;;  %9658 = vmatprep.subr.mxu0 %v3010_v5  ;;  %v12160_v13 = vsel %vm968_vm0, 0.0, %v3048_v19  ;;  %v3006_v38 = vld [vmem:[%s16577_s25 + $0x18] sm:$0xff] }
 0x33d   : > { %3635 = vrot.lane.b32.xlu1 %v3204_v44, %s16504_s30  ;;  %9641 = vmatprep.mubr.msk.f32.mxu1 %vm16493_vm12, %v2633_v31  ;;  %v2601_v41 = vsel %vm2577_vm10, %v2568_v48, %v2234_v14  ;;  %v3049_v31 = vrot.slane %v2974_v32, 7  ;;  %v3009_v14 = vld [vmem:[%s16577_s25 + $0x30] sm:$0xff] }
 0x33e   : > { %v12126_v58 = vpop.permute.xlu0 %2043  ;;  %9659 = vmatpush3.msra.mxu0 %v3010_v5  ;;  %v3371_v47 = vsel %vm1614_vm3, %v3368_v50, %v3370_v2  ;;  %v3005_v32 = vld [vmem:[%s16577_s25 + $0x10] sm:$0xff] }
 0x33f   : > { %v12130_v15 = vpop.permute.xlu1 %1944  ;;  %v12165_v46 = vsel %vm968_vm0, %v3048_v19, %v3049_v31  ;;  %9660 = vmatprep.subr.mxu0 %v3009_v14  ;;  %v3157_v5 = vsel %vm968_vm0, %v3049_v31, 0.0 }
 0x340   : > { %3736 = vrot.lane.b32.xlu0 %v3369_v8, %s16463_s4  ;;  %9661 = vmatpush3.msra.mxu0 %v3009_v14  ;;  %v3208_v50 = vrot.slane %v12165_v46, 1  ;;  %v3372_v14 = vrot.slane %v12160_v13, 2 }
 0x341   : > { %3637 = vrot.lane.b32.xlu1 %v3206_v10, %s16504_s30  ;;  %9662 = vmatprep.subr.mxu0 %v3008_v33 }
 0x342   : > { %v12144_v26 = vpop.permute.xlu0 %1572  ;;  %9663 = vmatpush3.msra.mxu0 %v3008_v33  ;;  %v9616_v33 = vpop.f32.mrf.mxu1 }
 0x343   : > { %v2330_v44 = vpop.permute.xlu1 %2329 }
 0x344   : > { %v2634_v36 = vsel %vm2610_vm11, %v2601_v41, %v2330_v44  ;;  %3442 = vrot.lane.b32.xlu0 %v3369_v8, %s16465_s28  ;;  %v3007_v8 = vld [vmem:[%s16577_s25 + $0x20] sm:$0xff]  ;;  %v3004_v41 = vld [vmem:[%s16577_s25 + $0x8] sm:$0xff]  ;;  %v2832_v11 = vpop.f32.mrf.mxu1 }
 0x345   : > { %3279 = vrot.lane.b32.xlu1 %v3206_v10, %s16477_s1  ;;  %9642 = vmatmul.mubr.msk.f32.gmra.mxu1 %vm16493_vm12, %v2634_v36  ;;  %v3207_v10 = vrot.slane %v12160_v13, 1  ;;  %v3003_v44 = vld [vmem:[%s16577_s25] sm:$0xff] }
 0x346   : > { %v12154_v54 = vpop.permute.xlu0 %2045  ;;  %9664 = vmatprep.subr.mxu0 %v3007_v8 }
 0x347   : > { %v12162_v22 = vpop.permute.xlu1 %1747  ;;  %9665 = vmatpush3.msra.mxu0 %v3007_v8  ;;  %v3209_v19 = vsel %vm1437_vm2, %v3207_v10, %v3208_v50  ;;  %v2404_v8 = vsel %vm16492_vm4, %v11648_v9, %v12017_v4  ;;  %v3210_v10 = vrot.slane %v3157_v5, 1 }
 0x348   : > { %3832 = vrot.lane.b32.xlu0 %v12160_v13, %s16500_s9  ;;  %9666 = vmatprep.subr.mxu0 %v3006_v38  ;;  %v2437_v31 = vsel %vm2412_vm5, %v2404_v8, %v12058_v20  ;;  %v2833_v8 = vadd.f32 %v12056_v62, %v2832_v11 }
 0x349   : > { %3738 = vrot.lane.b32.xlu1 %v3371_v47, %s16463_s4  ;;  %9667 = vmatpush3.msra.mxu0 %v3006_v38  ;;  %v3211_v4 = vsel %vm1437_vm2, %v3208_v50, %v3210_v10  ;;  %s16580_s4 = smov 40  }
 0x34a   : > { %v12174_v25 = vpop.permute.xlu0 %1749  ;;  %9668 = vmatprep.subr.mxu0 %v3005_v32 }
 0x34b   : > { %v2140_v52 = vpop.permute.xlu1 %2139  ;;  %9669 = vmatpush3.msra.mxu0 %v3005_v32  ;;  %v16578_v32 = vmov 0.0  }
 0x34c   : > { %3537 = vrot.lane.b32.xlu0 %v12160_v13, %s10414_s27  ;;  %9670 = vmatprep.subr.mxu0 %v3004_v41 }
 0x34d   : > { %3444 = vrot.lane.b32.xlu1 %v3371_v47, %s16465_s28  ;;  %v3373_v47 = vrot.slane %v12165_v46, 2  ;;  %9671 = vmatpush3.msra.mxu0 %v3004_v41  ;;  %v2470_v41 = vsel %vm2445_vm6, %v2437_v31, %v12072_v56  ;;  %s16579_s28 = smov 64  }
 0x34e   : > { %v2142_v24 = vpop.permute.xlu0 %2141  ;;  %9672 = vmatprep.subr.mxu0 %v3003_v44  ;;  %v2503_v9 = vsel %vm2478_vm7, %v2470_v41, %v12095_v55  ;;  %v3375_v41 = vrot.slane %v3157_v5, 2 }
 0x34f   : > { %v12190_v48 = vpop.permute.xlu1 %1844  ;;  %9673 = vmatpush3.msra.mxu0 %v3003_v44  ;;  %v3374_v49 = vsel %vm1614_vm3, %v3372_v14, %v3373_v47  ;;  %v2536_v20 = vsel %vm2511_vm8, %v2503_v9, %v12126_v58  ;;  %v2405_v58 = vsel %vm16492_vm4, %v11655_v34, %v12043_v16 }
 0x350   : > { %3922 = vrot.lane.b32.xlu0 %v3209_v19, %s10418_s2  ;;  %7144 = vmatprep.subr.mxu0 %v16578_v32  ;;  %v2569_v44 = vsel %vm2544_vm9, %v2536_v20, %v2140_v52  ;;  %v2838_v52 = vadd.f32 %v9616_v33, %v12056_v62  ;;  %v2438_v11 = vsel %vm2412_vm5, %v2405_v58, %v12065_v57 }
 0x351   : > { %3834 = vrot.lane.b32.xlu1 %v12165_v46, %s16500_s9  ;;  %v2471_v10 = vsel %vm2445_vm6, %v2438_v11, %v12076_v1  ;;  %v3376_v5 = vsel %vm1614_vm3, %v3373_v47, %v3375_v41 }
 0x352   : > { %v12202_v36 = vpop.permute.xlu0 %1846  ;;  %v2504_v34 = vsel %vm2478_vm7, %v2471_v10, %v12130_v15  ;;  %v2976_v57 = vmax.f32 %v2838_v52, 0.0 }
 0x353   : > { %v2236_v2 = vpop.permute.xlu1 %2235  ;;  %v2537_v16 = vsel %vm2511_vm8, %v2504_v34, %v12154_v54 }
 0x354   : > { %3639 = vrot.lane.b32.xlu0 %v3209_v19, %s16504_s30  ;;  %v2602_v14 = vsel %vm2577_vm10, %v2569_v44, %v2236_v2  ;;  %v2975_v2 = vmax.f32 %v2833_v8, 0.0  ;;  %v3052_v15 = vrot.slane %v2976_v57, 7 }
 0x355   : > { %3539 = vrot.lane.b32.xlu1 %v12165_v46, %s10414_s27 }
 0x356   : > { %v2238_v38 = vpop.permute.xlu0 %2237  ;;  %v3051_v1 = vrot.slane %v2975_v2, 7  ;;  %v3158_v11 = vsel %vm968_vm0, %v3052_v15, 0.0 }
 0x357   : > { %v12218_v18 = vpop.permute.xlu1 %1946  ;;  %v3215_v57 = vrot.slane %v3158_v11, 1 }
 0x358   : > { %4012 = vrot.lane.b32.xlu0 %v3374_v49, %s16579_s28  ;;  %v12263_v8 = vsel %vm968_vm0, 0.0, %v3051_v1 }
 0x359   : > { %3924 = vrot.lane.b32.xlu1 %v3211_v4, %s10418_s2  ;;  %v3377_v10 = vrot.slane %v12263_v8, 2 }
 0x35a   : > { %v12229_v56 = vpop.permute.xlu0 %1574 }
 0x35b   : > { %v2332_v31 = vpop.permute.xlu1 %2331 }
 0x35c   : > { %v2635_v55 = vsel %vm2610_vm11, %v2602_v14, %v2332_v31  ;;  %3641 = vrot.lane.b32.xlu0 %v3211_v4, %s16504_s30  ;;  %v12268_v14 = vsel %vm968_vm0, %v3051_v1, %v3052_v15 }
 0x35d   : > { %3281 = vrot.lane.b32.xlu1 %v3209_v19, %s16477_s1  ;;  %9644 = vmatprep.mubr.msk.f32.mxu1 %vm16493_vm12, %v2635_v55  ;;  %v2570_v19 = vsel %vm2544_vm9, %v2537_v16, %v2142_v24  ;;  %v3213_v31 = vrot.slane %v12268_v14, 1  ;;  %v3378_v34 = vrot.slane %v12268_v14, 2  ;;  %v2406_v16 = vsel %vm16492_vm4, %v11739_v27, %v12110_v7 }
 0x35e   : > { %v2048_v50 = vpop.permute.xlu0 %2047  ;;  %v2603_v20 = vsel %vm2577_vm10, %v2570_v19, %v2238_v38  ;;  %v2439_v19 = vsel %vm2412_vm5, %v2406_v16, %v12162_v22 }
 0x35f   : > { %v12245_v9 = vpop.permute.xlu1 %1948  ;;  %v3216_v27 = vsel %vm1437_vm2, %v3213_v31, %v3215_v57 }
 0x360   : > { %4014 = vrot.lane.b32.xlu0 %v3376_v5, %s16579_s28 }
 0x361   : > { %3740 = vrot.lane.b32.xlu1 %v3374_v49, %s16580_s4 }
 0x362   : > { %v12255_v33 = vpop.permute.xlu0 %1576 }
 0x363   : > { %v2334_v44 = vpop.permute.xlu1 %2333 }
 0x364   : > { %v2636_v47 = vsel %vm2610_vm11, %v2603_v20, %v2334_v44  ;;  %3446 = vrot.lane.b32.xlu0 %v3374_v49, %s16581_s0  ;;  %v2472_v20 = vsel %vm2445_vm6, %v2439_v19, %v12190_v48 }
 0x365   : > { %3283 = vrot.lane.b32.xlu1 %v3211_v4, %s16477_s1  ;;  %9645 = vmatmul.mubr.msk.f32.gmra.mxu1 %vm16493_vm12, %v2636_v47  ;;  %v3212_v4 = vrot.slane %v12263_v8, 1  ;;  %v3379_v47 = vsel %vm1614_vm3, %v3377_v10, %v3378_v34 }
 0x366   : > { %v2050_v54 = vpop.permute.xlu0 %2049 }
 0x367   : > { %v12265_v24 = vpop.permute.xlu1 %1751  ;;  %v3214_v58 = vsel %vm1437_vm2, %v3212_v4, %v3213_v31  ;;  %v2505_v4 = vsel %vm2478_vm7, %v2472_v20, %v12218_v18  ;;  %v3380_v18 = vrot.slane %v3158_v11, 2 }
 0x368   : > { %3836 = vrot.lane.b32.xlu0 %v12263_v8, %s16500_s9  ;;  %v2538_v7 = vsel %vm2511_vm8, %v2505_v4, %v2048_v50  ;;  %v2407_v50 = vsel %vm16492_vm4, %v11746_v35, %v12144_v26 }
 0x369   : > { %3742 = vrot.lane.b32.xlu1 %v3376_v5, %s16580_s4  ;;  %v2440_v31 = vsel %vm2412_vm5, %v2407_v50, %v12174_v25  ;;  %v3381_v11 = vsel %vm1614_vm3, %v3378_v34, %v3380_v18 }
 0x36a   : > { %v12273_v49 = vpop.permute.xlu0 %1753  ;;  %v2473_v20 = vsel %vm2445_vm6, %v2440_v31, %v12202_v36 }
 0x36b   : > { %v2144_v38 = vpop.permute.xlu1 %2143  ;;  %v2506_v35 = vsel %vm2478_vm7, %v2473_v20, %v12245_v9 }
 0x36c   : > { %3541 = vrot.lane.b32.xlu0 %v12263_v8, %s10414_s27  ;;  %v2571_v22 = vsel %vm2544_vm9, %v2538_v7, %v2144_v38 }
 0x36d   : > { %3448 = vrot.lane.b32.xlu1 %v3376_v5, %s16581_s0  ;;  %v9619_v5 = vpop.f32.mrf.mxu1 }
 0x36e   : > { %v2146_v55 = vpop.permute.xlu0 %2145  ;;  %v2848_v38 = vadd.f32 %v9619_v5, %v12056_v62 }
 0x36f   : > { %v12280_v41 = vpop.permute.xlu1 %1848  ;;  %v2842_v15 = vpop.f32.mrf.mxu1 }
 0x370   : > { %3926 = vrot.lane.b32.xlu0 %v3214_v58, %s10418_s2  ;;  %v2843_v48 = vadd.f32 %v12056_v62, %v2842_v15  ;;  %v2978_v26 = vmax.f32 %v2848_v38, 0.0 }
 0x371   : > { %3838 = vrot.lane.b32.xlu1 %v12268_v14, %s16500_s9 }
 0x372   : > { %v12286_v52 = vpop.permute.xlu0 %1850  ;;  %v2977_v57 = vmax.f32 %v2843_v48, 0.0  ;;  %v3055_v9 = vrot.slane %v2978_v26, 7 }
 0x373   : > { %v2240_v2 = vpop.permute.xlu1 %2239 }
 0x374   : > { %3643 = vrot.lane.b32.xlu0 %v3214_v58, %s16504_s30  ;;  %v2604_v10 = vsel %vm2577_vm10, %v2571_v22, %v2240_v2  ;;  %v3054_v5 = vrot.slane %v2977_v57, 7  ;;  %v3159_v38 = vsel %vm968_vm0, %v3055_v9, 0.0 }
 0x375   : > { %3543 = vrot.lane.b32.xlu1 %v12268_v14, %s10414_s27 }
 0x376   : > { %v2242_v1 = vpop.permute.xlu0 %2241  ;;  %v12342_v7 = vsel %vm968_vm0, 0.0, %v3054_v5  ;;  %v12347_v22 = vsel %vm968_vm0, %v3054_v5, %v3055_v9  ;;  %v2409_v9 = vsel %vm16492_vm4, %v11837_v30, %v12255_v33 }
 0x377   : > { %v12301_v44 = vpop.permute.xlu1 %1950  ;;  %v3218_v48 = vrot.slane %v12347_v22, 1  ;;  %v3382_v57 = vrot.slane %v12342_v7, 2  ;;  %v3383_v20 = vrot.slane %v12347_v22, 2 }
 0x378   : > { %4016 = vrot.lane.b32.xlu0 %v3379_v47, %s16579_s28 }
 0x379   : > { %3928 = vrot.lane.b32.xlu1 %v3216_v27, %s10418_s2 }
 0x37a   : > { %v12311_v16 = vpop.permute.xlu0 %1578 }
 0x37b   : > { %v2336_v19 = vpop.permute.xlu1 %2335 }
 0x37c   : > { %v2637_v40 = vsel %vm2610_vm11, %v2604_v10, %v2336_v19  ;;  %3645 = vrot.lane.b32.xlu0 %v3216_v27, %s16504_s30 }
 0x37d   : > { %3285 = vrot.lane.b32.xlu1 %v3214_v58, %s16477_s1  ;;  %9647 = vmatprep.mubr.msk.f32.mxu1 %vm16493_vm12, %v2637_v40  ;;  %v2539_v40 = vsel %vm2511_vm8, %v2506_v35, %v2050_v54  ;;  %v9622_v35 = vpop.f32.mrf.mxu1 }
 0x37e   : > { %v2052_v2 = vpop.permute.xlu0 %2051  ;;  %v2572_v25 = vsel %vm2544_vm9, %v2539_v40, %v2146_v55  ;;  %v3220_v40 = vrot.slane %v3159_v38, 1 }
 0x37f   : > { %v1953_v15 = vpop.permute.xlu1 %1952  ;;  %v2605_v36 = vsel %vm2577_vm10, %v2572_v25, %v2242_v1 }
 0x380   : > { %4018 = vrot.lane.b32.xlu0 %v3381_v11, %s16579_s28 }
 0x381   : > { %3744 = vrot.lane.b32.xlu1 %v3379_v47, %s16580_s4 }
 0x382   : > { %v12334_v58 = vpop.permute.xlu0 %1580 }
 0x383   : > { %v2338_v4 = vpop.permute.xlu1 %2337 }
 0x384   : > { %v2638_v34 = vsel %vm2610_vm11, %v2605_v36, %v2338_v4  ;;  %3450 = vrot.lane.b32.xlu0 %v3379_v47, %s16581_s0  ;;  %v3384_v4 = vsel %vm1614_vm3, %v3382_v57, %v3383_v20 }
 0x385   : > { %3287 = vrot.lane.b32.xlu1 %v3216_v27, %s16477_s1  ;;  %9648 = vmatmul.mubr.msk.f32.gmra.mxu1 %vm16493_vm12, %v2638_v34  ;;  %v3217_v27 = vrot.slane %v12342_v7, 1  ;;  %v2852_v34 = vpop.f32.mrf.mxu1 }
 0x386   : > { %v2054_v54 = vpop.permute.xlu0 %2053  ;;  %v2853_v33 = vadd.f32 %v12056_v62, %v2852_v34 }
 0x387   : > { %v12344_v55 = vpop.permute.xlu1 %1755  ;;  %v3219_v18 = vsel %vm1437_vm2, %v3217_v27, %v3218_v48 }
 0x388   : > { %3840 = vrot.lane.b32.xlu0 %v12342_v7, %s16500_s9 }
 0x389   : > { %3746 = vrot.lane.b32.xlu1 %v3381_v11, %s16580_s4 }
 0x38a   : > { %v12352_v1 = vpop.permute.xlu0 %1757 }
 0x38b   : > { %v2148_v47 = vpop.permute.xlu1 %2147 }
 0x38c   : > { %3545 = vrot.lane.b32.xlu0 %v12342_v7, %s10414_s27 }
 0x38d   : > { %3452 = vrot.lane.b32.xlu1 %v3381_v11, %s16581_s0  ;;  %v2408_v11 = vsel %vm16492_vm4, %v11830_v61, %v12229_v56  ;;  %v3221_v56 = vsel %vm1437_vm2, %v3218_v48, %v3220_v40 }
 0x38e   : > { %v2150_v10 = vpop.permute.xlu0 %2149  ;;  %v2441_v26 = vsel %vm2412_vm5, %v2408_v11, %v12265_v24  ;;  %v2442_v24 = vsel %vm2412_vm5, %v2409_v9, %v12273_v49 }
 0x38f   : > { %v12359_v19 = vpop.permute.xlu1 %1852  ;;  %v2474_v5 = vsel %vm2445_vm6, %v2441_v26, %v12280_v41  ;;  %v2475_v27 = vsel %vm2445_vm6, %v2442_v24, %v12286_v52  ;;  %v2858_v52 = vadd.f32 %v9622_v35, %v12056_v62 }
 0x390   : > { %3930 = vrot.lane.b32.xlu0 %v3219_v18, %s10418_s2  ;;  %v2507_v61 = vsel %vm2478_vm7, %v2474_v5, %v12301_v44  ;;  %v2508_v44 = vsel %vm2478_vm7, %v2475_v27, %v1953_v15 }
 0x391   : > { %3842 = vrot.lane.b32.xlu1 %v12347_v22, %s16500_s9  ;;  %v2540_v41 = vsel %vm2511_vm8, %v2507_v61, %v2052_v2  ;;  %v2541_v40 = vsel %vm2511_vm8, %v2508_v44, %v2054_v54  ;;  %v3385_v2 = vrot.slane %v3159_v38, 2 }
 0x392   : > { %v1855_v50 = vpop.permute.xlu0 %1854  ;;  %v2573_v57 = vsel %vm2544_vm9, %v2540_v41, %v2148_v47  ;;  %v2574_v26 = vsel %vm2544_vm9, %v2541_v40, %v2150_v10  ;;  %v2980_v10 = vmax.f32 %v2858_v52, 0.0 }
 0x393   : > { %v2244_v31 = vpop.permute.xlu1 %2243  ;;  %v3386_v34 = vsel %vm1614_vm3, %v3383_v20, %v3385_v2  ;;  %v2410_v20 = vsel %vm16492_vm4, %v11921_v53, %v12311_v16 }
 0x394   : > { %3647 = vrot.lane.b32.xlu0 %v3219_v18, %s16504_s30  ;;  %v2606_v11 = vsel %vm2577_vm10, %v2573_v57, %v2244_v31  ;;  %v2979_v31 = vmax.f32 %v2853_v33, 0.0  ;;  %v2443_v24 = vsel %vm2412_vm5, %v2410_v20, %v12344_v55 }
 0x395   : > { %3547 = vrot.lane.b32.xlu1 %v12347_v22, %s10414_s27  ;;  %v2476_v27 = vsel %vm2445_vm6, %v2443_v24, %v12359_v19 }
 0x396   : > { %v2246_v25 = vpop.permute.xlu0 %2245  ;;  %v3057_v35 = vrot.slane %v2979_v31, 7 }
 0x397   : > { %v1955_v36 = vpop.permute.xlu1 %1954  ;;  %v2607_v15 = vsel %vm2577_vm10, %v2574_v26, %v2246_v25 }
 0x398   : > { %4020 = vrot.lane.b32.xlu0 %v3384_v4, %s16579_s28  ;;  %v2509_v55 = vsel %vm2478_vm7, %v2476_v27, %v1955_v36 }
 0x399   : > { %3932 = vrot.lane.b32.xlu1 %v3221_v56, %s10418_s2 }
 0x39a   : > { %v1957_v30 = vpop.permute.xlu0 %1956 }
 0x39b   : > { %v2340_v48 = vpop.permute.xlu1 %2339 }
 0x39c   : > { %v2639_v49 = vsel %vm2610_vm11, %v2606_v11, %v2340_v48  ;;  %3649 = vrot.lane.b32.xlu0 %v3221_v56, %s16504_s30 }
 0x39d   : > { %3289 = vrot.lane.b32.xlu1 %v3219_v18, %s16477_s1  ;;  %9650 = vmatprep.mubr.msk.f32.mxu1 %vm16493_vm12, %v2639_v49  ;;  %v2411_v18 = vsel %vm16492_vm4, %v11928_v3, %v12334_v58 }
 0x39e   : > { %v2342_v47 = vpop.permute.xlu0 %2341  ;;  %v2444_v25 = vsel %vm2412_vm5, %v2411_v18, %v12352_v1  ;;  %v3058_v1 = vrot.slane %v2980_v10, 7 }
 0x39f   : > { %v2640_v5 = vsel %vm2610_vm11, %v2607_v15, %v2342_v47  ;;  %v2056_v54 = vpop.permute.xlu1 %2055  ;;  %v2477_v61 = vsel %vm2445_vm6, %v2444_v25, %v1855_v50  ;;  %v12433_v50 = vsel %vm968_vm0, 0.0, %v3057_v35 }
 0x3a0   : > { %4022 = vrot.lane.b32.xlu0 %v3386_v34, %s16579_s28  ;;  %9651 = vmatmul.mubr.msk.f32.gmra.mxu1 %vm16493_vm12, %v2640_v5  ;;  %v2510_v3 = vsel %vm2478_vm7, %v2477_v61, %v1957_v30  ;;  %v2542_v19 = vsel %vm2511_vm8, %v2509_v55, %v2056_v54  ;;  %v3222_v15 = vrot.slane %v12433_v50, 1  ;;  %v3160_v18 = vsel %vm968_vm0, %v3058_v1, 0.0 }
 0x3a1   : > { %3748 = vrot.lane.b32.xlu1 %v3384_v4, %s16580_s4  ;;  %v3387_v25 = vrot.slane %v12433_v50, 2  ;;  %v3225_v20 = vrot.slane %v3160_v18, 1 }
 0x3a2   : > { %v12412_v38 = vpop.permute.xlu0 %9934 }
 0x3a3   : > { %v2058_v9 = vpop.permute.xlu1 %2057  ;;  %v16475_v58 = vunpack.i.h.bf16 %v12412_v38  ;;  %v16479_v41 = vunpack.i.l.bf16 %v12412_v38 }
 0x3a4   : > { %3454 = vrot.lane.b32.xlu0 %v3384_v4, %s16581_s0  ;;  %v2543_v53 = vsel %vm2511_vm8, %v2510_v3, %v2058_v9  ;;  %v9625_v9 = vpop.f32.mrf.mxu1 }
 0x3a5   : > { %3291 = vrot.lane.b32.xlu1 %v3221_v56, %s16477_s1  ;;  %v12441_v56 = vsel %vm968_vm0, %v3057_v35, %v3058_v1  ;;  %v2576_v36 = vsel %vm2544_vm9, %v2543_v53, %v16475_v58  ;;  %v2575_v11 = vsel %vm2544_vm9, %v2542_v19, %v16479_v41 }
 0x3a6   : > { %v12430_v16 = vpop.permute.xlu0 %9944  ;;  %v3223_v47 = vrot.slane %v12441_v56, 1  ;;  %v2862_v27 = vpop.f32.mrf.mxu1 }
 0x3a7   : > { %v16472_v4 = vunpack.i.h.bf16 %v12430_v16  ;;  %v16474_v57 = vunpack.i.l.bf16 %v12430_v16  ;;  %v12438_v30 = vpop.permute.xlu1 %9939  ;;  %v2863_v55 = vadd.f32 %v12056_v62, %v2862_v27 }
 0x3a8   : > { %v16473_v33 = vunpack.i.h.bf16 %v12438_v30  ;;  %v16476_v44 = vunpack.i.l.bf16 %v12438_v30  ;;  %3844 = vrot.lane.b32.xlu0 %v12433_v50, %s16500_s9  ;;  %v3224_v54 = vsel %vm1437_vm2, %v3222_v15, %v3223_v47  ;;  %v3226_v1 = vsel %vm1437_vm2, %v3223_v47, %v3225_v20 }
 0x3a9   : > { %3750 = vrot.lane.b32.xlu1 %v3386_v34, %s16580_s4 }
 0x3aa   : > { %v12455_v48 = vpop.permute.xlu0 %3535  ;;  %v2608_v40 = vsel %vm2577_vm10, %v2575_v11, %v16476_v44  ;;  %v2609_v49 = vsel %vm2577_vm10, %v2576_v36, %v16473_v33  ;;  %v3390_v36 = vrot.slane %v3160_v18, 2  ;;  %v2868_v11 = vadd.f32 %v9625_v9, %v12056_v62 }
 0x3ab   : > { %v3534_v2 = vpop.permute.xlu1 %3533  ;;  %v2641_v26 = vsel %vm2610_vm11, %v2608_v40, %v16474_v57  ;;  %v2642_v52 = vsel %vm2610_vm11, %v2609_v49, %v16472_v4  ;;  %v2981_v49 = vmax.f32 %v2863_v55, 0.0 }
 0x3ac   : > { %3549 = vrot.lane.b32.xlu0 %v12433_v50, %s10414_s27  ;;  %9653 = vmatprep.mubr.msk.f32.mxu1 %vm16493_vm12, %v2641_v26  ;;  %v2982_v15 = vmax.f32 %v2868_v11, 0.0  ;;  %v4162_v18 = vsel %vm2445_vm6, %v11078_v23, %v3534_v2 }
 0x3ad   : > { %3456 = vrot.lane.b32.xlu1 %v3386_v34, %s16581_s0  ;;  %9654 = vmatmul.mubr.msk.f32.gmra.mxu1 %vm16493_vm12, %v2642_v52  ;;  %v3388_v34 = vrot.slane %v12441_v56, 2 }
 0x3ae   : > { %v12476_v31 = vpop.permute.xlu0 %3277 }
 0x3af   : > { %v3636_v5 = vpop.permute.xlu1 %3635  ;;  %v3389_v3 = vsel %vm1614_vm3, %v3387_v25, %v3388_v34  ;;  %v3391_v52 = vsel %vm1614_vm3, %v3388_v34, %v3390_v36  ;;  %v3060_v25 = vrot.slane %v2981_v49, 7 }
 0x3b0   : > { %3934 = vrot.lane.b32.xlu0 %v3224_v54, %s10418_s2  ;;  %v4194_v27 = vsel %vm2478_vm7, %v4162_v18, %v3636_v5 }
 0x3b1   : > { %3846 = vrot.lane.b32.xlu1 %v12441_v56, %s16500_s9  ;;  %v12514_v34 = vsel %vm968_vm0, 0.0, %v3060_v25 }
 0x3b2   : > { %v3737_v10 = vpop.permute.xlu0 %3736 }
 0x3b3   : > { %v3638_v35 = vpop.permute.xlu1 %3637 }
 0x3b4   : > { %3651 = vrot.lane.b32.xlu0 %v3224_v54, %s16504_s30 }
 0x3b5   : > { %3551 = vrot.lane.b32.xlu1 %v12441_v56, %s10414_s27 }
 0x3b6   : > { %v12488_v61 = vpop.permute.xlu0 %3442 }
 0x3b7   : > { %v12490_v24 = vpop.permute.xlu1 %3279 }
 0x3b8   : > { %4024 = vrot.lane.b32.xlu0 %v3389_v3, %s16579_s28 }
 0x3b9   : > { %3936 = vrot.lane.b32.xlu1 %v3226_v1, %s10418_s2 }
 0x3ba   : > { %v3833_v53 = vpop.permute.xlu0 %3832 }
 0x3bb   : > { %v3739_v19 = vpop.permute.xlu1 %3738 }
 0x3bc   : > { %3653 = vrot.lane.b32.xlu0 %v3226_v1, %s16504_s30 }
 0x3bd   : > { %3293 = vrot.lane.b32.xlu1 %v3224_v54, %s16477_s1  ;;  %v3061_v54 = vrot.slane %v2982_v15, 7  ;;  %v3227_v15 = vrot.slane %v12514_v34, 1 }
 0x3be   : > { %v12500_v40 = vpop.permute.xlu0 %3537 }
 0x3bf   : > { %v12502_v26 = vpop.permute.xlu1 %3444  ;;  %v12520_v36 = vsel %vm968_vm0, %v3060_v25, %v3061_v54 }
 0x3c0   : > { %4026 = vrot.lane.b32.xlu0 %v3391_v52, %s16579_s28  ;;  %v3228_v25 = vrot.slane %v12520_v36, 1 }
 0x3c1   : > { %3752 = vrot.lane.b32.xlu1 %v3389_v3, %s16580_s4 }
 0x3c2   : > { %v3923_v47 = vpop.permute.xlu0 %3922 }
 0x3c3   : > { %v3835_v20 = vpop.permute.xlu1 %3834 }
 0x3c4   : > { %3458 = vrot.lane.b32.xlu0 %v3389_v3, %s16581_s0  ;;  %v4226_v3 = vsel %vm2511_vm8, %v4194_v27, %v3737_v10  ;;  %v4163_v10 = vsel %vm2445_vm6, %v11110_v28, %v12455_v48  ;;  %v3229_v27 = vsel %vm1437_vm2, %v3227_v15, %v3228_v25  ;;  %v3393_v15 = vrot.slane %v12520_v36, 2 }
 0x3c5   : > { %3295 = vrot.lane.b32.xlu1 %v3226_v1, %s16477_s1  ;;  %v4258_v1 = vsel %vm2544_vm9, %v4226_v3, %v3833_v53 }
 0x3c6   : > { %v12511_v9 = vpop.permute.xlu0 %3639  ;;  %v4290_v2 = vsel %vm2577_vm10, %v4258_v1, %v3923_v47  ;;  %v4195_v47 = vsel %vm2478_vm7, %v4163_v10, %v3638_v35 }
 0x3c7   : > { %v12517_v55 = vpop.permute.xlu1 %3539  ;;  %v4227_v3 = vsel %vm2511_vm8, %v4195_v47, %v3739_v19  ;;  %v9628_v19 = vpop.f32.mrf.mxu1 }
 0x3c8   : > { %3848 = vrot.lane.b32.xlu0 %v12514_v34, %s16500_s9  ;;  %v4259_v1 = vsel %vm2544_vm9, %v4227_v3, %v3835_v20  ;;  %v2878_v4 = vadd.f32 %v9628_v19, %v12056_v62 }
 0x3c9   : > { %3754 = vrot.lane.b32.xlu1 %v3391_v52, %s16580_s4  ;;  %v2872_v47 = vpop.f32.mrf.mxu1 }
 0x3ca   : > { %v4013_v11 = vpop.permute.xlu0 %4012 }
 0x3cb   : > { %v4322_v49 = vsel %vm2610_vm11, %v4290_v2, %v4013_v11  ;;  %v3925_v5 = vpop.permute.xlu1 %3924  ;;  %v3161_v2 = vsel %vm968_vm0, %v3061_v54, 0.0 }
 0x3cc   : > { %3553 = vrot.lane.b32.xlu0 %v12514_v34, %s10414_s27  ;;  %9674 = vmatprep.mubr.msk.f32.mxu0 %vm16493_vm12, %v4322_v49  ;;  %v3392_v49 = vrot.slane %v12514_v34, 2  ;;  %v3230_v20 = vrot.slane %v3161_v2, 1 }
 0x3cd   : > { %3460 = vrot.lane.b32.xlu1 %v3391_v52, %s16581_s0  ;;  %v4291_v52 = vsel %vm2577_vm10, %v4259_v1, %v3925_v5 }
 0x3ce   : > { %v12538_v53 = vpop.permute.xlu0 %3641  ;;  %v3394_v54 = vsel %vm1614_vm3, %v3392_v49, %v3393_v15  ;;  %v3231_v3 = vsel %vm1437_vm2, %v3228_v25, %v3230_v20  ;;  %v2984_v20 = vmax.f32 %v2878_v4, 0.0 }
 0x3cf   : > { %v12541_v18 = vpop.permute.xlu1 %3281 }
 0x3d0   : > { %3938 = vrot.lane.b32.xlu0 %v3229_v27, %s10418_s2 }
 0x3d1   : > { %3850 = vrot.lane.b32.xlu1 %v12520_v36, %s16500_s9 }
 0x3d2   : > { %v4015_v48 = vpop.permute.xlu0 %4014 }
 0x3d3   : > { %v4323_v35 = vsel %vm2610_vm11, %v4291_v52, %v4015_v48  ;;  %v3741_v11 = vpop.permute.xlu1 %3740  ;;  %v2873_v52 = vadd.f32 %v12056_v62, %v2872_v47 }
 0x3d4   : > { %3655 = vrot.lane.b32.xlu0 %v3229_v27, %s16504_s30  ;;  %9675 = vmatmul.mubr.msk.f32.vlgmr.msra.gmra.mxu0 %vm16493_vm12, %v4323_v35  ;;  %v3395_v35 = vrot.slane %v3161_v2, 2  ;;  %v3064_v2 = vrot.slane %v2984_v20, 7 }
 0x3d5   : > { %3555 = vrot.lane.b32.xlu1 %v12520_v36, %s10414_s27  ;;  %v2983_v49 = vmax.f32 %v2873_v52, 0.0 }
 0x3d6   : > { %v12558_v5 = vpop.permute.xlu0 %3446  ;;  %v3396_v25 = vsel %vm1614_vm3, %v3393_v15, %v3395_v35 }
 0x3d7   : > { %v12560_v10 = vpop.permute.xlu1 %3283  ;;  %v3063_v58 = vrot.slane %v2983_v49, 7 }
 0x3d8   : > { %4028 = vrot.lane.b32.xlu0 %v3394_v54, %s16579_s28 }
 0x3d9   : > { %3940 = vrot.lane.b32.xlu1 %v3231_v3, %s10418_s2  ;;  %v12589_v4 = vsel %vm968_vm0, 0.0, %v3063_v58 }
 0x3da   : > { %v3837_v1 = vpop.permute.xlu0 %3836  ;;  %v3232_v49 = vrot.slane %v12589_v4, 1 }
 0x3db   : > { %v3743_v48 = vpop.permute.xlu1 %3742 }
 0x3dc   : > { %3657 = vrot.lane.b32.xlu0 %v3231_v3, %s16504_s30 }
 0x3dd   : > { %3297 = vrot.lane.b32.xlu1 %v3229_v27, %s16477_s1  ;;  %v4102_v27 = vsel %vm16492_vm4, %v12084_v6, %v12476_v31  ;;  %v12596_v31 = vsel %vm968_vm0, %v3063_v58, %v3064_v2 }
 0x3de   : > { %v12570_v33 = vpop.permute.xlu0 %3541  ;;  %v4132_v62 = vsel %vm2412_vm5, %v4102_v27, %v12488_v61  ;;  %v3233_v58 = vrot.slane %v12596_v31, 1 }
 0x3df   : > { %v12572_v57 = vpop.permute.xlu1 %3448  ;;  %v4164_v15 = vsel %vm2445_vm6, %v4132_v62, %v12500_v40 }
 0x3e0   : > { %4030 = vrot.lane.b32.xlu0 %v3396_v25, %s16579_s28  ;;  %v4196_v52 = vsel %vm2478_vm7, %v4164_v15, %v12511_v9  ;;  %v3162_v15 = vsel %vm968_vm0, %v3064_v2, 0.0 }
 0x3e1   : > { %3756 = vrot.lane.b32.xlu1 %v3394_v54, %s16580_s4  ;;  %v4228_v61 = vsel %vm2511_vm8, %v4196_v52, %v3741_v11  ;;  %v4103_v11 = vsel %vm16492_vm4, %v12081_v17, %v12490_v24  ;;  %v3234_v17 = vsel %vm1437_vm2, %v3232_v49, %v3233_v58 }
 0x3e2   : > { %v3927_v47 = vpop.permute.xlu0 %3926  ;;  %v4260_v40 = vsel %vm2544_vm9, %v4228_v61, %v3837_v1  ;;  %v4133_v1 = vsel %vm2412_vm5, %v4103_v11, %v12502_v26  ;;  %v3397_v61 = vrot.slane %v12589_v4, 2  ;;  %v12650_v11 = vld [vmem:[%s16576_s8] ss:$0 sm:$0xff] }
 0x3e3   : > { %v3839_v44 = vpop.permute.xlu1 %3838  ;;  %v4165_v20 = vsel %vm2445_vm6, %v4133_v1, %v12517_v55 }
 0x3e4   : > { %3462 = vrot.lane.b32.xlu0 %v3394_v54, %s16581_s0  ;;  %v4292_v54 = vsel %vm2577_vm10, %v4260_v40, %v3927_v47  ;;  %v4197_v27 = vsel %vm2478_vm7, %v4165_v20, %v12538_v53  ;;  %v3398_v40 = vrot.slane %v12596_v31, 2 }
 0x3e5   : > { %3299 = vrot.lane.b32.xlu1 %v3231_v3, %s16477_s1  ;;  %v4229_v24 = vsel %vm2511_vm8, %v4197_v27, %v3743_v48  ;;  %v9631_v48 = vpop.f32.mrf.mxu1  ;;  %v3400_v27 = vrot.slane %v3162_v15, 2 }
 0x3e6   : > { %v12586_v19 = vpop.permute.xlu0 %3643  ;;  %v4261_v26 = vsel %vm2544_vm9, %v4229_v24, %v3839_v44  ;;  %v3235_v44 = vrot.slane %v3162_v15, 1  ;;  %v3399_v2 = vsel %vm1614_vm3, %v3397_v61, %v3398_v40  ;;  %v2888_v24 = vadd.f32 %v12650_v11, %v9631_v48 }
 0x3e7   : > { %v12593_v6 = vpop.permute.xlu1 %3543 }
 0x3e8   : > { %3852 = vrot.lane.b32.xlu0 %v12589_v4, %s16500_s9 }
 0x3e9   : > { %3758 = vrot.lane.b32.xlu1 %v3396_v25, %s16580_s4 }
 0x3ea   : > { %v4017_v3 = vpop.permute.xlu0 %4016 }
 0x3eb   : > { %v4324_v35 = vsel %vm2610_vm11, %v4292_v54, %v4017_v3  ;;  %v3929_v9 = vpop.permute.xlu1 %3928 }
 0x3ec   : > { %3557 = vrot.lane.b32.xlu0 %v12589_v4, %s10414_s27  ;;  %9677 = vmatprep.mubr.msk.f32.mxu0 %vm16493_vm12, %v4324_v35  ;;  %v4293_v55 = vsel %vm2577_vm10, %v4261_v26, %v3929_v9  ;;  %v2882_v35 = vpop.f32.mrf.mxu1  ;;  %v3236_v9 = vsel %vm1437_vm2, %v3233_v58, %v3235_v44 }
 0x3ed   : > { %3464 = vrot.lane.b32.xlu1 %v3396_v25, %s16581_s0  ;;  %v2883_v1 = vadd.f32 %v12650_v11, %v2882_v35 }
 0x3ee   : > { %v12618_v47 = vpop.permute.xlu0 %3645 }
 0x3ef   : > { %v12622_v62 = vpop.permute.xlu1 %3285  ;;  %v2985_v58 = vmax.f32 %v2883_v1, 0.0 }
 0x3f0   : > { %3942 = vrot.lane.b32.xlu0 %v3234_v17, %s10418_s2 }
 0x3f1   : > { %3854 = vrot.lane.b32.xlu1 %v12596_v31, %s16500_s9  ;;  %v3066_v44 = vrot.slane %v2985_v58, 7 }
 0x3f2   : > { %v4019_v25 = vpop.permute.xlu0 %4018 }
 0x3f3   : > { %v4325_v53 = vsel %vm2610_vm11, %v4293_v55, %v4019_v25  ;;  %v3745_v52 = vpop.permute.xlu1 %3744  ;;  %v3401_v25 = vsel %vm1614_vm3, %v3398_v40, %v3400_v27  ;;  %v12675_v27 = vsel %vm968_vm0, 0.0, %v3066_v44 }
 0x3f4   : > { %3659 = vrot.lane.b32.xlu0 %v3234_v17, %s16504_s30  ;;  %9678 = vmatmul.mubr.msk.f32.gmra.mxu0 %vm16493_vm12, %v4325_v53  ;;  %v2986_v53 = vmax.f32 %v2888_v24, 0.0 }
 0x3f5   : > { %3559 = vrot.lane.b32.xlu1 %v12596_v31, %s10414_s27 }
 0x3f6   : > { %v12639_v54 = vpop.permute.xlu0 %3450  ;;  %v3067_v40 = vrot.slane %v2986_v53, 7  ;;  %v3237_v53 = vrot.slane %v12675_v27, 1 }
 0x3f7   : > { %v12641_v3 = vpop.permute.xlu1 %3287 }
 0x3f8   : > { %4032 = vrot.lane.b32.xlu0 %v3399_v2, %s16579_s28 }
 0x3f9   : > { %3944 = vrot.lane.b32.xlu1 %v3236_v9, %s10418_s2 }
 0x3fa   : > { %v3841_v49 = vpop.permute.xlu0 %3840 }
 0x3fb   : > { %v3747_v20 = vpop.permute.xlu1 %3746 }
 0x3fc   : > { %3661 = vrot.lane.b32.xlu0 %v3236_v9, %s16504_s30 }
 0x3fd   : > { %3301 = vrot.lane.b32.xlu1 %v3234_v17, %s16477_s1  ;;  %v4104_v17 = vsel %vm16492_vm4, %v12160_v13, %v12541_v18  ;;  %v12682_v18 = vsel %vm968_vm0, %v3066_v44, %v3067_v40 }
 0x3fe   : > { %v12656_v26 = vpop.permute.xlu0 %3545  ;;  %v4134_v15 = vsel %vm2412_vm5, %v4104_v17, %v12558_v5  ;;  %v3238_v44 = vrot.slane %v12682_v18, 1 }
 0x3ff   : > { %v12658_v55 = vpop.permute.xlu1 %3452  ;;  %v4166_v48 = vsel %vm2445_vm6, %v4134_v15, %v12570_v33 }
 0x400   : > { %4034 = vrot.lane.b32.xlu0 %v3401_v25, %s16579_s28  ;;  %v4198_v24 = vsel %vm2478_vm7, %v4166_v48, %v12586_v19 }
 0x401   : > { %3760 = vrot.lane.b32.xlu1 %v3399_v2, %s16580_s4  ;;  %v4230_v5 = vsel %vm2511_vm8, %v4198_v24, %v3745_v52  ;;  %v4105_v52 = vsel %vm16492_vm4, %v12165_v46, %v12560_v10  ;;  %v3239_v46 = vsel %vm1437_vm2, %v3237_v53, %v3238_v44  ;;  %v3163_v24 = vsel %vm968_vm0, %v3067_v40, 0.0 }
 0x402   : > { %v3931_v61 = vpop.permute.xlu0 %3930  ;;  %v4262_v33 = vsel %vm2544_vm9, %v4230_v5, %v3841_v49  ;;  %v4135_v49 = vsel %vm2412_vm5, %v4105_v52, %v12572_v57 }
 0x403   : > { %v3843_v35 = vpop.permute.xlu1 %3842 }
 0x404   : > { %3466 = vrot.lane.b32.xlu0 %v3399_v2, %s16581_s0  ;;  %v4294_v2 = vsel %vm2577_vm10, %v4262_v33, %v3931_v61  ;;  %v4167_v61 = vsel %vm2445_vm6, %v4135_v49, %v12593_v6  ;;  %v3402_v33 = vrot.slane %v12675_v27, 2 }
 0x405   : > { %3303 = vrot.lane.b32.xlu1 %v3236_v9, %s16477_s1  ;;  %v4199_v15 = vsel %vm2478_vm7, %v4167_v61, %v12618_v47 }
 0x406   : > { %v12672_v1 = vpop.permute.xlu0 %3647  ;;  %v4231_v10 = vsel %vm2511_vm8, %v4199_v15, %v3747_v20  ;;  %v9634_v20 = vpop.f32.mrf.mxu1  ;;  %v3405_v15 = vrot.slane %v3163_v24, 2 }
 0x407   : > { %v12679_v13 = vpop.permute.xlu1 %3547  ;;  %v4263_v57 = vsel %vm2544_vm9, %v4231_v10, %v3843_v35  ;;  %v3240_v35 = vrot.slane %v3163_v24, 1  ;;  %v2898_v10 = vadd.f32 %v12650_v11, %v9634_v20 }
 0x408   : > { %3856 = vrot.lane.b32.xlu0 %v12675_v27, %s16500_s9 }
 0x409   : > { %3762 = vrot.lane.b32.xlu1 %v3401_v25, %s16580_s4  ;;  %v3241_v53 = vsel %vm1437_vm2, %v3238_v44, %v3240_v35 }
 0x40a   : > { %v4021_v9 = vpop.permute.xlu0 %4020 }
 0x40b   : > { %v4326_v58 = vsel %vm2610_vm11, %v4294_v2, %v4021_v9  ;;  %v3933_v19 = vpop.permute.xlu1 %3932  ;;  %v3403_v2 = vrot.slane %v12682_v18, 2 }
 0x40c   : > { %3561 = vrot.lane.b32.xlu0 %v12675_v27, %s10414_s27  ;;  %9680 = vmatprep.mubr.msk.f32.mxu0 %vm16493_vm12, %v4326_v58  ;;  %v4295_v6 = vsel %vm2577_vm10, %v4263_v57, %v3933_v19  ;;  %v2892_v19 = vpop.f32.mrf.mxu1 }
 0x40d   : > { %3468 = vrot.lane.b32.xlu1 %v3401_v25, %s16581_s0  ;;  %v3404_v40 = vsel %vm1614_vm3, %v3402_v33, %v3403_v2  ;;  %v2893_v49 = vadd.f32 %v12650_v11, %v2892_v19  ;;  %v3406_v44 = vsel %vm1614_vm3, %v3403_v2, %v3405_v15 }
 0x40e   : > { %v12704_v17 = vpop.permute.xlu0 %3649 }
 0x40f   : > { %v12708_v48 = vpop.permute.xlu1 %3289 }
 0x410   : > { %3946 = vrot.lane.b32.xlu0 %v3239_v46, %s10418_s2 }
 0x411   : > { %3858 = vrot.lane.b32.xlu1 %v12682_v18, %s16500_s9 }
 0x412   : > { %v4023_v25 = vpop.permute.xlu0 %4022 }
 0x413   : > { %v4327_v47 = vsel %vm2610_vm11, %v4295_v6, %v4023_v25  ;;  %v3749_v5 = vpop.permute.xlu1 %3748  ;;  %v2987_v6 = vmax.f32 %v2893_v49, 0.0 }
 0x414   : > { %3663 = vrot.lane.b32.xlu0 %v3239_v46, %s16504_s30  ;;  %9681 = vmatmul.mubr.msk.f32.gmra.mxu0 %vm16493_vm12, %v4327_v47  ;;  %v2988_v47 = vmax.f32 %v2898_v10, 0.0 }
 0x415   : > { %3563 = vrot.lane.b32.xlu1 %v12682_v18, %s10414_s27  ;;  %v3069_v35 = vrot.slane %v2987_v6, 7 }
 0x416   : > { %v12725_v9 = vpop.permute.xlu0 %3454  ;;  %v3070_v2 = vrot.slane %v2988_v47, 7 }
 0x417   : > { %v12727_v58 = vpop.permute.xlu1 %3291  ;;  %v12756_v15 = vsel %vm968_vm0, 0.0, %v3069_v35 }
 0x418   : > { %4036 = vrot.lane.b32.xlu0 %v3404_v40, %s16579_s28  ;;  %v3242_v47 = vrot.slane %v12756_v15, 1 }
 0x419   : > { %3948 = vrot.lane.b32.xlu1 %v3241_v53, %s10418_s2 }
 0x41a   : > { %v3845_v52 = vpop.permute.xlu0 %3844 }
 0x41b   : > { %v3751_v61 = vpop.permute.xlu1 %3750 }
 0x41c   : > { %3665 = vrot.lane.b32.xlu0 %v3241_v53, %s16504_s30 }
 0x41d   : > { %3305 = vrot.lane.b32.xlu1 %v3239_v46, %s16477_s1  ;;  %v4106_v46 = vsel %vm16492_vm4, %v12263_v8, %v12622_v62  ;;  %v12763_v62 = vsel %vm968_vm0, %v3069_v35, %v3070_v2 }
 0x41e   : > { %v12737_v57 = vpop.permute.xlu0 %3549  ;;  %v4136_v24 = vsel %vm2412_vm5, %v4106_v46, %v12639_v54  ;;  %v3243_v35 = vrot.slane %v12763_v62, 1 }
 0x41f   : > { %v12739_v25 = vpop.permute.xlu1 %3456  ;;  %v4168_v20 = vsel %vm2445_vm6, %v4136_v24, %v12656_v26 }
 0x420   : > { %4038 = vrot.lane.b32.xlu0 %v3406_v44, %s16579_s28  ;;  %v4200_v10 = vsel %vm2478_vm7, %v4168_v20, %v12672_v1 }
 0x421   : > { %3764 = vrot.lane.b32.xlu1 %v3404_v40, %s16580_s4  ;;  %v4232_v54 = vsel %vm2511_vm8, %v4200_v10, %v3749_v5  ;;  %v4107_v5 = vsel %vm16492_vm4, %v12268_v14, %v12641_v3  ;;  %v3244_v14 = vsel %vm1437_vm2, %v3242_v47, %v3243_v35  ;;  %v3164_v10 = vsel %vm968_vm0, %v3070_v2, 0.0 }
 0x422   : > { %v3935_v33 = vpop.permute.xlu0 %3934  ;;  %v4264_v26 = vsel %vm2544_vm9, %v4232_v54, %v3845_v52  ;;  %v4137_v52 = vsel %vm2412_vm5, %v4107_v5, %v12658_v55 }
 0x423   : > { %v3847_v19 = vpop.permute.xlu1 %3846 }
 0x424   : > { %3470 = vrot.lane.b32.xlu0 %v3404_v40, %s16581_s0  ;;  %v4296_v40 = vsel %vm2577_vm10, %v4264_v26, %v3935_v33  ;;  %v4169_v33 = vsel %vm2445_vm6, %v4137_v52, %v12679_v13  ;;  %v3407_v26 = vrot.slane %v12756_v15, 2 }
 0x425   : > { %3307 = vrot.lane.b32.xlu1 %v3241_v53, %s16477_s1  ;;  %v4201_v24 = vsel %vm2478_vm7, %v4169_v33, %v12704_v17 }
 0x426   : > { %v12753_v49 = vpop.permute.xlu0 %3651  ;;  %v4233_v3 = vsel %vm2511_vm8, %v4201_v24, %v3751_v61  ;;  %v9637_v61 = vpop.f32.mrf.mxu1  ;;  %v3410_v24 = vrot.slane %v3164_v10, 2 }
 0x427   : > { %v12760_v8 = vpop.permute.xlu1 %3551  ;;  %v4265_v55 = vsel %vm2544_vm9, %v4233_v3, %v3847_v19  ;;  %v3245_v19 = vrot.slane %v3164_v10, 1  ;;  %v2908_v3 = vadd.f32 %v12650_v11, %v9637_v61 }
 0x428   : > { %3860 = vrot.lane.b32.xlu0 %v12756_v15, %s16500_s9 }
 0x429   : > { %3766 = vrot.lane.b32.xlu1 %v3406_v44, %s16580_s4  ;;  %v3246_v47 = vsel %vm1437_vm2, %v3243_v35, %v3245_v19 }
 0x42a   : > { %v4025_v53 = vpop.permute.xlu0 %4024 }
 0x42b   : > { %v4328_v6 = vsel %vm2610_vm11, %v4296_v40, %v4025_v53  ;;  %v3937_v1 = vpop.permute.xlu1 %3936  ;;  %v3408_v40 = vrot.slane %v12763_v62, 2 }
 0x42c   : > { %3565 = vrot.lane.b32.xlu0 %v12756_v15, %s10414_s27  ;;  %9683 = vmatprep.mubr.msk.f32.mxu0 %vm16493_vm12, %v4328_v6  ;;  %v4297_v13 = vsel %vm2577_vm10, %v4265_v55, %v3937_v1  ;;  %v2902_v1 = vpop.f32.mrf.mxu1 }
 0x42d   : > { %3472 = vrot.lane.b32.xlu1 %v3406_v44, %s16581_s0  ;;  %v3409_v2 = vsel %vm1614_vm3, %v3407_v26, %v3408_v40  ;;  %v2903_v52 = vadd.f32 %v12650_v11, %v2902_v1  ;;  %v3411_v35 = vsel %vm1614_vm3, %v3408_v40, %v3410_v24 }
 0x42e   : > { %v12785_v46 = vpop.permute.xlu0 %3653 }
 0x42f   : > { %v12789_v20 = vpop.permute.xlu1 %3293 }
 0x430   : > { %3950 = vrot.lane.b32.xlu0 %v3244_v14, %s10418_s2 }
 0x431   : > { %3862 = vrot.lane.b32.xlu1 %v12763_v62, %s16500_s9 }
 0x432   : > { %v4027_v44 = vpop.permute.xlu0 %4026 }
 0x433   : > { %v4329_v17 = vsel %vm2610_vm11, %v4297_v13, %v4027_v44  ;;  %v3753_v54 = vpop.permute.xlu1 %3752  ;;  %v2989_v13 = vmax.f32 %v2903_v52, 0.0 }
 0x434   : > { %3667 = vrot.lane.b32.xlu0 %v3244_v14, %s16504_s30  ;;  %9684 = vmatmul.mubr.msk.f32.gmra.mxu0 %vm16493_vm12, %v4329_v17  ;;  %v2990_v17 = vmax.f32 %v2908_v3, 0.0 }
 0x435   : > { %3567 = vrot.lane.b32.xlu1 %v12763_v62, %s10414_s27  ;;  %v3072_v19 = vrot.slane %v2989_v13, 7 }
 0x436   : > { %v12806_v53 = vpop.permute.xlu0 %3458  ;;  %v3073_v40 = vrot.slane %v2990_v17, 7 }
 0x437   : > { %v12808_v6 = vpop.permute.xlu1 %3295  ;;  %v12837_v24 = vsel %vm968_vm0, 0.0, %v3072_v19 }
 0x438   : > { %4040 = vrot.lane.b32.xlu0 %v3409_v2, %s16579_s28  ;;  %v3247_v17 = vrot.slane %v12837_v24, 1 }
 0x439   : > { %3952 = vrot.lane.b32.xlu1 %v3246_v47, %s10418_s2 }
 0x43a   : > { %v3849_v5 = vpop.permute.xlu0 %3848 }
 0x43b   : > { %v3755_v33 = vpop.permute.xlu1 %3754 }
 0x43c   : > { %3669 = vrot.lane.b32.xlu0 %v3246_v47, %s16504_s30 }
 0x43d   : > { %3309 = vrot.lane.b32.xlu1 %v3244_v14, %s16477_s1  ;;  %v4108_v14 = vsel %vm16492_vm4, %v12342_v7, %v12708_v48  ;;  %v12844_v48 = vsel %vm968_vm0, %v3072_v19, %v3073_v40 }
 0x43e   : > { %v12818_v55 = vpop.permute.xlu0 %3553  ;;  %v4138_v10 = vsel %vm2412_vm5, %v4108_v14, %v12725_v9  ;;  %v3248_v19 = vrot.slane %v12844_v48, 1 }
 0x43f   : > { %v12820_v44 = vpop.permute.xlu1 %3460  ;;  %v4170_v61 = vsel %vm2445_vm6, %v4138_v10, %v12737_v57 }
 0x440   : > { %4042 = vrot.lane.b32.xlu0 %v3411_v35, %s16579_s28  ;;  %v4202_v3 = vsel %vm2478_vm7, %v4170_v61, %v12753_v49 }
 0x441   : > { %3768 = vrot.lane.b32.xlu1 %v3409_v2, %s16580_s4  ;;  %v4234_v9 = vsel %vm2511_vm8, %v4202_v3, %v3753_v54  ;;  %v4109_v54 = vsel %vm16492_vm4, %v12347_v22, %v12727_v58  ;;  %v3249_v22 = vsel %vm1437_vm2, %v3247_v17, %v3248_v19  ;;  %v3165_v3 = vsel %vm968_vm0, %v3073_v40, 0.0 }
 0x442   : > { %v3939_v26 = vpop.permute.xlu0 %3938  ;;  %v4266_v57 = vsel %vm2544_vm9, %v4234_v9, %v3849_v5  ;;  %v4139_v5 = vsel %vm2412_vm5, %v4109_v54, %v12739_v25 }
 0x443   : > { %v3851_v1 = vpop.permute.xlu1 %3850 }
 0x444   : > { %3474 = vrot.lane.b32.xlu0 %v3409_v2, %s16581_s0  ;;  %v4298_v2 = vsel %vm2577_vm10, %v4266_v57, %v3939_v26  ;;  %v4171_v26 = vsel %vm2445_vm6, %v4139_v5, %v12760_v8  ;;  %v3412_v57 = vrot.slane %v12837_v24, 2 }
 0x445   : > { %3311 = vrot.lane.b32.xlu1 %v3246_v47, %s16477_s1  ;;  %v4203_v10 = vsel %vm2478_vm7, %v4171_v26, %v12785_v46 }
 0x446   : > { %v12834_v52 = vpop.permute.xlu0 %3655  ;;  %v4235_v58 = vsel %vm2511_vm8, %v4203_v10, %v3755_v33  ;;  %v9640_v33 = vpop.f32.mrf.mxu1  ;;  %v3415_v10 = vrot.slane %v3165_v3, 2 }
 0x447   : > { %v12841_v7 = vpop.permute.xlu1 %3555  ;;  %v4267_v25 = vsel %vm2544_vm9, %v4235_v58, %v3851_v1  ;;  %v3250_v1 = vrot.slane %v3165_v3, 1  ;;  %v2918_v58 = vadd.f32 %v12650_v11, %v9640_v33 }
 0x448   : > { %3864 = vrot.lane.b32.xlu0 %v12837_v24, %s16500_s9 }
 0x449   : > { %3770 = vrot.lane.b32.xlu1 %v3411_v35, %s16580_s4  ;;  %v3251_v17 = vsel %vm1437_vm2, %v3248_v19, %v3250_v1 }
 0x44a   : > { %v4029_v47 = vpop.permute.xlu0 %4028 }
 0x44b   : > { %v4330_v13 = vsel %vm2610_vm11, %v4298_v2, %v4029_v47  ;;  %v3941_v49 = vpop.permute.xlu1 %3940  ;;  %v3413_v2 = vrot.slane %v12844_v48, 2 }
 0x44c   : > { %3569 = vrot.lane.b32.xlu0 %v12837_v24, %s10414_s27  ;;  %9686 = vmatprep.mubr.msk.f32.mxu0 %vm16493_vm12, %v4330_v13  ;;  %v4299_v8 = vsel %vm2577_vm10, %v4267_v25, %v3941_v49  ;;  %v2912_v49 = vpop.f32.mrf.mxu1 }
 0x44d   : > { %3476 = vrot.lane.b32.xlu1 %v3411_v35, %s16581_s0  ;;  %v3414_v40 = vsel %vm1614_vm3, %v3412_v57, %v3413_v2  ;;  %v2913_v5 = vadd.f32 %v12650_v11, %v2912_v49  ;;  %v3416_v19 = vsel %vm1614_vm3, %v3413_v2, %v3415_v10 }
 0x44e   : > { %v12866_v14 = vpop.permute.xlu0 %3657 }
 0x44f   : > { %v12870_v61 = vpop.permute.xlu1 %3297 }
 0x450   : > { %3954 = vrot.lane.b32.xlu0 %v3249_v22, %s10418_s2 }
 0x451   : > { %3866 = vrot.lane.b32.xlu1 %v12844_v48, %s16500_s9 }
 0x452   : > { %v4031_v35 = vpop.permute.xlu0 %4030 }
 0x453   : > { %v4331_v46 = vsel %vm2610_vm11, %v4299_v8, %v4031_v35  ;;  %v3757_v9 = vpop.permute.xlu1 %3756  ;;  %v2991_v8 = vmax.f32 %v2913_v5, 0.0 }
 0x454   : > { %3671 = vrot.lane.b32.xlu0 %v3249_v22, %s16504_s30  ;;  %9687 = vmatmul.mubr.msk.f32.gmra.mxu0 %vm16493_vm12, %v4331_v46  ;;  %v2992_v46 = vmax.f32 %v2918_v58, 0.0 }
 0x455   : > { %3571 = vrot.lane.b32.xlu1 %v12844_v48, %s10414_s27  ;;  %v3075_v1 = vrot.slane %v2991_v8, 7 }
 0x456   : > { %v12887_v47 = vpop.permute.xlu0 %3462  ;;  %v3076_v2 = vrot.slane %v2992_v46, 7 }
 0x457   : > { %v12889_v13 = vpop.permute.xlu1 %3299  ;;  %v12918_v10 = vsel %vm968_vm0, 0.0, %v3075_v1 }
 0x458   : > { %4044 = vrot.lane.b32.xlu0 %v3414_v40, %s16579_s28  ;;  %v3252_v46 = vrot.slane %v12918_v10, 1 }
 0x459   : > { %3956 = vrot.lane.b32.xlu1 %v3251_v17, %s10418_s2 }
 0x45a   : > { %v3853_v54 = vpop.permute.xlu0 %3852 }
 0x45b   : > { %v3759_v26 = vpop.permute.xlu1 %3758 }
 0x45c   : > { %3673 = vrot.lane.b32.xlu0 %v3251_v17, %s16504_s30 }
 0x45d   : > { %3313 = vrot.lane.b32.xlu1 %v3249_v22, %s16477_s1  ;;  %v4110_v22 = vsel %vm16492_vm4, %v12433_v50, %v12789_v20  ;;  %v12925_v20 = vsel %vm968_vm0, %v3075_v1, %v3076_v2 }
 0x45e   : > { %v12899_v25 = vpop.permute.xlu0 %3557  ;;  %v4140_v3 = vsel %vm2412_vm5, %v4110_v22, %v12806_v53  ;;  %v3253_v1 = vrot.slane %v12925_v20, 1 }
 0x45f   : > { %v12901_v35 = vpop.permute.xlu1 %3464  ;;  %v4172_v33 = vsel %vm2445_vm6, %v4140_v3, %v12818_v55 }
 0x460   : > { %4046 = vrot.lane.b32.xlu0 %v3416_v19, %s16579_s28  ;;  %v4204_v58 = vsel %vm2478_vm7, %v4172_v33, %v12834_v52 }
 0x461   : > { %3772 = vrot.lane.b32.xlu1 %v3414_v40, %s16580_s4  ;;  %v4236_v53 = vsel %vm2511_vm8, %v4204_v58, %v3757_v9  ;;  %v4111_v9 = vsel %vm16492_vm4, %v12441_v56, %v12808_v6  ;;  %v3254_v56 = vsel %vm1437_vm2, %v3252_v46, %v3253_v1  ;;  %v3166_v58 = vsel %vm968_vm0, %v3076_v2, 0.0 }
 0x462   : > { %v3943_v57 = vpop.permute.xlu0 %3942  ;;  %v4268_v55 = vsel %vm2544_vm9, %v4236_v53, %v3853_v54  ;;  %v4141_v54 = vsel %vm2412_vm5, %v4111_v9, %v12820_v44 }
 0x463   : > { %v3855_v49 = vpop.permute.xlu1 %3854 }
 0x464   : > { %3478 = vrot.lane.b32.xlu0 %v3414_v40, %s16581_s0  ;;  %v4300_v40 = vsel %vm2577_vm10, %v4268_v55, %v3943_v57  ;;  %v4173_v57 = vsel %vm2445_vm6, %v4141_v54, %v12841_v7  ;;  %v3417_v55 = vrot.slane %v12918_v10, 2 }
 0x465   : > { %3315 = vrot.lane.b32.xlu1 %v3251_v17, %s16477_s1  ;;  %v4205_v3 = vsel %vm2478_vm7, %v4173_v57, %v12866_v14 }
 0x466   : > { %v12915_v5 = vpop.permute.xlu0 %3659  ;;  %v4237_v6 = vsel %vm2511_vm8, %v4205_v3, %v3759_v26  ;;  %v9643_v26 = vpop.f32.mrf.mxu1  ;;  %v3420_v3 = vrot.slane %v3166_v58, 2 }
 0x467   : > { %v12922_v50 = vpop.permute.xlu1 %3559  ;;  %v4269_v44 = vsel %vm2544_vm9, %v4237_v6, %v3855_v49  ;;  %v3255_v49 = vrot.slane %v3166_v58, 1  ;;  %v2928_v6 = vadd.f32 %v12650_v11, %v9643_v26 }
 0x468   : > { %3868 = vrot.lane.b32.xlu0 %v12918_v10, %s16500_s9 }
 0x469   : > { %3774 = vrot.lane.b32.xlu1 %v3416_v19, %s16580_s4  ;;  %v3256_v46 = vsel %vm1437_vm2, %v3253_v1, %v3255_v49 }
 0x46a   : > { %v4033_v17 = vpop.permute.xlu0 %4032 }
 0x46b   : > { %v4332_v8 = vsel %vm2610_vm11, %v4300_v40, %v4033_v17  ;;  %v3945_v52 = vpop.permute.xlu1 %3944  ;;  %v3418_v40 = vrot.slane %v12925_v20, 2 }
 0x46c   : > { %3573 = vrot.lane.b32.xlu0 %v12918_v10, %s10414_s27  ;;  %9689 = vmatprep.mubr.msk.f32.mxu0 %vm16493_vm12, %v4332_v8  ;;  %v4301_v7 = vsel %vm2577_vm10, %v4269_v44, %v3945_v52  ;;  %v2922_v52 = vpop.f32.mrf.mxu1 }
 0x46d   : > { %3480 = vrot.lane.b32.xlu1 %v3416_v19, %s16581_s0  ;;  %v3419_v2 = vsel %vm1614_vm3, %v3417_v55, %v3418_v40  ;;  %v2923_v54 = vadd.f32 %v12650_v11, %v2922_v52  ;;  %v3421_v1 = vsel %vm1614_vm3, %v3418_v40, %v3420_v3 }
 0x46e   : > { %v12947_v22 = vpop.permute.xlu0 %3661 }
 0x46f   : > { %v12951_v33 = vpop.permute.xlu1 %3301 }
 0x470   : > { %3958 = vrot.lane.b32.xlu0 %v3254_v56, %s10418_s2 }
 0x471   : > { %3870 = vrot.lane.b32.xlu1 %v12925_v20, %s16500_s9 }
 0x472   : > { %v4035_v19 = vpop.permute.xlu0 %4034 }
 0x473   : > { %v4333_v14 = vsel %vm2610_vm11, %v4301_v7, %v4035_v19  ;;  %v3761_v53 = vpop.permute.xlu1 %3760  ;;  %v2993_v7 = vmax.f32 %v2923_v54, 0.0 }
 0x474   : > { %3675 = vrot.lane.b32.xlu0 %v3254_v56, %s16504_s30  ;;  %9690 = vmatmul.mubr.msk.f32.gmra.mxu0 %vm16493_vm12, %v4333_v14  ;;  %v2994_v14 = vmax.f32 %v2928_v6, 0.0 }
 0x475   : > { %3575 = vrot.lane.b32.xlu1 %v12925_v20, %s10414_s27  ;;  %v3078_v49 = vrot.slane %v2993_v7, 7 }
 0x476   : > { %v12968_v17 = vpop.permute.xlu0 %3466  ;;  %v3079_v40 = vrot.slane %v2994_v14, 7 }
 0x477   : > { %v12970_v8 = vpop.permute.xlu1 %3303  ;;  %v12999_v3 = vsel %vm968_vm0, 0.0, %v3078_v49 }
 0x478   : > { %4048 = vrot.lane.b32.xlu0 %v3419_v2, %s16579_s28  ;;  %v3257_v14 = vrot.slane %v12999_v3, 1 }
 0x479   : > { %3960 = vrot.lane.b32.xlu1 %v3256_v46, %s10418_s2 }
 0x47a   : > { %v3857_v9 = vpop.permute.xlu0 %3856 }
 0x47b   : > { %v3763_v57 = vpop.permute.xlu1 %3762 }
 0x47c   : > { %3677 = vrot.lane.b32.xlu0 %v3256_v46, %s16504_s30 }
 0x47d   : > { %3317 = vrot.lane.b32.xlu1 %v3254_v56, %s16477_s1  ;;  %v4112_v56 = vsel %vm16492_vm4, %v12514_v34, %v12870_v61  ;;  %v13006_v61 = vsel %vm968_vm0, %v3078_v49, %v3079_v40 }
 0x47e   : > { %v12980_v44 = vpop.permute.xlu0 %3561  ;;  %v4142_v58 = vsel %vm2412_vm5, %v4112_v56, %v12887_v47  ;;  %v3258_v49 = vrot.slane %v13006_v61, 1 }
 0x47f   : > { %v12982_v19 = vpop.permute.xlu1 %3468  ;;  %v4174_v26 = vsel %vm2445_vm6, %v4142_v58, %v12899_v25 }
 0x480   : > { %4050 = vrot.lane.b32.xlu0 %v3421_v1, %s16579_s28  ;;  %v4206_v6 = vsel %vm2478_vm7, %v4174_v26, %v12915_v5 }
 0x481   : > { %3776 = vrot.lane.b32.xlu1 %v3419_v2, %s16580_s4  ;;  %v4238_v47 = vsel %vm2511_vm8, %v4206_v6, %v3761_v53  ;;  %v4113_v53 = vsel %vm16492_vm4, %v12520_v36, %v12889_v13  ;;  %v3259_v36 = vsel %vm1437_vm2, %v3257_v14, %v3258_v49  ;;  %v3167_v6 = vsel %vm968_vm0, %v3079_v40, 0.0 }
 0x482   : > { %v3947_v55 = vpop.permute.xlu0 %3946  ;;  %v4270_v25 = vsel %vm2544_vm9, %v4238_v47, %v3857_v9  ;;  %v4143_v9 = vsel %vm2412_vm5, %v4113_v53, %v12901_v35 }
 0x483   : > { %v3859_v52 = vpop.permute.xlu1 %3858 }
 0x484   : > { %3482 = vrot.lane.b32.xlu0 %v3419_v2, %s16581_s0  ;;  %v4302_v2 = vsel %vm2577_vm10, %v4270_v25, %v3947_v55  ;;  %v4175_v55 = vsel %vm2445_vm6, %v4143_v9, %v12922_v50  ;;  %v3422_v25 = vrot.slane %v12999_v3, 2 }
 0x485   : > { %3319 = vrot.lane.b32.xlu1 %v3256_v46, %s16477_s1  ;;  %v4207_v58 = vsel %vm2478_vm7, %v4175_v55, %v12947_v22 }
 0x486   : > { %v12996_v54 = vpop.permute.xlu0 %3663  ;;  %v4239_v13 = vsel %vm2511_vm8, %v4207_v58, %v3763_v57  ;;  %v9646_v57 = vpop.f32.mrf.mxu1  ;;  %v3425_v58 = vrot.slane %v3167_v6, 2 }
 0x487   : > { %v13003_v34 = vpop.permute.xlu1 %3563  ;;  %v4271_v35 = vsel %vm2544_vm9, %v4239_v13, %v3859_v52  ;;  %v3260_v52 = vrot.slane %v3167_v6, 1  ;;  %v2938_v13 = vadd.f32 %v12650_v11, %v9646_v57 }
 0x488   : > { %3872 = vrot.lane.b32.xlu0 %v12999_v3, %s16500_s9 }
 0x489   : > { %3778 = vrot.lane.b32.xlu1 %v3421_v1, %s16580_s4  ;;  %v3261_v14 = vsel %vm1437_vm2, %v3258_v49, %v3260_v52 }
 0x48a   : > { %v4037_v46 = vpop.permute.xlu0 %4036 }
 0x48b   : > { %v4334_v7 = vsel %vm2610_vm11, %v4302_v2, %v4037_v46  ;;  %v3949_v5 = vpop.permute.xlu1 %3948  ;;  %v3423_v2 = vrot.slane %v13006_v61, 2 }
 0x48c   : > { %3577 = vrot.lane.b32.xlu0 %v12999_v3, %s10414_s27  ;;  %9692 = vmatprep.mubr.msk.f32.mxu0 %vm16493_vm12, %v4334_v7  ;;  %v4303_v50 = vsel %vm2577_vm10, %v4271_v35, %v3949_v5  ;;  %v2932_v5 = vpop.f32.mrf.mxu1 }
 0x48d   : > { %3484 = vrot.lane.b32.xlu1 %v3421_v1, %s16581_s0  ;;  %v3424_v40 = vsel %vm1614_vm3, %v3422_v25, %v3423_v2  ;;  %v2933_v9 = vadd.f32 %v12650_v11, %v2932_v5  ;;  %v3426_v49 = vsel %vm1614_vm3, %v3423_v2, %v3425_v58 }
 0x48e   : > { %v13028_v56 = vpop.permute.xlu0 %3665 }
 0x48f   : > { %v13032_v26 = vpop.permute.xlu1 %3305 }
 0x490   : > { %3962 = vrot.lane.b32.xlu0 %v3259_v36, %s10418_s2 }
 0x491   : > { %3874 = vrot.lane.b32.xlu1 %v13006_v61, %s16500_s9 }
 0x492   : > { %v4039_v1 = vpop.permute.xlu0 %4038 }
 0x493   : > { %v4335_v22 = vsel %vm2610_vm11, %v4303_v50, %v4039_v1  ;;  %v3765_v47 = vpop.permute.xlu1 %3764  ;;  %v2995_v50 = vmax.f32 %v2933_v9, 0.0 }
 0x494   : > { %3679 = vrot.lane.b32.xlu0 %v3259_v36, %s16504_s30  ;;  %9693 = vmatmul.mubr.msk.f32.gmra.mxu0 %vm16493_vm12, %v4335_v22  ;;  %v2996_v22 = vmax.f32 %v2938_v13, 0.0 }
 0x495   : > { %3579 = vrot.lane.b32.xlu1 %v13006_v61, %s10414_s27  ;;  %v3081_v52 = vrot.slane %v2995_v50, 7 }
 0x496   : > { %v13049_v46 = vpop.permute.xlu0 %3470  ;;  %v3082_v2 = vrot.slane %v2996_v22, 7 }
 0x497   : > { %v13051_v7 = vpop.permute.xlu1 %3307  ;;  %v13080_v58 = vsel %vm968_vm0, 0.0, %v3081_v52 }
 0x498   : > { %4052 = vrot.lane.b32.xlu0 %v3424_v40, %s16579_s28  ;;  %v3262_v22 = vrot.slane %v13080_v58, 1 }
 0x499   : > { %3964 = vrot.lane.b32.xlu1 %v3261_v14, %s10418_s2 }
 0x49a   : > { %v3861_v53 = vpop.permute.xlu0 %3860 }
 0x49b   : > { %v3767_v55 = vpop.permute.xlu1 %3766 }
 0x49c   : > { %3681 = vrot.lane.b32.xlu0 %v3261_v14, %s16504_s30 }
 0x49d   : > { %3321 = vrot.lane.b32.xlu1 %v3259_v36, %s16477_s1  ;;  %v4114_v36 = vsel %vm16492_vm4, %v12589_v4, %v12951_v33  ;;  %v13087_v33 = vsel %vm968_vm0, %v3081_v52, %v3082_v2 }
 0x49e   : > { %v13061_v35 = vpop.permute.xlu0 %3565  ;;  %v4144_v6 = vsel %vm2412_vm5, %v4114_v36, %v12968_v17  ;;  %v3263_v52 = vrot.slane %v13087_v33, 1 }
 0x49f   : > { %v13063_v1 = vpop.permute.xlu1 %3472  ;;  %v4176_v57 = vsel %vm2445_vm6, %v4144_v6, %v12980_v44 }
 0x4a0   : > { %4054 = vrot.lane.b32.xlu0 %v3426_v49, %s16579_s28  ;;  %v4208_v13 = vsel %vm2478_vm7, %v4176_v57, %v12996_v54 }
 0x4a1   : > { %3780 = vrot.lane.b32.xlu1 %v3424_v40, %s16580_s4  ;;  %v4240_v17 = vsel %vm2511_vm8, %v4208_v13, %v3765_v47  ;;  %v4115_v47 = vsel %vm16492_vm4, %v12596_v31, %v12970_v8  ;;  %v3264_v31 = vsel %vm1437_vm2, %v3262_v22, %v3263_v52  ;;  %v3168_v13 = vsel %vm968_vm0, %v3082_v2, 0.0 }
 0x4a2   : > { %v3951_v25 = vpop.permute.xlu0 %3950  ;;  %v4272_v44 = vsel %vm2544_vm9, %v4240_v17, %v3861_v53  ;;  %v4145_v53 = vsel %vm2412_vm5, %v4115_v47, %v12982_v19 }
 0x4a3   : > { %v3863_v5 = vpop.permute.xlu1 %3862 }
 0x4a4   : > { %3486 = vrot.lane.b32.xlu0 %v3424_v40, %s16581_s0  ;;  %v4304_v40 = vsel %vm2577_vm10, %v4272_v44, %v3951_v25  ;;  %v4177_v25 = vsel %vm2445_vm6, %v4145_v53, %v13003_v34  ;;  %v3427_v44 = vrot.slane %v13080_v58, 2 }
 0x4a5   : > { %3323 = vrot.lane.b32.xlu1 %v3261_v14, %s16477_s1  ;;  %v4209_v6 = vsel %vm2478_vm7, %v4177_v25, %v13028_v56 }
 0x4a6   : > { %v13077_v9 = vpop.permute.xlu0 %3667  ;;  %v4241_v8 = vsel %vm2511_vm8, %v4209_v6, %v3767_v55  ;;  %v9649_v55 = vpop.f32.mrf.mxu1  ;;  %v3430_v6 = vrot.slane %v3168_v13, 2 }
 0x4a7   : > { %v13084_v4 = vpop.permute.xlu1 %3567  ;;  %v4273_v19 = vsel %vm2544_vm9, %v4241_v8, %v3863_v5  ;;  %v3265_v5 = vrot.slane %v3168_v13, 1  ;;  %v2948_v8 = vadd.f32 %v12650_v11, %v9649_v55 }
 0x4a8   : > { %3876 = vrot.lane.b32.xlu0 %v13080_v58, %s16500_s9 }
 0x4a9   : > { %3782 = vrot.lane.b32.xlu1 %v3426_v49, %s16580_s4  ;;  %v3266_v22 = vsel %vm1437_vm2, %v3263_v52, %v3265_v5 }
 0x4aa   : > { %v4041_v14 = vpop.permute.xlu0 %4040 }
 0x4ab   : > { %v4336_v50 = vsel %vm2610_vm11, %v4304_v40, %v4041_v14  ;;  %v3953_v54 = vpop.permute.xlu1 %3952  ;;  %v3428_v40 = vrot.slane %v13087_v33, 2 }
 0x4ac   : > { %3581 = vrot.lane.b32.xlu0 %v13080_v58, %s10414_s27  ;;  %9695 = vmatprep.mubr.msk.f32.mxu0 %vm16493_vm12, %v4336_v50  ;;  %v4305_v34 = vsel %vm2577_vm10, %v4273_v19, %v3953_v54  ;;  %v2942_v54 = vpop.f32.mrf.mxu1 }
 0x4ad   : > { %3488 = vrot.lane.b32.xlu1 %v3426_v49, %s16581_s0  ;;  %v3429_v2 = vsel %vm1614_vm3, %v3427_v44, %v3428_v40  ;;  %v2943_v53 = vadd.f32 %v12650_v11, %v2942_v54  ;;  %v3431_v52 = vsel %vm1614_vm3, %v3428_v40, %v3430_v6 }
 0x4ae   : > { %v13109_v36 = vpop.permute.xlu0 %3669 }
 0x4af   : > { %v13113_v57 = vpop.permute.xlu1 %3309 }
 0x4b0   : > { %3966 = vrot.lane.b32.xlu0 %v3264_v31, %s10418_s2 }
 0x4b1   : > { %3878 = vrot.lane.b32.xlu1 %v13087_v33, %s16500_s9 }
 0x4b2   : > { %v4043_v49 = vpop.permute.xlu0 %4042 }
 0x4b3   : > { %v4337_v56 = vsel %vm2610_vm11, %v4305_v34, %v4043_v49  ;;  %v3769_v17 = vpop.permute.xlu1 %3768  ;;  %v2997_v34 = vmax.f32 %v2943_v53, 0.0 }
 0x4b4   : > { %3683 = vrot.lane.b32.xlu0 %v3264_v31, %s16504_s30  ;;  %9696 = vmatmul.mubr.msk.f32.gmra.mxu0 %vm16493_vm12, %v4337_v56  ;;  %v2998_v56 = vmax.f32 %v2948_v8, 0.0 }
 0x4b5   : > { %3583 = vrot.lane.b32.xlu1 %v13087_v33, %s10414_s27  ;;  %v3084_v5 = vrot.slane %v2997_v34, 7 }
 0x4b6   : > { %v13130_v14 = vpop.permute.xlu0 %3474  ;;  %v3085_v40 = vrot.slane %v2998_v56, 7 }
 0x4b7   : > { %v13132_v50 = vpop.permute.xlu1 %3311  ;;  %v13161_v6 = vsel %vm968_vm0, 0.0, %v3084_v5 }
 0x4b8   : > { %4056 = vrot.lane.b32.xlu0 %v3429_v2, %s16579_s28  ;;  %v3267_v56 = vrot.slane %v13161_v6, 1 }
 0x4b9   : > { %3968 = vrot.lane.b32.xlu1 %v3266_v22, %s10418_s2 }
 0x4ba   : > { %v3865_v47 = vpop.permute.xlu0 %3864 }
 0x4bb   : > { %v3771_v25 = vpop.permute.xlu1 %3770 }
 0x4bc   : > { %3685 = vrot.lane.b32.xlu0 %v3266_v22, %s16504_s30 }
 0x4bd   : > { %3325 = vrot.lane.b32.xlu1 %v3264_v31, %s16477_s1  ;;  %v4116_v31 = vsel %vm16492_vm4, %v12675_v27, %v13032_v26  ;;  %v13168_v26 = vsel %vm968_vm0, %v3084_v5, %v3085_v40 }
 0x4be   : > { %v13142_v19 = vpop.permute.xlu0 %3569  ;;  %v4146_v13 = vsel %vm2412_vm5, %v4116_v31, %v13049_v46  ;;  %v3268_v5 = vrot.slane %v13168_v26, 1 }
 0x4bf   : > { %v13144_v49 = vpop.permute.xlu1 %3476  ;;  %v4178_v55 = vsel %vm2445_vm6, %v4146_v13, %v13061_v35 }
 0x4c0   : > { %4058 = vrot.lane.b32.xlu0 %v3431_v52, %s16579_s28  ;;  %v4210_v8 = vsel %vm2478_vm7, %v4178_v55, %v13077_v9 }
 0x4c1   : > { %3784 = vrot.lane.b32.xlu1 %v3429_v2, %s16580_s4  ;;  %v4242_v46 = vsel %vm2511_vm8, %v4210_v8, %v3769_v17  ;;  %v4117_v17 = vsel %vm16492_vm4, %v12682_v18, %v13051_v7  ;;  %v3269_v18 = vsel %vm1437_vm2, %v3267_v56, %v3268_v5  ;;  %v3169_v8 = vsel %vm968_vm0, %v3085_v40, 0.0 }
 0x4c2   : > { %v3955_v44 = vpop.permute.xlu0 %3954  ;;  %v4274_v35 = vsel %vm2544_vm9, %v4242_v46, %v3865_v47  ;;  %v4147_v47 = vsel %vm2412_vm5, %v4117_v17, %v13063_v1 }
 0x4c3   : > { %v3867_v54 = vpop.permute.xlu1 %3866 }
 0x4c4   : > { %3490 = vrot.lane.b32.xlu0 %v3429_v2, %s16581_s0  ;;  %v4306_v2 = vsel %vm2577_vm10, %v4274_v35, %v3955_v44  ;;  %v4179_v44 = vsel %vm2445_vm6, %v4147_v47, %v13084_v4  ;;  %v3432_v35 = vrot.slane %v13161_v6, 2 }
 0x4c5   : > { %3327 = vrot.lane.b32.xlu1 %v3266_v22, %s16477_s1  ;;  %v4211_v13 = vsel %vm2478_vm7, %v4179_v44, %v13109_v36 }
 0x4c6   : > { %v13158_v53 = vpop.permute.xlu0 %3671  ;;  %v4243_v7 = vsel %vm2511_vm8, %v4211_v13, %v3771_v25  ;;  %v9652_v25 = vpop.f32.mrf.mxu1  ;;  %v3435_v13 = vrot.slane %v3169_v8, 2 }
 0x4c7   : > { %v13165_v27 = vpop.permute.xlu1 %3571  ;;  %v4275_v1 = vsel %vm2544_vm9, %v4243_v7, %v3867_v54  ;;  %v3270_v54 = vrot.slane %v3169_v8, 1  ;;  %v2958_v7 = vadd.f32 %v12650_v11, %v9652_v25 }
 0x4c8   : > { %3880 = vrot.lane.b32.xlu0 %v13161_v6, %s16500_s9 }
 0x4c9   : > { %3786 = vrot.lane.b32.xlu1 %v3431_v52, %s16580_s4  ;;  %v3271_v56 = vsel %vm1437_vm2, %v3268_v5, %v3270_v54 }
 0x4ca   : > { %v4045_v22 = vpop.permute.xlu0 %4044 }
 0x4cb   : > { %v4338_v34 = vsel %vm2610_vm11, %v4306_v2, %v4045_v22  ;;  %v3957_v9 = vpop.permute.xlu1 %3956  ;;  %v3433_v2 = vrot.slane %v13168_v26, 2 }
 0x4cc   : > { %3585 = vrot.lane.b32.xlu0 %v13161_v6, %s10414_s27  ;;  %9698 = vmatprep.mubr.msk.f32.mxu0 %vm16493_vm12, %v4338_v34  ;;  %v4307_v4 = vsel %vm2577_vm10, %v4275_v1, %v3957_v9  ;;  %v2952_v9 = vpop.f32.mrf.mxu1 }
 0x4cd   : > { %3492 = vrot.lane.b32.xlu1 %v3431_v52, %s16581_s0  ;;  %v3434_v40 = vsel %vm1614_vm3, %v3432_v35, %v3433_v2  ;;  %v2953_v47 = vadd.f32 %v12650_v11, %v2952_v9  ;;  %v3436_v5 = vsel %vm1614_vm3, %v3433_v2, %v3435_v13 }
 0x4ce   : > { %v13190_v31 = vpop.permute.xlu0 %3673 }
 0x4cf   : > { %v13194_v55 = vpop.permute.xlu1 %3313 }
 0x4d0   : > { %3970 = vrot.lane.b32.xlu0 %v3269_v18, %s10418_s2 }
 0x4d1   : > { %3882 = vrot.lane.b32.xlu1 %v13168_v26, %s16500_s9 }
 0x4d2   : > { %v4047_v52 = vpop.permute.xlu0 %4046 }
 0x4d3   : > { %v4339_v36 = vsel %vm2610_vm11, %v4307_v4, %v4047_v52  ;;  %v3773_v46 = vpop.permute.xlu1 %3772  ;;  %v2999_v4 = vmax.f32 %v2953_v47, 0.0 }
 0x4d4   : > { %3687 = vrot.lane.b32.xlu0 %v3269_v18, %s16504_s30  ;;  %9699 = vmatmul.mubr.msk.f32.gmra.mxu0 %vm16493_vm12, %v4339_v36  ;;  %v3000_v36 = vmax.f32 %v2958_v7, 0.0 }
 0x4d5   : > { %3587 = vrot.lane.b32.xlu1 %v13168_v26, %s10414_s27  ;;  %v3087_v54 = vrot.slane %v2999_v4, 7 }
 0x4d6   : > { %v13211_v22 = vpop.permute.xlu0 %3478  ;;  %v3088_v8 = vrot.slane %v3000_v36, 7 }
 0x4d7   : > { %v13213_v34 = vpop.permute.xlu1 %3315  ;;  %v13242_v47 = vsel %vm968_vm0, 0.0, %v3087_v54 }
 0x4d8   : > { %4060 = vrot.lane.b32.xlu0 %v3434_v40, %s16579_s28  ;;  %v3272_v4 = vrot.slane %v13242_v47, 1 }
 0x4d9   : > { %3972 = vrot.lane.b32.xlu1 %v3271_v56, %s10418_s2 }
 0x4da   : > { %v3869_v17 = vpop.permute.xlu0 %3868 }
 0x4db   : > { %v3775_v44 = vpop.permute.xlu1 %3774 }
 0x4dc   : > { %3689 = vrot.lane.b32.xlu0 %v3271_v56, %s16504_s30 }
 0x4dd   : > { %3329 = vrot.lane.b32.xlu1 %v3269_v18, %s16477_s1  ;;  %v4118_v18 = vsel %vm16492_vm4, %v12756_v15, %v13113_v57  ;;  %v13249_v57 = vsel %vm968_vm0, %v3087_v54, %v3088_v8 }
 0x4de   : > { %v13223_v1 = vpop.permute.xlu0 %3573  ;;  %v4148_v11 = vsel %vm2412_vm5, %v4118_v18, %v13130_v14  ;;  %v3273_v36 = vrot.slane %v13249_v57, 1 }
 0x4df   : > { %v13225_v52 = vpop.permute.xlu1 %3480  ;;  %v4180_v2 = vsel %vm2445_vm6, %v4148_v11, %v13142_v19 }
 0x4e0   : > { %4062 = vrot.lane.b32.xlu0 %v3436_v5, %s16579_s28  ;;  %v4212_v13 = vsel %vm2478_vm7, %v4180_v2, %v13158_v53  ;;  %v3170_v2 = vsel %vm968_vm0, %v3088_v8, 0.0 }
 0x4e1   : > { %3788 = vrot.lane.b32.xlu1 %v3434_v40, %s16580_s4  ;;  %v4244_v14 = vsel %vm2511_vm8, %v4212_v13, %v3773_v46  ;;  %v4119_v46 = vsel %vm16492_vm4, %v12763_v62, %v13132_v50  ;;  %v3274_v62 = vsel %vm1437_vm2, %v3272_v4, %v3273_v36 }
 0x4e2   : > { %v3959_v35 = vpop.permute.xlu0 %3958  ;;  %v4276_v19 = vsel %vm2544_vm9, %v4244_v14, %v3869_v17  ;;  %v4149_v17 = vsel %vm2412_vm5, %v4119_v46, %v13144_v49  ;;  %v3437_v14 = vrot.slane %v13242_v47, 2  ;;  %v10198_v46 = vld [vmem:[%s16576_s8] ss:$0 sm:$0xff] }
 0x4e3   : > { %v3871_v9 = vpop.permute.xlu1 %3870 }
 0x4e4   : > { %3494 = vrot.lane.b32.xlu0 %v3434_v40, %s16581_s0  ;;  %v4308_v40 = vsel %vm2577_vm10, %v4276_v19, %v3959_v35  ;;  %v4181_v35 = vsel %vm2445_vm6, %v4149_v17, %v13165_v27  ;;  %v3438_v19 = vrot.slane %v13249_v57, 2 }
 0x4e5   : > { %3331 = vrot.lane.b32.xlu1 %v3271_v56, %s16477_s1  ;;  %v4213_v18 = vsel %vm2478_vm7, %v4181_v35, %v13190_v31 }
 0x4e6   : > { %v13239_v25 = vpop.permute.xlu0 %3675  ;;  %v4245_v50 = vsel %vm2511_vm8, %v4213_v18, %v3775_v44  ;;  %v9655_v44 = vpop.f32.mrf.mxu1  ;;  %v3439_v8 = vsel %vm1614_vm3, %v3437_v14, %v3438_v19  ;;  %v3440_v18 = vrot.slane %v3170_v2, 2 }
 0x4e7   : > { %v13246_v15 = vpop.permute.xlu1 %3575  ;;  %v4277_v49 = vsel %vm2544_vm9, %v4245_v50, %v3871_v9  ;;  %v3275_v9 = vrot.slane %v3170_v2, 1  ;;  %v2968_v50 = vadd.f32 %v10198_v46, %v9655_v44 }
 0x4e8   : > { %3884 = vrot.lane.b32.xlu0 %v13242_v47, %s16500_s9 }
 0x4e9   : > { %3790 = vrot.lane.b32.xlu1 %v3436_v5, %s16580_s4 }
 0x4ea   : > { %v4049_v56 = vpop.permute.xlu0 %4048 }
 0x4eb   : > { %v4340_v7 = vsel %vm2610_vm11, %v4308_v40, %v4049_v56  ;;  %v3961_v53 = vpop.permute.xlu1 %3960 }
 0x4ec   : > { %3589 = vrot.lane.b32.xlu0 %v13242_v47, %s10414_s27  ;;  %9701 = vmatprep.mubr.msk.f32.mxu0 %vm16493_vm12, %v4340_v7  ;;  %v4309_v27 = vsel %vm2577_vm10, %v4277_v49, %v3961_v53  ;;  %v2962_v7 = vpop.f32.mrf.mxu1  ;;  %v3276_v53 = vsel %vm1437_vm2, %v3273_v36, %v3275_v9  ;;  %v3441_v36 = vsel %vm1614_vm3, %v3438_v19, %v3440_v18 }
 0x4ed   : > { %3496 = vrot.lane.b32.xlu1 %v3436_v5, %s16581_s0  ;;  %v2963_v17 = vadd.f32 %v10198_v46, %v2962_v7  ;;  %v13312_v7 = vpop.f32.mrf.mxu0 }
 0x4ee   : > { %v13271_v54 = vpop.permute.xlu0 %3677 }
 0x4ef   : > { %v13275_v11 = vpop.permute.xlu1 %3317  ;;  %v4522_v18 = vpop.f32.mrf.mxu0 }
 0x4f0   : > { %3974 = vrot.lane.b32.xlu0 %v3274_v62, %s10418_s2 }
 0x4f1   : > { %3886 = vrot.lane.b32.xlu1 %v13249_v57, %s16500_s9 }
 0x4f2   : > { %v4051_v5 = vpop.permute.xlu0 %4050 }
 0x4f3   : > { %v4341_v31 = vsel %vm2610_vm11, %v4309_v27, %v4051_v5  ;;  %v3777_v13 = vpop.permute.xlu1 %3776  ;;  %v3001_v27 = vmax.f32 %v2963_v17, 0.0 }
 0x4f4   : > { %3691 = vrot.lane.b32.xlu0 %v3274_v62, %s16504_s30  ;;  %9702 = vmatmul.mubr.msk.f32.gmra.mxu0 %vm16493_vm12, %v4341_v31  ;;  %v3002_v31 = vmax.f32 %v2968_v50, 0.0 }
 0x4f5   : > { %3591 = vrot.lane.b32.xlu1 %v13249_v57, %s10414_s27  ;;  %v3090_v9 = vrot.slane %v3001_v27, 7 }
 0x4f6   : > { %v13292_v40 = vpop.permute.xlu0 %3482  ;;  %v3091_v19 = vrot.slane %v3002_v31, 7 }
 0x4f7   : > { %v13294_v56 = vpop.permute.xlu1 %3319 }
 0x4f8   : > { %4064 = vrot.lane.b32.xlu0 %v3439_v8, %s16579_s28 }
 0x4f9   : > { %3976 = vrot.lane.b32.xlu1 %v3276_v53, %s10418_s2 }
 0x4fa   : > { %v3873_v4 = vpop.permute.xlu0 %3872 }
 0x4fb   : > { %v3779_v35 = vpop.permute.xlu1 %3778 }
 0x4fc   : > { %3693 = vrot.lane.b32.xlu0 %v3276_v53, %s16504_s30 }
 0x4fd   : > { %3333 = vrot.lane.b32.xlu1 %v3274_v62, %s16477_s1  ;;  %v4120_v62 = vsel %vm16492_vm4, %v12837_v24, %v13194_v55  ;;  %v3155_v24 = vsel %vm968_vm0, 0.0, %v3090_v9  ;;  %v13331_v55 = vsel %vm968_vm0, %v3090_v9, %v3091_v19 }
 0x4fe   : > { %v13305_v49 = vpop.permute.xlu0 %3577  ;;  %v4150_v44 = vsel %vm2412_vm5, %v4120_v62, %v13211_v22 }
 0x4ff   : > { %v13307_v5 = vpop.permute.xlu1 %3484  ;;  %v4182_v46 = vsel %vm2445_vm6, %v4150_v44, %v13223_v1 }
 0x500   : > { %4066 = vrot.lane.b32.xlu0 %v3441_v36, %s16579_s28  ;;  %v4214_v50 = vsel %vm2478_vm7, %v4182_v46, %v13239_v25  ;;  %v3630_v25 = vrot.slane %v3155_v24, 1  ;;  %v3631_v46 = vrot.slane %v13331_v55, 1 }
 0x501   : > { %3792 = vrot.lane.b32.xlu1 %v3439_v8, %s16580_s4  ;;  %v4246_v22 = vsel %vm2511_vm8, %v4214_v50, %v3777_v13  ;;  %v4121_v13 = vsel %vm16492_vm4, %v12844_v48, %v13213_v34 }
 0x502   : > { %v3963_v14 = vpop.permute.xlu0 %3962  ;;  %v4278_v1 = vsel %vm2544_vm9, %v4246_v22, %v3873_v4  ;;  %v4151_v9 = vsel %vm2412_vm5, %v4121_v13, %v13225_v52  ;;  %v13355_v22 = vld [vmem:[%s16582_s29] ss:$0 sm:$0xff]  ;;  %v3171_v13 = vsel %vm968_vm0, %v3091_v19, 0.0  ;;  %v16585_v19 = vmax.f32 %v10804_v0, 0.0 }
 0x503   : > { %v3875_v2 = vpop.permute.xlu1 %3874 }
 0x504   : > { %3498 = vrot.lane.b32.xlu0 %v3439_v8, %s16581_s0  ;;  %v9679_v8 = vpop.f32.mrf.mxu0 }
 0x505   : > { %3335 = vrot.lane.b32.xlu1 %v3276_v53, %s16477_s1  ;;  %v4310_v53 = vsel %vm2577_vm10, %v4278_v1, %v3963_v14  ;;  %v4183_v14 = vsel %vm2445_vm6, %v4151_v9, %v13246_v15  ;;  %s16583_s1 = smov %s16582_s29  ;;  %v3632_v1 = vsel %vm1437_vm2, %v3630_v25, %v3631_v46  ;;  %v3731_v25 = vrot.slane %v3155_v24, 2  ;;  %s16506_s29 = smov 112  }
 0x506   : > { %v13323_v17 = vpop.permute.xlu0 %3679  ;;  %v4532_v4 = vpop.f32.mrf.mxu0  ;;  %v4215_v48 = vsel %vm2478_vm7, %v4183_v14, %v13271_v54  ;;  %v16584_v14 = vmax.f32 %v10797_v59, 0.0 }
 0x507   : > { %v13327_v27 = vpop.permute.xlu1 %3579  ;;  %v4533_v52 = vadd.f32 %v13355_v22, %v4532_v4 }
 0x508   : > { %3888 = vrot.lane.b32.xlu0 %v3155_v24, %s16500_s9  ;;  %v9682_v15 = vpop.f32.mrf.mxu0 }
 0x509   : > { %3794 = vrot.lane.b32.xlu1 %v3441_v36, %s16580_s4 }
 0x50a   : > { %v4053_v31 = vpop.permute.xlu0 %4052 }
 0x50b   : > { %v4342_v62 = vsel %vm2610_vm11, %v4310_v53, %v4053_v31  ;;  %v3965_v44 = vpop.permute.xlu1 %3964  ;;  %v4538_v31 = vadd.f32 %v9679_v8, %v13355_v22  ;;  %v4542_v8 = vpop.f32.mrf.mxu0 }
 0x50c   : > { %9704 = vmatprep.mubr.msk.f32.mxu0 %vm16493_vm12, %v4342_v62  ;;  %3593 = vrot.lane.b32.xlu0 %v3155_v24, %s10414_s27 }
 0x50d   : > { %3500 = vrot.lane.b32.xlu1 %v3441_v36, %s16581_s0  ;;  %v4247_v36 = vsel %vm2511_vm8, %v4215_v48, %v3779_v35  ;;  %v3732_v35 = vrot.slane %v13331_v55, 2  ;;  %v13383_v24 = vadd.f32 %v4538_v31, %v16585_v19  ;;  %v4548_v31 = vadd.f32 %v9682_v15, %v13355_v22 }
 0x50e   : > { %v13350_v50 = vpop.permute.xlu0 %3681  ;;  %v4279_v53 = vsel %vm2544_vm9, %v4247_v36, %v3875_v2  ;;  %v4683_v2 = vadd.f32 %v4533_v52, %v16584_v14  ;;  %v16587_v15 = vmax.f32 %v10772_v45, 0.0 }
 0x50f   : > { %v13359_v34 = vpop.permute.xlu1 %3321  ;;  %v4311_v54 = vsel %vm2577_vm10, %v4279_v53, %v3965_v44  ;;  %v3633_v44 = vrot.slane %v3171_v13, 1  ;;  %v3733_v59 = vsel %vm1614_vm3, %v3731_v25, %v3732_v35  ;;  %v4543_v53 = vadd.f32 %v13355_v22, %v4542_v8 }
 0x510   : > { %3978 = vrot.lane.b32.xlu0 %v3632_v1, %s10418_s2  ;;  %v4758_v52 = vrot.slane %v4683_v2, 7  ;;  %v4759_v0 = vrot.slane %v13383_v24, 7  ;;  %v3734_v2 = vrot.slane %v3171_v13, 2  ;;  %v16589_v24 = vmax.f32 %v10768_v42, 0.0 }
 0x511   : > { %3890 = vrot.lane.b32.xlu1 %v13331_v55, %s16500_s9 }
 0x512   : > { %v4055_v62 = vpop.permute.xlu0 %4054  ;;  %v13405_v14 = vsel %vm968_vm0, 0.0, %v4758_v52 }
 0x513   : > { %v4343_v4 = vsel %vm2610_vm11, %v4311_v54, %v4055_v62  ;;  %v13372_v9 = vpop.permute.xlu1 %3780  ;;  %v4528_v62 = vadd.f32 %v13312_v7, %v13355_v22  ;;  %v16588_v7 = vmax.f32 %v10883_v51, 0.0  ;;  %v4965_v13 = vrot.slane %v13405_v14, 2 }
 0x514   : > { %9705 = vmatmul.mubr.msk.f32.gmra.mxu0 %vm16493_vm12, %v4343_v4  ;;  %3695 = vrot.lane.b32.xlu0 %v3632_v1, %s16504_s30  ;;  %v3634_v1 = vsel %vm1437_vm2, %v3631_v46, %v3633_v44  ;;  %v13402_v4 = vsel %vm968_vm0, %v4758_v52, %v4759_v0  ;;  %v4888_v51 = vrot.slane %v13405_v14, 1 }
 0x515   : > { %3595 = vrot.lane.b32.xlu1 %v13331_v55, %s10414_s27  ;;  %v4523_v55 = vadd.f32 %v13355_v22, %v4522_v18  ;;  %v16586_v18 = vmax.f32 %v10878_v43, 0.0  ;;  %v13415_v44 = vadd.f32 %v4548_v31, %v16588_v7  ;;  %v13421_v52 = vadd.f32 %v4528_v62, %v16589_v24 }
 0x516   : > { %v13385_v48 = vpop.permute.xlu0 %3486  ;;  %v16482_v45 = vrot.slane %v13402_v4, 2 }
 0x517   : > { %v13387_v36 = vpop.permute.xlu1 %3323  ;;  %v4685_v46 = vadd.f32 %v4543_v53, %v16586_v18  ;;  %v4681_v8 = vadd.f32 %v4523_v55, %v16587_v15  ;;  %v16480_v42 = vrot.slane %v13415_v44, 7  ;;  %v16481_v62 = vrot.slane %v13421_v52, 7 }
 0x518   : > { %4068 = vrot.lane.b32.xlu0 %v3733_v59, %s16579_s28  ;;  %v13437_v18 = vsel %vm1614_vm3, %v4965_v13, %v16482_v45 }
 0x519   : > { %3980 = vrot.lane.b32.xlu1 %v3634_v1, %s10418_s2  ;;  %v4761_v53 = vrot.slane %v4685_v46, 7  ;;  %v4755_v55 = vrot.slane %v4681_v8, 7 }
 0x51a   : > { %v3877_v54 = vpop.permute.xlu0 %3876 }
 0x51b   : > { %v13399_v25 = vpop.permute.xlu1 %3782  ;;  %v13442_v46 = vsel %vm968_vm0, %v4761_v53, %v16480_v42  ;;  %v4844_v8 = vsel %vm968_vm0, 0.0, %v4761_v53  ;;  %v13456_v7 = vsel %vm968_vm0, %v4755_v55, %v16481_v62 }
 0x51c   : > { %3796 = vrot.lane.b32.xlu0 %v3733_v59, %s16580_s4  ;;  %v3735_v59 = vsel %vm1614_vm3, %v3732_v35, %v3734_v2  ;;  %v4122_v2 = vsel %vm16492_vm4, %v12918_v10, %v13275_v11  ;;  %v4842_v10 = vsel %vm968_vm0, 0.0, %v4755_v55  ;;  %v9685_v11 = vpop.f32.mrf.mxu0  ;;  %v5111_v41 = vrot.slane %v4844_v8, 1 }
 0x51d   : > { %3697 = vrot.lane.b32.xlu1 %v3634_v1, %s16504_s30  ;;  %v4889_v1 = vrot.slane %v13402_v4, 1  ;;  %v4152_v24 = vsel %vm2412_vm5, %v4122_v2, %v13292_v40  ;;  %v5106_v55 = vrot.slane %v4842_v10, 1  ;;  %v4123_v2 = vsel %vm16492_vm4, %v12925_v20, %v13294_v56 }
 0x51e   : > { %v13417_v19 = vpop.permute.xlu0 %3581 }
 0x51f   : > { %v13423_v43 = vpop.permute.xlu1 %3488  ;;  %v13450_v15 = vsel %vm1437_vm2, %v4888_v51, %v4889_v1 }
 0x520   : > { %3798 = vrot.lane.b32.xlu0 %v3735_v59, %s16580_s4 }
 0x521   : > { %4070 = vrot.lane.b32.xlu1 %v3735_v59, %s16579_s28  ;;  %v4184_v59 = vsel %vm2445_vm6, %v4152_v24, %v13305_v49  ;;  %v4859_v24 = vsel %vm968_vm0, %v4759_v0, 0.0  ;;  %v16592_v0 = vrot.slane %v13456_v7, 1 }
 0x522   : > { %v3967_v31 = vpop.permute.xlu0 %3966  ;;  %v4216_v53 = vsel %vm2478_vm7, %v4184_v59, %v13323_v17  ;;  %v4552_v17 = vpop.f32.mrf.mxu0 }
 0x523   : > { %v3879_v35 = vpop.permute.xlu1 %3878  ;;  %v4248_v40 = vsel %vm2511_vm8, %v4216_v53, %v13372_v9  ;;  %v16591_v9 = vrot.slane %v13442_v46, 1 }
 0x524   : > { %5000 = vrot.lane.b32.xlu0 %v13437_v18, %s16581_s0  ;;  %v4280_v49 = vsel %vm2544_vm9, %v4248_v40, %v3877_v54  ;;  %v5194_v54 = vrot.slane %v4842_v10, 2  ;;  %v4891_v40 = vrot.slane %v4859_v24, 1  ;;  %v13499_v56 = vpop.f32.mrf.mxu0 }
 0x525   : > { %4923 = vrot.lane.b32.xlu1 %v13450_v15, %s16590_s26  ;;  %v4312_v59 = vsel %vm2577_vm10, %v4280_v49, %v3967_v31  ;;  %v5113_v53 = vsel %vm1437_vm2, %v5111_v41, %v16591_v9  ;;  %v5108_v31 = vsel %vm1437_vm2, %v5106_v55, %v16592_v0  ;;  %v4553_v49 = vadd.f32 %v13355_v22, %v4552_v17 }
 0x526   : > { %v13465_v13 = vpop.permute.xlu0 %3683  ;;  %v4153_v41 = vsel %vm2412_vm5, %v4123_v2, %v13307_v5  ;;  %v13509_v17 = vsel %vm1437_vm2, %v4889_v1, %v4891_v40  ;;  %v5199_v2 = vrot.slane %v4844_v8, 2  ;;  %v4562_v1 = vpop.f32.mrf.mxu0  ;;  %v16594_v0 = vmax.f32 %v10934_v21, 0.0 }
 0x527   : > { %v13469_v51 = vpop.permute.xlu1 %3583  ;;  %v4185_v20 = vsel %vm2445_vm6, %v4153_v41, %v13327_v27 }
 0x528   : > { %5054 = vrot.lane.b32.xlu0 %v4844_v8, %s10414_s27  ;;  %v4217_v55 = vsel %vm2478_vm7, %v4185_v20, %v13350_v50  ;;  %v16593_v50 = vmax.f32 %v10929_v12, 0.0 }
 0x529   : > { %5050 = vrot.lane.b32.xlu1 %v4842_v10, %s10414_s27  ;;  %v4558_v10 = vadd.f32 %v9685_v11, %v13355_v22  ;;  %v4249_v5 = vsel %vm2511_vm8, %v4217_v55, %v13399_v25  ;;  %v16486_v11 = vrot.slane %v13442_v46, 2 }
 0x52a   : > { %v4057_v62 = vpop.permute.xlu0 %4056  ;;  %v4687_v9 = vadd.f32 %v4553_v49, %v16593_v50  ;;  %v16596_v50 = vmax.f32 %v11053_v37, 0.0 }
 0x52b   : > { %v4344_v45 = vsel %vm2610_vm11, %v4312_v59, %v4057_v62  ;;  %v3969_v42 = vpop.permute.xlu1 %3968  ;;  %v16487_v62 = vrot.slane %v13456_v7, 2  ;;  %v5201_v12 = vsel %vm1614_vm3, %v5199_v2, %v16486_v11  ;;  %v16595_v2 = vrot.slane %v13402_v4, 2 }
 0x52c   : > { %9707 = vmatprep.mubr.msk.f32.mxu0 %vm16493_vm12, %v4344_v45  ;;  %5150 = vrot.lane.b32.xlu0 %v5113_v53, %s16504_s30  ;;  %v4281_v53 = vsel %vm2544_vm9, %v4249_v5, %v3879_v35  ;;  %v4764_v35 = vrot.slane %v4687_v9, 7 }
 0x52d   : > { %5146 = vrot.lane.b32.xlu1 %v5108_v31, %s16504_s30  ;;  %v5196_v27 = vsel %vm1614_vm3, %v5194_v54, %v16487_v62  ;;  %v4313_v25 = vsel %vm2577_vm10, %v4281_v53, %v3969_v42  ;;  %v13526_v31 = vadd.f32 %v4558_v10, %v16594_v0  ;;  %v4968_v42 = vrot.slane %v4859_v24, 2 }
 0x52e   : > { %v13501_v45 = vpop.permute.xlu0 %3685  ;;  %v13560_v53 = vsel %vm968_vm0, 0.0, %v4764_v35 }
 0x52f   : > { %v13506_v59 = vpop.permute.xlu1 %3325  ;;  %v16484_v10 = vrot.slane %v13526_v31, 7 }
 0x530   : > { %4925 = vrot.lane.b32.xlu0 %v13509_v17, %s16590_s26 }
 0x531   : > { %5234 = vrot.lane.b32.xlu1 %v5196_v27, %s16580_s4  ;;  %v13548_v27 = vsel %vm1614_vm3, %v16595_v2, %v4968_v42  ;;  %v13553_v24 = vsel %vm968_vm0, %v4764_v35, %v16484_v10 }
 0x532   : > { %v4059_v8 = vpop.permute.xlu0 %4058  ;;  %v16485_v37 = vrot.slane %v13553_v24, 1 }
 0x533   : > { %v4345_v40 = vsel %vm2610_vm11, %v4313_v25, %v4059_v8  ;;  %v3785_v54 = vpop.permute.xlu1 %3784  ;;  %v16597_v25 = vmax.f32 %v11059_v39, 0.0  ;;  %v16598_v39 = vrot.slane %v13421_v52, 7 }
 0x534   : > { %v9691_v41 = vpop.f32.mrf.mxu0  ;;  %9708 = vmatmul.mubr.msk.f32.gmra.mxu0 %vm16493_vm12, %v4345_v40  ;;  %5283 = vrot.lane.b32.xlu0 %v13405_v14, %s16500_s9 }
 0x535   : > { %5238 = vrot.lane.b32.xlu1 %v5201_v12, %s16580_s4  ;;  %v4578_v21 = vadd.f32 %v9691_v41, %v13355_v22  ;;  %v4893_v12 = vrot.slane %v13560_v53, 1 }
 0x536   : > { %v4572_v49 = vpop.f32.mrf.mxu0  ;;  %v13537_v20 = vpop.permute.xlu0 %3490 }
 0x537   : > { %v4573_v55 = vadd.f32 %v13355_v22, %v4572_v49  ;;  %v13541_v5 = vpop.permute.xlu1 %3327  ;;  %v13564_v8 = vadd.f32 %v4578_v21, %v16597_v25  ;;  %v4858_v21 = vsel %vm968_vm0, %v16598_v39, 0.0  ;;  %v4895_v2 = vsel %vm1437_vm2, %v4893_v12, %v16485_v37 }
 0x538   : > { %5052 = vrot.lane.b32.xlu0 %v13456_v7, %s10414_s27  ;;  %v5109_v52 = vrot.slane %v4858_v21, 1  ;;  %v16600_v37 = vrot.slane %v13415_v44, 7 }
 0x539   : > { %v4691_v9 = vadd.f32 %v4573_v55, %v16596_v50  ;;  %5002 = vrot.lane.b32.xlu1 %v13548_v27, %s16581_s0  ;;  %v16483_v35 = vrot.slane %v13564_v8, 7 }
 0x53a   : > { %v3881_v0 = vpop.permute.xlu0 %3880  ;;  %v13609_v11 = vsel %vm968_vm0, %v16600_v37, 0.0 }
 0x53b   : > { %v3787_v40 = vpop.permute.xlu1 %3786  ;;  %v4770_v41 = vrot.slane %v4691_v9, 7 }
 0x53c   : > { %5337 = vrot.lane.b32.xlu0 %v13450_v15, %s10418_s2 }
 0x53d   : > { %5287 = vrot.lane.b32.xlu1 %v13560_v53, %s16500_s9  ;;  %v13583_v15 = vsel %vm968_vm0, %v4770_v41, %v16483_v35  ;;  %v13586_v55 = vsel %vm968_vm0, 0.0, %v4770_v41  ;;  %v4124_v41 = vsel %vm16492_vm4, %v12999_v3, %v13359_v34  ;;  %v16599_v35 = vrot.slane %v13456_v7, 1 }
 0x53e   : > { %v13573_v42 = vpop.permute.xlu0 %3585  ;;  %v4898_v25 = vrot.slane %v13586_v55, 1  ;;  %v16488_v39 = vrot.slane %v13583_v15, 1  ;;  %v4154_v12 = vsel %vm2412_vm5, %v4124_v41, %v13385_v48  ;;  %v4563_v34 = vadd.f32 %v13355_v22, %v4562_v1 }
 0x53f   : > { %v13578_v49 = vpop.permute.xlu1 %3492  ;;  %v5110_v10 = vsel %vm1437_vm2, %v16599_v35, %v5109_v52  ;;  %v4186_v62 = vsel %vm2445_vm6, %v4154_v12, %v13417_v19  ;;  %v4971_v19 = vrot.slane %v13553_v24, 2  ;;  %v5114_v1 = vrot.slane %v13609_v11, 1 }
 0x540   : > { %5056 = vrot.lane.b32.xlu0 %v13442_v46, %s10414_s27  ;;  %v4218_v35 = vsel %vm2478_vm7, %v4186_v62, %v13465_v13  ;;  %v13623_v48 = vsel %vm1437_vm2, %v4898_v25, %v16488_v39  ;;  %v4568_v62 = vadd.f32 %v13499_v56, %v13355_v22  ;;  %v16601_v52 = vmax.f32 %v10980_v60, 0.0 }
 0x541   : > { %4927 = vrot.lane.b32.xlu1 %v4895_v2, %s16590_s26  ;;  %v4250_v44 = vsel %vm2511_vm8, %v4218_v35, %v3785_v54  ;;  %v16602_v35 = vrot.slane %v13442_v46, 1 }
 0x542   : > { %v3971_v50 = vpop.permute.xlu0 %3970  ;;  %v4282_v13 = vsel %vm2544_vm9, %v4250_v44, %v3881_v0  ;;  %v4689_v25 = vadd.f32 %v4563_v34, %v16601_v52  ;;  %v5197_v0 = vrot.slane %v4858_v21, 2  ;;  %v16604_v21 = vrot.slane %v13456_v7, 2 }
 0x543   : > { %v3883_v9 = vpop.permute.xlu1 %3882  ;;  %v4314_v37 = vsel %vm2577_vm10, %v4282_v13, %v3971_v50  ;;  %v5115_v39 = vsel %vm1437_vm2, %v16602_v35, %v5114_v1  ;;  %v16603_v50 = vmax.f32 %v10985_v63, 0.0  ;;  %v4975_v1 = vrot.slane %v13586_v55, 2 }
 0x544   : > { %5341 = vrot.lane.b32.xlu0 %v4895_v2, %s10418_s2  ;;  %v5198_v63 = vsel %vm1614_vm3, %v16604_v21, %v5197_v0 }
 0x545   : > { %5148 = vrot.lane.b32.xlu1 %v5110_v10, %s16504_s30  ;;  %v4970_v10 = vrot.slane %v13560_v53, 2  ;;  %v13656_v34 = vadd.f32 %v4568_v62, %v16603_v50 }
 0x546   : > { %v13613_v3 = vpop.permute.xlu0 %3687 }
 0x547   : > { %v13618_v2 = vpop.permute.xlu1 %3587  ;;  %v4972_v60 = vsel %vm1614_vm3, %v4970_v10, %v4971_v19 }
 0x548   : > { %4931 = vrot.lane.b32.xlu0 %v13623_v48, %s16590_s26 }
 0x549   : > { %5390 = vrot.lane.b32.xlu1 %v13437_v18, %s16579_s28  ;;  %v4125_v18 = vsel %vm16492_vm4, %v13006_v61, %v13387_v36 }
 0x54a   : > { %v4061_v54 = vpop.permute.xlu0 %4060  ;;  %v4155_v56 = vsel %vm2412_vm5, %v4125_v18, %v13423_v43 }
 0x54b   : > { %v4346_v41 = vsel %vm2610_vm11, %v4314_v37, %v4061_v54  ;;  %v3973_v12 = vpop.permute.xlu1 %3972  ;;  %v4187_v61 = vsel %vm2445_vm6, %v4155_v56, %v13469_v51  ;;  %v4976_v51 = vrot.slane %v13583_v15, 2 }
 0x54c   : > { %9710 = vmatprep.mubr.msk.f32.mxu0 %vm16493_vm12, %v4346_v41  ;;  %5152 = vrot.lane.b32.xlu0 %v5115_v39, %s16504_s30  ;;  %v4767_v39 = vrot.slane %v4689_v25, 7  ;;  %v4219_v44 = vsel %vm2478_vm7, %v4187_v61, %v13501_v45  ;;  %v4768_v45 = vrot.slane %v13656_v34, 7 }
 0x54d   : > { %5004 = vrot.lane.b32.xlu1 %v4972_v60, %s16581_s0  ;;  %v4251_v43 = vsel %vm2511_vm8, %v4219_v44, %v3787_v40  ;;  %v13694_v25 = vsel %vm1614_vm3, %v4975_v1, %v4976_v51 }
 0x54e   : > { %v13660_v36 = vpop.permute.xlu0 %3689  ;;  %v4283_v13 = vsel %vm2544_vm9, %v4251_v43, %v3883_v9  ;;  %v13681_v7 = vsel %vm968_vm0, 0.0, %v4767_v39  ;;  %v13686_v52 = vsel %vm968_vm0, %v4767_v39, %v4768_v45  ;;  %v16607_v43 = vld [vmem:[#allocation26_spill] sm:$0xff] }
 0x54f   : > { %v13664_v10 = vpop.permute.xlu1 %3329  ;;  %v4315_v62 = vsel %vm2577_vm10, %v4283_v13, %v3973_v12  ;;  %v5202_v12 = vrot.slane %v13609_v11, 2  ;;  %v5116_v0 = vrot.slane %v13681_v7, 1  ;;  %v5117_v39 = vrot.slane %v13686_v52, 1 }
 0x550   : > { %5394 = vrot.lane.b32.xlu0 %v4972_v60, %s16579_s28  ;;  %v16605_v60 = vmax.f32 %v11158_v29, 0.0  ;;  %v16606_v11 = vrot.slane %v13442_v46, 2  ;;  %v16608_v21 = vmax.f32 %v16607_v43, 0.0 }
 0x551   : > { %5236 = vrot.lane.b32.xlu1 %v5198_v63, %s16580_s4 }
 0x552   : > { %v4063_v37 = vpop.permute.xlu0 %4062  ;;  %v5203_v44 = vsel %vm1614_vm3, %v16606_v11, %v5202_v12  ;;  %v4720_v11 = vld [vmem:[#allocation5 + $0x38] sm:$0xff] }
 0x553   : > { %v4347_v40 = vsel %vm2610_vm11, %v4315_v62, %v4063_v37  ;;  %v13678_v54 = vpop.permute.xlu1 %3788  ;;  %v5118_v37 = vsel %vm1437_vm2, %v5116_v0, %v5117_v39  ;;  %v16609_v0 = vrot.slane %v13526_v31, 7 }
 0x554   : > { %v9694_v9 = vpop.f32.mrf.mxu0  ;;  %9711 = vmatmul.mubr.msk.f32.gmra.mxu0 %vm16493_vm12, %v4347_v40  ;;  %5058 = vrot.lane.b32.xlu0 %v13681_v7, %s10414_s27 }
 0x555   : > { %v4588_v41 = vadd.f32 %v9694_v9, %v13355_v22  ;;  %5008 = vrot.lane.b32.xlu1 %v13694_v25, %s16581_s0 }
 0x556   : > { %v4582_v35 = vpop.f32.mrf.mxu0  ;;  %v13700_v18 = vpop.permute.xlu0 %3494 }
 0x557   : > { %v13704_v56 = vadd.f32 %v4588_v41, %v16605_v60  ;;  %v4583_v50 = vadd.f32 %v13355_v22, %v4582_v35  ;;  %v13708_v61 = vpop.permute.xlu1 %3331  ;;  %v4721_v60 = vld [vmem:[#allocation5 + $0x40] sm:$0xff] }
 0x558   : > { %5285 = vrot.lane.b32.xlu0 %v13402_v4, %s16500_s9  ;;  %9722 = vmatprep.subr.mxu1 %v4721_v60 }
 0x559   : > { %v4693_v29 = vadd.f32 %v4583_v50, %v16608_v21  ;;  %5240 = vrot.lane.b32.xlu1 %v5203_v44, %s16580_s4  ;;  %v16490_v1 = vrot.slane %v13704_v56, 7  ;;  %v13745_v50 = vsel %vm968_vm0, %v16609_v0, 0.0  ;;  %9723 = vmatpush3.msra.mxu1 %v4721_v60  ;;  %v16610_v60 = vrot.slane %v13553_v24, 1 }
 0x55a   : > { %v3885_v63 = vpop.permute.xlu0 %3884  ;;  %v4896_v43 = vrot.slane %v13745_v50, 1  ;;  %9724 = vmatprep.subr.mxu1 %v4720_v11 }
 0x55b   : > { %v4773_v13 = vrot.slane %v4693_v29, 7  ;;  %v13720_v62 = vpop.permute.xlu1 %3790  ;;  %v4719_v29 = vld [vmem:[#allocation5 + $0x30] sm:$0xff]  ;;  %9725 = vmatpush3.msra.mxu1 %v4720_v11 }
 0x55c   : > { %5154 = vrot.lane.b32.xlu0 %v5118_v37, %s16504_s30  ;;  %v5204_v37 = vrot.slane %v13681_v7, 2  ;;  %v4897_v0 = vsel %vm1437_vm2, %v16610_v60, %v4896_v43  ;;  %9726 = vmatprep.subr.mxu1 %v4719_v29  ;;  %v4717_v43 = vld [vmem:[#allocation5 + $0x20] sm:$0xff]  ;;  %v16612_v60 = vrot.slane %v13583_v15, 1 }
 0x55d   : > { %v13729_v46 = vsel %vm968_vm0, %v4773_v13, %v16490_v1  ;;  %v13732_v40 = vsel %vm968_vm0, 0.0, %v4773_v13  ;;  %v16611_v1 = vrot.slane %v13564_v8, 7  ;;  %9727 = vmatpush3.msra.mxu1 %v4719_v29 }
 0x55e   : > { %v13734_v9 = vpop.permute.xlu0 %3589  ;;  %5062 = vrot.lane.b32.xlu1 %v13732_v40, %s10414_s27  ;;  %v5121_v41 = vrot.slane %v13732_v40, 1  ;;  %v16489_v35 = vrot.slane %v13729_v46, 1 }
 0x55f   : > { %v13739_v12 = vpop.permute.xlu1 %3496 }
 0x560   : > { %5339 = vrot.lane.b32.xlu0 %v13509_v17, %s10418_s2  ;;  %v5123_v31 = vsel %vm1437_vm2, %v5121_v41, %v16489_v35  ;;  %v4126_v17 = vsel %vm16492_vm4, %v13080_v58, %v13506_v59  ;;  %v5205_v41 = vrot.slane %v13686_v52, 2  ;;  %v4718_v35 = vld [vmem:[#allocation5 + $0x28] sm:$0xff]  ;;  %v13769_v58 = vsel %vm968_vm0, %v16611_v1, 0.0 }
 0x561   : > { %v4156_v13 = vsel %vm2412_vm5, %v4126_v17, %v13537_v20  ;;  %9728 = vmatprep.subr.mxu1 %v4718_v35 }
 0x562   : > { %v3975_v44 = vpop.permute.xlu0 %3974  ;;  %5289 = vrot.lane.b32.xlu1 %v13553_v24, %s16500_s9  ;;  %v4188_v59 = vsel %vm2445_vm6, %v4156_v13, %v13573_v42  ;;  %9729 = vmatpush3.msra.mxu1 %v4718_v35  ;;  %v4901_v42 = vrot.slane %v13769_v58, 1 }
 0x563   : > { %v3887_v21 = vpop.permute.xlu1 %3886  ;;  %v4220_v20 = vsel %vm2478_vm7, %v4188_v59, %v13613_v3  ;;  %9730 = vmatprep.subr.mxu1 %v4717_v43  ;;  %v4716_v3 = vld [vmem:[#allocation5 + $0x18] sm:$0xff]  ;;  %v4714_v59 = vld [vmem:[#allocation5 + $0x8] sm:$0xff] }
 0x564   : > { %5158 = vrot.lane.b32.xlu0 %v5123_v31, %s16504_s30  ;;  %v4252_v8 = vsel %vm2511_vm8, %v4220_v20, %v13678_v54  ;;  %v5206_v31 = vsel %vm1614_vm3, %v5204_v37, %v5205_v41  ;;  %9731 = vmatpush3.msra.mxu1 %v4717_v43  ;;  %v5209_v54 = vrot.slane %v13732_v40, 2  ;;  %v5210_v37 = vrot.slane %v13729_v46, 2 }
 0x565   : > { %v4284_v1 = vsel %vm2544_vm9, %v4252_v8, %v3885_v63  ;;  %v13795_v63 = vsel %vm1437_vm2, %v16612_v60, %v4901_v42  ;;  %9732 = vmatprep.subr.mxu1 %v4716_v3  ;;  %v4713_v42 = vld [vmem:[#allocation5] sm:$0xff] }
 0x566   : > { %v13773_v11 = vpop.permute.xlu0 %3691  ;;  %4929 = vrot.lane.b32.xlu1 %v4897_v0, %s16590_s26  ;;  %v4316_v29 = vsel %vm2577_vm10, %v4284_v1, %v3975_v44  ;;  %v4127_v44 = vsel %vm16492_vm4, %v13087_v33, %v13541_v5  ;;  %9733 = vmatpush3.msra.mxu1 %v4716_v3  ;;  %v4973_v33 = vrot.slane %v13745_v50, 2 }
 0x567   : > { %v13778_v7 = vpop.permute.xlu1 %3591  ;;  %v4157_v40 = vsel %vm2412_vm5, %v4127_v44, %v13578_v49  ;;  %v5211_v49 = vsel %vm1614_vm3, %v5209_v54, %v5210_v37  ;;  %v16613_v54 = vld [vmem:[#allocation28_spill] sm:$0xff] }
 0x568   : > { %5343 = vrot.lane.b32.xlu0 %v4897_v0, %s10418_s2  ;;  %v4715_v0 = vld [vmem:[#allocation5 + $0x10] sm:$0xff]  ;;  %v4189_v20 = vsel %vm2445_vm6, %v4157_v40, %v13618_v2  ;;  %v16615_v40 = vld [vmem:[#allocation27_spill] sm:$0xff] }
 0x569   : > { %9734 = vmatprep.subr.mxu1 %v4715_v0  ;;  %v4221_v5 = vsel %vm2478_vm7, %v4189_v20, %v13660_v36  ;;  %v4974_v36 = vsel %vm1614_vm3, %v4971_v19, %v4973_v33 }
 0x56a   : > { %v4065_v17 = vpop.permute.xlu0 %4064  ;;  %5242 = vrot.lane.b32.xlu1 %v5206_v31, %s16580_s4  ;;  %9735 = vmatpush3.msra.mxu1 %v4715_v0  ;;  %v4253_v2 = vsel %vm2511_vm8, %v4221_v5, %v13720_v62 }
 0x56b   : > { %v4348_v35 = vsel %vm2610_vm11, %v4316_v29, %v4065_v17  ;;  %v3977_v13 = vpop.permute.xlu1 %3976  ;;  %9736 = vmatprep.subr.mxu1 %v4714_v59  ;;  %v4978_v17 = vrot.slane %v13769_v58, 2  ;;  %v4862_v58 = vsel %vm968_vm0, %v4768_v45, 0.0 }
 0x56c   : > { %9713 = vmatprep.mubr.msk.f32.mxu0 %vm16493_vm12, %v4348_v35  ;;  %4933 = vrot.lane.b32.xlu0 %v13795_v63, %s16590_s26  ;;  %v16614_v35 = vmax.f32 %v16613_v54, 0.0  ;;  %v16617_v54 = vrot.slane %v13704_v56, 7 }
 0x56d   : > { %9737 = vmatpush3.msra.mxu1 %v4714_v59  ;;  %v16616_v59 = vmax.f32 %v16615_v40, 0.0  ;;  %v13849_v33 = vsel %vm1614_vm3, %v4976_v51, %v4978_v17 }
 0x56e   : > { %v13808_v43 = vpop.permute.xlu0 %3693  ;;  %5392 = vrot.lane.b32.xlu1 %v13548_v27, %s16579_s28  ;;  %v4285_v27 = vsel %vm2544_vm9, %v4253_v2, %v3887_v21  ;;  %9738 = vmatprep.subr.mxu1 %v4713_v42 }
 0x56f   : > { %v13815_v8 = vpop.permute.xlu1 %3333  ;;  %v4317_v50 = vsel %vm2577_vm10, %v4285_v27, %v3977_v13  ;;  %9739 = vmatpush3.msra.mxu1 %v4713_v42  ;;  %v5119_v27 = vrot.slane %v4862_v58, 1 }
 0x570   : > { %5246 = vrot.lane.b32.xlu0 %v5211_v49, %s16580_s4  ;;  %6678 = vmatprep.subr.mxu1 %v16578_v32 }
 0x572   : > { %v4067_v1 = vpop.permute.xlu0 %4066  ;;  %5006 = vrot.lane.b32.xlu1 %v4974_v36, %s16581_s0 }
 0x573   : > { %v4349_v31 = vsel %vm2610_vm11, %v4317_v50, %v4067_v1  ;;  %v3793_v3 = vpop.permute.xlu1 %3792 }
 0x574   : > { %v9697_v62 = vpop.f32.mrf.mxu0  ;;  %9714 = vmatmul.mubr.msk.f32.gmra.mxu0 %vm16493_vm12, %v4349_v31  ;;  %5396 = vrot.lane.b32.xlu0 %v4974_v36, %s16579_s28 }
 0x575   : > { %v4598_v21 = vadd.f32 %v9697_v62, %v13355_v22 }
 0x576   : > { %v4592_v19 = vpop.f32.mrf.mxu0  ;;  %v3499_v29 = vpop.permute.xlu0 %3498  ;;  %5291 = vrot.lane.b32.xlu1 %v13586_v55, %s16500_s9 }
 0x577   : > { %v4696_v13 = vadd.f32 %v4598_v21, %v16614_v35  ;;  %v4593_v60 = vadd.f32 %v13355_v22, %v4592_v19  ;;  %v13840_v0 = vpop.permute.xlu1 %3335  ;;  %v13885_v35 = vsel %vm968_vm0, %v16617_v54, 0.0 }
 0x578   : > { %5060 = vrot.lane.b32.xlu0 %v13686_v52, %s10414_s27 }
 0x579   : > { %v4777_v44 = vrot.slane %v4696_v13, 7  ;;  %v4695_v20 = vadd.f32 %v4593_v60, %v16616_v59  ;;  %v4128_v60 = vsel %vm16492_vm4, %v13161_v6, %v13664_v10 }
 0x57a   : > { %v3889_v5 = vpop.permute.xlu0 %3888  ;;  %5010 = vrot.lane.b32.xlu1 %v13849_v33, %s16581_s0  ;;  %v4158_v56 = vsel %vm2412_vm5, %v4128_v60, %v13700_v18 }
 0x57b   : > { %v4865_v49 = vsel %vm968_vm0, %v4777_v44, 0.0  ;;  %v4776_v42 = vrot.slane %v4695_v20, 7  ;;  %v13857_v2 = vpop.permute.xlu1 %3794  ;;  %v4190_v59 = vsel %vm2445_vm6, %v4158_v56, %v13734_v9 }
 0x57c   : > { %5345 = vrot.lane.b32.xlu0 %v13623_v48, %s10418_s2  ;;  %v4906_v45 = vrot.slane %v4865_v49, 1  ;;  %v4983_v31 = vrot.slane %v4865_v49, 2  ;;  %v5120_v48 = vsel %vm1437_vm2, %v5117_v39, %v5119_v27  ;;  %v4222_v49 = vsel %vm2478_vm7, %v4190_v59, %v13773_v11 }
 0x57d   : > { %v13862_v51 = vsel %vm968_vm0, %v4776_v42, %v4777_v44  ;;  %v13865_v34 = vsel %vm968_vm0, 0.0, %v4776_v42  ;;  %v5124_v44 = vrot.slane %v13885_v35, 1  ;;  %v4254_v18 = vsel %vm2511_vm8, %v4222_v49, %v3793_v3 }
 0x57e   : > { %v3594_v36 = vpop.permute.xlu0 %3593  ;;  %5295 = vrot.lane.b32.xlu1 %v13865_v34, %s16500_s9  ;;  %v4904_v50 = vrot.slane %v13862_v51, 1  ;;  %v4981_v1 = vrot.slane %v13862_v51, 2  ;;  %v4903_v19 = vrot.slane %v13865_v34, 1  ;;  %v4980_v6 = vrot.slane %v13865_v34, 2 }
 0x57f   : > { %v3501_v62 = vpop.permute.xlu1 %3500  ;;  %v4286_v27 = vsel %vm2544_vm9, %v4254_v18, %v3889_v5  ;;  %v4130_v11 = vsel %vm16492_vm4, %v13242_v47, %v13815_v8  ;;  %v4129_v5 = vsel %vm16492_vm4, %v13168_v26, %v13708_v61  ;;  %v4131_v26 = vsel %vm16492_vm4, %v13249_v57, %v13840_v0 }
 0x580   : > { %5156 = vrot.lane.b32.xlu0 %v5120_v48, %s16504_s30  ;;  %v13876_v21 = vsel %vm1437_vm2, %v4904_v50, %v4906_v45  ;;  %v13880_v17 = vsel %vm1614_vm3, %v4981_v1, %v4983_v31  ;;  %v4905_v40 = vsel %vm1437_vm2, %v4903_v19, %v4904_v50  ;;  %v5207_v50 = vrot.slane %v4862_v58, 2 }
 0x581   : > { %v4982_v19 = vsel %vm1614_vm3, %v4980_v6, %v4981_v1  ;;  %v4160_v3 = vsel %vm2412_vm5, %v4130_v11, %v3499_v29  ;;  %v4159_v8 = vsel %vm2412_vm5, %v4129_v5, %v13739_v12  ;;  %v4161_v12 = vsel %vm2412_vm5, %v4131_v26, %v3501_v62 }
 0x582   : > { %5064 = vrot.lane.b32.xlu1 %v13729_v46, %s10414_s27  ;;  %v3979_v13 = vpop.permute.xlu0 %3978  ;;  %v4192_v58 = vsel %vm2445_vm6, %v4160_v3, %v3594_v36  ;;  %v5208_v47 = vsel %vm1614_vm3, %v5205_v41, %v5207_v50  ;;  %v4191_v54 = vsel %vm2445_vm6, %v4159_v8, %v13778_v7  ;;  %v16619_v36 = vunpack.i.l.bf16 %v12412_v38 }
 0x583   : > { %v3891_v39 = vpop.permute.xlu1 %3890  ;;  %v4318_v9 = vsel %vm2577_vm10, %v4286_v27, %v3979_v13  ;;  %v4223_v41 = vsel %vm2478_vm7, %v4191_v54, %v13808_v43  ;;  %v16620_v43 = vunpack.i.l.bf16 %v12438_v30 }
 0x584   : > { %5398 = vrot.lane.b32.xlu0 %v13694_v25, %s16579_s28  ;;  %v16618_v25 = vrot.slane %v13729_v46, 1  ;;  %v4255_v7 = vsel %vm2511_vm8, %v4223_v41, %v13857_v2 }
 0x585   : > { %v4287_v57 = vsel %vm2544_vm9, %v4255_v7, %v3891_v39 }
 0x586   : > { %5349 = vrot.lane.b32.xlu1 %v4905_v40, %s10418_s2  ;;  %v3696_v20 = vpop.permute.xlu0 %3695  ;;  %v5125_v42 = vsel %vm1437_vm2, %v16618_v25, %v5124_v44 }
 0x587   : > { %v3596_v10 = vpop.permute.xlu1 %3595  ;;  %v4224_v1 = vsel %vm2478_vm7, %v4192_v58, %v3696_v20  ;;  %v16621_v20 = vunpack.i.h.bf16 %v12412_v38 }
 0x588   : > { %5160 = vrot.lane.b32.xlu0 %v5125_v42, %s16504_s30  ;;  %v4193_v60 = vsel %vm2445_vm6, %v4161_v12, %v3596_v10  ;;  %v16622_v10 = vunpack.i.l.bf16 %v12430_v16  ;;  %v16623_v42 = vunpack.i.h.bf16 %v12438_v30  ;;  %v16627_v30 = vld [vmem:[#allocation29_spill] sm:$0xff] }
 0x589   : > { %v16628_v5 = vmax.f32 %v16627_v30, 0.0 }
 0x58a   : > { %4935 = vrot.lane.b32.xlu1 %v4905_v40, %s16590_s26  ;;  %v4069_v45 = vpop.permute.xlu0 %4068 }
 0x58b   : > { %v4350_v31 = vsel %vm2610_vm11, %v4318_v9, %v4069_v45  ;;  %v3981_v48 = vpop.permute.xlu1 %3980  ;;  %v16624_v9 = vld [vmem:[#allocation30_spill] sm:$0xff] }
 0x58c   : > { %5402 = vrot.lane.b32.xlu0 %v4982_v19, %s16579_s28  ;;  %9716 = vmatprep.mubr.msk.f32.mxu0 %vm16493_vm12, %v4350_v31  ;;  %v4319_v56 = vsel %vm2577_vm10, %v4287_v57, %v3981_v48  ;;  %v16625_v45 = vmax.f32 %v16624_v9, 0.0  ;;  %v16626_v48 = vunpack.i.h.bf16 %v12430_v16 }
 0x58e   : > { %5244 = vrot.lane.b32.xlu1 %v5208_v47, %s16580_s4  ;;  %v3797_v29 = vpop.permute.xlu0 %3796 }
 0x58f   : > { %v4256_v61 = vsel %vm2511_vm8, %v4224_v1, %v3797_v29  ;;  %v3698_v52 = vpop.permute.xlu1 %3697 }
 0x590   : > { %v4288_v13 = vsel %vm2544_vm9, %v4256_v61, %v16619_v36  ;;  %5012 = vrot.lane.b32.xlu0 %v4982_v19, %s16581_s0  ;;  %v4225_v0 = vsel %vm2478_vm7, %v4193_v60, %v3698_v52 }
 0x591   : > { %v4320_v62 = vsel %vm2577_vm10, %v4288_v13, %v16620_v43 }
 0x592   : > { %v3799_v44 = vpop.permute.xlu0 %3798  ;;  %v4352_v25 = vsel %vm2610_vm11, %v4320_v62, %v16622_v10 }
 0x593   : > { %v4257_v40 = vsel %vm2511_vm8, %v4225_v0, %v3799_v44  ;;  %v4071_v59 = vpop.permute.xlu1 %4070 }
 0x594   : > { %v4289_v2 = vsel %vm2544_vm9, %v4257_v40, %v16621_v20  ;;  %v4351_v49 = vsel %vm2610_vm11, %v4319_v56, %v4071_v59  ;;  %v9700_v6 = vpop.f32.mrf.mxu0  ;;  %5293 = vrot.lane.b32.xlu0 %v13583_v15, %s16500_s9 }
 0x595   : > { %v4608_v39 = vadd.f32 %v9700_v6, %v13355_v22  ;;  %9717 = vmatmul.mubr.msk.f32.gmra.mxu0 %vm16493_vm12, %v4351_v49  ;;  %v4321_v38 = vsel %vm2577_vm10, %v4289_v2, %v16623_v42  ;;  %v16629_v6 = vld [vmem:[#allocation32_spill] sm:$0xff]  ;;  %v16631_v42 = vld [vmem:[#allocation31_spill] sm:$0xff] }
 0x596   : > { %v4602_v18 = vpop.f32.mrf.mxu0  ;;  %9719 = vmatprep.mubr.msk.f32.mxu0 %vm16493_vm12, %v4352_v25  ;;  %v13969_v27 = vpop.permute.xlu0 %5000  ;;  %v4353_v19 = vsel %vm2610_vm11, %v4321_v38, %v16626_v48  ;;  %v16632_v38 = vmax.f32 %v16631_v42, 0.0 }
 0x597   : > { %v4698_v50 = vadd.f32 %v4608_v39, %v16625_v45  ;;  %v4603_v11 = vadd.f32 %v13355_v22, %v4602_v18  ;;  %v13974_v31 = vpop.permute.xlu1 %4923  ;;  %v16630_v39 = vmax.f32 %v16629_v6, 0.0  ;;  %v5582_v6 = vlaneseq }
 0x598   : > { %v5438_v46 = vsel %vm16492_vm4, %v13405_v14, %v13974_v31 }
 0x599   : > { %v4780_v3 = vrot.slane %v4698_v50, 7  ;;  %v4697_v58 = vadd.f32 %v4603_v11, %v16628_v5  ;;  %9720 = vmatmul.mubr.msk.f32.gmra.mxu0 %vm16493_vm12, %v4353_v19  ;;  %vm6122_vm12 = vcmask 1046534  }
 0x59a   : > { %v13982_v47 = vpop.permute.xlu0 %5054 }
 0x59b   : > { %v13985_v8 = vsel %vm968_vm0, %v4780_v3, 0.0  ;;  %v4779_v1 = vrot.slane %v4697_v58, 7  ;;  %v5051_v29 = vpop.permute.xlu1 %5050 }
 0x59c   : > { %v5129_v26 = vrot.slane %v13985_v8, 1 }
 0x59d   : > { %v13988_v54 = vsel %vm968_vm0, %v4779_v1, %v4780_v3  ;;  %v13991_v16 = vsel %vm968_vm0, 0.0, %v4779_v1  ;;  %v5212_v1 = vrot.slane %v13885_v35, 2 }
 0x59e   : > { %5066 = vrot.lane.b32.xlu0 %v13991_v16, %s10414_s27  ;;  %v13996_v61 = vpop.permute.xlu0 %5150  ;;  %v5127_v52 = vrot.slane %v13988_v54, 1  ;;  %v5126_v36 = vrot.slane %v13991_v16, 1 }
 0x59f   : > { %v5147_v41 = vpop.permute.xlu1 %5146 }
 0x5a0   : > { %v14000_v12 = vsel %vm1437_vm2, %v5127_v52, %v5129_v26  ;;  %v5128_v60 = vsel %vm1437_vm2, %v5126_v36, %v5127_v52  ;;  %v5213_v36 = vsel %vm1614_vm3, %v5210_v37, %v5212_v1  ;;  %v5466_v37 = vsel %vm2445_vm6, %v11078_v23, %v5051_v29 }
 0x5a1   : > { %v5452_v1 = vsel %vm2412_vm5, %v5438_v46, %v13969_v27 }
 0x5a2   : > { %5347 = vrot.lane.b32.xlu0 %v13795_v63, %s10418_s2  ;;  %v14005_v13 = vpop.permute.xlu0 %4925 }
 0x5a3   : > { %v5235_v7 = vpop.permute.xlu1 %5234 }
 0x5a6   : > { %5162 = vrot.lane.b32.xlu0 %v5128_v60, %s16504_s30  ;;  %v5284_v57 = vpop.permute.xlu0 %5283 }
 0x5a7   : > { %v5239_v0 = vpop.permute.xlu1 %5238 }
 0x5aa   : > { %5400 = vrot.lane.b32.xlu0 %v13849_v33, %s16579_s28  ;;  %v14011_v44 = vpop.permute.xlu0 %5052 }
 0x5ab   : > { %v14013_v43 = vpop.permute.xlu1 %5002 }
 0x5ae   : > { %v5338_v62 = vpop.permute.xlu0 %5337 }
 0x5af   : > { %v5288_v56 = vpop.permute.xlu1 %5287 }
 0x5b2   : > { %v14015_v40 = vpop.permute.xlu0 %5056 }
 0x5b3   : > { %v14017_v63 = vpop.permute.xlu1 %4927 }
 0x5b4   : > { %v9703_v59 = vpop.f32.mrf.mxu0 }
 0x5b5   : > { %v4618_v20 = vadd.f32 %v9703_v59, %v13355_v22 }
 0x5b6   : > { %v4612_v2 = vpop.f32.mrf.mxu0  ;;  %v5342_v49 = vpop.permute.xlu0 %5341 }
 0x5b7   : > { %v14022_v10 = vadd.f32 %v4618_v20, %v16630_v39  ;;  %v4613_v33 = vadd.f32 %v13355_v22, %v4612_v2  ;;  %v14025_v25 = vpop.permute.xlu1 %5148  ;;  %v10420_v20 = vmov 1983009808  }
 0x5b8   : > { %v5580_v2 = vunpack.c.l.s4 %v10420_v20 }
 0x5b9   : > { %v4699_v18 = vadd.f32 %v4613_v33, %v16632_v38  ;;  %v16495_v45 = vrot.slane %v14022_v10, 7  ;;  %v14078_v38 = vshrl.u32 %v5582_v6, 7 }
 0x5ba   : > { %v14029_v9 = vpop.permute.xlu0 %4931  ;;  %v5581_v42 = vunpack.c.0.s8 %v5580_v2 }
 0x5bb   : > { %v4782_v50 = vrot.slane %v4699_v18, 7  ;;  %v5391_v11 = vpop.permute.xlu1 %5390 }
 0x5bc   : > { %v14093_v29 = vsub.s32 %v5581_v42, %v14078_v38 }
 0x5bd   : > { %v14035_v48 = vsel %vm968_vm0, %v4782_v50, %v16495_v45  ;;  %v14038_v19 = vsel %vm968_vm0, 0.0, %v4782_v50  ;;  %v5482_v50 = vsel %vm2478_vm7, %v5466_v37, %v5147_v41  ;;  %v5468_v41 = vsel %vm2445_vm6, %v5452_v1, %v13982_v47 }
 0x5be   : > { %v14040_v22 = vpop.permute.xlu0 %5152  ;;  %v4908_v3 = vrot.slane %v14038_v19, 1  ;;  %v16494_v30 = vrot.slane %v14035_v48, 1  ;;  %v4985_v60 = vrot.slane %v14038_v19, 2  ;;  %v16491_v59 = vrot.slane %v14035_v48, 2 }
 0x5bf   : > { %v14044_v5 = vpop.permute.xlu1 %5004  ;;  %v5498_v14 = vsel %vm2511_vm8, %v5482_v50, %v5235_v7  ;;  %v5484_v27 = vsel %vm2478_vm7, %v5468_v41, %v13996_v61  ;;  %v14114_v61 = vld [vmem:[%s16583_s1] ss:$0 sm:$0xff] }
 0x5c0   : > { %v14049_v58 = vsel %vm1437_vm2, %v4908_v3, %v16494_v30  ;;  %v14069_v35 = vsel %vm1614_vm3, %v4985_v60, %v16491_v59  ;;  %v5514_v31 = vsel %vm2544_vm9, %v5498_v14, %v5284_v57  ;;  %v5500_v57 = vsel %vm2511_vm8, %v5484_v27, %v5239_v0 }
 0x5c1   : > { %4939 = vrot.lane.b32.xlu1 %v14049_v58, %s16590_s26  ;;  %v5530_v23 = vsel %vm2577_vm10, %v5514_v31, %v5338_v62  ;;  %v5516_v20 = vsel %vm2544_vm9, %v5500_v57, %v5288_v56  ;;  %v16635_v57 = vld [vmem:[#allocation33_spill] sm:$0xff] }
 0x5c2   : > { %v5395_v26 = vpop.permute.xlu0 %5394  ;;  %v5546_v60 = vsel %vm2610_vm11, %v5530_v23, %v5391_v11  ;;  %v5532_v6 = vsel %vm2577_vm10, %v5516_v20, %v5342_v49  ;;  %v16633_v49 = vld [vmem:[#allocation34_spill] sm:$0xff]  ;;  %v14124_v23 = vsub.s32 0, %v14078_v38  ;;  %v16636_v20 = vmax.f32 %v16635_v57, 0.0 }
 0x5c3   : > { %v14054_v52 = vpop.permute.xlu1 %5236  ;;  %v5585_v62 = vrot.slane %v5546_v60, %v14093_v29  ;;  %v5578_v46 = vcombine.high %v5546_v60, %v5546_v60  ;;  %v5548_v37 = vsel %vm2610_vm11, %v5532_v6, %v5395_v26  ;;  %v16634_v14 = vmax.f32 %v16633_v49, 0.0 }
 0x5c4   : > { %v5619_v1 = vrot.slane %v5548_v37, %v14093_v29  ;;  %v5612_v49 = vcombine.high %v5548_v37, %v5548_v37 }
 0x5c5   : > { %5248 = vrot.lane.b32.xlu1 %v5213_v36, %s16580_s4  ;;  %v5593_v11 = vcombine.high %v5585_v62, %v5585_v62  ;;  %v5592_v41 = vrot.slane %v5578_v46, %v14093_v29 }
 0x5c6   : > { %v14062_v39 = vpop.permute.xlu0 %5058 }
 0x5c7   : > { %v14064_v33 = vpop.permute.xlu1 %5008  ;;  %v5867_v37 = vrot.slane %v5592_v41, %v14124_v23 }
 0x5c9   : > { %5016 = vrot.lane.b32.xlu1 %v14069_v35, %s16581_s0 }
 0x5ca   : > { %v14080_v18 = vpop.permute.xlu0 %5285 }
 0x5cb   : > { %v14083_v3 = vpop.permute.xlu1 %5240 }
 0x5cd   : > { %5297 = vrot.lane.b32.xlu1 %v13862_v51, %s16500_s9 }
 0x5ce   : > { %v14095_v36 = vpop.permute.xlu0 %5154 }
 0x5d0   : > { %v14102_v7 = vpop.permute.xlu1 %5062 }
 0x5d2   : > { %v5340_v2 = vpop.permute.xlu0 %5339 }
 0x5d4   : > { %v9706_v47 = vpop.f32.mrf.mxu0  ;;  %v14109_v42 = vpop.permute.xlu1 %5289 }
 0x5d5   : > { %v4628_v0 = vadd.f32 %v14114_v61, %v9706_v47  ;;  %v5467_v47 = vsel %vm2445_vm6, %v11110_v28, %v14011_v44  ;;  %v5594_v28 = vcombine.high %v5592_v41, %v5592_v41  ;;  %v5859_v44 = vrot.slane %v5585_v62, %v14124_v23 }
 0x5d6   : > { %v4622_v56 = vpop.f32.mrf.mxu0  ;;  %v14117_v50 = vpop.permute.xlu0 %5158 }
 0x5d7   : > { %v4702_v31 = vadd.f32 %v4628_v0, %v16634_v14  ;;  %v4623_v26 = vadd.f32 %v14114_v61, %v4622_v56  ;;  %v5863_v0 = vrot.slane %v5593_v11, %v14124_v23  ;;  %v5627_v14 = vcombine.high %v5619_v1, %v5619_v1 }
 0x5d8   : > { %v14127_v60 = vpop.permute.xlu1 %4929 }
 0x5d9   : > { %v4786_v27 = vrot.slane %v4702_v31, 7  ;;  %v4701_v6 = vadd.f32 %v4623_v26, %v16636_v20  ;;  %v5439_v31 = vsel %vm16492_vm4, %v13402_v4, %v14005_v13  ;;  %v5483_v26 = vsel %vm2478_vm7, %v5467_v47, %v14025_v25 }
 0x5da   : > { %v5344_v56 = vpop.permute.xlu0 %5343  ;;  %v5499_v57 = vsel %vm2511_vm8, %v5483_v26, %v14054_v52  ;;  %v6113_v41 = vsel %vm16496_vm13, %v5863_v0, %v5859_v44  ;;  %vm6124_vm4 = vcmask 1047559   ;;  %v5453_v26 = vsel %vm2412_vm5, %v5439_v31, %v14013_v43 }
 0x5db   : > { %v14136_v46 = vsel %vm968_vm0, %v4786_v27, 0.0  ;;  %v4785_v59 = vrot.slane %v4701_v6, 7  ;;  %v5515_v47 = vsel %vm2544_vm9, %v5499_v57, %v14080_v18  ;;  %v5871_v18 = vrot.slane %v5594_v28, %v14124_v23 }
 0x5dc   : > { %v14144_v11 = vpop.permute.xlu1 %5242  ;;  %v5222_v4 = vrot.slane %v14136_v46, 2  ;;  %v5531_v30 = vsel %vm2577_vm10, %v5515_v47, %v5340_v2  ;;  %v5891_v44 = vrot.slane %v5619_v1, %v14124_v23  ;;  %v6115_v2 = vsel %vm16499_vm14, %v5867_v37, %v6113_v41 }
 0x5dd   : > { %v14150_v20 = vsel %vm968_vm0, %v4785_v59, %v4786_v27  ;;  %v14153_v6 = vsel %vm968_vm0, 0.0, %v4785_v59  ;;  %v5626_v59 = vrot.slane %v5612_v49, %v14093_v29  ;;  %v5895_v27 = vrot.slane %v5627_v14, %v14124_v23 }
 0x5de   : > { %v5131_v13 = vrot.slane %v14153_v6, 1  ;;  %5070 = vrot.lane.b32.xlu1 %v14153_v6, %s10414_s27  ;;  %v14159_v25 = vpop.permute.xlu0 %4933  ;;  %v5132_v62 = vrot.slane %v14150_v20, 1  ;;  %v16637_v0 = vrot.slane %v14150_v20, 2  ;;  %v5469_v14 = vsel %vm2445_vm6, %v5453_v26, %v14015_v40 }
 0x5df   : > { %v5485_v31 = vsel %vm2478_vm7, %v5469_v14, %v14040_v22  ;;  %v5628_v28 = vcombine.high %v5626_v59, %v5626_v59  ;;  %v5899_v1 = vrot.slane %v5626_v59, %v14124_v23  ;;  %v5214_v41 = vrot.slane %v13991_v16, 2 }
 0x5e0   : > { %v5393_v45 = vpop.permute.xlu1 %5392  ;;  %v5133_v52 = vsel %vm1437_vm2, %v5131_v13, %v5132_v62  ;;  %v14177_v49 = vsel %vm1614_vm3, %v16637_v0, %v5222_v4  ;;  %v6117_v26 = vsel %vm16498_vm15, %v5871_v18, %v6115_v2  ;;  %v5215_v59 = vrot.slane %v13988_v54, 2 }
 0x5e1   : > { %v5547_v43 = vsel %vm2610_vm11, %v5531_v30, %v5393_v45  ;;  %5166 = vrot.lane.b32.xlu0 %v5133_v52, %s16504_s30  ;;  %v6126_v45 = vsel %vm16496_vm13, %v5895_v27, %v5891_v44  ;;  %v5501_v30 = vsel %vm2511_vm8, %v5485_v31, %v14083_v3  ;;  %v5903_v18 = vrot.slane %v5628_v28, %v14124_v23 }
 0x5e2   : > { %v5595_v57 = vcombine.high %v5547_v43, %v5547_v43  ;;  %v5602_v4 = vrot.slane %v5547_v43, %v14093_v29  ;;  %5351 = vrot.lane.b32.xlu1 %v13876_v21, %s10418_s2  ;;  %v14191_v40 = vpop.permute.xlu0 %5246  ;;  %v5517_v37 = vsel %vm2544_vm9, %v5501_v30, %v14109_v42  ;;  %v6127_v44 = vsel %vm16499_vm14, %v5899_v1, %v6126_v45 }
 0x5e3   : > { %v5533_v47 = vsel %vm2577_vm10, %v5517_v37, %v5344_v56  ;;  %v16638_v56 = vrot.slane %v14022_v10, 7  ;;  %vm16639_vm13 = vcmask 1045509  }
 0x5e4   : > { %v5609_v22 = vrot.slane %v5595_v57, %v14093_v29  ;;  %v5610_v13 = vcombine.high %v5602_v4, %v5602_v4  ;;  %v5875_v52 = vrot.slane %v5602_v4, %v14124_v23 }
 0x5e5   : > { %5404 = vrot.lane.b32.xlu0 %v13880_v17, %s16579_s28  ;;  %v4867_v14 = vsel %vm968_vm0, %v16638_v56, 0.0 }
 0x5e6   : > { %v5611_v3 = vcombine.high %v5609_v22, %v5609_v22  ;;  %v5879_v27 = vrot.slane %v5610_v13, %v14124_v23  ;;  %v5883_v42 = vrot.slane %v5609_v22, %v14124_v23  ;;  %v6119_v0 = vsel %vm16497_vm1, %v5875_v52, %v6117_v26  ;;  %4937 = vrot.lane.b32.xlu1 %v13876_v21, %s16590_s26  ;;  %v5397_v16 = vpop.permute.xlu0 %5396 }
 0x5e7   : > { %v5549_v43 = vsel %vm2610_vm11, %v5533_v47, %v5397_v16  ;;  %v5216_v21 = vsel %vm1614_vm3, %v5214_v41, %v5215_v59  ;;  %v4911_v22 = vrot.slane %v4867_v14, 1  ;;  %v5219_v26 = vrot.slane %v14153_v6, 2 }
 0x5e8   : > { %v5629_v2 = vcombine.high %v5549_v43, %v5549_v43  ;;  %v5636_v31 = vrot.slane %v5549_v43, %v14093_v29  ;;  %v5887_v57 = vrot.slane %v5611_v3, %v14124_v23  ;;  %v6121_v4 = vsel %vm16639_vm13, %v5879_v27, %v6119_v0  ;;  %v14239_v3 = vpop.permute.xlu1 %5006 }
 0x5e9   : > { %5014 = vrot.lane.b32.xlu0 %v13880_v17, %s16581_s0  ;;  %v6123_v10 = vsel %vm6122_vm12, %v5883_v42, %v6121_v4  ;;  %v6128_v17 = vsel %vm16498_vm15, %v5903_v18, %v6127_v44  ;;  %vm16640_vm13 = vcmask 588800   ;;  %v16641_v27 = vrot.slane %v14035_v48, 1 }
 0x5ea   : > { %v5643_v28 = vrot.slane %v5629_v2, %v14093_v29  ;;  %v5644_v1 = vcombine.high %v5636_v31, %v5636_v31  ;;  %v5907_v45 = vrot.slane %v5636_v31, %v14124_v23  ;;  %5250 = vrot.lane.b32.xlu1 %v5216_v21, %s16580_s4  ;;  %v14230_v30 = vpop.permute.xlu0 %5060  ;;  %v6125_v37 = vsel %vm6124_vm4, %v5887_v57, %v6123_v10 }
 0x5eb   : > { %9740 = vmatprep.mubr.msk.f32.mxu1 %vm16640_vm13, %v6125_v37  ;;  %v14246_v42 = vsel %vm1437_vm2, %v16641_v27, %v4911_v22  ;;  %vm16642_vm13 = vcmask 1045509   ;;  %v16644_v44 = vrot.slane %v14150_v20, 2  ;;  %v4988_v31 = vrot.slane %v4867_v14, 2  ;;  %v16646_v37 = vld [vmem:[#allocation36_spill] sm:$0xff] }
 0x5ec   : > { %v5645_v13 = vcombine.high %v5643_v28, %v5643_v28  ;;  %v5911_v52 = vrot.slane %v5644_v1, %v14124_v23  ;;  %v5915_v41 = vrot.slane %v5643_v28, %v14124_v23  ;;  %v6129_v47 = vsel %vm16497_vm1, %v5907_v45, %v6128_v17  ;;  %v5292_v57 = vpop.permute.xlu1 %5291 }
 0x5ed   : > { %5299 = vrot.lane.b32.xlu0 %v14038_v19, %s16500_s9  ;;  %vm16643_vm1 = vcmask 588800   ;;  %v5221_v43 = vsel %vm1614_vm3, %v5219_v26, %v16644_v44  ;;  %v16645_v10 = vrot.slane %v14035_v48, 2  ;;  %v16647_v22 = vmax.f32 %v16646_v37, 0.0 }
 0x5ee   : > { %v5919_v0 = vrot.slane %v5645_v13, %v14124_v23  ;;  %v6130_v16 = vsel %vm16642_vm13, %v5911_v52, %v6129_v47  ;;  %4941 = vrot.lane.b32.xlu1 %v14246_v42, %s16590_s26  ;;  %v5346_v56 = vpop.permute.xlu0 %5345 }
 0x5ef   : > { %v6131_v6 = vsel %vm6122_vm12, %v5915_v41, %v6130_v16  ;;  %v14269_v28 = vsel %vm1614_vm3, %v16645_v10, %v4988_v31  ;;  %v16648_v41 = vld [vmem:[#allocation35_spill] sm:$0xff] }
 0x5f0   : > { %v6132_v18 = vsel %vm6124_vm4, %v5919_v0, %v6131_v6  ;;  %v14276_v13 = vpop.permute.xlu1 %5010 }
 0x5f1   : > { %5068 = vrot.lane.b32.xlu0 %v13988_v54, %s10414_s27  ;;  %9741 = vmatmul.mubr.msk.f32.vlgmr.msra.gmra.mxu1 %vm16643_vm1, %v6132_v18  ;;  %v5134_v18 = vrot.slane %v14136_v46, 1  ;;  %vm16650_vm1 = vcmask 64512  }
 0x5f2   : > { %5254 = vrot.lane.b32.xlu1 %v5221_v43, %s16580_s4  ;;  %v14261_v2 = vpop.permute.xlu0 %5156  ;;  %vm16651_vm13 = vmmov %vm16650_vm1 }
 0x5f4   : > { %v9709_v4 = vpop.f32.mrf.mxu0 }
 0x5f5   : > { %v4638_v21 = vadd.f32 %v14114_v61, %v9709_v4  ;;  %5353 = vrot.lane.b32.xlu0 %v14049_v58, %s10418_s2  ;;  %v16649_v58 = vmax.f32 %v16648_v41, 0.0 }
 0x5f6   : > { %v4632_v1 = vpop.f32.mrf.mxu0  ;;  %5018 = vrot.lane.b32.xlu1 %v14269_v28, %s16581_s0  ;;  %v5399_v45 = vpop.permute.xlu0 %5398 }
 0x5f7   : > { %v4704_v14 = vadd.f32 %v4638_v21, %v16647_v22  ;;  %v4633_v17 = vadd.f32 %v14114_v61, %v4632_v1 }
 0x5f9   : > { %v4789_v52 = vrot.slane %v4704_v14, 7  ;;  %v4703_v47 = vadd.f32 %v4633_v17, %v16649_v58  ;;  %5164 = vrot.lane.b32.xlu0 %v14000_v12, %s16504_s30  ;;  %v14296_v12 = vpop.permute.xlu1 %5295  ;;  %v5440_v14 = vsel %vm16650_vm1, %v13560_v53, %v14017_v63  ;;  %vm16656_vm1 = vcmask 1041409  }
 0x5fa   : > { %v14282_v26 = vpop.permute.xlu0 %5160 }
 0x5fb   : > { %v4788_v27 = vrot.slane %v4703_v47, 7  ;;  %v4869_v0 = vsel %vm968_vm0, %v4789_v52, 0.0 }
 0x5fc   : > { %v4916_v44 = vrot.slane %v4869_v0, 1  ;;  %v4993_v4 = vrot.slane %v4869_v0, 2 }
 0x5fd   : > { %v14286_v16 = vsel %vm968_vm0, %v4788_v27, %v4789_v52  ;;  %5406 = vrot.lane.b32.xlu0 %v14069_v35, %s16579_s28  ;;  %v14291_v6 = vsel %vm968_vm0, 0.0, %v4788_v27  ;;  %v5135_v35 = vsel %vm1437_vm2, %v5132_v62, %v5134_v18  ;;  %v14320_v62 = vpop.permute.xlu1 %5064  ;;  %v5454_v52 = vsel %vm2412_vm5, %v5440_v14, %v14044_v5 }
 0x5fe   : > { %5303 = vrot.lane.b32.xlu1 %v14291_v6, %s16500_s9  ;;  %v4991_v43 = vrot.slane %v14286_v16, 2  ;;  %v4914_v31 = vrot.slane %v14286_v16, 1  ;;  %v4990_v21 = vrot.slane %v14291_v6, 2  ;;  %v14301_v10 = vpop.permute.xlu0 %5402  ;;  %v4913_v46 = vrot.slane %v14291_v6, 1 }
 0x5ff   : > { %v5217_v5 = vrot.slane %v13985_v8, 2 }
 0x600   : > { %v14309_v1 = vsel %vm1437_vm2, %v4914_v31, %v4916_v44  ;;  %v14314_v37 = vsel %vm1614_vm3, %v4991_v43, %v4993_v4  ;;  %v4992_v22 = vsel %vm1614_vm3, %v4990_v21, %v4991_v43  ;;  %v4915_v17 = vsel %vm1437_vm2, %v4913_v46, %v4914_v31 }
 0x601   : > { %5168 = vrot.lane.b32.xlu0 %v5135_v35, %s16504_s30  ;;  %v14340_v27 = vpop.permute.xlu1 %5349  ;;  %v5441_v43 = vsel %vm16651_vm13, %v13553_v24, %v14127_v60  ;;  %vm16657_vm13 = vcmask 1044484  }
 0x602   : > { %5072 = vrot.lane.b32.xlu1 %v14150_v20, %s10414_s27  ;;  %v14326_v41 = vpop.permute.xlu0 %5012  ;;  %v5470_v20 = vsel %vm2445_vm6, %v5454_v52, %v14062_v39  ;;  %v5455_v31 = vsel %vm2412_vm5, %v5441_v43, %v14239_v3 }
 0x603   : > { %v5486_v58 = vsel %vm2478_vm7, %v5470_v20, %v14095_v36  ;;  %v5218_v36 = vsel %vm1614_vm3, %v5215_v59, %v5217_v5  ;;  %v5471_v21 = vsel %vm2445_vm6, %v5455_v31, %v14230_v30 }
 0x604   : > { %v5502_v53 = vsel %vm2511_vm8, %v5486_v58, %v14144_v11  ;;  %v5487_v24 = vsel %vm2478_vm7, %v5471_v21, %v14261_v2 }
 0x605   : > { %5410 = vrot.lane.b32.xlu0 %v4992_v22, %s16579_s28  ;;  %v5518_v63 = vsel %vm2544_vm9, %v5502_v53, %v5292_v57  ;;  %v16654_v53 = vld [vmem:[#allocation37_spill] sm:$0xff] }
 0x606   : > { %5357 = vrot.lane.b32.xlu1 %v4915_v17, %s10418_s2  ;;  %v5534_v47 = vsel %vm2577_vm10, %v5518_v63, %v5346_v56  ;;  %v5294_v0 = vpop.permute.xlu0 %5293  ;;  %v14352_v56 = vpop.permute.xlu1 %4935  ;;  %v16655_v63 = vmax.f32 %v16654_v53, 0.0 }
 0x607   : > { %v5550_v39 = vsel %vm2610_vm11, %v5534_v47, %v5399_v45 }
 0x608   : > { %v5653_v11 = vrot.slane %v5550_v39, %v14093_v29  ;;  %v5646_v8 = vcombine.high %v5550_v39, %v5550_v39 }
 0x609   : > { %5020 = vrot.lane.b32.xlu0 %v4992_v22, %s16581_s0  ;;  %v16652_v22 = vld [vmem:[#allocation38_spill] sm:$0xff] }
 0x60a   : > { %4943 = vrot.lane.b32.xlu1 %v4915_v17, %s16590_s26  ;;  %v5661_v18 = vcombine.high %v5653_v11, %v5653_v11  ;;  %v5660_v54 = vrot.slane %v5646_v8, %v14093_v29  ;;  %v5245_v46 = vpop.permute.xlu1 %5244  ;;  %v16653_v14 = vmax.f32 %v16652_v22, 0.0  ;;  %v5923_v3 = vrot.slane %v5653_v11, %v14124_v23 }
 0x60b   : > { %v5503_v47 = vsel %vm2511_vm8, %v5487_v24, %v5245_v46 }
 0x60c   : > { %v5927_v35 = vrot.slane %v5661_v18, %v14124_v23  ;;  %v5662_v20 = vcombine.high %v5660_v54, %v5660_v54  ;;  %v5931_v5 = vrot.slane %v5660_v54, %v14124_v23 }
 0x60d   : > { %5301 = vrot.lane.b32.xlu0 %v14035_v48, %s16500_s9 }
 0x60e   : > { %5252 = vrot.lane.b32.xlu1 %v5218_v36, %s16580_s4  ;;  %v6133_v39 = vsel %vm16656_vm1, %v5927_v35, %v5923_v3  ;;  %v5519_v36 = vsel %vm2544_vm9, %v5503_v47, %v5294_v0  ;;  %v5935_v11 = vrot.slane %v5662_v20, %v14124_v23  ;;  %vm16658_vm1 = vcmask 1045509  }
 0x60f   : > { %v6134_v31 = vsel %vm16499_vm14, %v5931_v5, %v6133_v39 }
 0x610   : > { %v14350_v57 = vpop.permute.xlu0 %5066 }
 0x614   : > { %v9712_v44 = vpop.f32.mrf.mxu0  ;;  %v5348_v45 = vpop.permute.xlu0 %5347 }
 0x615   : > { %v4648_v59 = vadd.f32 %v14114_v61, %v9712_v44  ;;  %v5535_v18 = vsel %vm2577_vm10, %v5519_v36, %v5348_v45 }
 0x616   : > { %v4642_v4 = vpop.f32.mrf.mxu0 }
 0x617   : > { %v4706_v17 = vadd.f32 %v4648_v59, %v16653_v14  ;;  %v4643_v52 = vadd.f32 %v14114_v61, %v4642_v4  ;;  %v6135_v14 = vsel %vm16498_vm15, %v5935_v11, %v6134_v31  ;;  %vm16659_vm15 = vcmask 588800  }
 0x618   : > { %v14369_v60 = vpop.permute.xlu0 %5162 }
 0x619   : > { %v4792_v58 = vrot.slane %v4706_v17, 7  ;;  %v4705_v30 = vadd.f32 %v4643_v52, %v16655_v63 }
 0x61b   : > { %v4791_v8 = vrot.slane %v4705_v30, 7  ;;  %v14379_v2 = vsel %vm968_vm0, %v4792_v58, 0.0 }
 0x61c   : > { %v5401_v44 = vpop.permute.xlu0 %5400  ;;  %v5139_v45 = vrot.slane %v14379_v2, 1 }
 0x61d   : > { %v14384_v43 = vsel %vm968_vm0, %v4791_v8, %v4792_v58  ;;  %v5551_v54 = vsel %vm2610_vm11, %v5535_v18, %v5401_v44  ;;  %v14388_v59 = vsel %vm968_vm0, 0.0, %v4791_v8  ;;  %v16660_v8 = vld [vmem:[#allocation40_spill] sm:$0xff] }
 0x61e   : > { %v5663_v0 = vcombine.high %v5551_v54, %v5551_v54  ;;  %v5670_v4 = vrot.slane %v5551_v54, %v14093_v29  ;;  %5074 = vrot.lane.b32.xlu0 %v14388_v59, %s10414_s27  ;;  %v5137_v21 = vrot.slane %v14384_v43, 1  ;;  %v5136_v17 = vrot.slane %v14388_v59, 1  ;;  %v16662_v54 = vld [vmem:[#allocation39_spill] sm:$0xff] }
 0x61f   : > { %v16661_v18 = vmax.f32 %v16660_v8, 0.0  ;;  %v16663_v31 = vmax.f32 %v16662_v54, 0.0 }
 0x620   : > { %v5677_v35 = vrot.slane %v5663_v0, %v14093_v29  ;;  %v5678_v46 = vcombine.high %v5670_v4, %v5670_v4  ;;  %v5939_v22 = vrot.slane %v5670_v4, %v14124_v23  ;;  %v14401_v52 = vsel %vm1437_vm2, %v5137_v21, %v5139_v45 }
 0x621   : > { %v5138_v30 = vsel %vm1437_vm2, %v5136_v17, %v5137_v21 }
 0x622   : > { %v5679_v24 = vcombine.high %v5677_v35, %v5677_v35  ;;  %v5943_v20 = vrot.slane %v5678_v46, %v14124_v23  ;;  %v5947_v3 = vrot.slane %v5677_v35, %v14124_v23  ;;  %v6136_v58 = vsel %vm16657_vm13, %v5939_v22, %v6135_v14  ;;  %5355 = vrot.lane.b32.xlu0 %v14246_v42, %s10418_s2 }
 0x624   : > { %v5951_v53 = vrot.slane %v5679_v24, %v14124_v23  ;;  %v6137_v63 = vsel %vm16658_vm1, %v5943_v20, %v6136_v58  ;;  %vm16666_vm1 = vcmask 1041409  }
 0x625   : > { %v6138_v5 = vsel %vm6122_vm12, %v5947_v3, %v6137_v63 }
 0x626   : > { %5170 = vrot.lane.b32.xlu0 %v5138_v30, %s16504_s30  ;;  %v6139_v47 = vsel %vm6124_vm4, %v5951_v53, %v6138_v5 }
 0x627   : > { %9743 = vmatprep.mubr.msk.f32.mxu1 %vm16659_vm15, %v6139_v47  ;;  %vm16664_vm15 = vcmask 64512  }
 0x628   : > { %v5442_v24 = vsel %vm16664_vm15, %v13586_v55, %v14029_v9  ;;  %vm16665_vm13 = vmmov %vm16664_vm15  ;;  %vm16671_vm15 = vcmask 1043459  }
 0x629   : > { %v5456_v20 = vsel %vm2412_vm5, %v5442_v24, %v14064_v33  ;;  %v5443_v47 = vsel %vm16665_vm13, %v13583_v15, %v14159_v25  ;;  %vm16672_vm13 = vcmask 1044484  }
 0x62a   : > { %5408 = vrot.lane.b32.xlu0 %v14269_v28, %s16579_s28  ;;  %v5472_v3 = vsel %vm2445_vm6, %v5456_v20, %v14102_v7 }
 0x62b   : > { %v5488_v63 = vsel %vm2478_vm7, %v5472_v3, %v14117_v50  ;;  %v16667_v3 = vld [vmem:[#allocation42_spill] sm:$0xff] }
 0x62c   : > { %v5504_v30 = vsel %vm2511_vm8, %v5488_v63, %v14191_v40 }
 0x62d   : > { %v5520_v9 = vsel %vm2544_vm9, %v5504_v30, %v14296_v12 }
 0x62e   : > { %v5536_v33 = vsel %vm2577_vm10, %v5520_v9, %v14340_v27 }
 0x62f   : > { %v5552_v50 = vsel %vm2610_vm11, %v5536_v33, %v14301_v10  ;;  %v5457_v10 = vsel %vm2412_vm5, %v5443_v47, %v14276_v13 }
 0x630   : > { %v5680_v12 = vcombine.high %v5552_v50, %v5552_v50 }
 0x633   : > { %v14425_v4 = vpop.permute.xlu1 %4939 }
 0x634   : > { %v9715_v39 = vpop.f32.mrf.mxu0 }
 0x635   : > { %v4658_v42 = vadd.f32 %v14114_v61, %v9715_v39  ;;  %v5694_v39 = vrot.slane %v5680_v12, %v14093_v29 }
 0x636   : > { %v4652_v36 = vpop.f32.mrf.mxu0 }
 0x637   : > { %v14420_v44 = vadd.f32 %v4658_v42, %v16661_v18  ;;  %v4653_v11 = vadd.f32 %v14114_v61, %v4652_v36  ;;  %v5249_v14 = vpop.permute.xlu1 %5248  ;;  %v5473_v42 = vsel %vm2445_vm6, %v5457_v10, %v14320_v62  ;;  %v5696_v15 = vcombine.high %v5694_v39, %v5694_v39 }
 0x638   : > { %v5489_v8 = vsel %vm2478_vm7, %v5473_v42, %v14282_v26  ;;  %v5963_v62 = vrot.slane %v5694_v39, %v14124_v23 }
 0x639   : > { %v4707_v0 = vadd.f32 %v4653_v11, %v16663_v31  ;;  %v4795_v45 = vrot.slane %v14420_v44, 7  ;;  %v5505_v54 = vsel %vm2511_vm8, %v5489_v8, %v5249_v14  ;;  %v5967_v33 = vrot.slane %v5696_v15, %v14124_v23 }
 0x63b   : > { %v4794_v21 = vrot.slane %v4707_v0, 7  ;;  %v14460_v55 = vpop.permute.xlu1 %5016 }
 0x63d   : > { %v14431_v28 = vsel %vm968_vm0, %v4794_v21, %v4795_v45  ;;  %v14434_v35 = vsel %vm968_vm0, 0.0, %v4794_v21 }
 0x63e   : > { %v4918_v46 = vrot.slane %v14434_v35, 1  ;;  %v4919_v22 = vrot.slane %v14431_v28, 1  ;;  %v4995_v58 = vrot.slane %v14434_v35, 2  ;;  %v4996_v53 = vrot.slane %v14431_v28, 2 }
 0x63f   : > { %v5298_v40 = vpop.permute.xlu1 %5297 }
 0x640   : > { %v14441_v17 = vsel %vm1437_vm2, %v4918_v46, %v4919_v22  ;;  %v14469_v7 = vsel %vm1614_vm3, %v4995_v58, %v4996_v53  ;;  %v5521_v13 = vsel %vm2544_vm9, %v5505_v54, %v5298_v40  ;;  %v16668_v58 = vmax.f32 %v16667_v3, 0.0 }
 0x641   : > { %4947 = vrot.lane.b32.xlu1 %v14441_v17, %s16590_s26 }
 0x645   : > { %5256 = vrot.lane.b32.xlu1 %v14177_v49, %s16580_s4  ;;  %v5687_v49 = vrot.slane %v5552_v50, %v14093_v29  ;;  %v16669_v50 = vld [vmem:[#allocation41_spill] sm:$0xff] }
 0x647   : > { %v5695_v5 = vcombine.high %v5687_v49, %v5687_v49  ;;  %v5955_v25 = vrot.slane %v5687_v49, %v14124_v23  ;;  %v16670_v49 = vmax.f32 %v16669_v50, 0.0 }
 0x649   : > { %5024 = vrot.lane.b32.xlu1 %v14469_v7, %s16581_s0  ;;  %v5959_v18 = vrot.slane %v5695_v5, %v14124_v23 }
 0x64b   : > { %v6140_v26 = vsel %vm16666_vm1, %v5959_v18, %v5955_v25  ;;  %vm16673_vm1 = vcmask 1045509  }
 0x64c   : > { %v6141_v12 = vsel %vm16499_vm14, %v5963_v62, %v6140_v26 }
 0x64d   : > { %5305 = vrot.lane.b32.xlu1 %v14286_v16, %s16500_s9  ;;  %v6142_v18 = vsel %vm16671_vm15, %v5967_v33, %v6141_v12  ;;  %vm16674_vm15 = vcmask 588800   ;;  %v5225_v33 = vrot.slane %v14384_v43, 2 }
 0x650   : > { %v14478_v27 = vpop.permute.xlu1 %5070 }
 0x653   : > { %v14488_v36 = vpop.permute.xlu0 %5166 }
 0x654   : > { %v5352_v11 = vpop.permute.xlu1 %5351 }
 0x655   : > { %v9718_v31 = vpop.f32.mrf.mxu0  ;;  %v5537_v21 = vsel %vm2577_vm10, %v5521_v13, %v5352_v11 }
 0x656   : > { %v4668_v0 = vadd.f32 %v14114_v61, %v9718_v31 }
 0x657   : > { %v4662_v46 = vpop.f32.mrf.mxu0  ;;  %v5405_v24 = vpop.permute.xlu0 %5404 }
 0x658   : > { %v4663_v20 = vadd.f32 %v14114_v61, %v4662_v46  ;;  %v5553_v14 = vsel %vm2610_vm11, %v5537_v21, %v5405_v24  ;;  %v14504_v63 = vadd.f32 %v4668_v0, %v16668_v58  ;;  %v14529_v21 = vpop.permute.xlu1 %4937 }
 0x659   : > { %v5697_v30 = vcombine.high %v5553_v14, %v5553_v14  ;;  %v5704_v9 = vrot.slane %v5553_v14, %v14093_v29  ;;  %v9721_v50 = vpop.f32.mrf.mxu0 }
 0x65a   : > { %v4709_v40 = vadd.f32 %v4663_v20, %v16670_v49  ;;  %v4798_v8 = vrot.slane %v14504_v63, 7 }
 0x65b   : > { %v5711_v5 = vrot.slane %v5697_v30, %v14093_v29  ;;  %v5712_v47 = vcombine.high %v5704_v9, %v5704_v9  ;;  %v5971_v10 = vrot.slane %v5704_v9, %v14124_v23  ;;  %v14513_v39 = vpop.permute.xlu0 %5014  ;;  %v5224_v30 = vrot.slane %v14388_v59, 2  ;;  %v4672_v59 = vpop.f32.mrf.mxu0 }
 0x65c   : > { %v4797_v42 = vrot.slane %v4709_v40, 7  ;;  %v14546_v9 = vpop.permute.xlu1 %5250  ;;  %v4871_v40 = vsel %vm968_vm0, %v4795_v45, 0.0 }
 0x65d   : > { %v5713_v11 = vcombine.high %v5711_v5, %v5711_v5  ;;  %v5975_v54 = vrot.slane %v5712_v47, %v14124_v23  ;;  %v5979_v15 = vrot.slane %v5711_v5, %v14124_v23  ;;  %v6143_v25 = vsel %vm16672_vm13, %v5971_v10, %v6142_v18  ;;  %v16675_v18 = vld [vmem:[#allocation43_spill] sm:$0xff] }
 0x65e   : > { %v14521_v31 = vsel %vm968_vm0, %v4797_v42, %v4798_v8  ;;  %v4856_v13 = vsel %vm968_vm0, 0.0, %v4797_v42  ;;  %v5226_v12 = vsel %vm1614_vm3, %v5224_v30, %v5225_v33  ;;  %v4921_v5 = vrot.slane %v4871_v40, 1 }
 0x65f   : > { %v14526_v0 = vpop.permute.xlu0 %5299  ;;  %5078 = vrot.lane.b32.xlu1 %v4856_v13, %s10414_s27  ;;  %v5141_v62 = vrot.slane %v4856_v13, 1  ;;  %v5142_v46 = vrot.slane %v14521_v31, 1  ;;  %v5983_v24 = vrot.slane %v5713_v11, %v14124_v23  ;;  %v6144_v26 = vsel %vm16673_vm1, %v5975_v54, %v6143_v25 }
 0x660   : > { %v6145_v20 = vsel %vm6122_vm12, %v5979_v15, %v6144_v26  ;;  %v14560_v47 = vpop.permute.xlu1 %4941  ;;  %v4673_v10 = vadd.f32 %v14114_v61, %v4672_v59  ;;  %v5229_v42 = vrot.slane %v4856_v13, 2  ;;  %v14570_v44 = vsel %vm1437_vm2, %v4919_v22, %v4921_v5 }
 0x661   : > { %v5143_v3 = vsel %vm1437_vm2, %v5141_v62, %v5142_v46  ;;  %v6146_v58 = vsel %vm6124_vm4, %v5983_v24, %v6145_v20  ;;  %v5230_v45 = vrot.slane %v14521_v31, 2  ;;  %v16676_v11 = vmax.f32 %v16675_v18, 0.0  ;;  %v16677_v62 = vld [vmem:[#allocation44_spill] sm:$0xff] }
 0x662   : > { %5174 = vrot.lane.b32.xlu0 %v5143_v3, %s16504_s30  ;;  %9744 = vmatmul.mubr.msk.f32.gmra.mxu1 %vm16674_vm15, %v6146_v58  ;;  %v4998_v22 = vrot.slane %v4871_v40, 2  ;;  %v16678_v24 = vmax.f32 %v16677_v62, 0.0  ;;  %v4872_v5 = vsel %vm968_vm0, %v4798_v8, 0.0  ;;  %vm16679_vm13 = vcmask 64512  }
 0x663   : > { %v14535_v14 = vpop.permute.xlu0 %5068  ;;  %5359 = vrot.lane.b32.xlu1 %v14309_v1, %s10418_s2  ;;  %v4711_v54 = vadd.f32 %v4673_v10, %v16676_v11  ;;  %v5231_v25 = vsel %vm1614_vm3, %v5229_v42, %v5230_v45  ;;  %v5144_v18 = vrot.slane %v4872_v5, 1  ;;  %vm16680_vm1 = vmmov %vm16679_vm13  ;;  %vm16681_vm15 = vcmask 1041409  }
 0x664   : > { %v14580_v15 = vpop.permute.xlu1 %5254 }
 0x665   : > { %v4800_v20 = vrot.slane %v4711_v54, 7 }
 0x666   : > { %5412 = vrot.lane.b32.xlu0 %v14314_v37, %s16579_s28 }
 0x667   : > { %4945 = vrot.lane.b32.xlu1 %v14309_v1, %s16590_s26  ;;  %v14551_v49 = vpop.permute.xlu0 %5353 }
 0x668   : > { %v14595_v3 = vpop.permute.xlu1 %5018 }
 0x66a   : > { %5022 = vrot.lane.b32.xlu0 %v14314_v37, %s16581_s0  ;;  %v4678_v37 = vadd.f32 %v14114_v61, %v9721_v50  ;;  %v14591_v61 = vsel %vm1614_vm3, %v4996_v53, %v4998_v22 }
 0x66b   : > { %5258 = vrot.lane.b32.xlu1 %v5226_v12, %s16580_s4  ;;  %v14564_v1 = vpop.permute.xlu0 %5164 }
 0x66c   : > { %v4712_v26 = vadd.f32 %v4678_v37, %v16678_v24  ;;  %v5444_v37 = vsel %vm16679_vm13, %v13865_v34, %v14352_v56  ;;  %vm16682_vm13 = vcmask 1043459  }
 0x66e   : > { %5307 = vrot.lane.b32.xlu0 %v14434_v35, %s16500_s9  ;;  %v4801_v58 = vrot.slane %v4712_v26, 7 }
 0x66f   : > { %4949 = vrot.lane.b32.xlu1 %v14570_v44, %s16590_s26  ;;  %v5407_v13 = vpop.permute.xlu0 %5406 }
 0x670   : > { %v4802_v50 = vsel %vm968_vm0, %v4800_v20, %v4801_v58  ;;  %v14604_v40 = vpop.permute.xlu1 %5303 }
 0x671   : > { %v5333_v12 = vrot.slane %v4802_v50, 1  ;;  %v5386_v54 = vrot.slane %v4802_v50, 2 }
 0x672   : > { %5076 = vrot.lane.b32.xlu0 %v14384_v43, %s10414_s27  ;;  %v4857_v43 = vsel %vm968_vm0, 0.0, %v4800_v20 }
 0x673   : > { %5262 = vrot.lane.b32.xlu1 %v5231_v25, %s16580_s4  ;;  %v14599_v30 = vpop.permute.xlu0 %5168  ;;  %v5332_v53 = vrot.slane %v4857_v43, 1  ;;  %v5385_v11 = vrot.slane %v4857_v43, 2 }
 0x674   : > { %v14618_v10 = vpop.permute.xlu1 %5072 }
 0x676   : > { %5361 = vrot.lane.b32.xlu0 %v14441_v17, %s10418_s2  ;;  %v5227_v17 = vrot.slane %v14379_v2, 2  ;;  %v5458_v2 = vsel %vm2412_vm5, %v5444_v37, %v14326_v41 }
 0x677   : > { %5026 = vrot.lane.b32.xlu1 %v14591_v61, %s16581_s0  ;;  %v14608_v59 = vpop.permute.xlu0 %5410  ;;  %v5474_v8 = vsel %vm2445_vm6, %v5458_v2, %v14350_v57 }
 0x678   : > { %v5228_v42 = vsel %vm1614_vm3, %v5225_v33, %v5227_v17  ;;  %v5145_v33 = vsel %vm1437_vm2, %v5142_v46, %v5144_v18  ;;  %v5490_v34 = vsel %vm2478_vm7, %v5474_v8, %v14369_v60  ;;  %v14642_v25 = vpop.permute.xlu1 %5357  ;;  %v5387_v60 = vsel %vm1614_vm3, %v5385_v11, %v5386_v54 }
 0x679   : > { %v5506_v41 = vsel %vm2511_vm8, %v5490_v34, %v14546_v9 }
 0x67a   : > { %5172 = vrot.lane.b32.xlu0 %v14401_v52, %s16504_s30  ;;  %v5334_v52 = vsel %vm1437_vm2, %v5332_v53, %v5333_v12  ;;  %v5522_v57 = vsel %vm2544_vm9, %v5506_v41, %v14526_v0 }
 0x67b   : > { %5311 = vrot.lane.b32.xlu1 %v4857_v43, %s16500_s9  ;;  %v14629_v63 = vpop.permute.xlu0 %5020  ;;  %v5538_v46 = vsel %vm2577_vm10, %v5522_v57, %v14551_v49 }
 0x67c   : > { %v14655_v24 = vpop.permute.xlu1 %4943 }
 0x67e   : > { %5414 = vrot.lane.b32.xlu0 %v14469_v7, %s16579_s28  ;;  %v5232_v7 = vrot.slane %v4872_v5, 2 }
 0x67f   : > { %5080 = vrot.lane.b32.xlu1 %v14521_v31, %s10414_s27  ;;  %v4873_v31 = vsel %vm968_vm0, %v4801_v58, 0.0  ;;  %v5302_v22 = vpop.permute.xlu0 %5301  ;;  %v5445_v58 = vsel %vm16680_vm1, %v13862_v51, %v14529_v21  ;;  %vm16683_vm1 = vcmask 1044484   ;;  %s16693_s27 = sld [smem:[#allocation54_spill]] }
 0x680   : > { %v5233_v56 = vsel %vm1614_vm3, %v5230_v45, %v5232_v7  ;;  %v5554_v45 = vsel %vm2610_vm11, %v5538_v46, %v5407_v13  ;;  %v5335_v9 = vrot.slane %v4873_v31, 1  ;;  %v5388_v13 = vrot.slane %v4873_v31, 2  ;;  %v5253_v17 = vpop.permute.xlu1 %5252 }
 0x681   : > { %v5721_v62 = vrot.slane %v5554_v45, %v14093_v29  ;;  %v5714_v26 = vcombine.high %v5554_v45, %v5554_v45  ;;  %v5459_v53 = vsel %vm2412_vm5, %v5445_v58, %v14513_v39 }
 0x682   : > { %5260 = vrot.lane.b32.xlu0 %v5228_v42, %s16580_s4  ;;  %v5336_v0 = vsel %vm1437_vm2, %v5333_v12, %v5335_v9  ;;  %v5389_v43 = vsel %vm1614_vm3, %v5386_v54, %v5388_v13  ;;  %v5475_v5 = vsel %vm2445_vm6, %v5459_v53, %v14535_v14 }
 0x683   : > { %5365 = vrot.lane.b32.xlu1 %v5334_v52, %s10418_s2  ;;  %v5729_v20 = vcombine.high %v5721_v62, %v5721_v62  ;;  %v5728_v12 = vrot.slane %v5714_v26, %v14093_v29  ;;  %v5491_v51 = vsel %vm2478_vm7, %v5475_v5, %v14564_v1  ;;  %v5987_v42 = vrot.slane %v5721_v62, %v14124_v23 }
 0x684   : > { %v5507_v52 = vsel %vm2511_vm8, %v5491_v51, %v5253_v17  ;;  %v16687_v17 = vld [vmem:[#allocation25_spill] sm:$0xff]  ;;  %v16689_v51 = vld [vmem:[#allocation24_spill] sm:$0xff] }
 0x685   : > { %v5991_v21 = vrot.slane %v5729_v20, %v14124_v23  ;;  %v5730_v39 = vcombine.high %v5728_v12, %v5728_v12  ;;  %v5995_v37 = vrot.slane %v5728_v12, %v14124_v23  ;;  %v5523_v14 = vsel %vm2544_vm9, %v5507_v52, %v5302_v22 }
 0x686   : > { %5264 = vrot.lane.b32.xlu0 %v5233_v56, %s16580_s4  ;;  %s16686_s4 = sld [smem:[#allocation53_spill]]  ;;  %v16688_v5 = vrot.slane %v16687_v17, 2 }
 0x687   : > { %5176 = vrot.lane.b32.xlu1 %v5145_v33, %s16504_s30  ;;  %v6147_v18 = vsel %vm16681_vm15, %v5991_v21, %v5987_v42  ;;  %v5999_v7 = vrot.slane %v5730_v39, %v14124_v23  ;;  %vm16684_vm15 = vcmask 1045509   ;;  %v16690_v21 = vrot.slane %v16689_v51, 2 }
 0x688   : > { %v16691_v39 = vrot.slane %v16687_v17, 1  ;;  %v16692_v42 = vrot.slane %v16689_v51, 1 }
 0x689   : > { %v14725_v52 = vsel %vm1614_vm3, %v16690_v21, %v16688_v5 }
 0x68a   : > { %5313 = vrot.lane.b32.xlu0 %v4802_v50, %s16500_s9 }
 0x68b   : > { %5418 = vrot.lane.b32.xlu1 %v5387_v60, %s16579_s28 }
 0x68e   : > { %5367 = vrot.lane.b32.xlu0 %v5336_v0, %s10418_s2  ;;  %v14706_v0 = vld [vmem:[%s16686_s4] ss:$0 sm:$0xff] }
 0x68f   : > { %5309 = vrot.lane.b32.xlu1 %v14431_v28, %s16500_s9 }
 0x690   : > { %v14660_v49 = vpop.permute.xlu0 %5074 }
 0x692   : > { %5420 = vrot.lane.b32.xlu0 %v5389_v43, %s16579_s28 }
 0x693   : > { %5363 = vrot.lane.b32.xlu1 %v14570_v44, %s10418_s2  ;;  %s16502_s2 = smov 80  }
 0x694   : > { %v5356_v50 = vpop.permute.xlu0 %5355 }
 0x695   : > { %v5539_v1 = vsel %vm2577_vm10, %v5523_v14, %v5356_v50 }
 0x697   : > { %5416 = vrot.lane.b32.xlu1 %v14591_v61, %s16579_s28  ;;  %v6148_v61 = vsel %vm16499_vm14, %v5995_v37, %v6147_v18  ;;  %vm16685_vm14 = vcmask 588800   ;;  %v14732_v37 = vsel %vm1437_vm2, %v16692_v42, %v16691_v39  ;;  %v6315_v39 = vld [vmem:[%s16693_s27 + $0x58] sm:$0xff] }
 0x698   : > { %v14681_v44 = vpop.permute.xlu0 %5170  ;;  %v6149_v41 = vsel %vm16682_vm13, %v5999_v7, %v6148_v61 }
 0x69c   : > { %v5409_v2 = vpop.permute.xlu0 %5408 }
 0x69d   : > { %v5555_v8 = vsel %vm2610_vm11, %v5539_v1, %v5409_v2 }
 0x69e   : > { %v5731_v11 = vcombine.high %v5555_v8, %v5555_v8  ;;  %v5738_v33 = vrot.slane %v5555_v8, %v14093_v29 }
 0x6a0   : > { %v5745_v54 = vrot.slane %v5731_v11, %v14093_v29  ;;  %v5746_v34 = vcombine.high %v5738_v33, %v5738_v33  ;;  %v6003_v56 = vrot.slane %v5738_v33, %v14124_v23 }
 0x6a2   : > { %v5747_v57 = vcombine.high %v5745_v54, %v5745_v54  ;;  %v6007_v31 = vrot.slane %v5746_v34, %v14124_v23  ;;  %v6011_v46 = vrot.slane %v5745_v54, %v14124_v23  ;;  %v6150_v60 = vsel %vm16683_vm1, %v6003_v56, %v6149_v41 }
 0x6a3   : > { %vm16696_vm1 = vcmask 1041409  }
 0x6a4   : > { %v6015_v45 = vrot.slane %v5747_v57, %v14124_v23  ;;  %v6151_v22 = vsel %vm16684_vm15, %v6007_v31, %v6150_v60  ;;  %v6318_v60 = vld [vmem:[%s16693_s27 + $0x70] sm:$0xff]  ;;  %vm16697_vm15 = vcmask 1042434  }
 0x6a5   : > { %v6152_v9 = vsel %vm6122_vm12, %v6011_v46, %v6151_v22  ;;  %v6319_v46 = vld [vmem:[%s16693_s27 + $0x78] sm:$0xff] }
 0x6a6   : > { %v6153_v62 = vsel %vm6124_vm4, %v6015_v45, %v6152_v9  ;;  %6679 = vmatpush1.msra.mxu1 %v6319_v46  ;;  %v6308_v46 = vld [vmem:[%s16693_s27 + $0x20] sm:$0xff] }
 0x6a7   : > { %9746 = vmatprep.mubr.msk.f32.mxu1 %vm16685_vm14, %v6153_v62  ;;  %6680 = vmatprep.subr.mxu1 %v16578_v32  ;;  %vm16694_vm14 = vcmask 64512  }
 0x6a8   : > { %v5446_v62 = vsel %vm16694_vm14, %v14038_v19, %v14425_v4  ;;  %6681 = vmatpush1.msra.mxu1 %v6318_v60  ;;  %v6316_v4 = vld [vmem:[%s16693_s27 + $0x60] sm:$0xff]  ;;  %vm16695_vm13 = vmmov %vm16694_vm14  ;;  %vm16698_vm14 = vcmask 1043459  }
 0x6a9   : > { %v5460_v17 = vsel %vm2412_vm5, %v5446_v62, %v14460_v55  ;;  %6682 = vmatprep.subr.mxu1 %v16578_v32 }
 0x6aa   : > { %v5476_v19 = vsel %vm2445_vm6, %v5460_v17, %v14478_v27 }
 0x6ab   : > { %v5492_v5 = vsel %vm2478_vm7, %v5476_v19, %v14488_v36 }
 0x6ac   : > { %v5508_v55 = vsel %vm2511_vm8, %v5492_v5, %v14580_v15  ;;  %v6314_v15 = vld [vmem:[%s16693_s27 + $0x50] sm:$0xff] }
 0x6ad   : > { %v5524_v42 = vsel %vm2544_vm9, %v5508_v55, %v14604_v40  ;;  %v6313_v40 = vld [vmem:[%s16693_s27 + $0x48] sm:$0xff] }
 0x6ae   : > { %v5540_v36 = vsel %vm2577_vm10, %v5524_v42, %v14642_v25 }
 0x6af   : > { %v5556_v25 = vsel %vm2610_vm11, %v5540_v36, %v14608_v59  ;;  %v6310_v59 = vld [vmem:[%s16693_s27 + $0x30] sm:$0xff] }
 0x6b1   : > { %v9742_v26 = vpop.f32.mrf.mxu1 }
 0x6b2   : > { %v14709_v13 = vadd.f32 %v9742_v26, %v14706_v0 }
 0x6b3   : > { %v6257_v20 = vpop.f32.mrf.mxu1  ;;  %v14744_v33 = vpop.permute.xlu1 %4947 }
 0x6b4   : > { %v6297_v58 = vmax.f32 %v14709_v13, 0.0  ;;  %v14713_v43 = vadd.f32 %v14706_v0, %v6257_v20 }
 0x6b6   : > { %v6332_v50 = vrot.slane %v6297_v58, 7  ;;  %v6296_v53 = vmax.f32 %v14713_v43, 0.0 }
 0x6b7   : > { %v14767_v26 = vpop.permute.xlu1 %5256 }
 0x6b8   : > { %v6331_v12 = vrot.slane %v6296_v53, 7  ;;  %v14735_v18 = vsel %vm968_vm0, 0.0, %v6332_v50  ;;  %v6356_v14 = vsel %vm968_vm0, %v6332_v50, 0.0 }
 0x6b9   : > { %v6381_v54 = vrot.slane %v14735_v18, 1  ;;  %v6382_v34 = vrot.slane %v6356_v14, 1  ;;  %v6427_v45 = vrot.slane %v14735_v18, 2  ;;  %v6428_v22 = vrot.slane %v6356_v14, 2 }
 0x6ba   : > { %v14739_v1 = vsel %vm968_vm0, 0.0, %v6331_v12  ;;  %v6355_v2 = vsel %vm968_vm0, %v6331_v12, 0.0  ;;  %v6317_v12 = vld [vmem:[%s16693_s27 + $0x68] sm:$0xff] }
 0x6bb   : > { %v6378_v7 = vrot.slane %v14739_v1, 1  ;;  %v6379_v8 = vrot.slane %v6355_v2, 1  ;;  %v6424_v61 = vrot.slane %v14739_v1, 2  ;;  %v6425_v11 = vrot.slane %v6355_v2, 2  ;;  %6683 = vmatpush1.msra.mxu1 %v6317_v12  ;;  %v14801_v14 = vpop.permute.xlu1 %5024  ;;  %v6312_v2 = vld [vmem:[%s16693_s27 + $0x40] sm:$0xff] }
 0x6bc   : > { %v14761_v9 = vsel %vm1437_vm2, %v6381_v54, %v6382_v34  ;;  %v9958_v50 = vpack.i.bf16 %v14735_v18, %v14739_v1  ;;  %v14788_v21 = vsel %vm1614_vm3, %v6427_v45, %v6428_v22  ;;  %6684 = vmatprep.subr.mxu1 %v16578_v32 }
 0x6bd   : > { %v6426_v56 = vsel %vm1614_vm3, %v6424_v61, %v6425_v11  ;;  %v6380_v41 = vsel %vm1437_vm2, %v6378_v7, %v6379_v8  ;;  %6685 = vmatpush1.msra.mxu1 %v6316_v4  ;;  %v5755_v7 = vrot.slane %v5556_v25, %v14093_v29  ;;  %v6311_v61 = vld [vmem:[%s16693_s27 + $0x38] sm:$0xff]  ;;  %v5748_v11 = vcombine.high %v5556_v25, %v5556_v25 }
 0x6be   : > { %v9953_v57 = vpack.i.bf16 %v6426_v56, %v14725_v52  ;;  %v9948_v31 = vpack.i.bf16 %v6380_v41, %v14732_v37  ;;  %v9963_v20 = vpack.i.bf16 %v14761_v9, %v6380_v41  ;;  %v9968_v27 = vpack.i.bf16 %v14788_v21, %v6426_v56  ;;  %6686 = vmatprep.subr.mxu1 %v16578_v32  ;;  %v6309_v56 = vld [vmem:[%s16693_s27 + $0x28] sm:$0xff] }
 0x6bf   : > { %6687 = vmatpush1.msra.mxu1 %v6315_v39  ;;  %v5306_v8 = vpop.permute.xlu1 %5305  ;;  %v5763_v54 = vcombine.high %v5755_v7, %v5755_v7  ;;  %v5447_v41 = vsel %vm16695_vm13, %v14035_v48, %v14560_v47  ;;  %v6307_v48 = vld [vmem:[%s16693_s27 + $0x18] sm:$0xff]  ;;  %v6019_v62 = vrot.slane %v5755_v7, %v14124_v23  ;;  %vm16699_vm13 = vcmask 1044484  }
 0x6c0   : > { %9954 = vrot.lane.b32.xlu0 %v9953_v57, %s16504_s30  ;;  %9949 = vrot.lane.b32.xlu1 %v9948_v31, %s16581_s0  ;;  %v5461_v57 = vsel %vm2412_vm5, %v5447_v41, %v14595_v3  ;;  %v5762_v31 = vrot.slane %v5748_v11, %v14093_v29  ;;  %s16718_s30 = smov 32  }
 0x6c1   : > { %6688 = vmatprep.subr.mxu1 %v16578_v32  ;;  %v5477_v60 = vsel %vm2445_vm6, %v5461_v57, %v14618_v10  ;;  %v6023_v45 = vrot.slane %v5763_v54, %v14124_v23  ;;  %v6306_v10 = vld [vmem:[%s16693_s27 + $0x10] sm:$0xff] }
 0x6c2   : > { %6689 = vmatpush1.msra.mxu1 %v6314_v15  ;;  %v5764_v3 = vcombine.high %v5762_v31, %v5762_v31 }
 0x6c3   : > { %6690 = vmatprep.subr.mxu1 %v16578_v32  ;;  %v6154_v17 = vsel %vm16696_vm1, %v6023_v45, %v6019_v62  ;;  %vm16700_vm1 = vcmask 1045509  }
 0x6c4   : > { %9964 = vrot.lane.b32.xlu0 %v9963_v20, %s16579_s28  ;;  %9959 = vrot.lane.b32.xlu1 %v9958_v50, %s16500_s9  ;;  %v5493_v20 = vsel %vm2478_vm7, %v5477_v60, %v14599_v30  ;;  %v6027_v50 = vrot.slane %v5762_v31, %v14124_v23  ;;  %v6305_v30 = vld [vmem:[%s16693_s27 + $0x8] sm:$0xff]  ;;  %s16720_s9 = smov 80  }
 0x6c5   : > { %6691 = vmatpush1.msra.mxu1 %v6313_v40  ;;  %v5509_v12 = vsel %vm2511_vm8, %v5493_v20, %v14767_v26 }
 0x6c6   : > { %6692 = vmatprep.subr.mxu1 %v16578_v32  ;;  %v5525_v19 = vsel %vm2544_vm9, %v5509_v12, %v5306_v8  ;;  %v6155_v39 = vsel %vm16697_vm15, %v6027_v50, %v6154_v17  ;;  %vm16701_vm15 = vcmask 588800  }
 0x6c7   : > { %6693 = vmatpush1.msra.mxu1 %v6312_v2 }
 0x6c8   : > { %9969 = vrot.lane.b32.xlu1 %v9968_v27, %s16502_s2  ;;  %6694 = vmatprep.subr.mxu1 %v16578_v32  ;;  %v6031_v27 = vrot.slane %v5764_v3, %v14124_v23  ;;  %s16719_s2 = smov 48  }
 0x6c9   : > { %6695 = vmatpush1.msra.mxu1 %v6311_v61 }
 0x6ca   : > { %6696 = vmatprep.subr.mxu1 %v16578_v32  ;;  %v6156_v8 = vsel %vm16698_vm14, %v6031_v27, %v6155_v39  ;;  %vm16702_vm14 = vcmask 64512  }
 0x6cb   : > { %6697 = vmatpush1.msra.mxu1 %v6310_v59 }
 0x6cc   : > { %6698 = vmatprep.subr.mxu1 %v16578_v32 }
 0x6cd   : > { %6699 = vmatpush1.msra.mxu1 %v6309_v56 }
 0x6ce   : > { %6700 = vmatprep.subr.mxu1 %v16578_v32 }
 0x6cf   : > { %6701 = vmatpush1.msra.mxu1 %v6308_v46 }
 0x6d0   : > { %6702 = vmatprep.subr.mxu1 %v16578_v32 }
 0x6d1   : > { %v14827_v34 = vpop.permute.xlu1 %5078  ;;  %6703 = vmatpush1.msra.mxu1 %v6307_v48 }
 0x6d2   : > { %6704 = vmatprep.subr.mxu1 %v16578_v32 }
 0x6d3   : > { %6705 = vmatpush1.msra.mxu1 %v6306_v10  ;;  %v5448_v10 = vsel %vm16702_vm14, %v14291_v6, %v14655_v24 }
 0x6d4   : > { %v14850_v47 = vpop.permute.xlu0 %5174  ;;  %6706 = vmatprep.subr.mxu1 %v16578_v32  ;;  %v5462_v12 = vsel %vm2412_vm5, %v5448_v10, %v14629_v63 }
 0x6d5   : > { %v5360_v22 = vpop.permute.xlu1 %5359  ;;  %6707 = vmatpush1.msra.mxu1 %v6305_v30 }
 0x6d6   : > { %v5541_v5 = vsel %vm2577_vm10, %v5525_v19, %v5360_v22  ;;  %6708 = vmatprep.subr.mxu1 %v16578_v32  ;;  %v5478_v19 = vsel %vm2445_vm6, %v5462_v12, %v14660_v49 }
 0x6d7   : > { %v5494_v30 = vsel %vm2478_vm7, %v5478_v19, %v14681_v44 }
 0x6d8   : > { %v5413_v55 = vpop.permute.xlu0 %5412 }
 0x6d9   : > { %v14864_v4 = vpop.permute.xlu1 %4945  ;;  %v5557_v26 = vsel %vm2610_vm11, %v5541_v5, %v5413_v55 }
 0x6da   : > { %v5765_v42 = vcombine.high %v5557_v26, %v5557_v26  ;;  %v5772_v36 = vrot.slane %v5557_v26, %v14093_v29 }
 0x6dc   : > { %v5779_v40 = vrot.slane %v5765_v42, %v14093_v29  ;;  %v5780_v25 = vcombine.high %v5772_v36, %v5772_v36  ;;  %v6035_v2 = vrot.slane %v5772_v36, %v14124_v23  ;;  %v5023_v7 = vpop.permute.xlu0 %5022 }
 0x6dd   : > { %v5259_v15 = vpop.permute.xlu1 %5258 }
 0x6de   : > { %v5781_v61 = vcombine.high %v5779_v40, %v5779_v40  ;;  %v6039_v11 = vrot.slane %v5780_v25, %v14124_v23  ;;  %v6043_v59 = vrot.slane %v5779_v40, %v14124_v23  ;;  %v6157_v54 = vsel %vm16699_vm13, %v6035_v2, %v6156_v8  ;;  %vm16703_vm13 = vmmov %vm16702_vm14 }
 0x6df   : > { %v5510_v5 = vsel %vm2511_vm8, %v5494_v30, %v5259_v15  ;;  %v5450_v6 = vsel %vm16703_vm13, %v14434_v35, %v14744_v33 }
 0x6e0   : > { %v5308_v41 = vpop.permute.xlu0 %5307  ;;  %v6047_v57 = vrot.slane %v5781_v61, %v14124_v23  ;;  %v6158_v31 = vsel %vm16700_vm1, %v6039_v11, %v6157_v54  ;;  %v5464_v63 = vsel %vm2412_vm5, %v5450_v6, %v14801_v14  ;;  %vm16704_vm1 = vmmov %vm16703_vm13  ;;  %vm16708_vm13 = vcmask 1042434  }
 0x6e1   : > { %v4950_v56 = vpop.permute.xlu1 %4949  ;;  %v6159_v46 = vsel %vm6122_vm12, %v6043_v59, %v6158_v31  ;;  %v5526_v27 = vsel %vm2544_vm9, %v5510_v5, %v5308_v41  ;;  %v5480_v44 = vsel %vm2445_vm6, %v5464_v63, %v14827_v34 }
 0x6e2   : > { %v6160_v60 = vsel %vm6124_vm4, %v6047_v57, %v6159_v46  ;;  %v5496_v42 = vsel %vm2478_vm7, %v5480_v44, %v14850_v47  ;;  %v5451_v35 = vsel %vm16704_vm1, %v14431_v28, %v4950_v56 }
 0x6e3   : > { %9747 = vmatmul.mubr.msk.f32.gmra.mxu1 %vm16701_vm15, %v6160_v60  ;;  %vm16705_vm15 = vmmov %vm16704_vm1  ;;  %vm16710_vm1 = vcmask 1043459  }
 0x6e4   : > { %v5077_v22 = vpop.permute.xlu0 %5076  ;;  %v5449_v28 = vsel %vm16705_vm15, %v14286_v16, %v14864_v4  ;;  %vm16711_vm15 = vcmask 1044484  }
 0x6e5   : > { %v5263_v45 = vpop.permute.xlu1 %5262  ;;  %v5463_v56 = vsel %vm2412_vm5, %v5449_v28, %v5023_v7 }
 0x6e6   : > { %v5512_v15 = vsel %vm2511_vm8, %v5496_v42, %v5263_v45  ;;  %v5479_v45 = vsel %vm2445_vm6, %v5463_v56, %v5077_v22 }
 0x6e8   : > { %v5362_v3 = vpop.permute.xlu0 %5361 }
 0x6e9   : > { %v5027_v48 = vpop.permute.xlu1 %5026  ;;  %v5542_v24 = vsel %vm2577_vm10, %v5526_v27, %v5362_v3 }
 0x6ea   : > { %v5465_v14 = vsel %vm2412_vm5, %v5451_v35, %v5027_v48 }
 0x6ec   : > { %v5173_v20 = vpop.permute.xlu0 %5172 }
 0x6ed   : > { %v5312_v62 = vpop.permute.xlu1 %5311  ;;  %v5495_v4 = vsel %vm2478_vm7, %v5479_v45, %v5173_v20 }
 0x6ee   : > { %v5528_v33 = vsel %vm2544_vm9, %v5512_v15, %v5312_v62 }
 0x6f0   : > { %v5415_v17 = vpop.permute.xlu0 %5414 }
 0x6f1   : > { %v5081_v50 = vpop.permute.xlu1 %5080  ;;  %v5558_v49 = vsel %vm2610_vm11, %v5542_v24, %v5415_v17 }
 0x6f2   : > { %v5789_v40 = vrot.slane %v5558_v49, %v14093_v29  ;;  %v5782_v25 = vcombine.high %v5558_v49, %v5558_v49  ;;  %v5481_v8 = vsel %vm2445_vm6, %v5465_v14, %v5081_v50  ;;  %vm16706_vm6 = vcmask 1041409  }
 0x6f3   : > { %vm16707_vm14 = vmmov %vm16706_vm6 }
 0x6f4   : > { %v5261_v26 = vpop.permute.xlu0 %5260  ;;  %v5797_v11 = vcombine.high %v5789_v40, %v5789_v40  ;;  %v5796_v57 = vrot.slane %v5782_v25, %v14093_v29  ;;  %v6051_v17 = vrot.slane %v5789_v40, %v14124_v23 }
 0x6f5   : > { %v5366_v55 = vpop.permute.xlu1 %5365  ;;  %v5511_v5 = vsel %vm2511_vm8, %v5495_v4, %v5261_v26 }
 0x6f6   : > { %v5544_v2 = vsel %vm2577_vm10, %v5528_v33, %v5366_v55  ;;  %v6055_v62 = vrot.slane %v5797_v11, %v14124_v23  ;;  %v5798_v12 = vcombine.high %v5796_v57, %v5796_v57  ;;  %v6059_v6 = vrot.slane %v5796_v57, %v14124_v23 }
 0x6f8   : > { %v5265_v36 = vpop.permute.xlu0 %5264  ;;  %v6161_v24 = vsel %vm16707_vm14, %v6055_v62, %v6051_v17  ;;  %v6063_v26 = vrot.slane %v5798_v12, %v14124_v23  ;;  %vm16714_vm14 = vmmov %vm16711_vm15  ;;  %v6304_v12 = vld [vmem:[%s16693_s27] sm:$0xff] }
 0x6f9   : > { %v5177_v39 = vpop.permute.xlu1 %5176  ;;  %6709 = vmatpush1.msra.mxu1 %v6304_v12 }
 0x6fa   : > { %v5497_v59 = vsel %vm2478_vm7, %v5481_v8, %v5177_v39  ;;  %6738 = vmatprep.subr.mxu1 %v16578_v32 }
 0x6fb   : > { %v5513_v48 = vsel %vm2511_vm8, %v5497_v59, %v5265_v36  ;;  %vm16709_vm8 = vmmov %vm16708_vm13 }
 0x6fc   : > { %v5314_v61 = vpop.permute.xlu0 %5313  ;;  %v6162_v25 = vsel %vm16709_vm8, %v6059_v6, %v6161_v24  ;;  %vm16716_vm8 = vcmask 588800  }
 0x6fd   : > { %v5419_v34 = vpop.permute.xlu1 %5418  ;;  %v5529_v19 = vsel %vm2544_vm9, %v5513_v48, %v5314_v61 }
 0x6fe   : > { %v5560_v47 = vsel %vm2610_vm11, %v5544_v2, %v5419_v34 }
 0x6ff   : > { %v5816_v54 = vcombine.high %v5560_v47, %v5560_v47  ;;  %v5823_v41 = vrot.slane %v5560_v47, %v14093_v29 }
 0x700   : > { %v5368_v3 = vpop.permute.xlu0 %5367 }
 0x701   : > { %v5830_v31 = vrot.slane %v5816_v54, %v14093_v29  ;;  %v5831_v46 = vcombine.high %v5823_v41, %v5823_v41  ;;  %v5310_v60 = vpop.permute.xlu1 %5309  ;;  %v6083_v50 = vrot.slane %v5823_v41, %v14124_v23  ;;  %v5545_v55 = vsel %vm2577_vm10, %v5529_v19, %v5368_v3 }
 0x702   : > { %v5527_v44 = vsel %vm2544_vm9, %v5511_v5, %v5310_v60 }
 0x703   : > { %v5832_v10 = vcombine.high %v5830_v31, %v5830_v31  ;;  %v6087_v16 = vrot.slane %v5831_v46, %v14124_v23  ;;  %v6091_v7 = vrot.slane %v5830_v31, %v14124_v23 }
 0x704   : > { %v5421_v27 = vpop.permute.xlu0 %5420 }
 0x705   : > { %v6168_v22 = vsel %vm16706_vm6, %v6087_v16, %v6083_v50  ;;  %v5364_v30 = vpop.permute.xlu1 %5363  ;;  %v6095_v20 = vrot.slane %v5832_v10, %v14124_v23  ;;  %v5561_v63 = vsel %vm2610_vm11, %v5545_v55, %v5421_v27  ;;  %vm16713_vm6 = vcmask 1045509   ;;  %v6320_v27 = vld [vmem:[%s16693_s27 + $0x80] sm:$0xff] }
 0x706   : > { %v6169_v49 = vsel %vm16708_vm13, %v6091_v7, %v6168_v22  ;;  %v5833_v39 = vcombine.high %v5561_v63, %v5561_v63  ;;  %v5840_v42 = vrot.slane %v5561_v63, %v14093_v29  ;;  %v5543_v36 = vsel %vm2577_vm10, %v5527_v44, %v5364_v30  ;;  %vm16712_vm10 = vmmov %vm16710_vm1  ;;  %v6321_v30 = vld [vmem:[%s16693_s27 + $0x88] sm:$0xff] }
 0x707   : > { %v6170_v2 = vsel %vm16710_vm1, %v6095_v20, %v6169_v49  ;;  %v6163_v56 = vsel %vm16712_vm10, %v6063_v26, %v6162_v25  ;;  %vm16715_vm13 = vmmov %vm16713_vm6  ;;  %6739 = vmatpush2.msra.mxu1 %v6321_v30  ;;  %vm6638_vm10 = vcmask 785408  }
 0x708   : > { %v5847_v40 = vrot.slane %v5833_v39, %v14093_v29  ;;  %v5848_v35 = vcombine.high %v5840_v42, %v5840_v42  ;;  %v6099_v33 = vrot.slane %v5840_v42, %v14124_v23  ;;  %vm16717_vm1 = vmmov %vm16716_vm8  ;;  %6740 = vmatprep.subr.mxu1 %v16578_v32 }
 0x709   : > { %v5417_v15 = vpop.permute.xlu1 %5416  ;;  %6741 = vmatpush2.msra.mxu1 %v6320_v27 }
 0x70a   : > { %v5559_v14 = vsel %vm2610_vm11, %v5543_v36, %v5417_v15  ;;  %v5849_v61 = vcombine.high %v5847_v40, %v5847_v40  ;;  %v6103_v47 = vrot.slane %v5848_v35, %v14124_v23  ;;  %v6171_v11 = vsel %vm16711_vm15, %v6099_v33, %v6170_v2  ;;  %7728 = vmatprep.subr.mxu1 %v16578_v32 }
 0x70b   : > { %v5799_v34 = vcombine.high %v5559_v14, %v5559_v14  ;;  %v5806_v8 = vrot.slane %v5559_v14, %v14093_v29  ;;  %v6107_v59 = vrot.slane %v5847_v40, %v14124_v23  ;;  %vm6629_vm15 = vcmask 654336  }
 0x70c   : > { %v6172_v57 = vsel %vm16713_vm6, %v6103_v47, %v6171_v11  ;;  %v6111_v48 = vrot.slane %v5849_v61, %v14124_v23  ;;  %vm6647_vm6 = vcmask 916480  }
 0x70d   : > { %v5813_v54 = vrot.slane %v5799_v34, %v14093_v29  ;;  %v5814_v41 = vcombine.high %v5806_v8, %v5806_v8  ;;  %v6067_v28 = vrot.slane %v5806_v8, %v14124_v23  ;;  %v6173_v10 = vsel %vm6122_vm12, %v6107_v59, %v6172_v57 }
 0x70e   : > { %v6174_v4 = vsel %vm6124_vm4, %v6111_v48, %v6173_v10 }
 0x70f   : > { %v5815_v31 = vcombine.high %v5813_v54, %v5813_v54  ;;  %v6071_v46 = vrot.slane %v5814_v41, %v14124_v23  ;;  %v6075_v60 = vrot.slane %v5813_v54, %v14124_v23  ;;  %v6164_v45 = vsel %vm16714_vm14, %v6067_v28, %v6163_v56 }
 0x710   : > { %vm16728_vm14 = vcmask 1042434  }
 0x711   : > { %v6079_v3 = vrot.slane %v5815_v31, %v14124_v23  ;;  %v6165_v62 = vsel %vm16715_vm13, %v6071_v46, %v6164_v45  ;;  %vm16729_vm13 = vmmov %vm16728_vm14 }
 0x712   : > { %v6166_v50 = vsel %vm6122_vm12, %v6075_v60, %v6165_v62 }
 0x713   : > { %v6167_v16 = vsel %vm6124_vm4, %v6079_v3, %v6166_v50 }
 0x714   : > { %9749 = vmatprep.mubr.msk.f32.mxu1 %vm16716_vm8, %v6167_v16  ;;  %vm16730_vm8 = vcmask 1043459  }
 0x715   : > { %9750 = vmatmul.mubr.msk.f32.gmra.mxu1 %vm16717_vm1, %v6174_v4  ;;  %vm16731_vm1 = vmmov %vm16730_vm8 }
 0x716   : > { %9237 = vmatprep.mubr.msk.f32.mxu1 %vm2412_vm5, %v14788_v21 }
 0x722   : > { %v9745_v7 = vpop.f32.mrf.mxu1 }
 0x723   : > { %v14979_v17 = vadd.f32 %v9745_v7, %v14706_v0 }
 0x724   : > { %v6267_v19 = vpop.f32.mrf.mxu1 }
 0x725   : > { %v14983_v22 = vadd.f32 %v14706_v0, %v6267_v19  ;;  %v6299_v5 = vmax.f32 %v14979_v17, 0.0 }
 0x727   : > { %v6298_v55 = vmax.f32 %v14983_v22, 0.0  ;;  %v6334_v24 = vrot.slane %v6299_v5, 7 }
 0x729   : > { %v6333_v6 = vrot.slane %v6298_v55, 7  ;;  %v15009_v15 = vsel %vm968_vm0, 0.0, %v6334_v24  ;;  %v6358_v40 = vsel %vm968_vm0, %v6334_v24, 0.0 }
 0x72a   : > { %v6387_v14 = vrot.slane %v15009_v15, 1  ;;  %v6388_v25 = vrot.slane %v6358_v40, 1  ;;  %v6433_v34 = vrot.slane %v15009_v15, 2  ;;  %v6434_v8 = vrot.slane %v6358_v40, 2 }
 0x72b   : > { %v15000_v20 = vsel %vm968_vm0, 0.0, %v6333_v6  ;;  %v6357_v63 = vsel %vm968_vm0, %v6333_v6, 0.0 }
 0x72c   : > { %v6384_v49 = vrot.slane %v15000_v20, 1  ;;  %v6385_v44 = vrot.slane %v6357_v63, 1  ;;  %v6430_v39 = vrot.slane %v15000_v20, 2  ;;  %v6431_v42 = vrot.slane %v6357_v63, 2 }
 0x72d   : > { %v9973_v26 = vpack.i.bf16 %v15000_v20, %v14735_v18  ;;  %v15024_v61 = vsel %vm1437_vm2, %v6387_v14, %v6388_v25  ;;  %v15029_v11 = vsel %vm1614_vm3, %v6433_v34, %v6434_v8 }
 0x72e   : > { %v6386_v36 = vsel %vm1437_vm2, %v6384_v49, %v6385_v44  ;;  %v6432_v33 = vsel %vm1614_vm3, %v6430_v39, %v6431_v42 }
 0x72f   : > { %9974 = vrot.lane.b32.xlu0 %v9973_v26, %s16508_s6  ;;  %v9978_v35 = vpack.i.bf16 %v6386_v36, %v14761_v9  ;;  %v9988_v2 = vpack.i.bf16 %v6432_v33, %v14788_v21  ;;  %v9993_v9 = vpack.i.bf16 %v15009_v15, %v15000_v20  ;;  %v9998_v47 = vpack.i.bf16 %v15024_v61, %v6386_v36 }
 0x730   : > { %v10003_v21 = vpack.i.bf16 %v15029_v11, %v6432_v33 }
 0x731   : > { %9979 = vrot.lane.b32.xlu1 %v9978_v35, %s16506_s29 }
 0x732   : > { %v9950_v59 = vpop.permute.xlu1 %9949  ;;  %v9955_v54 = vpop.permute.xlu0 %9954 }
 0x733   : > { %9984 = vrot.lane.b32.xlu0 %v9978_v35, %s16581_s0  ;;  %v9951_v28 = vunpack.i.l.bf16 %v9950_v59  ;;  %v9952_v56 = vunpack.i.h.bf16 %v9950_v59  ;;  %v9956_v57 = vunpack.i.l.bf16 %v9955_v54  ;;  %v9957_v48 = vunpack.i.h.bf16 %v9955_v54 }
 0x735   : > { %9989 = vrot.lane.b32.xlu1 %v9988_v2, %s16718_s30  ;;  %v6597_v31 = vsel %vm2412_vm5, %v16689_v51, %v9951_v28  ;;  %v6598_v3 = vsel %vm2412_vm5, %v14739_v1, %v9952_v56 }
 0x736   : > { %v9960_v41 = vpop.permute.xlu1 %9959  ;;  %v9965_v60 = vpop.permute.xlu0 %9964  ;;  %v15039_v62 = vsel %vm2478_vm7, %v6597_v31, %v9956_v57  ;;  %v6606_v19 = vsel %vm2478_vm7, %v6598_v3, %v9957_v48 }
 0x737   : > { %9994 = vrot.lane.b32.xlu0 %v9993_v9, %s16719_s2  ;;  %v9961_v46 = vunpack.i.l.bf16 %v9960_v41  ;;  %v9966_v10 = vunpack.i.l.bf16 %v9965_v60  ;;  %v9962_v50 = vunpack.i.h.bf16 %v9960_v41  ;;  %v9967_v6 = vunpack.i.h.bf16 %v9965_v60 }
 0x739   : > { %9999 = vrot.lane.b32.xlu1 %v9998_v47, %s16579_s28  ;;  %v6613_v16 = vsel %vm2544_vm9, %v15039_v62, %v9961_v46  ;;  %v6614_v49 = vsel %vm2544_vm9, %v6606_v19, %v9962_v50 }
 0x73a   : > { %v9970_v45 = vpop.permute.xlu1 %9969  ;;  %v6621_v1 = vsel %vm2610_vm11, %v6613_v16, %v9966_v10  ;;  %v6622_v25 = vsel %vm2610_vm11, %v6614_v49, %v9967_v6 }
 0x73b   : > { %10004 = vrot.lane.b32.xlu0 %v10003_v21, %s16720_s9  ;;  %v9971_v4 = vunpack.i.l.bf16 %v9970_v45  ;;  %v9972_v44 = vunpack.i.h.bf16 %v9970_v45 }
 0x73d   : > { %v6630_v39 = vsel %vm6629_vm15, %v6621_v1, %v9971_v4  ;;  %v6631_v8 = vsel %vm6629_vm15, %v6622_v25, %v9972_v44 }
 0x7a1   : > { %v9975_v7 = vpop.permute.xlu0 %9974 }
 0x7a2   : > { %v9976_v12 = vunpack.i.l.bf16 %v9975_v7  ;;  %v9977_v26 = vunpack.i.h.bf16 %v9975_v7 }
 0x7a3   : > { %v9980_v30 = vpop.permute.xlu1 %9979  ;;  %v9748_v27 = vpop.f32.mrf.mxu1 }
 0x7a4   : > { %v9981_v24 = vunpack.i.l.bf16 %v9980_v30  ;;  %v15046_v63 = vadd.f32 %v9748_v27, %v14706_v0  ;;  %v6639_v40 = vsel %vm6638_vm10, %v6630_v39, %v9976_v12  ;;  %v9982_v35 = vunpack.i.h.bf16 %v9980_v30 }
 0x7a5   : > { %v6277_v42 = vpop.f32.mrf.mxu1  ;;  %v6640_v47 = vsel %vm6638_vm10, %v6631_v8, %v9977_v26 }
 0x7a6   : > { %v15051_v36 = vadd.f32 %v14706_v0, %v6277_v42  ;;  %v6648_v14 = vsel %vm6647_vm6, %v6639_v40, %v9981_v24  ;;  %v6301_v2 = vmax.f32 %v15046_v63, 0.0  ;;  %v6649_v21 = vsel %vm6647_vm6, %v6640_v47, %v9982_v35  ;;  %v7273_v63 = vld [vmem:[%s16373_s13 + $0x80] sm:$0xff] }
 0x7a7   : > { %6743 = vmatmul.mubr.f32.vlgmr.msra.gmra.mxu1 %v6648_v14 }
 0x7a8   : > { %v6300_v34 = vmax.f32 %v15051_v36, 0.0  ;;  %9238 = vmatprep.mubr.msk.f32.mxu1 %vm2412_vm5, %v6432_v33  ;;  %v6336_v59 = vrot.slane %v6301_v2, 7  ;;  %v7257_v36 = vld [vmem:[%s16373_s13] sm:$0xff] }
 0x7aa   : > { %v6335_v9 = vrot.slane %v6300_v34, 7  ;;  %v15078_v60 = vsel %vm968_vm0, 0.0, %v6336_v59  ;;  %v6360_v45 = vsel %vm968_vm0, %v6336_v59, 0.0 }
 0x7ab   : > { %6748 = vmatmul.mubr.f32.gmra.mxu1 %v6649_v21  ;;  %v6393_v10 = vrot.slane %v15078_v60, 1  ;;  %v6394_v50 = vrot.slane %v6360_v45, 1  ;;  %v6439_v4 = vrot.slane %v15078_v60, 2  ;;  %v6440_v7 = vrot.slane %v6360_v45, 2 }
 0x7ac   : > { %v15067_v54 = vsel %vm968_vm0, 0.0, %v6335_v9  ;;  %v6359_v41 = vsel %vm968_vm0, %v6335_v9, 0.0  ;;  %9239 = vmatprep.mubr.msk.f32.mxu1 %vm2412_vm5, %v15029_v11 }
 0x7ad   : > { %v6390_v33 = vrot.slane %v15067_v54, 1  ;;  %v6391_v28 = vrot.slane %v6359_v41, 1  ;;  %v6436_v56 = vrot.slane %v15067_v54, 2  ;;  %v6437_v57 = vrot.slane %v6359_v41, 2 }
 0x7ae   : > { %v10008_v31 = vpack.i.bf16 %v15067_v54, %v15009_v15  ;;  %v6395_v12 = vsel %vm1437_vm2, %v6393_v10, %v6394_v50  ;;  %v15099_v30 = vsel %vm1614_vm3, %v6439_v4, %v6440_v7  ;;  %v9985_v50 = vpop.permute.xlu0 %9984 }
 0x7af   : > { %v6392_v46 = vsel %vm1437_vm2, %v6390_v33, %v6391_v28  ;;  %v15084_v3 = vsel %vm1614_vm3, %v6436_v56, %v6437_v57  ;;  %v9986_v7 = vunpack.i.l.bf16 %v9985_v50 }
 0x7b0   : > { %v10013_v48 = vpack.i.bf16 %v6392_v46, %v15024_v61  ;;  %10009 = vrot.lane.b32.xlu1 %v10008_v31, %s16508_s6  ;;  %v10023_v16 = vpack.i.bf16 %v15084_v3, %v15029_v11  ;;  %v10028_v61 = vpack.i.bf16 %v15078_v60, %v15067_v54  ;;  %v10033_v19 = vpack.i.bf16 %v6395_v12, %v6392_v46 }
 0x7b1   : > { %v10038_v11 = vpack.i.bf16 %v15099_v30, %v15084_v3 }
 0x7b2   : > { %10014 = vrot.lane.b32.xlu0 %v10013_v48, %s16506_s29  ;;  %v9995_v4 = vpop.permute.xlu0 %9994 }
 0x7b4   : > { %10019 = vrot.lane.b32.xlu1 %v10013_v48, %s16581_s0 }
 0x7b6   : > { %10024 = vrot.lane.b32.xlu0 %v10023_v16, %s16718_s30  ;;  %v9990_v16 = vpop.permute.xlu1 %9989 }
 0x7b8   : > { %10029 = vrot.lane.b32.xlu1 %v10028_v61, %s16719_s2  ;;  %v9991_v61 = vunpack.i.l.bf16 %v9990_v16 }
 0x7ba   : > { %10034 = vrot.lane.b32.xlu0 %v10033_v19, %s16579_s28  ;;  %v9987_v19 = vunpack.i.h.bf16 %v9985_v50 }
 0x7bc   : > { %10039 = vrot.lane.b32.xlu1 %v10038_v11, %s16720_s9  ;;  %v6599_v11 = vsel %vm2412_vm5, %v14735_v18, %v9986_v7 }
 0x7d5   : > { %v9751_v27 = vpop.f32.mrf.mxu1 }
 0x7d6   : > { %v15105_v6 = vadd.f32 %v9751_v27, %v14706_v0  ;;  %v9996_v27 = vunpack.i.l.bf16 %v9995_v4 }
 0x7d7   : > { %v6287_v1 = vpop.f32.mrf.mxu1 }
 0x7d8   : > { %v15108_v24 = vadd.f32 %v14706_v0, %v6287_v1  ;;  %v6303_v49 = vmax.f32 %v15105_v6, 0.0  ;;  %v9992_v1 = vunpack.i.h.bf16 %v9990_v16 }
 0x7da   : > { %v6302_v44 = vmax.f32 %v15108_v24, 0.0  ;;  %v6338_v42 = vrot.slane %v6303_v49, 7 }
 0x7dc   : > { %v6337_v39 = vrot.slane %v6302_v44, 7  ;;  %v6354_v47 = vsel %vm968_vm0, 0.0, %v6338_v42  ;;  %v6362_v21 = vsel %vm968_vm0, %v6338_v42, 0.0 }
 0x7dd   : > { %v6495_v33 = vrot.slane %v6354_v47, 1  ;;  %v6496_v28 = vrot.slane %v6362_v21, 1  ;;  %v6523_v45 = vrot.slane %v6362_v21, 2  ;;  %v6522_v48 = vrot.slane %v6354_v47, 2 }
 0x7de   : > { %v15117_v26 = vsel %vm968_vm0, 0.0, %v6337_v39  ;;  %v6361_v40 = vsel %vm968_vm0, %v6337_v39, 0.0  ;;  %v6607_v39 = vsel %vm2478_vm7, %v6599_v11, %v9991_v61 }
 0x7df   : > { %v6396_v35 = vrot.slane %v15117_v26, 1  ;;  %v6397_v14 = vrot.slane %v6361_v40, 1  ;;  %v6442_v0 = vrot.slane %v15117_v26, 2  ;;  %v6443_v25 = vrot.slane %v6361_v40, 2  ;;  %v10005_v40 = vpop.permute.xlu0 %10004 }
 0x7e0   : > { %v10043_v8 = vpack.i.bf16 %v15117_v26, %v15078_v60  ;;  %v10063_v57 = vpack.i.bf16 %v6354_v47, %v15117_v26  ;;  %v6497_v31 = vsel %vm1437_vm2, %v6495_v33, %v6496_v28  ;;  %v15145_v10 = vsel %vm1614_vm3, %v6522_v48, %v6523_v45 }
 0x7e1   : > { %v6398_v9 = vsel %vm1437_vm2, %v6396_v35, %v6397_v14  ;;  %v15129_v41 = vsel %vm1614_vm3, %v6442_v0, %v6443_v25  ;;  %v6600_v35 = vsel %vm2412_vm5, %v15000_v20, %v9987_v19  ;;  %v6615_v14 = vsel %vm2544_vm9, %v6607_v39, %v9996_v27 }
 0x7e2   : > { %10044 = vrot.lane.b32.xlu0 %v10043_v8, %s16508_s6  ;;  %v10048_v59 = vpack.i.bf16 %v6398_v9, %v6395_v12  ;;  %v10058_v56 = vpack.i.bf16 %v15129_v41, %v15099_v30  ;;  %v10068_v46 = vpack.i.bf16 %v6497_v31, %v6398_v9  ;;  %v10000_v12 = vpop.permute.xlu1 %9999  ;;  %v10006_v0 = vunpack.i.l.bf16 %v10005_v40 }
 0x7e3   : > { %v10001_v42 = vunpack.i.l.bf16 %v10000_v12  ;;  %v6608_v25 = vsel %vm2478_vm7, %v6600_v35, %v9992_v1  ;;  %v10002_v8 = vunpack.i.h.bf16 %v10000_v12  ;;  %v10007_v33 = vunpack.i.h.bf16 %v10005_v40 }
 0x7e4   : > { %10049 = vrot.lane.b32.xlu1 %v10048_v59, %s16506_s29 }
 0x7e5   : > { %v6623_v9 = vsel %vm2610_vm11, %v6615_v14, %v10001_v42 }
 0x7e6   : > { %10054 = vrot.lane.b32.xlu0 %v10048_v59, %s16581_s0 }
 0x7e8   : > { %10059 = vrot.lane.b32.xlu1 %v10058_v56, %s16718_s30  ;;  %v6632_v56 = vsel %vm6629_vm15, %v6623_v9, %v10006_v0 }
 0x7ea   : > { %10064 = vrot.lane.b32.xlu0 %v10063_v57, %s16719_s2 }
 0x7ec   : > { %10069 = vrot.lane.b32.xlu1 %v10068_v46, %s16579_s28 }
 0x7ee   : > { %6537 = vrot.lane.b32.xlu0 %v15129_v41, %s16720_s9 }
 0x7f0   : > { %6561 = vrot.lane.b32.xlu1 %v6354_v47, %s16508_s6 }
 0x7f2   : > { %6585 = vrot.lane.b32.xlu0 %v6497_v31, %s16506_s29 }
 0x7f4   : > { %6539 = vrot.lane.b32.xlu1 %v15145_v10, %s16720_s9 }
 0x7f6   : > { %6563 = vrot.lane.b32.xlu0 %v16689_v51, %s16508_s6 }
 0x7f8   : > { %6587 = vrot.lane.b32.xlu1 %v14732_v37, %s16506_s29  ;;  %v9997_v37 = vunpack.i.h.bf16 %v9995_v4  ;;  %s9292_s29 = sshll.u32 %s10577_s7, 8 }
 0x7fa   : > { %v6616_v59 = vsel %vm2544_vm9, %v6608_v25, %v9997_v37 }
 0x7fb   : > { %v6624_v20 = vsel %vm2610_vm11, %v6616_v59, %v10002_v8 }
 0x7fc   : > { %v6633_v48 = vsel %vm6629_vm15, %v6624_v20, %v10007_v33 }
 0x822   : > { %v10010_v47 = vpop.permute.xlu1 %10009 }
 0x823   : > { %v10011_v18 = vunpack.i.l.bf16 %v10010_v47  ;;  %v10012_v57 = vunpack.i.h.bf16 %v10010_v47 }
 0x824   : > { %v10015_v21 = vpop.permute.xlu0 %10014 }
 0x825   : > { %v10016_v28 = vunpack.i.l.bf16 %v10015_v21  ;;  %v6641_v31 = vsel %vm6638_vm10, %v6632_v56, %v10011_v18  ;;  %v10017_v46 = vunpack.i.h.bf16 %v10015_v21  ;;  %v6642_v50 = vsel %vm6638_vm10, %v6633_v48, %v10012_v57 }
 0x826   : > { %v10020_v4 = vpop.permute.xlu1 %10019 }
 0x827   : > { %v6650_v45 = vsel %vm6647_vm6, %v6641_v31, %v10016_v28  ;;  %v6651_v16 = vsel %vm6647_vm6, %v6642_v50, %v10017_v46  ;;  %v10021_v12 = vunpack.i.l.bf16 %v10020_v4  ;;  %v10022_v27 = vunpack.i.h.bf16 %v10020_v4 }
 0x828   : > { %6753 = vmatmul.mubr.f32.gmra.mxu1 %v6650_v45  ;;  %v10025_v7 = vpop.permute.xlu0 %10024 }
 0x829   : > { %9240 = vmatprep.mubr.msk.f32.mxu1 %vm2412_vm5, %v15084_v3  ;;  %v10026_v19 = vunpack.i.l.bf16 %v10025_v7  ;;  %v6601_v3 = vsel %vm2412_vm5, %v15009_v15, %v10021_v12  ;;  %v10027_v39 = vunpack.i.h.bf16 %v10025_v7  ;;  %v6602_v37 = vsel %vm2412_vm5, %v15067_v54, %v10022_v27 }
 0x82a   : > { %v10030_v61 = vpop.permute.xlu1 %10029 }
 0x82b   : > { %v10031_v1 = vunpack.i.l.bf16 %v10030_v61  ;;  %v6609_v42 = vsel %vm2478_vm7, %v6601_v3, %v10026_v19  ;;  %v6610_v25 = vsel %vm2478_vm7, %v6602_v37, %v10027_v39 }
 0x82c   : > { %6758 = vmatmul.mubr.f32.gmra.mxu1 %v6651_v16  ;;  %v10035_v11 = vpop.permute.xlu0 %10034 }
 0x82d   : > { %9241 = vmatprep.mubr.msk.f32.mxu1 %vm2412_vm5, %v15099_v30  ;;  %v10036_v40 = vunpack.i.l.bf16 %v10035_v11  ;;  %v10032_v30 = vunpack.i.h.bf16 %v10030_v61  ;;  %v6617_v14 = vsel %vm2544_vm9, %v6609_v42, %v10031_v1  ;;  %v10037_v8 = vunpack.i.h.bf16 %v10035_v11 }
 0x82e   : > { %v10040_v35 = vpop.permute.xlu1 %10039 }
 0x82f   : > { %v10041_v0 = vunpack.i.l.bf16 %v10040_v35  ;;  %v6625_v9 = vsel %vm2610_vm11, %v6617_v14, %v10036_v40  ;;  %v6618_v21 = vsel %vm2544_vm9, %v6610_v25, %v10032_v30  ;;  %v10042_v59 = vunpack.i.h.bf16 %v10040_v35 }
 0x830   : > { %v6626_v54 = vsel %vm2610_vm11, %v6618_v21, %v10037_v8  ;;  %v15214_v21 = vld [vmem:[%s16721_s10] ss:$0 sm:$0xff]  ;;  %s16724_s10 = smov 112  }
 0x831   : > { %v6634_v28 = vsel %vm6629_vm15, %v6625_v9, %v10041_v0  ;;  %v6635_v16 = vsel %vm6629_vm15, %v6626_v54, %v10042_v59 }
 0x854   : > { %v10045_v47 = vpop.permute.xlu0 %10044 }
 0x855   : > { %v10046_v15 = vunpack.i.l.bf16 %v10045_v47  ;;  %v10047_v56 = vunpack.i.h.bf16 %v10045_v47 }
 0x856   : > { %v10050_v18 = vpop.permute.xlu1 %10049 }
 0x857   : > { %v10051_v33 = vunpack.i.l.bf16 %v10050_v18  ;;  %v6643_v57 = vsel %vm6638_vm10, %v6634_v28, %v10046_v15  ;;  %v10052_v31 = vunpack.i.h.bf16 %v10050_v18  ;;  %v6644_v61 = vsel %vm6638_vm10, %v6635_v16, %v10047_v56 }
 0x858   : > { %v10055_v20 = vpop.permute.xlu0 %10054 }
 0x859   : > { %v10056_v46 = vunpack.i.l.bf16 %v10055_v20  ;;  %v6652_v45 = vsel %vm6647_vm6, %v6643_v57, %v10051_v33  ;;  %v10057_v12 = vunpack.i.h.bf16 %v10055_v20  ;;  %v6653_v27 = vsel %vm6647_vm6, %v6644_v61, %v10052_v31 }
 0x85a   : > { %v10060_v48 = vpop.permute.xlu1 %10059  ;;  %6763 = vmatmul.mubr.f32.gmra.mxu1 %v6652_v45 }
 0x85b   : > { %v10061_v50 = vunpack.i.l.bf16 %v10060_v48  ;;  %9242 = vmatprep.mubr.msk.f32.mxu1 %vm2412_vm5, %v15129_v41  ;;  %v6603_v4 = vsel %vm2412_vm5, %v15078_v60, %v10056_v46  ;;  %v10062_v3 = vunpack.i.h.bf16 %v10060_v48  ;;  %v6604_v60 = vsel %vm2412_vm5, %v15117_v26, %v10057_v12 }
 0x85c   : > { %v10065_v7 = vpop.permute.xlu0 %10064 }
 0x85d   : > { %v6611_v19 = vsel %vm2478_vm7, %v6603_v4, %v10061_v50  ;;  %v10066_v11 = vunpack.i.l.bf16 %v10065_v7  ;;  %v10067_v40 = vunpack.i.h.bf16 %v10065_v7  ;;  %v6612_v37 = vsel %vm2478_vm7, %v6604_v60, %v10062_v3 }
 0x85e   : > { %v10070_v1 = vpop.permute.xlu1 %10069  ;;  %6768 = vmatmul.mubr.f32.gmra.mxu1 %v6653_v27 }
 0x85f   : > { %v10071_v39 = vunpack.i.l.bf16 %v10070_v1  ;;  %9243 = vmatprep.mubr.msk.f32.mxu1 %vm2412_vm5, %v15145_v10  ;;  %v6619_v42 = vsel %vm2544_vm9, %v6611_v19, %v10066_v11  ;;  %v10072_v30 = vunpack.i.h.bf16 %v10070_v1  ;;  %v6620_v9 = vsel %vm2544_vm9, %v6612_v37, %v10067_v40 }
 0x860   : > { %v6538_v41 = vpop.permute.xlu0 %6537 }
 0x861   : > { %v6627_v35 = vsel %vm2610_vm11, %v6619_v42, %v10071_v39  ;;  %v6628_v26 = vsel %vm2610_vm11, %v6620_v9, %v10072_v30  ;;  %v6803_v9 = vld [vmem:[%s16722_s11 + $0x60] sm:$0xff] }
 0x862   : > { %v6636_v14 = vsel %vm6629_vm15, %v6627_v35, %v6538_v41  ;;  %v6562_v0 = vpop.permute.xlu1 %6561 }
 0x863   : > { %v6645_v25 = vsel %vm6638_vm10, %v6636_v14, %v6562_v0 }
 0x864   : > { %v6586_v8 = vpop.permute.xlu0 %6585 }
 0x865   : > { %v6654_v10 = vsel %vm6647_vm6, %v6645_v25, %v6586_v8  ;;  %v6806_v25 = vld [vmem:[%s16722_s11 + $0x78] sm:$0xff]  ;;  %v6805_v8 = vld [vmem:[%s16722_s11 + $0x70] sm:$0xff] }
 0x866   : > { %6773 = vmatmul.mubr.f32.gmra.mxu1 %v6654_v10  ;;  %v6540_v47 = vpop.permute.xlu1 %6539  ;;  %7145 = vmatpush1.msra.mxu0 %v6806_v25  ;;  %v6804_v10 = vld [vmem:[%s16722_s11 + $0x68] sm:$0xff] }
 0x867   : > { %v6637_v15 = vsel %vm6629_vm15, %v6628_v26, %v6540_v47  ;;  %9244 = vmatprep.mubr.msk.f32.mxu1 %vm2412_vm5, %v14725_v52  ;;  %v6744_v33 = vpop.f32.mrf.mxu1  ;;  %7146 = vmatprep.subr.mxu0 %v16578_v32  ;;  %v6802_v47 = vld [vmem:[%s16722_s11 + $0x58] sm:$0xff]  ;;  %v6801_v26 = vld [vmem:[%s16722_s11 + $0x50] sm:$0xff] }
 0x868   : > { %v15209_v18 = vpop.permute.xlu0 %6563  ;;  %v6745_v54 = vadd.f32 %v15214_v21, %v6744_v33  ;;  %7147 = vmatpush1.msra.mxu0 %v6805_v8  ;;  %v6798_v33 = vld [vmem:[%s16722_s11 + $0x38] sm:$0xff] }
 0x869   : > { %v6646_v59 = vsel %vm6638_vm10, %v6637_v15, %v15209_v18  ;;  %v6746_v20 = vpop.f32.mrf.mxu1  ;;  %7148 = vmatprep.subr.mxu0 %v16578_v32  ;;  %v6800_v15 = vld [vmem:[%s16722_s11 + $0x48] sm:$0xff] }
 0x86a   : > { %v15218_v28 = vpop.permute.xlu1 %6587  ;;  %v6783_v57 = vmax.f32 %v6745_v54, 0.0  ;;  %7149 = vmatpush1.msra.mxu0 %v6804_v10  ;;  %v6797_v54 = vld [vmem:[%s16722_s11 + $0x30] sm:$0xff]  ;;  %v6795_v20 = vld [vmem:[%s16722_s11 + $0x20] sm:$0xff] }
 0x86b   : > { %v6655_v56 = vsel %vm6647_vm6, %v6646_v59, %v15218_v28  ;;  %v6749_v31 = vpop.f32.mrf.mxu1  ;;  %7150 = vmatprep.subr.mxu0 %v16578_v32  ;;  %v6799_v59 = vld [vmem:[%s16722_s11 + $0x40] sm:$0xff] }
 0x86c   : > { %6778 = vmatmul.mubr.f32.gmra.mxu1 %v6655_v56  ;;  %v6818_v46 = vrot.slane %v6783_v57, 7  ;;  %v6750_v45 = vadd.f32 %v15214_v21, %v6749_v31  ;;  %7151 = vmatpush1.msra.mxu0 %v6803_v9  ;;  %v6796_v56 = vld [vmem:[%s16722_s11 + $0x28] sm:$0xff]  ;;  %v6794_v57 = vld [vmem:[%s16722_s11 + $0x18] sm:$0xff]  ;;  %v6793_v31 = vld [vmem:[%s16722_s11 + $0x10] sm:$0xff] }
 0x86d   : > { %v6751_v48 = vpop.f32.mrf.mxu1  ;;  %7152 = vmatprep.subr.mxu0 %v16578_v32 }
 0x86e   : > { %v15225_v50 = vsel %vm968_vm0, 0.0, %v6818_v46  ;;  %v6842_v16 = vsel %vm968_vm0, %v6818_v46, 0.0  ;;  %v6784_v4 = vmax.f32 %v6750_v45, 0.0  ;;  %7153 = vmatpush1.msra.mxu0 %v6802_v47  ;;  %v6792_v46 = vld [vmem:[%s16722_s11 + $0x8] sm:$0xff]  ;;  %v6791_v45 = vld [vmem:[%s16722_s11] sm:$0xff] }
 0x86f   : > { %v6864_v61 = vrot.slane %v15225_v50, 1  ;;  %v6865_v12 = vrot.slane %v6842_v16, 1  ;;  %v6906_v42 = vrot.slane %v15225_v50, 2  ;;  %v6907_v60 = vrot.slane %v6842_v16, 2  ;;  %7154 = vmatprep.subr.mxu0 %v16578_v32  ;;  %v6808_v16 = vld [vmem:[%s16722_s11 + $0x88] sm:$0xff] }
 0x870   : > { %v6819_v7 = vrot.slane %v6784_v4, 7  ;;  %7155 = vmatpush1.msra.mxu0 %v6801_v26 }
 0x871   : > { %v6866_v35 = vsel %vm1437_vm2, %v6864_v61, %v6865_v12  ;;  %v6908_v14 = vsel %vm1614_vm3, %v6906_v42, %v6907_v60  ;;  %7156 = vmatprep.subr.mxu0 %v16578_v32 }
 0x872   : > { %v15230_v19 = vsel %vm968_vm0, 0.0, %v6819_v7  ;;  %v6843_v11 = vsel %vm968_vm0, %v6819_v7, 0.0  ;;  %7157 = vmatpush1.msra.mxu0 %v6800_v15 }
 0x873   : > { %v6867_v27 = vrot.slane %v15230_v19, 1  ;;  %v6868_v3 = vrot.slane %v6843_v11, 1  ;;  %v6910_v1 = vrot.slane %v6843_v11, 2  ;;  %v10073_v39 = vpack.i.bf16 %v15230_v19, %v15225_v50  ;;  %7158 = vmatprep.subr.mxu0 %v16578_v32 }
 0x874   : > { %v6909_v41 = vrot.slane %v15230_v19, 2  ;;  %7159 = vmatpush1.msra.mxu0 %v6799_v59 }
 0x875   : > { %v15239_v40 = vsel %vm1437_vm2, %v6867_v27, %v6868_v3  ;;  %10074 = vrot.lane.b32.xlu0 %v10073_v39, %s16719_s2  ;;  %7160 = vmatprep.subr.mxu0 %v16578_v32 }
 0x876   : > { %v6911_v37 = vsel %vm1614_vm3, %v6909_v41, %v6910_v1  ;;  %v10078_v30 = vpack.i.bf16 %v15239_v40, %v6866_v35  ;;  %7161 = vmatpush1.msra.mxu0 %v6798_v33  ;;  %v6807_v1 = vld [vmem:[%s16722_s11 + $0x80] sm:$0xff]  ;;  %s10334_s11 = sshll.u32 %s10424_s5, 4  ;;  %s10335_s11 = int_to_ptr.vmem [resolvable:$false] %s10334_s11 }
 0x877   : > { %9246 = vmatprep.mubr.msk.f32.mxu0 %vm2412_vm5, %v6911_v37  ;;  %v10088_v0 = vpack.i.bf16 %v6911_v37, %v6908_v14  ;;  %7162 = vmatprep.subr.mxu0 %v16578_v32  ;;  %s10336_s8 = scalar_lea.vmem %s10335_s11, 512 }
 0x878   : > { %10079 = vrot.lane.b32.xlu1 %v10078_v30, %s16579_s28  ;;  %7163 = vmatpush1.msra.mxu0 %v6797_v54 }
 0x879   : > { %10084 = vrot.lane.b32.xlu0 %v10078_v30, %s16581_s0  ;;  %7164 = vmatprep.subr.mxu0 %v16578_v32 }
 0x87a   : > { %7165 = vmatpush1.msra.mxu0 %v6796_v56 }
 0x87b   : > { %7166 = vmatprep.subr.mxu0 %v16578_v32 }
 0x87c   : > { %10089 = vrot.lane.b32.xlu1 %v10088_v0, %s16720_s9  ;;  %7167 = vmatpush1.msra.mxu0 %v6795_v20 }
 0x87d   : > { %10094 = vrot.lane.b32.xlu0 %v10088_v0, %s16718_s30  ;;  %7168 = vmatprep.subr.mxu0 %v16578_v32 }
 0x87e   : > { %7169 = vmatpush1.msra.mxu0 %v6794_v57 }
 0x87f   : > { %7170 = vmatprep.subr.mxu0 %v16578_v32 }
 0x880   : > { %7171 = vmatpush1.msra.mxu0 %v6793_v31 }
 0x881   : > { %7172 = vmatprep.subr.mxu0 %v16578_v32 }
 0x882   : > { %7173 = vmatpush1.msra.mxu0 %v6792_v46 }
 0x883   : > { %7174 = vmatprep.subr.mxu0 %v16578_v32 }
 0x884   : > { %7175 = vmatpush1.msra.mxu0 %v6791_v45 }
 0x885   : > { %7204 = vmatprep.subr.mxu0 %v16578_v32 }
 0x886   : > { %7205 = vmatpush2.msra.mxu0 %v6808_v16 }
 0x887   : > { %7206 = vmatprep.subr.mxu0 %v16578_v32 }
 0x888   : > { %7207 = vmatpush2.msra.mxu0 %v6807_v1 }
 0x8e8   : > { %v6754_v48 = vpop.f32.mrf.mxu1 }
 0x8e9   : > { %v6755_v4 = vadd.f32 %v15214_v21, %v6754_v48 }
 0x8ea   : > { %v6756_v7 = vpop.f32.mrf.mxu1 }
 0x8eb   : > { %v6785_v61 = vmax.f32 %v6755_v4, 0.0 }
 0x8ec   : > { %v6759_v12 = vpop.f32.mrf.mxu1 }
 0x8ed   : > { %v6820_v11 = vrot.slane %v6785_v61, 7  ;;  %v6760_v27 = vadd.f32 %v15214_v21, %v6759_v12 }
 0x8ee   : > { %v6761_v3 = vpop.f32.mrf.mxu1 }
 0x8ef   : > { %v15325_v39 = vsel %vm968_vm0, 0.0, %v6820_v11  ;;  %v6844_v41 = vsel %vm968_vm0, %v6820_v11, 0.0  ;;  %v6786_v35 = vmax.f32 %v6760_v27, 0.0 }
 0x8f0   : > { %v6870_v42 = vrot.slane %v15325_v39, 1  ;;  %v6871_v60 = vrot.slane %v6844_v41, 1  ;;  %v10098_v30 = vpack.i.bf16 %v15325_v39, %v15230_v19  ;;  %v6913_v59 = vrot.slane %v6844_v41, 2 }
 0x8f1   : > { %v6821_v14 = vrot.slane %v6786_v35, 7 }
 0x8f2   : > { %v6872_v37 = vsel %vm1437_vm2, %v6870_v42, %v6871_v60  ;;  %10099 = vrot.lane.b32.xlu1 %v10098_v30, %s16723_s3 }
 0x8f3   : > { %v10103_v0 = vpack.i.bf16 %v6872_v37, %v15239_v40  ;;  %v15335_v25 = vsel %vm968_vm0, 0.0, %v6821_v14  ;;  %v6845_v8 = vsel %vm968_vm0, %v6821_v14, 0.0  ;;  %v6912_v40 = vrot.slane %v15325_v39, 2 }
 0x8f4   : > { %v6873_v10 = vrot.slane %v15335_v25, 1  ;;  %v6874_v9 = vrot.slane %v6845_v8, 1  ;;  %v6915_v47 = vrot.slane %v15335_v25, 2  ;;  %v6916_v26 = vrot.slane %v6845_v8, 2 }
 0x8f5   : > { %10104 = vrot.lane.b32.xlu0 %v10103_v0, %s16724_s10  ;;  %v10108_v15 = vpack.i.bf16 %v15335_v25, %v15325_v39  ;;  %v15351_v20 = vsel %vm1614_vm3, %v6912_v40, %v6913_v59 }
 0x8f6   : > { %v6875_v33 = vsel %vm1437_vm2, %v6873_v10, %v6874_v9  ;;  %v15347_v56 = vsel %vm1614_vm3, %v6915_v47, %v6916_v26 }
 0x8f7   : > { %10109 = vrot.lane.b32.xlu1 %v10108_v15, %s16719_s2  ;;  %v10113_v54 = vpack.i.bf16 %v6875_v33, %v6872_v37  ;;  %v10123_v57 = vpack.i.bf16 %v15347_v56, %v15351_v20 }
 0x8f9   : > { %10114 = vrot.lane.b32.xlu0 %v10113_v54, %s16579_s28 }
 0x8fb   : > { %10119 = vrot.lane.b32.xlu1 %v10113_v54, %s16581_s0 }
 0x8fd   : > { %10124 = vrot.lane.b32.xlu0 %v10123_v57, %s16720_s9 }
 0x8ff   : > { %10129 = vrot.lane.b32.xlu1 %v10123_v57, %s16718_s30 }
 0x91a   : > { %v6764_v31 = vpop.f32.mrf.mxu1 }
 0x91b   : > { %v6765_v46 = vadd.f32 %v15214_v21, %v6764_v31 }
 0x91c   : > { %v6766_v45 = vpop.f32.mrf.mxu1 }
 0x91d   : > { %v6787_v48 = vmax.f32 %v6765_v46, 0.0 }
 0x91e   : > { %v6769_v16 = vpop.f32.mrf.mxu1 }
 0x91f   : > { %v6822_v4 = vrot.slane %v6787_v48, 7  ;;  %v6770_v7 = vadd.f32 %v15214_v21, %v6769_v16 }
 0x920   : > { %v6771_v61 = vpop.f32.mrf.mxu1 }
 0x921   : > { %v15361_v12 = vsel %vm968_vm0, 0.0, %v6822_v4  ;;  %v6846_v11 = vsel %vm968_vm0, %v6822_v4, 0.0  ;;  %v6788_v27 = vmax.f32 %v6770_v7, 0.0 }
 0x922   : > { %v6876_v3 = vrot.slane %v15361_v12, 1  ;;  %v6877_v1 = vrot.slane %v6846_v11, 1  ;;  %v10133_v42 = vpack.i.bf16 %v15361_v12, %v15335_v25  ;;  %v6918_v15 = vrot.slane %v15361_v12, 2 }
 0x923   : > { %v6823_v41 = vrot.slane %v6788_v27, 7  ;;  %v6919_v40 = vrot.slane %v6846_v11, 2 }
 0x924   : > { %v6878_v60 = vsel %vm1437_vm2, %v6876_v3, %v6877_v1  ;;  %10134 = vrot.lane.b32.xlu0 %v10133_v42, %s16723_s3 }
 0x925   : > { %v15369_v35 = vsel %vm968_vm0, 0.0, %v6823_v41  ;;  %v6847_v37 = vsel %vm968_vm0, %v6823_v41, 0.0  ;;  %v10138_v30 = vpack.i.bf16 %v6878_v60, %v6875_v33  ;;  %v15387_v45 = vsel %vm1614_vm3, %v6918_v15, %v6919_v40 }
 0x926   : > { %v6879_v14 = vrot.slane %v15369_v35, 1  ;;  %v6880_v0 = vrot.slane %v6847_v37, 1  ;;  %v6921_v8 = vrot.slane %v15369_v35, 2  ;;  %v6922_v10 = vrot.slane %v6847_v37, 2  ;;  %v6774_v9 = vpop.f32.mrf.mxu1 }
 0x927   : > { %v6775_v47 = vadd.f32 %v15214_v21, %v6774_v9  ;;  %10139 = vrot.lane.b32.xlu1 %v10138_v30, %s16724_s10  ;;  %v10143_v26 = vpack.i.bf16 %v15369_v35, %v15361_v12 }
 0x928   : > { %v6881_v59 = vsel %vm1437_vm2, %v6879_v14, %v6880_v0  ;;  %v6776_v33 = vpop.f32.mrf.mxu1  ;;  %v15383_v31 = vsel %vm1614_vm3, %v6921_v8, %v6922_v10 }
 0x929   : > { %v6789_v54 = vmax.f32 %v6775_v47, 0.0  ;;  %10144 = vrot.lane.b32.xlu0 %v10143_v26, %s16719_s2  ;;  %v10148_v57 = vpack.i.bf16 %v6881_v59, %v6878_v60  ;;  %v10158_v7 = vpack.i.bf16 %v15383_v31, %v15387_v45  ;;  %v10075_v33 = vpop.permute.xlu0 %10074 }
 0x92b   : > { %v6824_v46 = vrot.slane %v6789_v54, 7  ;;  %10149 = vrot.lane.b32.xlu1 %v10148_v57, %s16579_s28 }
 0x92c   : > { %v6779_v48 = vpop.f32.mrf.mxu1 }
 0x92d   : > { %v15390_v16 = vsel %vm968_vm0, 0.0, %v6824_v46  ;;  %v6848_v4 = vsel %vm968_vm0, %v6824_v46, 0.0  ;;  %10154 = vrot.lane.b32.xlu0 %v10148_v57, %s16581_s0  ;;  %v6780_v27 = vadd.f32 %v15214_v21, %v6779_v48  ;;  %v10085_v54 = vpop.permute.xlu0 %10084  ;;  %v10080_v57 = vpop.permute.xlu1 %10079 }
 0x92e   : > { %v6882_v61 = vrot.slane %v15390_v16, 1  ;;  %v6883_v11 = vrot.slane %v6848_v4, 1  ;;  %v6781_v3 = vpop.f32.mrf.mxu1  ;;  %v10168_v41 = vpack.i.bf16 %v15390_v16, %v15369_v35  ;;  %v6925_v37 = vrot.slane %v6848_v4, 2 }
 0x92f   : > { %10159 = vrot.lane.b32.xlu1 %v10158_v7, %s16720_s9  ;;  %v6790_v42 = vmax.f32 %v6780_v27, 0.0  ;;  %v6924_v21 = vrot.slane %v15390_v16, 2  ;;  %v10086_v48 = vunpack.i.l.bf16 %v10085_v54  ;;  %v10081_v27 = vunpack.i.l.bf16 %v10080_v57 }
 0x930   : > { %v6884_v1 = vsel %vm1437_vm2, %v6882_v61, %v6883_v11  ;;  %v10076_v61 = vunpack.i.l.bf16 %v10075_v33 }
 0x931   : > { %10164 = vrot.lane.b32.xlu0 %v10158_v7, %s16718_s30  ;;  %v10173_v60 = vpack.i.bf16 %v6884_v1, %v6881_v59  ;;  %v6825_v30 = vrot.slane %v6790_v42, 7  ;;  %v15410_v0 = vsel %vm1614_vm3, %v6924_v21, %v6925_v37  ;;  %v10095_v46 = vpop.permute.xlu0 %10094  ;;  %v10090_v7 = vpop.permute.xlu1 %10089  ;;  %v7070_v11 = vsel %vm2412_vm5, %v15225_v50, %v10086_v48 }
 0x932   : > { %v10096_v4 = vunpack.i.l.bf16 %v10095_v46  ;;  %v7084_v42 = vsel %vm2544_vm9, %v15039_v62, %v10076_v61 }
 0x933   : > { %10169 = vrot.lane.b32.xlu1 %v10168_v41, %s16723_s3  ;;  %v6841_v14 = vsel %vm968_vm0, 0.0, %v6825_v30  ;;  %v6849_v8 = vsel %vm968_vm0, %v6825_v30, 0.0  ;;  %v10091_v41 = vunpack.i.l.bf16 %v10090_v7  ;;  %v10082_v30 = vunpack.i.h.bf16 %v10080_v57 }
 0x934   : > { %v10178_v10 = vpack.i.bf16 %v6841_v14, %v15390_v16  ;;  %v6974_v9 = vrot.slane %v6841_v14, 1  ;;  %v6975_v47 = vrot.slane %v6849_v8, 1  ;;  %v7001_v26 = vrot.slane %v6841_v14, 2 }
 0x935   : > { %10174 = vrot.lane.b32.xlu0 %v10173_v60, %s16724_s10  ;;  %v7002_v15 = vrot.slane %v6849_v8, 2  ;;  %v7077_v3 = vsel %vm2478_vm7, %v7070_v11, %v10096_v4  ;;  %v7092_v21 = vsel %vm2610_vm11, %v7084_v42, %v10081_v27  ;;  %v10097_v42 = vunpack.i.h.bf16 %v10095_v46 }
 0x936   : > { %v6976_v40 = vsel %vm1437_vm2, %v6974_v9, %v6975_v47 }
 0x937   : > { %6897 = vrot.lane.b32.xlu1 %v6884_v1, %s16581_s0  ;;  %v15424_v59 = vsel %vm1614_vm3, %v7001_v26, %v7002_v15  ;;  %v10092_v15 = vunpack.i.h.bf16 %v10090_v7 }
 0x939   : > { %6989 = vrot.lane.b32.xlu0 %v6884_v1, %s16579_s28  ;;  %v10077_v1 = vunpack.i.h.bf16 %v10075_v33 }
 0x93b   : > { %6939 = vrot.lane.b32.xlu1 %v15410_v0, %s16718_s30  ;;  %v7085_v60 = vsel %vm2544_vm9, %v7077_v3, %v10077_v1 }
 0x93c   : > { %v7093_v26 = vsel %vm2610_vm11, %v7085_v60, %v10082_v30 }
 0x93d   : > { %7016 = vrot.lane.b32.xlu0 %v15410_v0, %s16720_s9  ;;  %v7101_v57 = vsel %vm6629_vm15, %v7093_v26, %v10092_v15 }
 0x93f   : > { %10179 = vrot.lane.b32.xlu1 %v10178_v10, %s16719_s2  ;;  %v7100_v10 = vsel %vm6629_vm15, %v7092_v21, %v10091_v41  ;;  %v10087_v41 = vunpack.i.h.bf16 %v10085_v54 }
 0x941   : > { %7040 = vrot.lane.b32.xlu0 %v6841_v14, %s16723_s3 }
 0x943   : > { %7061 = vrot.lane.b32.xlu1 %v6976_v40, %s16724_s10 }
 0x945   : > { %6991 = vrot.lane.b32.xlu0 %v6976_v40, %s16579_s28 }
 0x947   : > { %7018 = vrot.lane.b32.xlu1 %v15424_v59, %s16720_s9 }
 0x964   : > { %v10100_v37 = vpop.permute.xlu1 %10099 }
 0x965   : > { %v10101_v14 = vunpack.i.l.bf16 %v10100_v37  ;;  %v10102_v50 = vunpack.i.h.bf16 %v10100_v37 }
 0x967   : > { %v10105_v8 = vpop.permute.xlu0 %10104  ;;  %v7108_v47 = vsel %vm6638_vm10, %v7100_v10, %v10101_v14  ;;  %v7109_v48 = vsel %vm6638_vm10, %v7101_v57, %v10102_v50  ;;  %v7071_v14 = vsel %vm2412_vm5, %v15230_v19, %v10087_v41 }
 0x968   : > { %v10106_v9 = vunpack.i.l.bf16 %v10105_v8  ;;  %v10107_v40 = vunpack.i.h.bf16 %v10105_v8  ;;  %v7078_v10 = vsel %vm2478_vm7, %v7071_v14, %v10097_v42 }
 0x969   : > { %v10110_v61 = vpop.permute.xlu1 %10109 }
 0x96a   : > { %v7116_v33 = vsel %vm6647_vm6, %v7108_v47, %v10106_v9  ;;  %v7117_v4 = vsel %vm6647_vm6, %v7109_v48, %v10107_v40 }
 0x96b   : > { %7209 = vmatmul.mubr.f32.vlgmr.msra.gmra.mxu0 %v7116_v33  ;;  %v10115_v7 = vpop.permute.xlu0 %10114 }
 0x96c   : > { %9247 = vmatprep.mubr.msk.f32.mxu0 %vm2412_vm5, %v15351_v20  ;;  %v10111_v20 = vunpack.i.l.bf16 %v10110_v61  ;;  %v10116_v30 = vunpack.i.l.bf16 %v10115_v7  ;;  %v10117_v47 = vunpack.i.h.bf16 %v10115_v7 }
 0x96d   : > { %v10120_v11 = vpop.permute.xlu1 %10119 }
 0x96e   : > { %v10121_v3 = vunpack.i.l.bf16 %v10120_v11  ;;  %v7086_v50 = vsel %vm2544_vm9, %v7078_v10, %v10111_v20  ;;  %v10122_v41 = vunpack.i.h.bf16 %v10120_v11 }
 0x96f   : > { %7214 = vmatmul.mubr.f32.gmra.mxu0 %v7117_v4  ;;  %v10125_v60 = vpop.permute.xlu0 %10124  ;;  %v7094_v26 = vsel %vm2610_vm11, %v7086_v50, %v10116_v30 }
 0x970   : > { %9248 = vmatprep.mubr.msk.f32.mxu0 %vm2412_vm5, %v15347_v56  ;;  %v7072_v37 = vsel %vm2412_vm5, %v15325_v39, %v10121_v3  ;;  %v10112_v56 = vunpack.i.h.bf16 %v10110_v61  ;;  %v10126_v8 = vunpack.i.l.bf16 %v10125_v60  ;;  %v10127_v4 = vunpack.i.h.bf16 %v10125_v60 }
 0x971   : > { %v10130_v27 = vpop.permute.xlu1 %10129 }
 0x972   : > { %v10131_v1 = vunpack.i.l.bf16 %v10130_v27  ;;  %v7102_v40 = vsel %vm6629_vm15, %v7094_v26, %v10126_v8 }
 0x974   : > { %v7079_v21 = vsel %vm2478_vm7, %v7072_v37, %v10131_v1  ;;  %v10132_v37 = vunpack.i.h.bf16 %v10130_v27 }
 0x975   : > { %v7087_v54 = vsel %vm2544_vm9, %v7079_v21, %v10112_v56 }
 0x976   : > { %v7095_v48 = vsel %vm2610_vm11, %v7087_v54, %v10117_v47 }
 0x977   : > { %v7103_v7 = vsel %vm6629_vm15, %v7095_v48, %v10127_v4 }
 0x996   : > { %v10135_v9 = vpop.permute.xlu0 %10134 }
 0x997   : > { %v10136_v46 = vunpack.i.l.bf16 %v10135_v9  ;;  %v10137_v33 = vunpack.i.h.bf16 %v10135_v9 }
 0x999   : > { %v10140_v39 = vpop.permute.xlu1 %10139  ;;  %v7110_v19 = vsel %vm6638_vm10, %v7102_v40, %v10136_v46  ;;  %v7111_v20 = vsel %vm6638_vm10, %v7103_v7, %v10137_v33 }
 0x99a   : > { %v10141_v15 = vunpack.i.l.bf16 %v10140_v39  ;;  %v10142_v61 = vunpack.i.h.bf16 %v10140_v39 }
 0x99b   : > { %v10145_v57 = vpop.permute.xlu0 %10144 }
 0x99c   : > { %v7118_v3 = vsel %vm6647_vm6, %v7110_v19, %v10141_v15  ;;  %v7119_v30 = vsel %vm6647_vm6, %v7111_v20, %v10142_v61  ;;  %v10146_v21 = vunpack.i.l.bf16 %v10145_v57  ;;  %v10147_v50 = vunpack.i.h.bf16 %v10145_v57 }
 0x99d   : > { %v10150_v1 = vpop.permute.xlu1 %10149  ;;  %7219 = vmatmul.mubr.f32.gmra.mxu0 %v7118_v3 }
 0x99e   : > { %9249 = vmatprep.mubr.msk.f32.mxu0 %vm2412_vm5, %v15387_v45  ;;  %v10151_v56 = vunpack.i.l.bf16 %v10150_v1  ;;  %v7073_v45 = vsel %vm2412_vm5, %v15335_v25, %v10122_v41  ;;  %v10152_v47 = vunpack.i.h.bf16 %v10150_v1 }
 0x99f   : > { %v10155_v42 = vpop.permute.xlu0 %10154  ;;  %v7080_v11 = vsel %vm2478_vm7, %v7073_v45, %v10132_v37 }
 0x9a0   : > { %v10156_v14 = vunpack.i.l.bf16 %v10155_v42  ;;  %v7088_v27 = vsel %vm2544_vm9, %v7080_v11, %v10146_v21  ;;  %v10157_v37 = vunpack.i.h.bf16 %v10155_v42 }
 0x9a1   : > { %v10160_v60 = vpop.permute.xlu1 %10159  ;;  %7224 = vmatmul.mubr.f32.gmra.mxu0 %v7119_v30  ;;  %v7096_v26 = vsel %vm2610_vm11, %v7088_v27, %v10151_v56 }
 0x9a2   : > { %9250 = vmatprep.mubr.msk.f32.mxu0 %vm2412_vm5, %v15383_v31  ;;  %v10161_v8 = vunpack.i.l.bf16 %v10160_v60  ;;  %v7074_v54 = vsel %vm2412_vm5, %v15361_v12, %v10156_v14  ;;  %v10162_v15 = vunpack.i.h.bf16 %v10160_v60  ;;  %v7075_v56 = vsel %vm2412_vm5, %v15369_v35, %v10157_v37 }
 0x9a3   : > { %v10165_v10 = vpop.permute.xlu0 %10164 }
 0x9a4   : > { %v10166_v9 = vunpack.i.l.bf16 %v10165_v10  ;;  %v7104_v19 = vsel %vm6629_vm15, %v7096_v26, %v10161_v8  ;;  %v10167_v21 = vunpack.i.h.bf16 %v10165_v10 }
 0x9a5   : > { %v10170_v46 = vpop.permute.xlu1 %10169 }
 0x9a6   : > { %v7081_v31 = vsel %vm2478_vm7, %v7074_v54, %v10166_v9  ;;  %v10171_v39 = vunpack.i.l.bf16 %v10170_v46  ;;  %v10172_v40 = vunpack.i.h.bf16 %v10170_v46  ;;  %v7082_v8 = vsel %vm2478_vm7, %v7075_v56, %v10167_v21  ;;  %v7272_v56 = vld [vmem:[%s16373_s13 + $0x78] sm:$0xff] }
 0x9a7   : > { %v7089_v25 = vsel %vm2544_vm9, %v7081_v31, %v10147_v50  ;;  %v10175_v33 = vpop.permute.xlu0 %10174  ;;  %7729 = vmatpush1.msra.mxu1 %v7272_v56 }
 0x9a8   : > { %v10176_v57 = vunpack.i.l.bf16 %v10175_v33  ;;  %v7112_v48 = vsel %vm6638_vm10, %v7104_v19, %v10171_v39  ;;  %v7097_v4 = vsel %vm2610_vm11, %v7089_v25, %v10152_v47  ;;  %v10177_v3 = vunpack.i.h.bf16 %v10175_v33  ;;  %v15509_v25 = vld [vmem:[%s16725_s12] ss:$0 sm:$0xff]  ;;  %7730 = vmatprep.subr.mxu1 %v16578_v32 }
 0x9a9   : > { %v6898_v12 = vpop.permute.xlu1 %6897  ;;  %v7105_v61 = vsel %vm6629_vm15, %v7097_v4, %v10162_v15 }
 0x9aa   : > { %v7120_v1 = vsel %vm6647_vm6, %v7112_v48, %v10176_v57  ;;  %v7113_v41 = vsel %vm6638_vm10, %v7105_v61, %v10172_v40  ;;  %v7076_v10 = vsel %vm2412_vm5, %v15390_v16, %v6898_v12 }
 0x9ab   : > { %v6990_v7 = vpop.permute.xlu0 %6989  ;;  %7229 = vmatmul.mubr.f32.gmra.mxu0 %v7120_v1  ;;  %v7121_v30 = vsel %vm6647_vm6, %v7113_v41, %v10177_v3 }
 0x9ac   : > { %9251 = vmatprep.mubr.msk.f32.mxu0 %vm2412_vm5, %v15410_v0 }
 0x9ad   : > { %v6940_v20 = vpop.permute.xlu1 %6939 }
 0x9af   : > { %v7017_v14 = vpop.permute.xlu0 %7016  ;;  %7234 = vmatmul.mubr.f32.gmra.mxu0 %v7121_v30 }
 0x9b0   : > { %9252 = vmatprep.mubr.msk.f32.mxu0 %vm2412_vm5, %v15424_v59  ;;  %v7083_v59 = vsel %vm2478_vm7, %v7076_v10, %v6940_v20  ;;  %v7265_v10 = vld [vmem:[%s16373_s13 + $0x40] sm:$0xff] }
 0x9b1   : > { %v10180_v60 = vpop.permute.xlu1 %10179 }
 0x9b2   : > { %v10181_v45 = vunpack.i.l.bf16 %v10180_v60  ;;  %v10182_v9 = vunpack.i.h.bf16 %v10180_v60 }
 0x9b3   : > { %v7041_v11 = vpop.permute.xlu0 %7040 }
 0x9b4   : > { %v7090_v0 = vsel %vm2544_vm9, %v7082_v8, %v10181_v45  ;;  %v7091_v46 = vsel %vm2544_vm9, %v7083_v59, %v10182_v9  ;;  %v7271_v45 = vld [vmem:[%s16373_s13 + $0x70] sm:$0xff]  ;;  %v7269_v9 = vld [vmem:[%s16373_s13 + $0x60] sm:$0xff] }
 0x9b5   : > { %v7098_v42 = vsel %vm2610_vm11, %v7090_v0, %v6990_v7  ;;  %v7062_v50 = vpop.permute.xlu1 %7061  ;;  %7731 = vmatpush1.msra.mxu1 %v7271_v45  ;;  %v7268_v0 = vld [vmem:[%s16373_s13 + $0x58] sm:$0xff] }
 0x9b6   : > { %v7106_v27 = vsel %vm6629_vm15, %v7098_v42, %v7017_v14  ;;  %7732 = vmatprep.subr.mxu1 %v16578_v32  ;;  %v7267_v42 = vld [vmem:[%s16373_s13 + $0x50] sm:$0xff] }
 0x9b7   : > { %v7114_v54 = vsel %vm6638_vm10, %v7106_v27, %v7041_v11  ;;  %v6992_v35 = vpop.permute.xlu0 %6991  ;;  %v7270_v11 = vld [vmem:[%s16373_s13 + $0x68] sm:$0xff]  ;;  %v7264_v27 = vld [vmem:[%s16373_s13 + $0x38] sm:$0xff] }
 0x9b8   : > { %v7122_v47 = vsel %vm6647_vm6, %v7114_v54, %v7062_v50  ;;  %v7099_v26 = vsel %vm2610_vm11, %v7091_v46, %v6992_v35  ;;  %7733 = vmatpush1.msra.mxu1 %v7270_v11  ;;  %v7266_v50 = vld [vmem:[%s16373_s13 + $0x48] sm:$0xff]  ;;  %v7263_v46 = vld [vmem:[%s16373_s13 + $0x30] sm:$0xff] }
 0x9b9   : > { %v7019_v31 = vpop.permute.xlu1 %7018  ;;  %7239 = vmatmul.mubr.f32.gmra.mxu0 %v7122_v47  ;;  %7734 = vmatprep.subr.mxu1 %v16578_v32 }
 0x9ba   : > { %v7107_v39 = vsel %vm6629_vm15, %v7099_v26, %v7019_v31  ;;  %9253 = vmatprep.mubr.msk.f32.mxu0 %vm2412_vm5, %v14725_v52  ;;  %7735 = vmatpush1.msra.mxu1 %v7269_v9  ;;  %v7262_v26 = vld [vmem:[%s16373_s13 + $0x28] sm:$0xff] }
 0x9bb   : > { %v7115_v16 = vsel %vm6638_vm10, %v7107_v39, %v15209_v18  ;;  %7736 = vmatprep.subr.mxu1 %v16578_v32 }
 0x9bc   : > { %v7123_v15 = vsel %vm6647_vm6, %v7115_v16, %v15218_v28  ;;  %7737 = vmatpush1.msra.mxu1 %v7268_v0  ;;  %v7274_v0 = vld [vmem:[%s16373_s13 + $0x88] sm:$0xff] }
 0x9bd   : > { %7244 = vmatmul.mubr.f32.gmra.mxu0 %v7123_v15  ;;  %7738 = vmatprep.subr.mxu1 %v16578_v32 }
 0x9be   : > { %7739 = vmatpush1.msra.mxu1 %v7267_v42 }
 0x9bf   : > { %7740 = vmatprep.subr.mxu1 %v16578_v32 }
 0x9c0   : > { %7741 = vmatpush1.msra.mxu1 %v7266_v50 }
 0x9c1   : > { %7742 = vmatprep.subr.mxu1 %v16578_v32 }
 0x9c2   : > { %7743 = vmatpush1.msra.mxu1 %v7265_v10 }
 0x9c3   : > { %7744 = vmatprep.subr.mxu1 %v16578_v32 }
 0x9c4   : > { %7745 = vmatpush1.msra.mxu1 %v7264_v27 }
 0x9c5   : > { %7746 = vmatprep.subr.mxu1 %v16578_v32 }
 0x9c6   : > { %7747 = vmatpush1.msra.mxu1 %v7263_v46 }
 0x9c7   : > { %7748 = vmatprep.subr.mxu1 %v16578_v32 }
 0x9c8   : > { %7749 = vmatpush1.msra.mxu1 %v7262_v26 }
 0x9c9   : > { %7750 = vmatprep.subr.mxu1 %v16578_v32 }
 0xa2b   : > { %v7210_v40 = vpop.f32.mrf.mxu0 }
 0xa2c   : > { %v7211_v33 = vadd.f32 %v15509_v25, %v7210_v40 }
 0xa2d   : > { %v7212_v19 = vpop.f32.mrf.mxu0 }
 0xa2e   : > { %v7249_v57 = vadd.f32 %v7211_v33, %v6296_v53 }
 0xa2f   : > { %v7215_v52 = vpop.f32.mrf.mxu0 }
 0xa30   : > { %v7284_v48 = vrot.slane %v7249_v57, 7  ;;  %v7216_v18 = vadd.f32 %v15509_v25, %v7215_v52 }
 0xa31   : > { %v7217_v4 = vpop.f32.mrf.mxu0 }
 0xa32   : > { %v7308_v28 = vsel %vm968_vm0, %v7284_v48, 0.0  ;;  %v7250_v12 = vadd.f32 %v7216_v18, %v6297_v58  ;;  %v7300_v61 = vsel %vm968_vm0, 0.0, %v7284_v48 }
 0xa33   : > { %v7379_v3 = vrot.slane %v7308_v28, 1  ;;  %v7403_v1 = vrot.slane %v7308_v28, 2  ;;  %7362 = vrot.lane.b32.xlu0 %v7300_v61, %s16719_s2  ;;  %v7378_v7 = vrot.slane %v7300_v61, 1  ;;  %v7402_v41 = vrot.slane %v7300_v61, 2  ;;  %v7261_v61 = vld [vmem:[%s16373_s13 + $0x20] sm:$0xff] }
 0xa34   : > { %v7285_v43 = vrot.slane %v7250_v12, 7  ;;  %7751 = vmatpush1.msra.mxu1 %v7261_v61 }
 0xa35   : > { %v7380_v53 = vsel %vm1437_vm2, %v7378_v7, %v7379_v3  ;;  %v7404_v20 = vsel %vm1614_vm3, %v7402_v41, %v7403_v1  ;;  %7752 = vmatprep.subr.mxu1 %v16578_v32 }
 0xa36   : > { %v7309_v37 = vsel %vm968_vm0, %v7285_v43, 0.0  ;;  %7390 = vrot.lane.b32.xlu1 %v7380_v53, %s16579_s28  ;;  %v15525_v13 = vsel %vm968_vm0, 0.0, %v7285_v43  ;;  %v7260_v43 = vld [vmem:[%s16373_s13 + $0x18] sm:$0xff] }
 0xa37   : > { %v7323_v58 = vrot.slane %v7309_v37, 1  ;;  %7414 = vrot.lane.b32.xlu0 %v7404_v20, %s16720_s9  ;;  %v7322_v30 = vrot.slane %v15525_v13, 1  ;;  %v7341_v21 = vrot.slane %v7309_v37, 2  ;;  %v7340_v14 = vrot.slane %v15525_v13, 2  ;;  %v7259_v20 = vld [vmem:[%s16373_s13 + $0x10] sm:$0xff]  ;;  %7753 = vmatpush1.msra.mxu1 %v7260_v43 }
 0xa38   : > { %7754 = vmatprep.subr.mxu1 %v16578_v32 }
 0xa39   : > { %v7324_v60 = vsel %vm1437_vm2, %v7322_v30, %v7323_v58  ;;  %v15541_v8 = vsel %vm1614_vm3, %v7340_v14, %v7341_v21  ;;  %v7258_v30 = vld [vmem:[%s16373_s13 + $0x8] sm:$0xff]  ;;  %7755 = vmatpush1.msra.mxu1 %v7259_v20 }
 0xa3a   : > { %7427 = vrot.lane.b32.xlu1 %v15525_v13, %s16723_s3  ;;  %7756 = vmatprep.subr.mxu1 %v16578_v32 }
 0xa3b   : > { %7331 = vrot.lane.b32.xlu0 %v7324_v60, %s16581_s0  ;;  %7757 = vmatpush1.msra.mxu1 %v7258_v30 }
 0xa3c   : > { %7758 = vmatprep.subr.mxu1 %v16578_v32 }
 0xa3d   : > { %7759 = vmatpush1.msra.mxu1 %v7257_v36 }
 0xa3e   : > { %7349 = vrot.lane.b32.xlu1 %v15541_v8, %s16718_s30  ;;  %7788 = vmatprep.subr.mxu1 %v16578_v32 }
 0xa3f   : > { %7443 = vrot.lane.b32.xlu0 %v7324_v60, %s16724_s10  ;;  %7789 = vmatpush2.msra.mxu1 %v7274_v0 }
 0xa40   : > { %7790 = vmatprep.subr.mxu1 %v16578_v32 }
 0xa41   : > { %7791 = vmatpush2.msra.mxu1 %v7273_v63 }
 0xa5d   : > { %v7220_v59 = vpop.f32.mrf.mxu0 }
 0xa5e   : > { %v7221_v54 = vadd.f32 %v15509_v25, %v7220_v59 }
 0xa5f   : > { %v7222_v35 = vpop.f32.mrf.mxu0 }
 0xa60   : > { %v7251_v47 = vadd.f32 %v7221_v54, %v6298_v55 }
 0xa61   : > { %v7225_v31 = vpop.f32.mrf.mxu0 }
 0xa62   : > { %v7286_v39 = vrot.slane %v7251_v47, 7  ;;  %v7226_v16 = vadd.f32 %v15509_v25, %v7225_v31 }
 0xa63   : > { %v7227_v15 = vpop.f32.mrf.mxu0 }
 0xa64   : > { %v7310_v40 = vsel %vm968_vm0, %v7286_v39, 0.0  ;;  %v7252_v22 = vadd.f32 %v7226_v16, %v6299_v5  ;;  %v7302_v55 = vsel %vm968_vm0, 0.0, %v7286_v39 }
 0xa65   : > { %v7382_v33 = vrot.slane %v7310_v40, 1  ;;  %v7406_v19 = vrot.slane %v7310_v40, 2  ;;  %v7381_v57 = vrot.slane %v7302_v55, 1  ;;  %v7405_v52 = vrot.slane %v7302_v55, 2  ;;  %7364 = vrot.lane.b32.xlu0 %v7302_v55, %s16719_s2 }
 0xa66   : > { %v7287_v48 = vrot.slane %v7252_v22, 7 }
 0xa67   : > { %v7383_v18 = vsel %vm1437_vm2, %v7381_v57, %v7382_v33  ;;  %v7407_v4 = vsel %vm1614_vm3, %v7405_v52, %v7406_v19 }
 0xa68   : > { %v7311_v28 = vsel %vm968_vm0, %v7287_v48, 0.0  ;;  %7392 = vrot.lane.b32.xlu1 %v7383_v18, %s16579_s28  ;;  %v15598_v17 = vsel %vm968_vm0, 0.0, %v7287_v48 }
 0xa69   : > { %v7344_v5 = vrot.slane %v7311_v28, 2  ;;  %7416 = vrot.lane.b32.xlu0 %v7407_v4, %s16720_s9  ;;  %v7343_v12 = vrot.slane %v15598_v17, 2  ;;  %v7326_v3 = vrot.slane %v7311_v28, 1  ;;  %v7325_v7 = vrot.slane %v15598_v17, 1 }
 0xa6b   : > { %v7230_v1 = vpop.f32.mrf.mxu0  ;;  %v15607_v41 = vsel %vm1614_vm3, %v7343_v12, %v7344_v5  ;;  %v7327_v14 = vsel %vm1437_vm2, %v7325_v7, %v7326_v3 }
 0xa6c   : > { %v7231_v53 = vadd.f32 %v15509_v25, %v7230_v1  ;;  %7429 = vrot.lane.b32.xlu1 %v15598_v17, %s16723_s3 }
 0xa6d   : > { %v7232_v37 = vpop.f32.mrf.mxu0  ;;  %7351 = vrot.lane.b32.xlu0 %v15607_v41, %s16718_s30 }
 0xa6e   : > { %v7253_v58 = vadd.f32 %v7231_v53, %v6300_v34 }
 0xa6f   : > { %v7235_v21 = vpop.f32.mrf.mxu0 }
 0xa70   : > { %v7288_v60 = vrot.slane %v7253_v58, 7  ;;  %v7236_v56 = vadd.f32 %v15509_v25, %v7235_v21  ;;  %7333 = vrot.lane.b32.xlu1 %v7327_v14, %s16581_s0 }
 0xa71   : > { %v7237_v34 = vpop.f32.mrf.mxu0  ;;  %7445 = vrot.lane.b32.xlu0 %v7327_v14, %s16724_s10 }
 0xa72   : > { %v7312_v45 = vsel %vm968_vm0, %v7288_v60, 0.0  ;;  %v7254_v11 = vadd.f32 %v7236_v56, %v6301_v2  ;;  %v7304_v9 = vsel %vm968_vm0, 0.0, %v7288_v60 }
 0xa73   : > { %v7385_v42 = vrot.slane %v7312_v45, 1  ;;  %v7409_v50 = vrot.slane %v7312_v45, 2  ;;  %v7384_v10 = vrot.slane %v7304_v9, 1  ;;  %v7408_v27 = vrot.slane %v7304_v9, 2 }
 0xa74   : > { %v7289_v59 = vrot.slane %v7254_v11, 7  ;;  %7366 = vrot.lane.b32.xlu1 %v7304_v9, %s16719_s2 }
 0xa75   : > { %v7386_v2 = vsel %vm1437_vm2, %v7384_v10, %v7385_v42  ;;  %v7410_v47 = vsel %vm1614_vm3, %v7408_v27, %v7409_v50 }
 0xa76   : > { %v7313_v54 = vsel %vm968_vm0, %v7289_v59, 0.0  ;;  %7394 = vrot.lane.b32.xlu0 %v7386_v2, %s16579_s28  ;;  %v15652_v35 = vsel %vm968_vm0, 0.0, %v7289_v59 }
 0xa77   : > { %v7329_v46 = vrot.slane %v7313_v54, 1  ;;  %v7328_v26 = vrot.slane %v15652_v35, 1  ;;  %v7347_v31 = vrot.slane %v7313_v54, 2  ;;  %v7346_v16 = vrot.slane %v15652_v35, 2 }
 0xa78   : > { %7418 = vrot.lane.b32.xlu1 %v7410_v47, %s16720_s9  ;;  %v15703_v54 = vsub.s32 2, %v14078_v38 }
 0xa79   : > { %v7240_v39 = vpop.f32.mrf.mxu0  ;;  %v7330_v32 = vsel %vm1437_vm2, %v7328_v26, %v7329_v46  ;;  %v15667_v33 = vsel %vm1614_vm3, %v7346_v16, %v7347_v31 }
 0xa7a   : > { %v7241_v15 = vadd.f32 %v15509_v25, %v7240_v39  ;;  %7431 = vrot.lane.b32.xlu0 %v15652_v35, %s16723_s3 }
 0xa7b   : > { %v7242_v40 = vpop.f32.mrf.mxu0 }
 0xa7c   : > { %v7255_v22 = vadd.f32 %v7241_v15, %v6302_v44  ;;  %7335 = vrot.lane.b32.xlu1 %v7330_v32, %s16581_s0  ;;  %s16743_s0 = sld [smem:[#allocation17_spill]] }
 0xa7d   : > { %v7245_v55 = vpop.f32.mrf.mxu0 }
 0xa7e   : > { %v7290_v19 = vrot.slane %v7255_v22, 7  ;;  %v7246_v57 = vadd.f32 %v15509_v25, %v7245_v55  ;;  %7353 = vrot.lane.b32.xlu0 %v15667_v33, %s16718_s30 }
 0xa7f   : > { %v7247_v52 = vpop.f32.mrf.mxu0 }
 0xa80   : > { %v7306_v48 = vsel %vm968_vm0, 0.0, %v7290_v19  ;;  %v7314_v18 = vsel %vm968_vm0, %v7290_v19, 0.0  ;;  %v7256_v24 = vadd.f32 %v7246_v57, %v6303_v49  ;;  %7447 = vrot.lane.b32.xlu1 %v7330_v32, %s16724_s10 }
 0xa81   : > { %v7387_v44 = vrot.slane %v7306_v48, 1  ;;  %v7388_v4 = vrot.slane %v7314_v18, 1  ;;  %v7411_v5 = vrot.slane %v7306_v48, 2  ;;  %v7412_v12 = vrot.slane %v7314_v18, 2 }
 0xa82   : > { %v7291_v28 = vrot.slane %v7256_v24, 7 }
 0xa83   : > { %v7389_v25 = vsel %vm1437_vm2, %v7387_v44, %v7388_v4  ;;  %v7413_v43 = vsel %vm1614_vm3, %v7411_v5, %v7412_v12 }
 0xa84   : > { %v7315_v61 = vsel %vm968_vm0, %v7291_v28, 0.0  ;;  %7396 = vrot.lane.b32.xlu0 %v7389_v25, %s16579_s28  ;;  %7368 = vrot.lane.b32.xlu1 %v7306_v48, %s16719_s2  ;;  %v7307_v3 = vsel %vm968_vm0, 0.0, %v7291_v28 }
 0xa85   : > { %v7456_v1 = vrot.slane %v7315_v61, 2  ;;  %v7455_v6 = vrot.slane %v7307_v3, 2  ;;  %v7441_v49 = vrot.slane %v7315_v61, 1  ;;  %v7440_v7 = vrot.slane %v7307_v3, 1 }
 0xa87   : > { %v15684_v53 = vsel %vm1614_vm3, %v7455_v6, %v7456_v1  ;;  %v7442_v20 = vsel %vm1437_vm2, %v7440_v7, %v7441_v49  ;;  %vm16726_vm2 = vcmask 1041409  }
 0xa88   : > { %7433 = vrot.lane.b32.xlu0 %v7307_v3, %s16723_s3  ;;  %7420 = vrot.lane.b32.xlu1 %v7413_v43, %s16720_s9  ;;  %vm16727_vm3 = vmmov %vm16726_vm2  ;;  %s16744_s9 = sld [smem:[#allocation22_spill]] }
 0xa8c   : > { %7449 = vrot.lane.b32.xlu1 %v7442_v20, %s16724_s10 }
 0xa8e   : > { %p16748_p8 = scmp.ne.s32.totalorder %s16744_s9, 0 }
 0xaa5   : > { %v7363_v37 = vpop.permute.xlu0 %7362 }
 0xaa6   : > { %v7464_v14 = vsel %vm2544_vm9, %v15039_v62, %v7363_v37 }
 0xaa8   : > { %v7391_v30 = vpop.permute.xlu1 %7390 }
 0xaa9   : > { %v7415_v58 = vpop.permute.xlu0 %7414  ;;  %v7468_v60 = vsel %vm2610_vm11, %v7464_v14, %v7391_v30 }
 0xaaa   : > { %v7472_v34 = vsel %vm6629_vm15, %v7468_v60, %v7415_v58 }
 0xaac   : > { %v7428_v56 = vpop.permute.xlu1 %7427 }
 0xaad   : > { %v7332_v21 = vpop.permute.xlu0 %7331  ;;  %v7476_v45 = vsel %vm6638_vm10, %v7472_v34, %v7428_v56 }
 0xaae   : > { %v7458_v62 = vsel %vm2412_vm5, %v15525_v13, %v7332_v21 }
 0xab0   : > { %v7350_v0 = vpop.permute.xlu1 %7349 }
 0xab1   : > { %v7444_v36 = vpop.permute.xlu0 %7443  ;;  %v7461_v2 = vsel %vm2478_vm7, %v7458_v62, %v7350_v0 }
 0xab2   : > { %v7480_v11 = vsel %vm6647_vm6, %v7476_v45, %v7444_v36 }
 0xab3   : > { %v7488_v9 = vcombine.low %v7480_v11, %v15541_v8  ;;  %v7489_v59 = vcombine.high %v7480_v11, %v15541_v8 }
 0xab5   : > { %v7496_v50 = vrot.slane %v7488_v9, %v14093_v29  ;;  %v7503_v39 = vrot.slane %v7489_v59, %v14093_v29 }
 0xab7   : > { %v7504_v63 = vcombine.high %v7496_v50, %v7496_v50  ;;  %v7573_v8 = vrot.slane %v7496_v50, %v15703_v54  ;;  %v7569_v38 = vrot.slane %v7496_v50, %v14124_v23  ;;  %v7505_v55 = vcombine.high %v7503_v39, %v7503_v39 }
 0xab8   : > { %v7589_v52 = vrot.slane %v7503_v39, %v15703_v54  ;;  %v7585_v44 = vrot.slane %v7503_v39, %v14124_v23 }
 0xab9   : > { %v7581_v16 = vrot.slane %v7504_v63, %v15703_v54  ;;  %v7577_v13 = vrot.slane %v7504_v63, %v14124_v23  ;;  %v7593_v61 = vrot.slane %v7505_v55, %v14124_v23  ;;  %v7597_v3 = vrot.slane %v7505_v55, %v15703_v54 }
 0xabb   : > { %v7701_v19 = vsel %vm16726_vm2, %v7581_v16, %v7573_v8  ;;  %v7694_v48 = vsel %vm16727_vm3, %v7577_v13, %v7569_v38  ;;  %vm16732_vm2 = vcmask 1044484  }
 0xabc   : > { %v7702_v28 = vsel %vm16728_vm14, %v7589_v52, %v7701_v19  ;;  %v7695_v1 = vsel %vm16729_vm13, %v7585_v44, %v7694_v48  ;;  %vm16733_vm3 = vmmov %vm16732_vm2  ;;  %vm16734_vm14 = vcmask 1045509  }
 0xabd   : > { %v7703_v37 = vsel %vm16730_vm8, %v7597_v3, %v7702_v28  ;;  %v7696_v14 = vsel %vm16731_vm1, %v7593_v61, %v7695_v1  ;;  %vm16735_vm13 = vmmov %vm16734_vm14 }
 0xad7   : > { %v7365_v42 = vpop.permute.xlu0 %7364 }
 0xad8   : > { %v7465_v46 = vsel %vm2544_vm9, %v7461_v2, %v7365_v42 }
 0xada   : > { %v7393_v10 = vpop.permute.xlu1 %7392 }
 0xadb   : > { %v7417_v27 = vpop.permute.xlu0 %7416  ;;  %v7469_v26 = vsel %vm2610_vm11, %v7465_v46, %v7393_v10 }
 0xadc   : > { %v7473_v15 = vsel %vm6629_vm15, %v7469_v26, %v7417_v27 }
 0xade   : > { %v7430_v47 = vpop.permute.xlu1 %7429 }
 0xadf   : > { %v7352_v31 = vpop.permute.xlu0 %7351  ;;  %v7477_v32 = vsel %vm6638_vm10, %v7473_v15, %v7430_v47 }
 0xae2   : > { %v7334_v40 = vpop.permute.xlu1 %7333 }
 0xae3   : > { %v7446_v22 = vpop.permute.xlu0 %7445  ;;  %v7459_v5 = vsel %vm2412_vm5, %v15598_v17, %v7334_v40 }
 0xae4   : > { %v7481_v57 = vsel %vm6647_vm6, %v7477_v32, %v7446_v22  ;;  %v7462_v20 = vsel %vm2478_vm7, %v7459_v5, %v7352_v31 }
 0xae5   : > { %v7506_v18 = vcombine.low %v7481_v57, %v15607_v41  ;;  %v7507_v24 = vcombine.high %v7481_v57, %v15607_v41 }
 0xae6   : > { %v7367_v4 = vpop.permute.xlu1 %7366 }
 0xae7   : > { %v7514_v12 = vrot.slane %v7506_v18, %v14093_v29  ;;  %v7521_v25 = vrot.slane %v7507_v24, %v14093_v29  ;;  %v7466_v21 = vsel %vm2544_vm9, %v7462_v20, %v7367_v4 }
 0xae8   : > { %v7395_v6 = vpop.permute.xlu0 %7394 }
 0xae9   : > { %v7522_v41 = vcombine.high %v7514_v12, %v7514_v12  ;;  %v7523_v49 = vcombine.high %v7521_v25, %v7521_v25  ;;  %v7601_v7 = vrot.slane %v7514_v12, %v14124_v23  ;;  %v7605_v43 = vrot.slane %v7514_v12, %v15703_v54 }
 0xaea   : > { %v7419_v17 = vpop.permute.xlu1 %7418  ;;  %v7617_v60 = vrot.slane %v7521_v25, %v14124_v23  ;;  %v7621_v56 = vrot.slane %v7521_v25, %v15703_v54  ;;  %v7470_v50 = vsel %vm2610_vm11, %v7466_v21, %v7395_v6 }
 0xaeb   : > { %v7609_v58 = vrot.slane %v7522_v41, %v14124_v23  ;;  %v7613_v30 = vrot.slane %v7522_v41, %v15703_v54  ;;  %v7704_v34 = vsel %vm16732_vm2, %v7605_v43, %v7703_v37  ;;  %v7697_v45 = vsel %vm16733_vm3, %v7601_v7, %v7696_v14  ;;  %vm16740_vm3 = vmmov %vm16731_vm1 }
 0xaec   : > { %v7432_v36 = vpop.permute.xlu0 %7431  ;;  %v7629_v11 = vrot.slane %v7523_v49, %v15703_v54  ;;  %v7625_v0 = vrot.slane %v7523_v49, %v14124_v23  ;;  %v7474_v59 = vsel %vm6629_vm15, %v7470_v50, %v7419_v17 }
 0xaed   : > { %v7705_v9 = vsel %vm16734_vm14, %v7613_v30, %v7704_v34  ;;  %v7698_v42 = vsel %vm16735_vm13, %v7609_v58, %v7697_v45  ;;  %v7478_v46 = vsel %vm6638_vm10, %v7474_v59, %v7432_v36  ;;  %vm16741_vm14 = vmmov %vm16732_vm2  ;;  %v7806_v59 = vld [vmem:[%s16375_s15 + $0x8] sm:$0xff] }
 0xaee   : > { %v7336_v10 = vpop.permute.xlu1 %7335  ;;  %v7706_v27 = vsel %vm6122_vm12, %v7621_v56, %v7705_v9  ;;  %v7699_v62 = vsel %vm6122_vm12, %v7617_v60, %v7698_v42 }
 0xaef   : > { %v7707_v63 = vsel %vm6124_vm4, %v7629_v11, %v7706_v27  ;;  %v7700_v2 = vsel %vm6124_vm4, %v7625_v0, %v7699_v62  ;;  %v7460_v31 = vsel %vm2412_vm5, %v15652_v35, %v7336_v10 }
 0xaf0   : > { %9255 = vmatprep.mubr.msk.f32.mxu1 %vm2412_vm5, %v7707_v63  ;;  %v7354_v47 = vpop.permute.xlu0 %7353  ;;  %v7805_v63 = vld [vmem:[%s16375_s15] sm:$0xff] }
 0xaf1   : > { %7793 = vmatmul.mubr.f32.vlgmr.msra.gmra.mxu1 %v7700_v2  ;;  %v7463_v13 = vsel %vm2478_vm7, %v7460_v31, %v7354_v47  ;;  %v9254_v2 = vld [vmem:[%s16374_s14] ss:$0 sm:$0xff] }
 0xaf2   : > { %v7448_v26 = vpop.permute.xlu1 %7447 }
 0xaf3   : > { %v7482_v39 = vsel %vm6647_vm6, %v7478_v46, %v7448_v26 }
 0xaf4   : > { %v7524_v16 = vcombine.low %v7482_v39, %v15667_v33  ;;  %v7525_v38 = vcombine.high %v7482_v39, %v15667_v33 }
 0xaf6   : > { %v7532_v8 = vrot.slane %v7524_v16, %v14093_v29  ;;  %v7397_v15 = vpop.permute.xlu0 %7396  ;;  %v7369_v40 = vpop.permute.xlu1 %7368  ;;  %v7539_v35 = vrot.slane %v7525_v38, %v14093_v29 }
 0xaf7   : > { %v7467_v32 = vsel %vm2544_vm9, %v7463_v13, %v7369_v40  ;;  %vm16736_vm9 = vcmask 1041409  }
 0xaf8   : > { %v7540_v22 = vcombine.high %v7532_v8, %v7532_v8  ;;  %v7471_v55 = vsel %vm2610_vm11, %v7467_v32, %v7397_v15  ;;  %v7637_v24 = vrot.slane %v7532_v8, %v15703_v54  ;;  %v7633_v44 = vrot.slane %v7532_v8, %v14124_v23  ;;  %vm16737_vm8 = vmmov %vm16736_vm9  ;;  %v9257_v15 = vld [vmem:[%s16376_s16] ss:$0 sm:$0xff] }
 0xaf9   : > { %v7541_v28 = vcombine.high %v7539_v35, %v7539_v35  ;;  %v7653_v25 = vrot.slane %v7539_v35, %v15703_v54  ;;  %v7649_v6 = vrot.slane %v7539_v35, %v14124_v23 }
 0xafa   : > { %v7421_v19 = vpop.permute.xlu1 %7420  ;;  %v7645_v57 = vrot.slane %v7540_v22, %v15703_v54  ;;  %v7434_v52 = vpop.permute.xlu0 %7433  ;;  %v7641_v18 = vrot.slane %v7540_v22, %v14124_v23 }
 0xafb   : > { %v7475_v48 = vsel %vm6629_vm15, %v7471_v55, %v7421_v19  ;;  %vm16738_vm15 = vcmask 1042434   ;;  %v7657_v43 = vrot.slane %v7541_v28, %v14124_v23  ;;  %v7661_v20 = vrot.slane %v7541_v28, %v15703_v54 }
 0xafc   : > { %v7479_v33 = vsel %vm6638_vm10, %v7475_v48, %v7434_v52  ;;  %v7715_v5 = vsel %vm16736_vm9, %v7645_v57, %v7637_v24  ;;  %v7708_v61 = vsel %vm16737_vm8, %v7641_v18, %v7633_v44  ;;  %vm16742_vm9 = vmmov %vm16735_vm13 }
 0xafd   : > { %v7716_v41 = vsel %vm16738_vm15, %v7653_v25, %v7715_v5 }
 0xafe   : > { %v7450_v4 = vpop.permute.xlu1 %7449  ;;  %v7717_v21 = vsel %vm16731_vm1, %v7661_v20, %v7716_v41  ;;  %v7810_v41 = vld [vmem:[%s16377_s17] sm:$0xff] }
 0xaff   : > { %v7483_v12 = vsel %vm6647_vm6, %v7479_v33, %v7450_v4  ;;  %vm16739_vm6 = vmmov %vm16738_vm15 }
 0xb00   : > { %v7542_v3 = vcombine.low %v7483_v12, %v15684_v53  ;;  %v7543_v1 = vcombine.high %v7483_v12, %v15684_v53  ;;  %v7709_v17 = vsel %vm16739_vm6, %v7649_v6, %v7708_v61  ;;  %v7811_v6 = vld [vmem:[%s16377_s17 + $0x8] sm:$0xff] }
 0xb01   : > { %v7710_v56 = vsel %vm16740_vm3, %v7657_v43, %v7709_v17 }
 0xb02   : > { %v7550_v49 = vrot.slane %v7542_v3, %v14093_v29  ;;  %v7557_v7 = vrot.slane %v7543_v1, %v14093_v29 }
 0xb04   : > { %v7558_v37 = vcombine.high %v7550_v49, %v7550_v49  ;;  %v7559_v58 = vcombine.high %v7557_v7, %v7557_v7  ;;  %v7665_v30 = vrot.slane %v7550_v49, %v14124_v23  ;;  %v7669_v53 = vrot.slane %v7550_v49, %v15703_v54 }
 0xb05   : > { %v7685_v36 = vrot.slane %v7557_v7, %v15703_v54  ;;  %v7681_v34 = vrot.slane %v7557_v7, %v14124_v23 }
 0xb06   : > { %v7677_v14 = vrot.slane %v7558_v37, %v15703_v54  ;;  %v7718_v60 = vsel %vm16732_vm2, %v7669_v53, %v7717_v21  ;;  %v7673_v29 = vrot.slane %v7558_v37, %v14124_v23  ;;  %v7711_v45 = vsel %vm16741_vm14, %v7665_v30, %v7710_v56 }
 0xb07   : > { %v7693_v11 = vrot.slane %v7559_v58, %v15703_v54  ;;  %v7689_v0 = vrot.slane %v7559_v58, %v14124_v23  ;;  %v7808_v54 = vld [vmem:[%s16375_s15 + $0x18] sm:$0xff]  ;;  %v7807_v23 = vld [vmem:[%s16375_s15 + $0x10] sm:$0xff] }
 0xb08   : > { %v7719_v9 = vsel %vm16735_vm13, %v7677_v14, %v7718_v60  ;;  %v7712_v42 = vsel %vm16742_vm9, %v7673_v29, %v7711_v45  ;;  %9752 = vmatprep.subr.mxu1 %v7808_v54 }
 0xb09   : > { %v7720_v50 = vsel %vm6122_vm12, %v7685_v36, %v7719_v9  ;;  %v7713_v10 = vsel %vm6122_vm12, %v7681_v34, %v7712_v42  ;;  %9753 = vmatpush3.msra.mxu1 %v7808_v54  ;;  %v8227_v9 = vld [vmem:[%s16379_s19 + $0x110] sm:$0xff]  ;;  %v8225_v42 = vld [vmem:[%s16379_s19 + $0x100] sm:$0xff]  ;;  %v8224_v54 = vld [vmem:[%s16379_s19 + $0xf8] sm:$0xff] }
 0xb0a   : > { %v7721_v27 = vsel %vm6124_vm4, %v7693_v11, %v7720_v50  ;;  %v7714_v62 = vsel %vm6124_vm4, %v7689_v0, %v7713_v10  ;;  %9754 = vmatprep.subr.mxu1 %v7807_v23  ;;  %vm8246_vm4 = vcmask 1044480   ;;  %v8228_v11 = vld [vmem:[%s16379_s19 + $0x118] sm:$0xff]  ;;  %v8226_v0 = vld [vmem:[%s16379_s19 + $0x108] sm:$0xff]  ;;  %v9266_v50 = vld [vmem:[%s16378_s18] ss:$0 sm:$0xff] }
 0xb0b   : > { %9256 = vmatprep.mubr.msk.f32.mxu1 %vm2412_vm5, %v7721_v27  ;;  %9755 = vmatpush3.msra.mxu1 %v7807_v23  ;;  %v15855_v49 = vsel %vm8246_vm4, %v16689_v51, 0.0  ;;  %v8208_v23 = vld [vmem:[%s16379_s19 + $0x78] sm:$0xff] }
 0xb0c   : > { %7798 = vmatmul.mubr.f32.gmra.mxu1 %v7714_v62  ;;  %9756 = vmatprep.subr.mxu1 %v7806_v59  ;;  %v8256_v7 = vrot.slane %v15855_v49, 1  ;;  %v15862_v34 = vrot.slane %v15855_v49, 2 }
 0xb0d   : > { %9757 = vmatpush3.msra.mxu1 %v7806_v59 }
 0xb0e   : > { %9758 = vmatprep.subr.mxu1 %v7805_v63  ;;  %v10183_v45 = vpack.i.bf16 %v15855_v49, %v15862_v34 }
 0xb0f   : > { %9759 = vmatpush3.msra.mxu1 %v7805_v63 }
 0xbb1   : > { %v7794_v46 = vpop.f32.mrf.mxu1 }
 0xbb2   : > { %v15816_v47 = vadd.f32 %v9254_v2, %v7794_v46  ;;  %v8207_v46 = vld [vmem:[%s16379_s19 + $0x70] sm:$0xff] }
 0xbb3   : > { %v7796_v26 = vpop.f32.mrf.mxu1 }
 0xbb4   : > { %v7803_v31 = vmax.f32 %v15816_v47, 0.0 }
 0xbb6   : > { %9760 = vmatprep.mubr.msk.f32.mxu1 %vm2478_vm7, %v7803_v31 }
 0xbcc   : > { %v7799_v39 = vpop.f32.mrf.mxu1 }
 0xbcd   : > { %v15822_v16 = vadd.f32 %v9254_v2, %v7799_v39  ;;  %v8223_v2 = vld [vmem:[%s16379_s19 + $0xf0] sm:$0xff] }
 0xbce   : > { %v7801_v13 = vpop.f32.mrf.mxu1 }
 0xbcf   : > { %v7804_v8 = vmax.f32 %v15822_v16, 0.0  ;;  %v8222_v13 = vld [vmem:[%s16379_s19 + $0xe8] sm:$0xff] }
 0xbd1   : > { %9761 = vmatmul.mubr.msk.f32.vlgmr.msra.gmra.mxu1 %vm2478_vm7, %v7804_v8 }
 0xc91   : > { %v9762_v40 = vpop.f32.mrf.mxu1 }
 0xc92   : > { %v7897_v38 = vadd.f32 %v9762_v40, %v9257_v15 }
 0xc93   : > { %v7891_v32 = vpop.f32.mrf.mxu1 }
 0xc94   : > { %v7892_v22 = vadd.f32 %v9257_v15, %v7891_v32  ;;  %7904 = vrot.lane.b32.xlu0 %v7897_v38, %s16724_s10  ;;  %v8221_v32 = vld [vmem:[%s16379_s19 + $0xe0] sm:$0xff] }
 0xc96   : > { %7902 = vrot.lane.b32.xlu1 %v7892_v22, %s16724_s10  ;;  %9767 = vmatprep.mubr.msk.f32.mxu0 %vm2412_vm5, %v7892_v22  ;;  %s822_s10 = sand.u32 1, %s16743_s0  }
 0xc97   : > { %s9124_s2 = sshll.u32 %s822_s10, 4  ;;  %s16319_s6 = scalar_lea.sflag [#allocation4], %s822_s10 }
 0xc98   : > { %s824_s4 = scalar_lea.vmem [#allocation11], %s9124_s2 }
 0xc99   : > { %s8998_s12 = sshll.u32 %s824_s4, 4  ;;  %s16310_s12 = int_to_ptr.vmem [resolvable:$true] %s8998_s12 }
 0xc9a   : > { %s10330_s7 = scalar_lea.vmem %s16310_s12, 256  ;;  %p10337_p6 = scmp.lt.s32.totalorder %s16310_s12, %s10335_s11 }
 0xc9b   : > { %p10331_p7 = scmp.ne.s32.totalorder %s16310_s12, %s10330_s7  ;;  %p10338_p0 = scmp.lt.s32.totalorder %s10336_s8, %s10330_s7 }
 0xc9d   : > { %p10332_p9 = pnand %p10331_p7, %p16748_p8  ;;  %p10339_p1 = por %p10338_p0, %p10337_p6 }
 0xc9f   : > { %p10333_p11 = pneg %p10332_p9 }
 0xca1   : > { %p10340_p5 = pnand %p10339_p1, %p10333_p11 }
 0xd06   : > { %v7905_v55 = vpop.permute.xlu0 %7904 }
 0xd07   : > { %9763 = vmatprep.subr.msk.mxu0 %vm2412_vm5, %v7905_v55 }
 0xd08   : > { %9764 = vmatpush3.xpose.msk.msra.mxu0 %vm2412_vm5, %v7905_v55  ;;  %v7903_v19 = vpop.permute.xlu1 %7902 }
 0xd09   : > { %9765 = vmatprep.subr.msk.mxu0 %vm2412_vm5, %v7903_v19 }
 0xd0c   : > { %9766 = vmatpush3.xpose.msk.msra.mxu0 %vm2412_vm5, %v7903_v19 }
 0xd0d   : > { %9777 = vmatprep.subr.mxu0 %v7811_v6 }
 0xd0f   : > { %9768 = vmatmul.mubr.msk.f32.vlgmr.msra.gmra.mxu0 %vm2412_vm5, %v7897_v38 }
 0xd10   : > { %9778 = vmatpush3.msra.mxu0 %v7811_v6 }
 0xd11   : > { %9779 = vmatprep.subr.mxu0 %v7810_v41 }
 0xd12   : > { %9780 = vmatpush3.msra.mxu0 %v7810_v41  ;;  %v8217_v41 = vld [vmem:[%s16379_s19 + $0xc0] sm:$0xff] }
 0xd13   : > { %9784 = vmatprep.subr.mxu0 %v8228_v11 }
 0xdcf   : > { %v9769_v35 = vpop.f32.mrf.mxu0 }
 0xdd0   : > { %v7992_v57 = vsel %vm2412_vm5, %v9769_v35, -inf }
 0xdd1   : > { %7993 = vmax.xlane.f32.xlu1 %v7992_v57  ;;  %v7980_v52 = vpop.f32.mrf.mxu0 }
 0xdd2   : > { %v7989_v48 = vsel %vm2412_vm5, %v7980_v52, -inf }
 0xdd3   : > { %7990 = vmax.xlane.f32.xlu0 %v7989_v48  ;;  %v8220_v48 = vld [vmem:[%s16379_s19 + $0xd8] sm:$0xff] }
 0xde2   : > { %8015 = vrot.lane.b32.xlu1 %v7892_v22, %s16723_s3  ;;  %v8205_v22 = vld [vmem:[%s16379_s19 + $0x60] sm:$0xff] }
 0xde9   : > { %8017 = vrot.lane.b32.xlu0 %v7897_v38, %s16723_s3 }
 0xe5a   : > { %v7994_v18 = vpop.xlane.xlu1 %7993 }
 0xe5b   : > { %v7996_v24 = vsub.f32 %v9769_v35, %v7994_v18  ;;  %v8204_v18 = vld [vmem:[%s16379_s19 + $0x58] sm:$0xff] }
 0xe5c   : > { %v7991_v44 = vpop.xlane.xlu0 %7990 }
 0xe5d   : > { %v7999_v33 = vmul.f32 1.442695, %v7996_v24  ;;  %v7995_v4 = vsub.f32 %v7980_v52, %v7991_v44 }
 0xe5e   : > { %v8016_v12 = vpop.permute.xlu1 %8015 }
 0xe5f   : > { %10188 = vpow2.f32 %v7999_v33  ;;  %v7997_v28 = vmul.f32 1.442695, %v7995_v4 }
 0xe60   : > { %v8018_v5 = vpop.permute.xlu0 %8017 }
 0xe61   : > { %10190 = vpow2.f32 %v7997_v28  ;;  %9770 = vmatprep.subr.mxu1 %v8018_v5  ;;  %v8219_v28 = vld [vmem:[%s16379_s19 + $0xd0] sm:$0xff] }
 0xe62   : > { %9771 = vmatpush3.msra.mxu1 %v8018_v5  ;;  %v8203_v5 = vld [vmem:[%s16379_s19 + $0x50] sm:$0xff] }
 0xe63   : > { %9772 = vmatprep.subr.mxu1 %v8016_v12 }
 0xe64   : > { %9773 = vmatpush3.msra.mxu1 %v8016_v12 }
 0xe65   : > { %9444 = vmatprep.subr.mxu1 %v8224_v54 }
 0xe6c   : > { %v10189_v25 = vpop.eup %10188 }
 0xe6d   : > { %v8004_v61 = vsel %vm2412_vm5, %v10189_v25, 0.0 }
 0xe6e   : > { %v10191_v3 = vpop.eup %10190  ;;  %8005 = vadd.xlane.f32.xlu1 %v8004_v61  ;;  %v8218_v61 = vld [vmem:[%s16379_s19 + $0xc8] sm:$0xff] }
 0xe6f   : > { %9774 = vmatprep.mubr.msk.f32.mxu1 %vm2412_vm5, %v10191_v3  ;;  %v8001_v1 = vsel %vm2412_vm5, %v10191_v3, 0.0  ;;  %v8202_v3 = vld [vmem:[%s16379_s19 + $0x48] sm:$0xff] }
 0xe70   : > { %8002 = vadd.xlane.f32.xlu0 %v8001_v1  ;;  %9775 = vmatmul.mubr.msk.f32.vlgmr.msra.gmra.mxu1 %vm2412_vm5, %v10189_v25 }
 0xe71   : > { %9445 = vmatpush3.msra.mxu1 %v8208_v23 }
 0xe72   : > { %9446 = vmatprep.subr.mxu1 %v8223_v2 }
 0xe73   : > { %9447 = vmatpush3.msra.mxu1 %v8207_v46 }
 0xe74   : > { %9448 = vmatprep.subr.mxu1 %v8222_v13 }
 0xe86   : > { %8260 = vrot.lane.b32.xlu0 %v8256_v7, %s16718_s30 }
 0xe8a   : > { %10184 = vrot.lane.b32.xlu0 %v10183_v45, %s16579_s28  ;;  %v8210_v45 = vld [vmem:[%s16379_s19 + $0x88] sm:$0xff] }
 0xe8e   : > { %8337 = vrot.lane.b32.xlu0 %v8256_v7, %s16723_s3  ;;  %v8201_v7 = vld [vmem:[%s16379_s19 + $0x40] sm:$0xff] }
 0xef7   : > { %v8006_v20 = vpop.xlane.xlu1 %8005 }
 0xef9   : > { %v8003_v43 = vpop.xlane.xlu0 %8002 }
 0xefa   : > { %10192 = vrcp.f32 %v8003_v43 }
 0xefb   : > { %10194 = vrcp.f32 %v8006_v20 }
 0xf07   : > { %v10193_v17 = vpop.eup %10192 }
 0xf08   : > { %v10195_v37 = vpop.eup %10194  ;;  %v8009_v58 = vmul.f32 %v10193_v17, %v8003_v43  ;;  %v8216_v43 = vld [vmem:[%s16379_s19 + $0xb8] sm:$0xff] }
 0xf09   : > { %v8010_v30 = vmul.f32 %v10195_v37, %v8006_v20  ;;  %v8200_v20 = vld [vmem:[%s16379_s19 + $0x38] sm:$0xff] }
 0xf0a   : > { %v8011_v53 = vsub.f32 2.0, %v8009_v58  ;;  %v8199_v58 = vld [vmem:[%s16379_s19 + $0x30] sm:$0xff] }
 0xf0b   : > { %v8012_v21 = vsub.f32 2.0, %v8010_v30  ;;  %v8214_v30 = vld [vmem:[%s16379_s19 + $0xa8] sm:$0xff] }
 0xf0c   : > { %v8013_v60 = vmul.f32 %v10193_v17, %v8011_v53  ;;  %v8198_v53 = vld [vmem:[%s16379_s19 + $0x28] sm:$0xff] }
 0xf0d   : > { %v8014_v29 = vmul.f32 %v10195_v37, %v8012_v21  ;;  %v8215_v37 = vld [vmem:[%s16379_s19 + $0xb0] sm:$0xff] }
 0xf30   : > { %v9776_v14 = vpop.f32.mrf.mxu1 }
 0xf31   : > { %v8103_v36 = vmul.f32 %v9776_v14, %v8014_v29  ;;  %v8213_v14 = vld [vmem:[%s16379_s19 + $0xa0] sm:$0xff]  ;;  %v8212_v29 = vld [vmem:[%s16379_s19 + $0x98] sm:$0xff] }
 0xf32   : > { %v8093_v56 = vpop.f32.mrf.mxu1 }
 0xf33   : > { %v8102_v51 = vmul.f32 %v8093_v56, %v8013_v60  ;;  %v8197_v60 = vld [vmem:[%s16379_s19 + $0x20] sm:$0xff]  ;;  %v8196_v56 = vld [vmem:[%s16379_s19 + $0x18] sm:$0xff] }
 0xf35   : > { %9781 = vmatprep.mubr.msk.f32.mxu0 %vm2412_vm5, %v8102_v51  ;;  %v8211_v51 = vld [vmem:[%s16379_s19 + $0x90] sm:$0xff] }
 0xf36   : > { %9782 = vmatmul.mubr.msk.f32.vlgmr.msra.gmra.mxu0 %vm2412_vm5, %v8103_v36  ;;  %v8195_v36 = vld [vmem:[%s16379_s19 + $0x10] sm:$0xff] }
 0xf37   : > { %9785 = vmatpush3.msra.mxu0 %v8228_v11  ;;  %v8194_v11 = vld [vmem:[%s16379_s19 + $0x8] sm:$0xff] }
 0xf38   : > { %9786 = vmatprep.subr.mxu0 %v8227_v9 }
 0xf39   : > { %9787 = vmatpush3.msra.mxu0 %v8227_v9  ;;  %v8209_v9 = vld [vmem:[%s16379_s19 + $0x80] sm:$0xff] }
 0xf3a   : > { %9788 = vmatprep.subr.mxu0 %v8226_v0 }
 0xf3b   : > { %9789 = vmatpush3.msra.mxu0 %v8226_v0  ;;  %v8193_v0 = vld [vmem:[%s16379_s19] sm:$0xff] }
 0xf3c   : > { %9790 = vmatprep.subr.mxu0 %v8225_v42 }
 0xf3d   : > { %9791 = vmatpush3.msra.mxu0 %v8225_v42 }
 0xff6   : > { %v9783_v10 = vpop.f32.mrf.mxu0 }
 0xff7   : > { %v8188_v27 = vadd.f32 %v9783_v10, %v9266_v50  ;;  %v8261_v10 = vpop.permute.xlu0 %8260 }
 0xff8   : > { %v8182_v62 = vpop.f32.mrf.mxu0 }
 0xff9   : > { %v15891_v59 = vadd.f32 %v8188_v27, %v7804_v8  ;;  %v8183_v63 = vadd.f32 %v9266_v50, %v8182_v62  ;;  %v8206_v8 = vld [vmem:[%s16379_s19 + $0x68] sm:$0xff] }
 0xffa   : > { %9449 = vmatpush3.msra.mxu1 %v8206_v8 }
 0xffb   : > { %v8233_v26 = vcombine.high %v15891_v59, %v15891_v59  ;;  %v8236_v39 = vrot.slane %v15891_v59, 7  ;;  %v15904_v16 = vadd.f32 %v8183_v63, %v7803_v31  ;;  %9450 = vmatprep.subr.mxu1 %v8221_v32  ;;  %v16058_v27 = vpop.permute.xlu0 %10184 }
 0xffc   : > { %9451 = vmatpush3.msra.mxu1 %v8205_v22 }
 0xffd   : > { %v8237_v15 = vrot.slane %v8233_v26, 7  ;;  %v8232_v40 = vcombine.high %v15904_v16, %v15904_v16  ;;  %v8244_v38 = vsel %vm968_vm0, 0.0, %v8236_v39  ;;  %v8234_v47 = vrot.slane %v15904_v16, 7  ;;  %9452 = vmatprep.subr.mxu1 %v8220_v48 }
 0xffe   : > { %v15917_v31 = vsel %vm8246_vm4, %v8244_v38, 0.0  ;;  %9453 = vmatpush3.msra.mxu1 %v8204_v18 }
 0xfff   : > { %v8245_v55 = vsel %vm968_vm0, 0.0, %v8237_v15  ;;  %v8235_v19 = vrot.slane %v8232_v40, 7  ;;  %8321 = vrot.lane.b32.xlu1 %v15917_v31, %s16579_s28  ;;  %v8242_v35 = vsel %vm968_vm0, 0.0, %v8234_v47  ;;  %v15945_v44 = vrot.slane %v15917_v31, 1  ;;  %9454 = vmatprep.subr.mxu1 %v8219_v28  ;;  %v16060_v62 = vpop.permute.xlu0 %8337 }
0x1000   : > { %v15930_v57 = vsel %vm8246_vm4, %v8245_v55, 0.0  ;;  %v15933_v52 = vsel %vm8246_vm4, %v8242_v35, 0.0  ;;  %v8275_v12 = vrot.slane %v15917_v31, 2  ;;  %9455 = vmatpush3.msra.mxu1 %v8203_v5  ;;  %v10186_v55 = vunpack.i.l.bf16 %v16058_v27 }
0x1001   : > { %v8243_v24 = vsel %vm968_vm0, 0.0, %v8235_v19  ;;  %8289 = vrot.lane.b32.xlu0 %v15933_v52, %s16723_s3  ;;  %v8306_v4 = vrot.slane %v15930_v57, 2  ;;  %9456 = vmatprep.subr.mxu1 %v8218_v61  ;;  %v8257_v17 = vrot.slane %v15933_v52, 1  ;;  %v8273_v21 = vrot.slane %v15933_v52, 2 }
0x1002   : > { %v15948_v33 = vsel %vm8246_vm4, %v8243_v24, 0.0  ;;  %9457 = vmatpush3.msra.mxu1 %v8202_v3  ;;  %v8301_v50 = vrot.slane %v15930_v57, 1  ;;  %v8343_v35 = vsel %vm2478_vm7, %v15855_v49, %v8261_v10  ;;  %v8580_v10 = vld [vmem:[%s16381_s21 + $0xe8] sm:$0xff] }
0x1003   : > { %8333 = vrot.lane.b32.xlu1 %v15945_v44, %s16723_s3  ;;  %v15961_v25 = vrot.slane %v15948_v33, 2  ;;  %v8390_v6 = vcombine.low %v8306_v4, %v15862_v34  ;;  %9458 = vmatprep.subr.mxu1 %v8217_v41  ;;  %v8258_v42 = vrot.slane %v15948_v33, 1 }
0x1004   : > { %9459 = vmatpush3.msra.mxu1 %v8201_v7 }
0x1005   : > { %8311 = vrot.lane.b32.xlu0 %v8275_v12, %s16718_s30  ;;  %v8387_v1 = vcombine.low %v15961_v25, %v8275_v12  ;;  %9460 = vmatprep.subr.mxu1 %v8216_v43 }
0x1006   : > { %9461 = vmatpush3.msra.mxu1 %v8200_v20 }
0x1007   : > { %8266 = vrot.lane.b32.xlu1 %v15945_v44, %s16718_s30  ;;  %9792 = vmatprep.mubr.msk.f32.mxu0 %vm2478_vm7, %v8387_v1  ;;  %v16084_v1 = vsel %vm2610_vm11, %v8343_v35, %v10186_v55  ;;  %v8576_v35 = vld [vmem:[%s16381_s21 + $0xc8] sm:$0xff] }
0x1008   : > { %9793 = vmatmul.mubr.msk.f32.vlgmr.msra.gmra.mxu0 %vm2478_vm7, %v8390_v6  ;;  %9462 = vmatprep.subr.mxu1 %v8215_v37 }
0x1009   : > { %8323 = vrot.lane.b32.xlu0 %v15930_v57, %s16579_s28  ;;  %9463 = vmatpush3.msra.mxu1 %v8199_v58 }
0x100a   : > { %9464 = vmatprep.subr.mxu1 %v8214_v30 }
0x100b   : > { %8262 = vrot.lane.b32.xlu1 %v8257_v17, %s16718_s30  ;;  %9465 = vmatpush3.msra.mxu1 %v8198_v53 }
0x100c   : > { %9466 = vmatprep.subr.mxu1 %v8213_v14 }
0x100d   : > { %8282 = vrot.lane.b32.xlu0 %v8275_v12, %s16579_s28  ;;  %9467 = vmatpush3.msra.mxu1 %v8197_v60 }
0x100e   : > { %9468 = vmatprep.subr.mxu1 %v8212_v29 }
0x100f   : > { %8278 = vrot.lane.b32.xlu1 %v8273_v21, %s16579_s28  ;;  %9469 = vmatpush3.msra.mxu1 %v8196_v56 }
0x1010   : > { %9470 = vmatprep.subr.mxu1 %v8211_v51 }
0x1011   : > { %8307 = vrot.lane.b32.xlu0 %v8273_v21, %s16718_s30  ;;  %9471 = vmatpush3.msra.mxu1 %v8195_v36 }
0x1012   : > { %9472 = vmatprep.subr.mxu1 %v8210_v45  ;;  %v8584_v45 = vld [vmem:[%s16381_s21 + $0x108] sm:$0xff] }
0x1013   : > { %8291 = vrot.lane.b32.xlu1 %v15948_v33, %s16723_s3  ;;  %9473 = vmatpush3.msra.mxu1 %v8194_v11  ;;  %v8583_v11 = vld [vmem:[%s16381_s21 + $0x100] sm:$0xff] }
0x1014   : > { %9474 = vmatprep.subr.mxu1 %v8209_v9  ;;  %v8582_v9 = vld [vmem:[%s16381_s21 + $0xf8] sm:$0xff] }
0x1015   : > { %8319 = vrot.lane.b32.xlu0 %v15948_v33, %s16579_s28  ;;  %9475 = vmatpush3.msra.mxu1 %v8193_v0  ;;  %v8566_v0 = vld [vmem:[%s16381_s21 + $0x78] sm:$0xff] }
0x1016   : > { %9488 = vmatprep.subr.mxu0 %v8582_v9 }
0x1017   : > { %8313 = vrot.lane.b32.xlu1 %v8306_v4, %s16718_s30  ;;  %9489 = vmatpush3.msra.mxu0 %v8566_v0 }
0x1019   : > { %8331 = vrot.lane.b32.xlu0 %v8258_v42, %s16723_s3 }
0x101b   : > { %8335 = vrot.lane.b32.xlu1 %v8301_v50, %s16723_s3 }
0x101d   : > { %8264 = vrot.lane.b32.xlu0 %v8258_v42, %s16718_s30 }
0x101f   : > { %8309 = vrot.lane.b32.xlu1 %v15961_v25, %s16718_s30 }
0x1021   : > { %8295 = vrot.lane.b32.xlu0 %v15930_v57, %s16723_s3  ;;  %v10187_v57 = vunpack.i.h.bf16 %v16058_v27 }
0x1023   : > { %8280 = vrot.lane.b32.xlu1 %v15961_v25, %s16579_s28 }
0x1027   : > { %8293 = vrot.lane.b32.xlu1 %v15917_v31, %s16723_s3 }
0x1071   : > { %v8322_v54 = vpop.permute.xlu1 %8321 }
0x1073   : > { %v8290_v23 = vpop.permute.xlu0 %8289 }
0x1074   : > { %v8351_v7 = vsel %vm6638_vm10, %v16084_v1, %v8290_v23 }
0x1075   : > { %v8334_v63 = vpop.permute.xlu1 %8333 }
0x1077   : > { %v8312_v2 = vpop.permute.xlu0 %8311 }
0x1078   : > { %v8357_v48 = vsel %vm2478_vm7, %v15945_v44, %v8312_v2  ;;  %v9269_v2 = vld [vmem:[#allocation7] ss:$0 sm:$0xff] }
0x1079   : > { %v8267_v46 = vpop.permute.xlu1 %8266 }
0x107a   : > { %v8346_v53 = vsel %vm2478_vm7, %v15917_v31, %v8267_v46  ;;  %v8586_v31 = vld [vmem:[%s16381_s21 + $0x118] sm:$0xff] }
0x107b   : > { %v8324_v26 = vpop.permute.xlu0 %8323  ;;  %9795 = vmatprep.subr.mxu1 %v8586_v31 }
0x107c   : > { %v8361_v28 = vsel %vm2610_vm11, %v8357_v48, %v8324_v26  ;;  %v8579_v26 = vld [vmem:[%s16381_s21 + $0xe0] sm:$0xff]  ;;  %v8560_v48 = vld [vmem:[%s16381_s21 + $0x48] sm:$0xff] }
0x107d   : > { %v8263_v39 = vpop.permute.xlu1 %8262 }
0x107e   : > { %v8344_v18 = vsel %vm2478_vm7, %v15933_v52, %v8263_v39  ;;  %v8563_v39 = vld [vmem:[%s16381_s21 + $0x60] sm:$0xff] }
0x107f   : > { %v8283_v13 = vpop.permute.xlu0 %8282 }
0x1080   : > { %v8350_v14 = vsel %vm2610_vm11, %v8346_v53, %v8283_v13  ;;  %v8556_v53 = vld [vmem:[%s16381_s21 + $0x28] sm:$0xff] }
0x1081   : > { %v8279_v8 = vpop.permute.xlu1 %8278 }
0x1082   : > { %v8348_v5 = vsel %vm2610_vm11, %v8344_v18, %v8279_v8  ;;  %v8578_v8 = vld [vmem:[%s16381_s21 + $0xd8] sm:$0xff] }
0x1083   : > { %v8308_v15 = vpop.permute.xlu0 %8307 }
0x1084   : > { %v8355_v12 = vsel %vm2478_vm7, %v8257_v17, %v8308_v15  ;;  %v8562_v15 = vld [vmem:[%s16381_s21 + $0x58] sm:$0xff] }
0x1085   : > { %v8292_v40 = vpop.permute.xlu1 %8291 }
0x1086   : > { %v8352_v25 = vsel %vm6638_vm10, %v8348_v5, %v8292_v40  ;;  %v8559_v5 = vld [vmem:[%s16381_s21 + $0x40] sm:$0xff] }
0x1087   : > { %v8320_v38 = vpop.permute.xlu0 %8319  ;;  %v9270_v17 = vcombine.low %v8351_v7, %v8352_v25 }
0x1088   : > { %v8359_v61 = vsel %vm2610_vm11, %v8355_v12, %v8320_v38 }
0x1089   : > { %v8314_v47 = vpop.permute.xlu1 %8313 }
0x108a   : > { %v8358_v19 = vsel %vm2478_vm7, %v8301_v50, %v8314_v47  ;;  %v8565_v50 = vld [vmem:[%s16381_s21 + $0x70] sm:$0xff] }
0x108b   : > { %v8332_v32 = vpop.permute.xlu0 %8331  ;;  %v8362_v44 = vsel %vm2610_vm11, %v8358_v19, %v10187_v57 }
0x108c   : > { %v8363_v6 = vsel %vm6638_vm10, %v8359_v61, %v8332_v32  ;;  %v8366_v37 = vsel %vm6638_vm10, %v8362_v44, %v16060_v62  ;;  %v8577_v32 = vld [vmem:[%s16381_s21 + $0xd0] sm:$0xff] }
0x108d   : > { %v8336_v22 = vpop.permute.xlu1 %8335 }
0x108e   : > { %v8365_v52 = vsel %vm6638_vm10, %v8361_v28, %v8336_v22  ;;  %v8561_v22 = vld [vmem:[%s16381_s21 + $0x50] sm:$0xff]  ;;  %v8575_v28 = vld [vmem:[%s16381_s21 + $0xc0] sm:$0xff] }
0x108f   : > { %v8265_v24 = vpop.permute.xlu0 %8264  ;;  %v9273_v58 = vcombine.low %v8365_v52, %v8366_v37  ;;  %v8573_v52 = vld [vmem:[%s16381_s21 + $0xb0] sm:$0xff] }
0x1090   : > { %v8345_v21 = vsel %vm2478_vm7, %v15948_v33, %v8265_v24  ;;  %v8585_v33 = vld [vmem:[%s16381_s21 + $0x110] sm:$0xff] }
0x1091   : > { %v8310_v4 = vpop.permute.xlu1 %8309 }
0x1092   : > { %v8356_v49 = vsel %vm2478_vm7, %v8258_v42, %v8310_v4  ;;  %v8581_v42 = vld [vmem:[%s16381_s21 + $0xf0] sm:$0xff] }
0x1093   : > { %v8360_v3 = vsel %vm2610_vm11, %v8356_v49, %v8322_v54  ;;  %v8296_v30 = vpop.permute.xlu0 %8295  ;;  %9490 = vmatprep.subr.mxu0 %v8581_v42  ;;  %v8564_v54 = vld [vmem:[%s16381_s21 + $0x68] sm:$0xff] }
0x1094   : > { %v8364_v41 = vsel %vm6638_vm10, %v8360_v3, %v8334_v63  ;;  %v8354_v56 = vsel %vm6638_vm10, %v8350_v14, %v8296_v30  ;;  %9491 = vmatpush3.msra.mxu0 %v8565_v50  ;;  %v8574_v3 = vld [vmem:[%s16381_s21 + $0xb8] sm:$0xff]  ;;  %v8572_v30 = vld [vmem:[%s16381_s21 + $0xa8] sm:$0xff] }
0x1095   : > { %v8281_v43 = vpop.permute.xlu1 %8280  ;;  %v9271_v20 = vcombine.low %v8363_v6, %v8364_v41  ;;  %9492 = vmatprep.subr.mxu0 %v8580_v10  ;;  %v8558_v6 = vld [vmem:[%s16381_s21 + $0x38] sm:$0xff]  ;;  %v8569_v10 = vld [vmem:[%s16381_s21 + $0x90] sm:$0xff] }
0x1096   : > { %v8349_v60 = vsel %vm2610_vm11, %v8345_v21, %v8281_v43  ;;  %9493 = vmatpush3.msra.mxu0 %v8564_v54  ;;  %v8557_v43 = vld [vmem:[%s16381_s21 + $0x30] sm:$0xff] }
0x1097   : > { %8463 = vmatprep.mubr.f32.mxu1 %v9271_v20  ;;  %9494 = vmatprep.subr.mxu0 %v8579_v26  ;;  %v8553_v54 = vld [vmem:[%s16381_s21 + $0x10] sm:$0xff] }
0x1098   : > { %8464 = vmatmul.mubr.f32.vlgmr.msra.gmra.mxu1 %v9270_v17  ;;  %9495 = vmatpush3.msra.mxu0 %v8563_v39 }
0x1099   : > { %v8294_v29 = vpop.permute.xlu1 %8293  ;;  %8468 = vmatprep.mubr.f32.mxu1 %v9273_v58  ;;  %9796 = vmatpush3.msra.mxu1 %v8586_v31 }
0x109a   : > { %v8353_v51 = vsel %vm6638_vm10, %v8349_v60, %v8294_v29  ;;  %9797 = vmatprep.subr.mxu1 %v8585_v33  ;;  %9496 = vmatprep.subr.mxu0 %v8578_v8  ;;  %v8571_v29 = vld [vmem:[%s16381_s21 + $0xa0] sm:$0xff] }
0x109b   : > { %v9272_v36 = vcombine.low %v8353_v51, %v8354_v56  ;;  %9798 = vmatpush3.msra.mxu1 %v8585_v33  ;;  %9497 = vmatpush3.msra.mxu0 %v8562_v15  ;;  %v8555_v56 = vld [vmem:[%s16381_s21 + $0x20] sm:$0xff] }
0x109c   : > { %9799 = vmatprep.subr.mxu1 %v8584_v45  ;;  %9498 = vmatprep.subr.mxu0 %v8577_v32 }
0x109d   : > { %8469 = vmatmul.mubr.f32.gmra.mxu1 %v9272_v36  ;;  %9499 = vmatpush3.msra.mxu0 %v8561_v22  ;;  %v8570_v36 = vld [vmem:[%s16381_s21 + $0x98] sm:$0xff] }
0x109e   : > { %9800 = vmatpush3.msra.mxu1 %v8584_v45  ;;  %9500 = vmatprep.subr.mxu0 %v8576_v35 }
0x109f   : > { %9801 = vmatprep.subr.mxu1 %v8583_v11  ;;  %9501 = vmatpush3.msra.mxu0 %v8560_v48 }
0x10a0   : > { %9802 = vmatpush3.msra.mxu1 %v8583_v11  ;;  %9502 = vmatprep.subr.mxu0 %v8575_v28  ;;  %v8554_v11 = vld [vmem:[%s16381_s21 + $0x18] sm:$0xff] }
0x10a1   : > { %9503 = vmatpush3.msra.mxu0 %v8559_v5 }
0x10a2   : > { %9504 = vmatprep.subr.mxu0 %v8574_v3 }
0x10a3   : > { %9505 = vmatpush3.msra.mxu0 %v8558_v6 }
0x10a4   : > { %9506 = vmatprep.subr.mxu0 %v8573_v52 }
0x10a5   : > { %9507 = vmatpush3.msra.mxu0 %v8557_v43 }
0x10a6   : > { %9508 = vmatprep.subr.mxu0 %v8572_v30 }
0x10a7   : > { %9509 = vmatpush3.msra.mxu0 %v8556_v53 }
0x10a8   : > { %9510 = vmatprep.subr.mxu0 %v8571_v29 }
0x10a9   : > { %9511 = vmatpush3.msra.mxu0 %v8555_v56 }
0x10aa   : > { %9512 = vmatprep.subr.mxu0 %v8570_v36 }
0x10ab   : > { %9513 = vmatpush3.msra.mxu0 %v8554_v11 }
0x10ac   : > { %9514 = vmatprep.subr.mxu0 %v8569_v10  ;;  %v9276_v10 = vld [vmem:[#allocation8] ss:$0 sm:$0xff] }
0x10ad   : > { %9515 = vmatpush3.msra.mxu0 %v8553_v54 }
0x10c8   : > { %v9794_v63 = vpop.f32.mrf.mxu0 }
0x10ca   : > { %v8540_v47 = vpop.f32.mrf.mxu0 }
0x1158   : > { %v9476_v23 = vpop.f32.mrf.mxu1 }
0x115a   : > { %v9477_v46 = vpop.f32.mrf.mxu1 }
0x115b   : > { %v9478_v13 = vadd.f32 %v9477_v46, %v9476_v23  ;;  %v8551_v46 = vld [vmem:[%s16381_s21] sm:$0xff] }
0x115d   : > { %v8466_v40 = vadd.f32 %v9478_v13, %v9269_v2  ;;  %v9479_v38 = vpop.f32.mrf.mxu1 }
0x115f   : > { %v8541_v55 = vadd.f32 %v8540_v47, %v8466_v40  ;;  %v9480_v19 = vpop.f32.mrf.mxu1 }
0x1160   : > { %v9481_v18 = vadd.f32 %v9480_v19, %v9479_v38 }
0x1161   : > { %v8549_v24 = vmax.f32 %v8541_v55, 0.0 }
0x1162   : > { %v8471_v4 = vadd.f32 %v9481_v18, %v9269_v2  ;;  %v8552_v2 = vld [vmem:[%s16381_s21 + $0x8] sm:$0xff] }
0x1163   : > { %v8590_v12 = vcombine.high %v8549_v24, %v8549_v24  ;;  %v8592_v49 = vrot.slane %v8549_v24, 7 }
0x1164   : > { %v8546_v25 = vadd.f32 %v9794_v63, %v8471_v4  ;;  %v8568_v63 = vld [vmem:[%s16381_s21 + $0x88] sm:$0xff] }
0x1165   : > { %v8593_v61 = vrot.slane %v8590_v12, 7  ;;  %v8600_v44 = vsel %vm968_vm0, 0.0, %v8592_v49  ;;  %9516 = vmatprep.subr.mxu0 %v8568_v63 }
0x1166   : > { %v8550_v41 = vmax.f32 %v8546_v25, 0.0  ;;  %v16172_v7 = vsel %vm8246_vm4, %v8600_v44, 0.0  ;;  %9517 = vmatpush3.msra.mxu0 %v8552_v2 }
0x1167   : > { %8636 = vrot.lane.b32.xlu1 %v16172_v7, %s16723_s3  ;;  %v8601_v20 = vsel %vm968_vm0, 0.0, %v8593_v61  ;;  %v8623_v21 = vrot.slane %v16172_v7, 2  ;;  %v8611_v0 = vrot.slane %v16172_v7, 1 }
0x1168   : > { %v8591_v17 = vcombine.high %v8550_v41, %v8550_v41  ;;  %v8594_v37 = vrot.slane %v8550_v41, 7  ;;  %v16181_v58 = vsel %vm8246_vm4, %v8601_v20, 0.0 }
0x1169   : > { %8666 = vrot.lane.b32.xlu0 %v16181_v58, %s16579_s28  ;;  %v8624_v33 = vrot.slane %v16181_v58, 2  ;;  %v8612_v26 = vrot.slane %v16181_v58, 1 }
0x116a   : > { %v8595_v14 = vrot.slane %v8591_v17, 7  ;;  %v8602_v60 = vsel %vm968_vm0, 0.0, %v8594_v37 }
0x116b   : > { %v16200_v51 = vsel %vm8246_vm4, %v8602_v60, 0.0  ;;  %8654 = vrot.lane.b32.xlu1 %v8623_v21, %s16718_s30 }
0x116c   : > { %v8603_v31 = vsel %vm968_vm0, 0.0, %v8595_v14  ;;  %v8625_v45 = vrot.slane %v16200_v51, 2  ;;  %v8613_v39 = vrot.slane %v16200_v51, 1  ;;  %vm16745_vm0 = vcmask 64512  }
0x116d   : > { %v16213_v9 = vsel %vm8246_vm4, %v8603_v31, 0.0  ;;  %8626 = vrot.lane.b32.xlu0 %v8623_v21, %s16579_s28  ;;  %vm16747_vm5 = vmmov %vm16745_vm0 }
0x116e   : > { %v8653_v42 = vrot.slane %v16213_v9, 2  ;;  %v8726_v50 = vcombine.low %v8624_v33, %v8625_v45  ;;  %v8648_v13 = vrot.slane %v16213_v9, 1 }
0x116f   : > { %8614 = vrot.lane.b32.xlu1 %v8611_v0, %s16718_s30 }
0x1170   : > { %v8729_v23 = vcombine.low %v8653_v42, %v15862_v34  ;;  %9803 = vmatprep.mubr.msk.f32.mxu1 %vm2478_vm7, %v8726_v50  ;;  %v8567_v34 = vld [vmem:[%s16381_s21 + $0x80] sm:$0xff] }
0x1171   : > { %8638 = vrot.lane.b32.xlu0 %v16181_v58, %s16723_s3  ;;  %9518 = vmatprep.subr.mxu0 %v8567_v34 }
0x1172   : > { %9804 = vmatmul.mubr.msk.f32.vlgmr.msra.gmra.mxu1 %vm2478_vm7, %v8729_v23  ;;  %9519 = vmatpush3.msra.mxu0 %v8551_v46 }
0x1173   : > { %8668 = vrot.lane.b32.xlu1 %v16200_v51, %s16579_s28 }
0x1175   : > { %8656 = vrot.lane.b32.xlu0 %v8624_v33, %s16718_s30 }
0x1177   : > { %8675 = vrot.lane.b32.xlu1 %v8612_v26, %s16723_s3 }
0x1179   : > { %8628 = vrot.lane.b32.xlu0 %v8624_v33, %s16579_s28 }
0x117b   : > { %8616 = vrot.lane.b32.xlu1 %v8612_v26, %s16718_s30 }
0x117d   : > { %8677 = vrot.lane.b32.xlu0 %v8613_v39, %s16723_s3 }
0x117f   : > { %8658 = vrot.lane.b32.xlu1 %v8625_v45, %s16718_s30 }
0x1181   : > { %8618 = vrot.lane.b32.xlu0 %v8613_v39, %s16718_s30 }
0x1183   : > { %8670 = vrot.lane.b32.xlu1 %v16213_v9, %s16579_s28 }
0x1185   : > { %8660 = vrot.lane.b32.xlu0 %v8653_v42, %s16718_s30 }
0x1187   : > { %8630 = vrot.lane.b32.xlu1 %v8625_v45, %s16579_s28 }
0x1189   : > { %8679 = vrot.lane.b32.xlu0 %v8648_v13, %s16723_s3 }
0x118b   : > { %8640 = vrot.lane.b32.xlu1 %v16200_v51, %s16723_s3 }
0x118d   : > { %8642 = vrot.lane.b32.xlu0 %v16213_v9, %s16723_s3  ;;  %v8891_v9 = vld [vmem:[%s16383_s23 + $0x8] sm:$0xff]  ;;  %s16746_s3 = sld [smem:[#allocation58_spill]] }
0x1193   : > { %s16316_s1 = scalar_lea.hbm %s16746_s3, %s9292_s29 }
0x11d9   : > { %v8637_v8 = vpop.permute.xlu1 %8636 }
0x11da   : > { %v8690_v3 = vsel %vm6638_vm10, %v16084_v1, %v8637_v8 }
0x11db   : > { %v8667_v15 = vpop.permute.xlu0 %8666 }
0x11dd   : > { %v8655_v40 = vpop.permute.xlu1 %8654 }
0x11de   : > { %v8694_v18 = vsel %vm2478_vm7, %v8611_v0, %v8655_v40  ;;  %v8890_v0 = vld [vmem:[%s16383_s23] sm:$0xff] }
0x11df   : > { %v8627_v38 = vpop.permute.xlu0 %8626  ;;  %v8698_v12 = vsel %vm2610_vm11, %v8694_v18, %v8667_v15 }
0x11e1   : > { %v8615_v47 = vpop.permute.xlu1 %8614 }
0x11e2   : > { %v8684_v19 = vsel %vm2478_vm7, %v16172_v7, %v8615_v47 }
0x11e3   : > { %v8639_v32 = vpop.permute.xlu0 %8638  ;;  %v8687_v24 = vsel %vm2610_vm11, %v8684_v19, %v8627_v38  ;;  %v9283_v38 = vld [vmem:[#allocation10] ss:$0 sm:$0xff] }
0x11e4   : > { %v8691_v5 = vsel %vm6638_vm10, %v8687_v24, %v8639_v32 }
0x11e5   : > { %v8669_v22 = vpop.permute.xlu1 %8668  ;;  %v9277_v41 = vcombine.low %v8690_v3, %v8691_v5 }
0x11e7   : > { %v8657_v55 = vpop.permute.xlu0 %8656 }
0x11e8   : > { %v8695_v4 = vsel %vm2478_vm7, %v8612_v26, %v8657_v55 }
0x11e9   : > { %v8676_v35 = vpop.permute.xlu1 %8675  ;;  %v8699_v25 = vsel %vm2610_vm11, %v8695_v4, %v8669_v22 }
0x11ea   : > { %v8702_v61 = vsel %vm6638_vm10, %v8698_v12, %v8676_v35 }
0x11eb   : > { %v8629_v48 = vpop.permute.xlu0 %8628 }
0x11ed   : > { %v8617_v28 = vpop.permute.xlu1 %8616 }
0x11ee   : > { %v8685_v14 = vsel %vm2478_vm7, %v16181_v58, %v8617_v28 }
0x11ef   : > { %v8678_v49 = vpop.permute.xlu0 %8677  ;;  %v8688_v31 = vsel %vm2610_vm11, %v8685_v14, %v8629_v48 }
0x11f0   : > { %v8703_v44 = vsel %vm6638_vm10, %v8699_v25, %v8678_v49 }
0x11f1   : > { %v9278_v6 = vcombine.low %v8702_v61, %v8703_v44  ;;  %v8659_v52 = vpop.permute.xlu1 %8658 }
0x11f2   : > { %v8696_v53 = vsel %vm2478_vm7, %v8613_v39, %v8659_v52 }
0x11f3   : > { %v8619_v7 = vpop.permute.xlu0 %8618  ;;  %8802 = vmatprep.mubr.f32.mxu0 %v9278_v6 }
0x11f4   : > { %8803 = vmatmul.mubr.f32.vlgmr.msra.gmra.mxu0 %v9277_v41  ;;  %v8686_v27 = vsel %vm2478_vm7, %v16200_v51, %v8619_v7  ;;  %v8892_v51 = vld [vmem:[%s16383_s23 + $0x10] sm:$0xff] }
0x11f5   : > { %v8671_v43 = vpop.permute.xlu1 %8670 }
0x11f6   : > { %v8700_v21 = vsel %vm2610_vm11, %v8696_v53, %v8671_v43 }
0x11f7   : > { %v8661_v20 = vpop.permute.xlu0 %8660 }
0x11f8   : > { %v8697_v17 = vsel %vm2478_vm7, %v8648_v13, %v8661_v20 }
0x11f9   : > { %v8701_v37 = vsel %vm2610_vm11, %v8697_v17, %v10187_v57  ;;  %v8631_v30 = vpop.permute.xlu1 %8630 }
0x11fa   : > { %v8705_v60 = vsel %vm6638_vm10, %v8701_v37, %v16060_v62  ;;  %v8689_v57 = vsel %vm2610_vm11, %v8686_v27, %v8631_v30  ;;  %v8893_v62 = vld [vmem:[%s16383_s23 + $0x18] sm:$0xff] }
0x11fb   : > { %v8680_v1 = vpop.permute.xlu0 %8679  ;;  %9806 = vmatprep.subr.mxu1 %v8893_v62 }
0x11fc   : > { %v8704_v29 = vsel %vm6638_vm10, %v8700_v21, %v8680_v1  ;;  %9807 = vmatpush3.msra.mxu1 %v8893_v62 }
0x11fd   : > { %v9280_v56 = vcombine.low %v8704_v29, %v8705_v60  ;;  %v8641_v36 = vpop.permute.xlu1 %8640  ;;  %9808 = vmatprep.subr.mxu1 %v8892_v51 }
0x11fe   : > { %v8692_v45 = vsel %vm6638_vm10, %v8688_v31, %v8641_v36  ;;  %9809 = vmatpush3.msra.mxu1 %v8892_v51 }
0x11ff   : > { %v8643_v33 = vpop.permute.xlu0 %8642  ;;  %8807 = vmatprep.mubr.f32.mxu0 %v9280_v56  ;;  %9810 = vmatprep.subr.mxu1 %v8891_v9 }
0x1200   : > { %v8693_v58 = vsel %vm6638_vm10, %v8689_v57, %v8643_v33  ;;  %9811 = vmatpush3.msra.mxu1 %v8891_v9 }
0x1201   : > { %v9279_v11 = vcombine.low %v8692_v45, %v8693_v58  ;;  %9812 = vmatprep.subr.mxu1 %v8890_v0 }
0x1202   : > { %9813 = vmatpush3.msra.mxu1 %v8890_v0 }
0x1203   : > { %8808 = vmatmul.mubr.f32.gmra.mxu0 %v9279_v11 }
0x1232   : > { %v9805_v50 = vpop.f32.mrf.mxu1 }
0x1234   : > { %v8879_v2 = vpop.f32.mrf.mxu1 }
0x12b4   : > { %v9520_v42 = vpop.f32.mrf.mxu0 }
0x12b6   : > { %v9521_v54 = vpop.f32.mrf.mxu0 }
0x12b7   : > { %v9522_v23 = vadd.f32 %v9521_v54, %v9520_v42 }
0x12b9   : > { %v8805_v63 = vadd.f32 %v9522_v23, %v9276_v10 }
0x12bb   : > { %v8880_v34 = vadd.f32 %v8879_v2, %v8805_v63 }
0x12bd   : > { %v8888_v46 = vadd.f32 %v8880_v34, %v15904_v16 }
0x12bf   : > { %9814 = vmatprep.mubr.msk.f32.mxu1 %vm2478_vm7, %v8888_v46 }
0x12c3   : > { %v9523_v26 = vpop.f32.mrf.mxu0 }
0x12c5   : > { %v9524_v39 = vpop.f32.mrf.mxu0 }
0x12c6   : > { %v9525_v13 = vadd.f32 %v9524_v39, %v9523_v26 }
0x12c8   : > { %v8810_v8 = vadd.f32 %v9525_v13, %v9276_v10 }
0x12ca   : > { %v8885_v15 = vadd.f32 %v9805_v50, %v8810_v8 }
0x12cc   : > { %v8889_v40 = vadd.f32 %v8885_v15, %v15891_v59 }
0x12ce   : > { %9815 = vmatmul.mubr.msk.f32.vlgmr.msra.gmra.mxu1 %vm2478_vm7, %v8889_v40 }
0x138e   : > { %v9816_v47 = vpop.f32.mrf.mxu1 }
0x138f   : > { %v8979_v16 = vadd.f32 %v9816_v47, %v9283_v38 }
0x1390   : > { %v8973_v32 = vpop.f32.mrf.mxu1 }
0x1391   : > { %8983 = vst.msk [vmem:[%s824_s4 + $0x8] sm:$0xff] %vm16745_vm0, %v8979_v16  ;;  %v8974_v59 = vadd.f32 %v9283_v38, %v8973_v32 }
0x1393   : > { %8982 = vst.msk [vmem:[%s824_s4] sm:$0xff] %vm16747_vm5, %v8974_v59 }
0x1394   : > { %10343 = shalt.err (!%p10340_p5)
}
0x1395   : > { %s10344_s0 = scalar_lea.hbm %s16316_s1, 256  ;;  %s10348_s4 = scalar_lea.hbm %s16746_s3, 512 }
0x1396   : > { %p10345_p13 = scmp.ne.s32.totalorder %s16316_s1, %s10344_s0  ;;  %p10349_p2 = scmp.lt.s32.totalorder %s16316_s1, %s16746_s3 }
0x1397   : > { %p10350_p12 = scmp.lt.s32.totalorder %s10348_s4, %s10344_s0 }
0x1398   : > { %p10346_p10 = pnand %p10345_p13, %p16748_p8 }
0x1399   : > { %p10351_p4 = por %p10350_p12, %p10349_p2 }
0x139a   : > { %p10347_p3 = pneg %p10346_p10 }
0x139c   : > { %p10352_p7 = pnand %p10351_p4, %p10347_p3 }
0x139e   : > { %10355 = shalt.err (!%p10352_p7)
}
0x139f   : > { %s10425_s30 = smov 128  }
0x13a0   : > { %9837 = dma.vmem_to_hbm [thread:$0]  (%p16748_p8), %s16310_s12, 256, %s16316_s1, %s16319_s6, %s10425_s30, %s10425_s30, %s16590_s26  }
0x13a1 PF: > { %s16749_s7 = sld [smem:[#allocation19_spill]] }
0x13a2   : > { %s16750_s5 = sld [smem:[#allocation16_spill]] }
0x13a3   : > { %s16751_s11 = sld [smem:[#allocation23_spill]] }
0x13a7   : > { %p9869_p9 = scmp.ge.s32.totalorder %s16749_s7, 2 }
0x13a8   : > { %s9013_s8 = sand.u32 1, %s16750_s5  }
0x13a9   : > { %p16752_p11 = scmp.ne.s32.totalorder %s16751_s11, 0  ;;  %s9014_s0 = scalar_lea.sflag [#allocation4], %s9013_s8 }
0x13ab   : > { %p9856_p6 = pnand %p9869_p9, %p16752_p11 }
0x13ad   : > { %p9857_p0 = pneg %p9856_p6 }
0x13af   : > { %10385 = dma.done.wait (%p9857_p0), %s9014_s0, 256  }
0x13b0   : > { %10387 = vsyncadd (%p9857_p0), %s9014_s0, 4294967040  ;;  %s16753_s30 = sld [smem:[#allocation20_spill]] }
0x13b1   : > { %s16754_s29 = sld [smem:[#allocation17_spill]] }
0x13b2   : > { %s16755_s2 = sld [smem:[#allocation18_spill]] }
0x13b3   : > { %s16756_s6 = sld [smem:[#allocation21_spill]] }
0x13b6   : > { %p38_p1 = scmp.ge.s32.totalorder %s16753_s30, 4  }
0x13b8   :  { %40 = sbr.rel (!%p38_p1) target bundleno = 21 (0x15), region = 176 }
0x13bd   :  { %9019 = vsyncpa [#allocation3], 1 }
0x13be   :  { %9021 = vsyncpa [#allocation3 + $0x1], 1 }
0x13bf   :  { %9022 = vsyncpa [#allocation6], 1 }
0x13c0   :  { %9023 = vsyncpa [#allocation9], 1 }
0x13c1   :  { %9024 = vsyncpa [#allocation4], 1 }
0x13c2   :  { %9026 = vsyncpa [#allocation4 + $0x1], 1 }

</bundles_post_ra>
